<compile_context>
chip_gen: v7x
topology: tpu7x:2x2x1
jax: 0.10.0
libtpu: 0.0.40
codegen_flags: <defaults>
</compile_context>

<pallas_src>
import functools
import numpy as np
import jax
import jax.numpy as jnp
from jax import lax
from jax.experimental import pallas as pl
from jax.experimental.pallas import tpu as pltpu

KH = KW = 5
PAD = 1
BN_EPS = 1e-5


def _round_up(v, m):
    return ((v + m - 1) // m) * m


def fused_cnn_kernel(x_ref, w2d_ref, chan_ref, mask_ref, we_ref, b1_ref, w2_ref, b2_ref,
                     out_ref, patch_ref, act_ref, ybuf_ref, *, Hp, Wp, Ho, Wo):
    # x_ref:    [N, Cin, x_lanes]   zero-padded image, spatial flattened (row-major), lane-padded
    # w2d_ref:  [Cout, KH*KW*Cin]   conv weight, columns ordered (kh, kw, ci)
    # chan_ref: [Cout, 3]           packed (conv_bias, bn_gamma, bn_beta)
    # mask_ref: [1, Hp*Wp]          1.0 at valid conv-output positions (oh<Ho, ow<Wo)
    # we_ref:   [Cout, Hp*Wp, hidden] bf16 zero-expanded fc1 weight (pool-select + flatten folded in)
    # b1_ref:   [1, hidden], w2_ref: [hidden, num_classes], b2_ref: [1, num_classes]
    # out_ref:  [N, num_classes]
    # patch_ref:[KH*KW*Cin, Hp*Wp]  im2col scratch
    # act_ref:  [N*Cout, Hp*Wp]     relu(conv) acts, later reused for pooled maxes
    # ybuf_ref: [Cout, >=Hp*Wp+Wp+1] shifted-slice pooling buffer (tail zeroed)
    N, Cin, _ = x_ref.shape
    Cout = w2d_ref.shape[0]
    hidden = b1_ref.shape[1]
    P = Hp * Wp

    w2d = w2d_ref[...]                  # [Cout, 25*Cin]
    bias = chan_ref[:, 0:1]             # [Cout, 1]
    gamma = chan_ref[:, 1:2]
    beta = chan_ref[:, 2:3]
    mask = mask_ref[...]                # [1, P]

    # ---- pass 1: conv (im2col -> MXU matmul) + bias + ReLU, one-pass BN stats ----
    s1 = jnp.zeros((Cout, 1), jnp.float32)
    s2 = jnp.zeros((Cout, 1), jnp.float32)
    for n in range(N):
        for kh in range(KH):
            for kw in range(KW):
                k = kh * KW + kw
                patch_ref[pl.ds(k * Cin, Cin), :] = x_ref[n, :, pl.ds(kh * Wp + kw, P)]
        conv = jnp.dot(w2d, patch_ref[...], preferred_element_type=jnp.float32)  # [Cout, P]
        a = jnp.maximum(conv + bias, 0.0)
        am = a * mask
        s1 = s1 + jnp.sum(am, axis=1, keepdims=True)
        s2 = s2 + jnp.sum(am * a, axis=1, keepdims=True)      # sum of a^2 over valid positions
        act_ref[pl.ds(n * Cout, Cout), :] = a

    inv_cnt = 1.0 / float(N * Ho * Wo)
    mean = s1 * inv_cnt
    var = s2 * inv_cnt - mean * mean                          # biased batch variance
    scale = gamma * lax.rsqrt(var + BN_EPS)                   # [Cout, 1]  (rsqrt -> EUP)
    shift = beta - mean * scale

    # ---- pass 2: BN affine (single FMA) + 2x2/2 max pool via shifted-slice maxes ----
    ybuf_ref[...] = jnp.zeros_like(ybuf_ref)                  # keep out-of-range lanes finite
    for n in range(N):
        y = act_ref[pl.ds(n * Cout, Cout), :] * scale + shift  # [Cout, P]
        ybuf_ref[:, pl.ds(0, P)] = y
        v01 = ybuf_ref[:, pl.ds(1, P)]          # (h,   w+1)
        v10 = ybuf_ref[:, pl.ds(Wp, P)]         # (h+1, w  )
        v11 = ybuf_ref[:, pl.ds(Wp + 1, P)]     # (h+1, w+1)
        # pooled value sits at flat position q = (2*ph)*Wp + 2*pw; other positions are junk
        # (finite) and hit zero rows of the expanded fc1 weight below.
        act_ref[pl.ds(n * Cout, Cout), :] = jnp.maximum(jnp.maximum(y, v01),
                                                        jnp.maximum(v10, v11))

    # ---- fc1 (pool-select + flatten folded into zero-expanded bf16 weights) + fc2 ----
    h = b1_ref[...] + jnp.zeros((N, hidden), jnp.float32)      # [N, hidden]
    for co in range(Cout):
        rows = jnp.concatenate(
            [act_ref[pl.ds(n * Cout + co, 1), :] for n in range(N)], axis=0)   # [N, P]
        h = h + jnp.dot(rows.astype(jnp.bfloat16), we_ref[co],
                        preferred_element_type=jnp.float32)
    out_ref[...] = jnp.dot(h, w2_ref[...], preferred_element_type=jnp.float32) + b2_ref[...]


def prepare_params(params, in_h, in_w):
    """One-time (outside the jitted forward) conversion of PyTorch-layout params to kernel layout."""
    conv_w, conv_b = params["conv_w"], params["conv_b"]
    gamma, beta = params["bn_gamma"], params["bn_beta"]
    fc1_w, fc1_b = params["fc1_w"], params["fc1_b"]
    fc2_w, fc2_b = params["fc2_w"], params["fc2_b"]

    Cout, Cin, _, _ = conv_w.shape
    hidden = fc1_w.shape[0]
    num_classes = fc2_w.shape[0]
    Hp, Wp = in_h + 2 * PAD, in_w + 2 * PAD
    Ho, Wo = Hp - KH + 1, Wp - KW + 1
    assert Ho % 2 == 0 and Wo % 2 == 0
    Ph, Pw = Ho // 2, Wo // 2
    assert fc1_w.shape[1] == Cout * Ph * Pw, (fc1_w.shape, Cout, Ph, Pw)

    # conv weight for the im2col matmul: columns ordered (kh, kw, ci)
    w2d = jnp.transpose(conv_w, (0, 2, 3, 1)).reshape(Cout, KH * KW * Cin).astype(jnp.float32)
    # packed per-channel params
    chan = jnp.stack([conv_b, gamma, beta], axis=1).astype(jnp.float32)          # [Cout, 3]
    # validity mask over the flat conv domain
    mask = ((jnp.arange(Hp) < Ho)[:, None] & (jnp.arange(Wp) < Wo)[None, :]
            ).astype(jnp.float32).reshape(1, Hp * Wp)

    # fc1 weight: permute from PyTorch (C, PH, PW) flatten order and zero-expand so that the
    # contraction runs over the flat conv domain with nonzeros only at q = (2*ph)*Wp + 2*pw.
    w1r = fc1_w.reshape(hidden, Cout, Ph, Pw).transpose(1, 2, 3, 0)              # [Cout,Ph,Pw,hid]
    we = jnp.zeros((Cout, Hp, Wp, hidden), jnp.float32)
    we = we.at[:, 0:2 * Ph:2, 0:2 * Pw:2, :].set(w1r.astype(jnp.float32))
    we = we.reshape(Cout, Hp * Wp, hidden).astype(jnp.bfloat16)                  # bf16 MXU operand

    return {
        "w2d": w2d, "chan": chan, "mask": mask, "we": we,
        "b1": fc1_b.reshape(1, hidden).astype(jnp.float32),
        "w2t": fc2_w.T.astype(jnp.float32),
        "b2": fc2_b.reshape(1, num_classes).astype(jnp.float32),
    }


@jax.jit
def cnn_forward(x_nchw, prepped):
    N, Cin, H, W = x_nchw.shape
    Hp, Wp = H + 2 * PAD, W + 2 * PAD
    Ho, Wo = Hp - KH + 1, Wp - KW + 1
    P = Hp * Wp
    Cout = prepped["w2d"].shape[0]
    num_classes = prepped["b2"].shape[1]

    max_shift = (KH - 1) * Wp + (KW - 1)
    x_lanes = _round_up(P + max_shift, 128)
    ybuf_lanes = _round_up(P + Wp + 1, 128)

    # glue: pad spatially, flatten spatial row-major, pad lanes with zeros
    xp = jnp.pad(x_nchw.astype(jnp.float32), ((0, 0), (0, 0), (PAD, PAD), (PAD, PAD)))
    xf = jnp.pad(xp.reshape(N, Cin, P), ((0, 0), (0, 0), (0, x_lanes - P)))

    kernel = functools.partial(fused_cnn_kernel, Hp=Hp, Wp=Wp, Ho=Ho, Wo=Wo)
    vspec = pl.BlockSpec(memory_space=pltpu.MemorySpace.VMEM)

    out = pl.pallas_call(
        kernel,
        out_shape=jax.ShapeDtypeStruct((N, num_classes), jnp.float32),
        in_specs=[vspec] * 8,
        out_specs=vspec,
        scratch_shapes=[
            pltpu.VMEM((KH * KW * Cin, P), jnp.float32),   # im2col patches
            pltpu.VMEM((N * Cout, P), jnp.float32),        # relu-conv acts / pooled maxes
            pltpu.VMEM((Cout, ybuf_lanes), jnp.float32),   # shifted-slice pooling buffer
        ],
    )(xf, prepped["w2d"], prepped["chan"], prepped["mask"], prepped["we"],
      prepped["b1"], prepped["w2t"], prepped["b2"])
    return out


def cnn_reference(x_nchw, params):
    # Pure-JAX reference mirroring the PyTorch forward (training-mode BatchNorm).
    conv_out = lax.conv_general_dilated(
        x_nchw, params["conv_w"], window_strides=(1, 1),
        padding=((PAD, PAD), (PAD, PAD)),
        dimension_numbers=("NCHW", "OIHW", "NCHW"),
        precision=lax.Precision.HIGHEST)
    conv_out = conv_out + params["conv_b"].reshape(1, -1, 1, 1)
    y = jnp.maximum(conv_out, 0.0)
    mean = jnp.mean(y, axis=(0, 2, 3), keepdims=True)
    var = jnp.mean((y - mean) ** 2, axis=(0, 2, 3), keepdims=True)
    y = (y - mean) / jnp.sqrt(var + BN_EPS)
    y = y * params["bn_gamma"].reshape(1, -1, 1, 1) + params["bn_beta"].reshape(1, -1, 1, 1)
    y = lax.reduce_window(y, -jnp.inf, lax.max, (1, 1, 2, 2), (1, 1, 2, 2), "VALID")
    flat = y.reshape(y.shape[0], -1)
    h = jnp.dot(flat, params["fc1_w"].T, precision=lax.Precision.HIGHEST) + params["fc1_b"]
    return jnp.dot(h, params["fc2_w"].T, precision=lax.Precision.HIGHEST) + params["fc2_b"]


if __name__ == "__main__":
    # fc1 expects 3380 = 20*13*13 features => spatial input must be 28x28 (MNIST-like).
    N, Cin, H, W = 2, 1, 28, 28
    Cout, hidden, num_classes = 20, 64, 10
    Php = (H + 2 * PAD - KH + 1) // 2

    key = jax.random.PRNGKey(0)
    ks = jax.random.split(key, 8)
    params = {
        "conv_w": jax.random.normal(ks[0], (Cout, Cin, KH, KW), jnp.float32) * 0.1,
        "conv_b": jax.random.normal(ks[1], (Cout,), jnp.float32) * 0.1,
        "bn_gamma": jnp.ones((Cout,), jnp.float32),   # PyTorch BatchNorm2d default init
        "bn_beta": jnp.zeros((Cout,), jnp.float32),
        "fc1_w": jax.random.normal(ks[2], (hidden, Cout * Php * Php), jnp.float32) * 0.02,
        "fc1_b": jax.random.normal(ks[3], (hidden,), jnp.float32) * 0.02,
        "fc2_w": jax.random.normal(ks[4], (num_classes, hidden), jnp.float32) * 0.1,
        "fc2_b": jax.random.normal(ks[5], (num_classes,), jnp.float32) * 0.1,
    }
    x = jax.random.normal(ks[6], (N, Cin, H, W), jnp.float32)

    prepped = prepare_params(params, H, W)      # one-time layout prep, outside the jitted forward
    out = jax.block_until_ready(cnn_forward(x, prepped))
    ref = jax.block_until_ready(cnn_reference(x, params))

    assert out.shape == (N, num_classes), out.shape
    np.testing.assert_allclose(np.asarray(out), np.asarray(ref), rtol=2e-2, atol=2e-2)
    print("KERNEL_OK")
</pallas_src>

<mosaic_0001>
module attributes {stable_mosaic.version = 11 : i64} {
  func.func @fused_cnn_kernel(%arg0: memref<2x1x1024xf32, #tpu.memory_space<vmem>>, %arg1: memref<20x25xf32, #tpu.memory_space<vmem>>, %arg2: memref<20x3xf32, #tpu.memory_space<vmem>>, %arg3: memref<1x900xf32, #tpu.memory_space<vmem>>, %arg4: memref<20x900x64xbf16, #tpu.memory_space<vmem>>, %arg5: memref<1x64xf32, #tpu.memory_space<vmem>>, %arg6: memref<64x10xf32, #tpu.memory_space<vmem>>, %arg7: memref<1x10xf32, #tpu.memory_space<vmem>>, %arg8: memref<2x10xf32, #tpu.memory_space<vmem>>, %arg9: memref<25x900xf32, #tpu.memory_space<vmem>>, %arg10: memref<40x900xf32, #tpu.memory_space<vmem>>, %arg11: memref<20x1024xf32, #tpu.memory_space<vmem>>) attributes {dimension_semantics = [], scalar_prefetch = 0 : i64, scratch_operands = 3 : i64, tpu.core_type = #tpu.core_type<tc>} {
    %c0 = arith.constant 0 : index
    %c0_0 = arith.constant 0 : index
    %0 = vector.load %arg1[%c0, %c0_0] : memref<20x25xf32, #tpu.memory_space<vmem>>, vector<20x25xf32>
    %c0_1 = arith.constant 0 : index
    %c0_2 = arith.constant 0 : index
    %1 = vector.load %arg2[%c0_1, %c0_2] : memref<20x3xf32, #tpu.memory_space<vmem>>, vector<20x1xf32>
    %c0_3 = arith.constant 0 : index
    %c1 = arith.constant 1 : index
    %2 = vector.load %arg2[%c0_3, %c1] : memref<20x3xf32, #tpu.memory_space<vmem>>, vector<20x1xf32>
    %c0_4 = arith.constant 0 : index
    %c2 = arith.constant 2 : index
    %3 = vector.load %arg2[%c0_4, %c2] : memref<20x3xf32, #tpu.memory_space<vmem>>, vector<20x1xf32>
    %c0_5 = arith.constant 0 : index
    %c0_6 = arith.constant 0 : index
    %4 = vector.load %arg3[%c0_5, %c0_6] : memref<1x900xf32, #tpu.memory_space<vmem>>, vector<1x900xf32>
    %cst = arith.constant 0.000000e+00 : f32
    %5 = vector.broadcast %cst : f32 to vector<20x1xf32>
    %cst_7 = arith.constant 0.000000e+00 : f32
    %6 = vector.broadcast %cst_7 : f32 to vector<20x1xf32>
    %c0_8 = arith.constant 0 : index
    %c0_9 = arith.constant 0 : index
    %c0_10 = arith.constant 0 : index
    %7 = vector.load %arg0[%c0_8, %c0_9, %c0_10] : memref<2x1x1024xf32, #tpu.memory_space<vmem>>, vector<1x1x900xf32>
    %8 = vector.shape_cast %7 : vector<1x1x900xf32> to vector<1x900xf32>
    %c0_11 = arith.constant 0 : index
    %c0_12 = arith.constant 0 : index
    %9 = vector.load %arg9[%c0_11, %c0_12] : memref<25x900xf32, #tpu.memory_space<vmem>>, vector<1x900xf32>
    tpu.vector_store %arg9[%c0_11, %c0_12], %8 {strides = array<i32>} : memref<25x900xf32, #tpu.memory_space<vmem>>, vector<1x900xf32>,
    %c0_13 = arith.constant 0 : index
    %c0_14 = arith.constant 0 : index
    %c1_15 = arith.constant 1 : index
    %10 = vector.load %arg0[%c0_13, %c0_14, %c1_15] : memref<2x1x1024xf32, #tpu.memory_space<vmem>>, vector<1x1x900xf32>
    %11 = vector.shape_cast %10 : vector<1x1x900xf32> to vector<1x900xf32>
    %c1_16 = arith.constant 1 : index
    %c0_17 = arith.constant 0 : index
    %12 = vector.load %arg9[%c1_16, %c0_17] : memref<25x900xf32, #tpu.memory_space<vmem>>, vector<1x900xf32>
    tpu.vector_store %arg9[%c1_16, %c0_17], %11 {strides = array<i32>} : memref<25x900xf32, #tpu.memory_space<vmem>>, vector<1x900xf32>,
    %c0_18 = arith.constant 0 : index
    %c0_19 = arith.constant 0 : index
    %c2_20 = arith.constant 2 : index
    %13 = vector.load %arg0[%c0_18, %c0_19, %c2_20] : memref<2x1x1024xf32, #tpu.memory_space<vmem>>, vector<1x1x900xf32>
    %14 = vector.shape_cast %13 : vector<1x1x900xf32> to vector<1x900xf32>
    %c2_21 = arith.constant 2 : index
    %c0_22 = arith.constant 0 : index
    %15 = vector.load %arg9[%c2_21, %c0_22] : memref<25x900xf32, #tpu.memory_space<vmem>>, vector<1x900xf32>
    tpu.vector_store %arg9[%c2_21, %c0_22], %14 {strides = array<i32>} : memref<25x900xf32, #tpu.memory_space<vmem>>, vector<1x900xf32>,
    %c0_23 = arith.constant 0 : index
    %c0_24 = arith.constant 0 : index
    %c3 = arith.constant 3 : index
    %16 = vector.load %arg0[%c0_23, %c0_24, %c3] : memref<2x1x1024xf32, #tpu.memory_space<vmem>>, vector<1x1x900xf32>
    %17 = vector.shape_cast %16 : vector<1x1x900xf32> to vector<1x900xf32>
    %c3_25 = arith.constant 3 : index
    %c0_26 = arith.constant 0 : index
    %18 = vector.load %arg9[%c3_25, %c0_26] : memref<25x900xf32, #tpu.memory_space<vmem>>, vector<1x900xf32>
    tpu.vector_store %arg9[%c3_25, %c0_26], %17 {strides = array<i32>} : memref<25x900xf32, #tpu.memory_space<vmem>>, vector<1x900xf32>,
    %c0_27 = arith.constant 0 : index
    %c0_28 = arith.constant 0 : index
    %c4 = arith.constant 4 : index
    %19 = vector.load %arg0[%c0_27, %c0_28, %c4] : memref<2x1x1024xf32, #tpu.memory_space<vmem>>, vector<1x1x900xf32>
    %20 = vector.shape_cast %19 : vector<1x1x900xf32> to vector<1x900xf32>
    %c4_29 = arith.constant 4 : index
    %c0_30 = arith.constant 0 : index
    %21 = vector.load %arg9[%c4_29, %c0_30] : memref<25x900xf32, #tpu.memory_space<vmem>>, vector<1x900xf32>
    tpu.vector_store %arg9[%c4_29, %c0_30], %20 {strides = array<i32>} : memref<25x900xf32, #tpu.memory_space<vmem>>, vector<1x900xf32>,
    %c0_31 = arith.constant 0 : index
    %c0_32 = arith.constant 0 : index
    %c30 = arith.constant 30 : index
    %22 = vector.load %arg0[%c0_31, %c0_32, %c30] : memref<2x1x1024xf32, #tpu.memory_space<vmem>>, vector<1x1x900xf32>
    %23 = vector.shape_cast %22 : vector<1x1x900xf32> to vector<1x900xf32>
    %c5 = arith.constant 5 : index
    %c0_33 = arith.constant 0 : index
    %24 = vector.load %arg9[%c5, %c0_33] : memref<25x900xf32, #tpu.memory_space<vmem>>, vector<1x900xf32>
    tpu.vector_store %arg9[%c5, %c0_33], %23 {strides = array<i32>} : memref<25x900xf32, #tpu.memory_space<vmem>>, vector<1x900xf32>,
    %c0_34 = arith.constant 0 : index
    %c0_35 = arith.constant 0 : index
    %c31 = arith.constant 31 : index
    %25 = vector.load %arg0[%c0_34, %c0_35, %c31] : memref<2x1x1024xf32, #tpu.memory_space<vmem>>, vector<1x1x900xf32>
    %26 = vector.shape_cast %25 : vector<1x1x900xf32> to vector<1x900xf32>
    %c6 = arith.constant 6 : index
    %c0_36 = arith.constant 0 : index
    %27 = vector.load %arg9[%c6, %c0_36] : memref<25x900xf32, #tpu.memory_space<vmem>>, vector<1x900xf32>
    tpu.vector_store %arg9[%c6, %c0_36], %26 {strides = array<i32>} : memref<25x900xf32, #tpu.memory_space<vmem>>, vector<1x900xf32>,
    %c0_37 = arith.constant 0 : index
    %c0_38 = arith.constant 0 : index
    %c32 = arith.constant 32 : index
    %28 = vector.load %arg0[%c0_37, %c0_38, %c32] : memref<2x1x1024xf32, #tpu.memory_space<vmem>>, vector<1x1x900xf32>
    %29 = vector.shape_cast %28 : vector<1x1x900xf32> to vector<1x900xf32>
    %c7 = arith.constant 7 : index
    %c0_39 = arith.constant 0 : index
    %30 = vector.load %arg9[%c7, %c0_39] : memref<25x900xf32, #tpu.memory_space<vmem>>, vector<1x900xf32>
    tpu.vector_store %arg9[%c7, %c0_39], %29 {strides = array<i32>} : memref<25x900xf32, #tpu.memory_space<vmem>>, vector<1x900xf32>,
    %c0_40 = arith.constant 0 : index
    %c0_41 = arith.constant 0 : index
    %c33 = arith.constant 33 : index
    %31 = vector.load %arg0[%c0_40, %c0_41, %c33] : memref<2x1x1024xf32, #tpu.memory_space<vmem>>, vector<1x1x900xf32>
    %32 = vector.shape_cast %31 : vector<1x1x900xf32> to vector<1x900xf32>
    %c8 = arith.constant 8 : index
    %c0_42 = arith.constant 0 : index
    %33 = vector.load %arg9[%c8, %c0_42] : memref<25x900xf32, #tpu.memory_space<vmem>>, vector<1x900xf32>
    tpu.vector_store %arg9[%c8, %c0_42], %32 {strides = array<i32>} : memref<25x900xf32, #tpu.memory_space<vmem>>, vector<1x900xf32>,
    %c0_43 = arith.constant 0 : index
    %c0_44 = arith.constant 0 : index
    %c34 = arith.constant 34 : index
    %34 = vector.load %arg0[%c0_43, %c0_44, %c34] : memref<2x1x1024xf32, #tpu.memory_space<vmem>>, vector<1x1x900xf32>
    %35 = vector.shape_cast %34 : vector<1x1x900xf32> to vector<1x900xf32>
    %c9 = arith.constant 9 : index
    %c0_45 = arith.constant 0 : index
    %36 = vector.load %arg9[%c9, %c0_45] : memref<25x900xf32, #tpu.memory_space<vmem>>, vector<1x900xf32>
    tpu.vector_store %arg9[%c9, %c0_45], %35 {strides = array<i32>} : memref<25x900xf32, #tpu.memory_space<vmem>>, vector<1x900xf32>,
    %c0_46 = arith.constant 0 : index
    %c0_47 = arith.constant 0 : index
    %c60 = arith.constant 60 : index
    %37 = vector.load %arg0[%c0_46, %c0_47, %c60] : memref<2x1x1024xf32, #tpu.memory_space<vmem>>, vector<1x1x900xf32>
    %38 = vector.shape_cast %37 : vector<1x1x900xf32> to vector<1x900xf32>
    %c10 = arith.constant 10 : index
    %c0_48 = arith.constant 0 : index
    %39 = vector.load %arg9[%c10, %c0_48] : memref<25x900xf32, #tpu.memory_space<vmem>>, vector<1x900xf32>
    tpu.vector_store %arg9[%c10, %c0_48], %38 {strides = array<i32>} : memref<25x900xf32, #tpu.memory_space<vmem>>, vector<1x900xf32>,
    %c0_49 = arith.constant 0 : index
    %c0_50 = arith.constant 0 : index
    %c61 = arith.constant 61 : index
    %40 = vector.load %arg0[%c0_49, %c0_50, %c61] : memref<2x1x1024xf32, #tpu.memory_space<vmem>>, vector<1x1x900xf32>
    %41 = vector.shape_cast %40 : vector<1x1x900xf32> to vector<1x900xf32>
    %c11 = arith.constant 11 : index
    %c0_51 = arith.constant 0 : index
    %42 = vector.load %arg9[%c11, %c0_51] : memref<25x900xf32, #tpu.memory_space<vmem>>, vector<1x900xf32>
    tpu.vector_store %arg9[%c11, %c0_51], %41 {strides = array<i32>} : memref<25x900xf32, #tpu.memory_space<vmem>>, vector<1x900xf32>,
    %c0_52 = arith.constant 0 : index
    %c0_53 = arith.constant 0 : index
    %c62 = arith.constant 62 : index
    %43 = vector.load %arg0[%c0_52, %c0_53, %c62] : memref<2x1x1024xf32, #tpu.memory_space<vmem>>, vector<1x1x900xf32>
    %44 = vector.shape_cast %43 : vector<1x1x900xf32> to vector<1x900xf32>
    %c12 = arith.constant 12 : index
    %c0_54 = arith.constant 0 : index
    %45 = vector.load %arg9[%c12, %c0_54] : memref<25x900xf32, #tpu.memory_space<vmem>>, vector<1x900xf32>
    tpu.vector_store %arg9[%c12, %c0_54], %44 {strides = array<i32>} : memref<25x900xf32, #tpu.memory_space<vmem>>, vector<1x900xf32>,
    %c0_55 = arith.constant 0 : index
    %c0_56 = arith.constant 0 : index
    %c63 = arith.constant 63 : index
    %46 = vector.load %arg0[%c0_55, %c0_56, %c63] : memref<2x1x1024xf32, #tpu.memory_space<vmem>>, vector<1x1x900xf32>
    %47 = vector.shape_cast %46 : vector<1x1x900xf32> to vector<1x900xf32>
    %c13 = arith.constant 13 : index
    %c0_57 = arith.constant 0 : index
    %48 = vector.load %arg9[%c13, %c0_57] : memref<25x900xf32, #tpu.memory_space<vmem>>, vector<1x900xf32>
    tpu.vector_store %arg9[%c13, %c0_57], %47 {strides = array<i32>} : memref<25x900xf32, #tpu.memory_space<vmem>>, vector<1x900xf32>,
    %c0_58 = arith.constant 0 : index
    %c0_59 = arith.constant 0 : index
    %c64 = arith.constant 64 : index
    %49 = vector.load %arg0[%c0_58, %c0_59, %c64] : memref<2x1x1024xf32, #tpu.memory_space<vmem>>, vector<1x1x900xf32>
    %50 = vector.shape_cast %49 : vector<1x1x900xf32> to vector<1x900xf32>
    %c14 = arith.constant 14 : index
    %c0_60 = arith.constant 0 : index
    %51 = vector.load %arg9[%c14, %c0_60] : memref<25x900xf32, #tpu.memory_space<vmem>>, vector<1x900xf32>
    tpu.vector_store %arg9[%c14, %c0_60], %50 {strides = array<i32>} : memref<25x900xf32, #tpu.memory_space<vmem>>, vector<1x900xf32>,
    %c0_61 = arith.constant 0 : index
    %c0_62 = arith.constant 0 : index
    %c90 = arith.constant 90 : index
    %52 = vector.load %arg0[%c0_61, %c0_62, %c90] : memref<2x1x1024xf32, #tpu.memory_space<vmem>>, vector<1x1x900xf32>
    %53 = vector.shape_cast %52 : vector<1x1x900xf32> to vector<1x900xf32>
    %c15 = arith.constant 15 : index
    %c0_63 = arith.constant 0 : index
    %54 = vector.load %arg9[%c15, %c0_63] : memref<25x900xf32, #tpu.memory_space<vmem>>, vector<1x900xf32>
    tpu.vector_store %arg9[%c15, %c0_63], %53 {strides = array<i32>} : memref<25x900xf32, #tpu.memory_space<vmem>>, vector<1x900xf32>,
    %c0_64 = arith.constant 0 : index
    %c0_65 = arith.constant 0 : index
    %c91 = arith.constant 91 : index
    %55 = vector.load %arg0[%c0_64, %c0_65, %c91] : memref<2x1x1024xf32, #tpu.memory_space<vmem>>, vector<1x1x900xf32>
    %56 = vector.shape_cast %55 : vector<1x1x900xf32> to vector<1x900xf32>
    %c16 = arith.constant 16 : index
    %c0_66 = arith.constant 0 : index
    %57 = vector.load %arg9[%c16, %c0_66] : memref<25x900xf32, #tpu.memory_space<vmem>>, vector<1x900xf32>
    tpu.vector_store %arg9[%c16, %c0_66], %56 {strides = array<i32>} : memref<25x900xf32, #tpu.memory_space<vmem>>, vector<1x900xf32>,
    %c0_67 = arith.constant 0 : index
    %c0_68 = arith.constant 0 : index
    %c92 = arith.constant 92 : index
    %58 = vector.load %arg0[%c0_67, %c0_68, %c92] : memref<2x1x1024xf32, #tpu.memory_space<vmem>>, vector<1x1x900xf32>
    %59 = vector.shape_cast %58 : vector<1x1x900xf32> to vector<1x900xf32>
    %c17 = arith.constant 17 : index
    %c0_69 = arith.constant 0 : index
    %60 = vector.load %arg9[%c17, %c0_69] : memref<25x900xf32, #tpu.memory_space<vmem>>, vector<1x900xf32>
    tpu.vector_store %arg9[%c17, %c0_69], %59 {strides = array<i32>} : memref<25x900xf32, #tpu.memory_space<vmem>>, vector<1x900xf32>,
    %c0_70 = arith.constant 0 : index
    %c0_71 = arith.constant 0 : index
    %c93 = arith.constant 93 : index
    %61 = vector.load %arg0[%c0_70, %c0_71, %c93] : memref<2x1x1024xf32, #tpu.memory_space<vmem>>, vector<1x1x900xf32>
    %62 = vector.shape_cast %61 : vector<1x1x900xf32> to vector<1x900xf32>
    %c18 = arith.constant 18 : index
    %c0_72 = arith.constant 0 : index
    %63 = vector.load %arg9[%c18, %c0_72] : memref<25x900xf32, #tpu.memory_space<vmem>>, vector<1x900xf32>
    tpu.vector_store %arg9[%c18, %c0_72], %62 {strides = array<i32>} : memref<25x900xf32, #tpu.memory_space<vmem>>, vector<1x900xf32>,
    %c0_73 = arith.constant 0 : index
    %c0_74 = arith.constant 0 : index
    %c94 = arith.constant 94 : index
    %64 = vector.load %arg0[%c0_73, %c0_74, %c94] : memref<2x1x1024xf32, #tpu.memory_space<vmem>>, vector<1x1x900xf32>
    %65 = vector.shape_cast %64 : vector<1x1x900xf32> to vector<1x900xf32>
    %c19 = arith.constant 19 : index
    %c0_75 = arith.constant 0 : index
    %66 = vector.load %arg9[%c19, %c0_75] : memref<25x900xf32, #tpu.memory_space<vmem>>, vector<1x900xf32>
    tpu.vector_store %arg9[%c19, %c0_75], %65 {strides = array<i32>} : memref<25x900xf32, #tpu.memory_space<vmem>>, vector<1x900xf32>,
    %c0_76 = arith.constant 0 : index
    %c0_77 = arith.constant 0 : index
    %c120 = arith.constant 120 : index
    %67 = vector.load %arg0[%c0_76, %c0_77, %c120] : memref<2x1x1024xf32, #tpu.memory_space<vmem>>, vector<1x1x900xf32>
    %68 = vector.shape_cast %67 : vector<1x1x900xf32> to vector<1x900xf32>
    %c20 = arith.constant 20 : index
    %c0_78 = arith.constant 0 : index
    %69 = vector.load %arg9[%c20, %c0_78] : memref<25x900xf32, #tpu.memory_space<vmem>>, vector<1x900xf32>
    tpu.vector_store %arg9[%c20, %c0_78], %68 {strides = array<i32>} : memref<25x900xf32, #tpu.memory_space<vmem>>, vector<1x900xf32>,
    %c0_79 = arith.constant 0 : index
    %c0_80 = arith.constant 0 : index
    %c121 = arith.constant 121 : index
    %70 = vector.load %arg0[%c0_79, %c0_80, %c121] : memref<2x1x1024xf32, #tpu.memory_space<vmem>>, vector<1x1x900xf32>
    %71 = vector.shape_cast %70 : vector<1x1x900xf32> to vector<1x900xf32>
    %c21 = arith.constant 21 : index
    %c0_81 = arith.constant 0 : index
    %72 = vector.load %arg9[%c21, %c0_81] : memref<25x900xf32, #tpu.memory_space<vmem>>, vector<1x900xf32>
    tpu.vector_store %arg9[%c21, %c0_81], %71 {strides = array<i32>} : memref<25x900xf32, #tpu.memory_space<vmem>>, vector<1x900xf32>,
    %c0_82 = arith.constant 0 : index
    %c0_83 = arith.constant 0 : index
    %c122 = arith.constant 122 : index
    %73 = vector.load %arg0[%c0_82, %c0_83, %c122] : memref<2x1x1024xf32, #tpu.memory_space<vmem>>, vector<1x1x900xf32>
    %74 = vector.shape_cast %73 : vector<1x1x900xf32> to vector<1x900xf32>
    %c22 = arith.constant 22 : index
    %c0_84 = arith.constant 0 : index
    %75 = vector.load %arg9[%c22, %c0_84] : memref<25x900xf32, #tpu.memory_space<vmem>>, vector<1x900xf32>
    tpu.vector_store %arg9[%c22, %c0_84], %74 {strides = array<i32>} : memref<25x900xf32, #tpu.memory_space<vmem>>, vector<1x900xf32>,
    %c0_85 = arith.constant 0 : index
    %c0_86 = arith.constant 0 : index
    %c123 = arith.constant 123 : index
    %76 = vector.load %arg0[%c0_85, %c0_86, %c123] : memref<2x1x1024xf32, #tpu.memory_space<vmem>>, vector<1x1x900xf32>
    %77 = vector.shape_cast %76 : vector<1x1x900xf32> to vector<1x900xf32>
    %c23 = arith.constant 23 : index
    %c0_87 = arith.constant 0 : index
    %78 = vector.load %arg9[%c23, %c0_87] : memref<25x900xf32, #tpu.memory_space<vmem>>, vector<1x900xf32>
    tpu.vector_store %arg9[%c23, %c0_87], %77 {strides = array<i32>} : memref<25x900xf32, #tpu.memory_space<vmem>>, vector<1x900xf32>,
    %c0_88 = arith.constant 0 : index
    %c0_89 = arith.constant 0 : index
    %c124 = arith.constant 124 : index
    %79 = vector.load %arg0[%c0_88, %c0_89, %c124] : memref<2x1x1024xf32, #tpu.memory_space<vmem>>, vector<1x1x900xf32>
    %80 = vector.shape_cast %79 : vector<1x1x900xf32> to vector<1x900xf32>
    %c24 = arith.constant 24 : index
    %c0_90 = arith.constant 0 : index
    %81 = vector.load %arg9[%c24, %c0_90] : memref<25x900xf32, #tpu.memory_space<vmem>>, vector<1x900xf32>
    tpu.vector_store %arg9[%c24, %c0_90], %80 {strides = array<i32>} : memref<25x900xf32, #tpu.memory_space<vmem>>, vector<1x900xf32>,
    %c0_91 = arith.constant 0 : index
    %c0_92 = arith.constant 0 : index
    %82 = vector.load %arg9[%c0_91, %c0_92] : memref<25x900xf32, #tpu.memory_space<vmem>>, vector<25x900xf32>
    %cst_93 = arith.constant dense<0.000000e+00> : vector<20x900xf32>
    %83 = tpu.matmul %0, %82, %cst_93 {dimension_numbers = #tpu.dot_dimension_numbers<[1], [0], [0], [1], [0, 0, 1, 1], [], []>} : vector<20x25xf32>, vector<25x900xf32>, vector<20x900xf32> -> vector<20x900xf32>
    %84 = vector.broadcast %1 : vector<20x1xf32> to vector<20x900xf32>
    %85 = arith.addf %83, %84 : vector<20x900xf32>
    %cst_94 = arith.constant 0.000000e+00 : f32
    %86 = vector.broadcast %cst_94 : f32 to vector<20x900xf32>
    %87 = arith.maximumf %85, %86 : vector<20x900xf32>
    %88 = vector.broadcast %4 : vector<1x900xf32> to vector<20x900xf32>
    %89 = arith.mulf %87, %88 : vector<20x900xf32>
    %cst_95 = arith.constant dense<0.000000e+00> : vector<20xf32>
    %90 = vector.multi_reduction <add>, %89, %cst_95 [1] : vector<20x900xf32> to vector<20xf32>
    %91 = vector.shape_cast %90 : vector<20xf32> to vector<20x1xf32>
    %92 = arith.addf %5, %91 : vector<20x1xf32>
    %93 = arith.mulf %89, %87 : vector<20x900xf32>
    %cst_96 = arith.constant dense<0.000000e+00> : vector<20xf32>
    %94 = vector.multi_reduction <add>, %93, %cst_96 [1] : vector<20x900xf32> to vector<20xf32>
    %95 = vector.shape_cast %94 : vector<20xf32> to vector<20x1xf32>
    %96 = arith.addf %6, %95 : vector<20x1xf32>
    %c0_97 = arith.constant 0 : index
    %c0_98 = arith.constant 0 : index
    %97 = vector.load %arg10[%c0_97, %c0_98] : memref<40x900xf32, #tpu.memory_space<vmem>>, vector<20x900xf32>
    tpu.vector_store %arg10[%c0_97, %c0_98], %87 {strides = array<i32>} : memref<40x900xf32, #tpu.memory_space<vmem>>, vector<20x900xf32>,
    %c1_99 = arith.constant 1 : index
    %c0_100 = arith.constant 0 : index
    %c0_101 = arith.constant 0 : index
    %98 = vector.load %arg0[%c1_99, %c0_100, %c0_101] : memref<2x1x1024xf32, #tpu.memory_space<vmem>>, vector<1x1x900xf32>
    %99 = vector.shape_cast %98 : vector<1x1x900xf32> to vector<1x900xf32>
    %c0_102 = arith.constant 0 : index
    %c0_103 = arith.constant 0 : index
    %100 = vector.load %arg9[%c0_102, %c0_103] : memref<25x900xf32, #tpu.memory_space<vmem>>, vector<1x900xf32>
    tpu.vector_store %arg9[%c0_102, %c0_103], %99 {strides = array<i32>} : memref<25x900xf32, #tpu.memory_space<vmem>>, vector<1x900xf32>,
    %c1_104 = arith.constant 1 : index
    %c0_105 = arith.constant 0 : index
    %c1_106 = arith.constant 1 : index
    %101 = vector.load %arg0[%c1_104, %c0_105, %c1_106] : memref<2x1x1024xf32, #tpu.memory_space<vmem>>, vector<1x1x900xf32>
    %102 = vector.shape_cast %101 : vector<1x1x900xf32> to vector<1x900xf32>
    %c1_107 = arith.constant 1 : index
    %c0_108 = arith.constant 0 : index
    %103 = vector.load %arg9[%c1_107, %c0_108] : memref<25x900xf32, #tpu.memory_space<vmem>>, vector<1x900xf32>
    tpu.vector_store %arg9[%c1_107, %c0_108], %102 {strides = array<i32>} : memref<25x900xf32, #tpu.memory_space<vmem>>, vector<1x900xf32>,
    %c1_109 = arith.constant 1 : index
    %c0_110 = arith.constant 0 : index
    %c2_111 = arith.constant 2 : index
    %104 = vector.load %arg0[%c1_109, %c0_110, %c2_111] : memref<2x1x1024xf32, #tpu.memory_space<vmem>>, vector<1x1x900xf32>
    %105 = vector.shape_cast %104 : vector<1x1x900xf32> to vector<1x900xf32>
    %c2_112 = arith.constant 2 : index
    %c0_113 = arith.constant 0 : index
    %106 = vector.load %arg9[%c2_112, %c0_113] : memref<25x900xf32, #tpu.memory_space<vmem>>, vector<1x900xf32>
    tpu.vector_store %arg9[%c2_112, %c0_113], %105 {strides = array<i32>} : memref<25x900xf32, #tpu.memory_space<vmem>>, vector<1x900xf32>,
    %c1_114 = arith.constant 1 : index
    %c0_115 = arith.constant 0 : index
    %c3_116 = arith.constant 3 : index
    %107 = vector.load %arg0[%c1_114, %c0_115, %c3_116] : memref<2x1x1024xf32, #tpu.memory_space<vmem>>, vector<1x1x900xf32>
    %108 = vector.shape_cast %107 : vector<1x1x900xf32> to vector<1x900xf32>
    %c3_117 = arith.constant 3 : index
    %c0_118 = arith.constant 0 : index
    %109 = vector.load %arg9[%c3_117, %c0_118] : memref<25x900xf32, #tpu.memory_space<vmem>>, vector<1x900xf32>
    tpu.vector_store %arg9[%c3_117, %c0_118], %108 {strides = array<i32>} : memref<25x900xf32, #tpu.memory_space<vmem>>, vector<1x900xf32>,
    %c1_119 = arith.constant 1 : index
    %c0_120 = arith.constant 0 : index
    %c4_121 = arith.constant 4 : index
    %110 = vector.load %arg0[%c1_119, %c0_120, %c4_121] : memref<2x1x1024xf32, #tpu.memory_space<vmem>>, vector<1x1x900xf32>
    %111 = vector.shape_cast %110 : vector<1x1x900xf32> to vector<1x900xf32>
    %c4_122 = arith.constant 4 : index
    %c0_123 = arith.constant 0 : index
    %112 = vector.load %arg9[%c4_122, %c0_123] : memref<25x900xf32, #tpu.memory_space<vmem>>, vector<1x900xf32>
    tpu.vector_store %arg9[%c4_122, %c0_123], %111 {strides = array<i32>} : memref<25x900xf32, #tpu.memory_space<vmem>>, vector<1x900xf32>,
    %c1_124 = arith.constant 1 : index
    %c0_125 = arith.constant 0 : index
    %c30_126 = arith.constant 30 : index
    %113 = vector.load %arg0[%c1_124, %c0_125, %c30_126] : memref<2x1x1024xf32, #tpu.memory_space<vmem>>, vector<1x1x900xf32>
    %114 = vector.shape_cast %113 : vector<1x1x900xf32> to vector<1x900xf32>
    %c5_127 = arith.constant 5 : index
    %c0_128 = arith.constant 0 : index
    %115 = vector.load %arg9[%c5_127, %c0_128] : memref<25x900xf32, #tpu.memory_space<vmem>>, vector<1x900xf32>
    tpu.vector_store %arg9[%c5_127, %c0_128], %114 {strides = array<i32>} : memref<25x900xf32, #tpu.memory_space<vmem>>, vector<1x900xf32>,
    %c1_129 = arith.constant 1 : index
    %c0_130 = arith.constant 0 : index
    %c31_131 = arith.constant 31 : index
    %116 = vector.load %arg0[%c1_129, %c0_130, %c31_131] : memref<2x1x1024xf32, #tpu.memory_space<vmem>>, vector<1x1x900xf32>
    %117 = vector.shape_cast %116 : vector<1x1x900xf32> to vector<1x900xf32>
    %c6_132 = arith.constant 6 : index
    %c0_133 = arith.constant 0 : index
    %118 = vector.load %arg9[%c6_132, %c0_133] : memref<25x900xf32, #tpu.memory_space<vmem>>, vector<1x900xf32>
    tpu.vector_store %arg9[%c6_132, %c0_133], %117 {strides = array<i32>} : memref<25x900xf32, #tpu.memory_space<vmem>>, vector<1x900xf32>,
    %c1_134 = arith.constant 1 : index
    %c0_135 = arith.constant 0 : index
    %c32_136 = arith.constant 32 : index
    %119 = vector.load %arg0[%c1_134, %c0_135, %c32_136] : memref<2x1x1024xf32, #tpu.memory_space<vmem>>, vector<1x1x900xf32>
    %120 = vector.shape_cast %119 : vector<1x1x900xf32> to vector<1x900xf32>
    %c7_137 = arith.constant 7 : index
    %c0_138 = arith.constant 0 : index
    %121 = vector.load %arg9[%c7_137, %c0_138] : memref<25x900xf32, #tpu.memory_space<vmem>>, vector<1x900xf32>
    tpu.vector_store %arg9[%c7_137, %c0_138], %120 {strides = array<i32>} : memref<25x900xf32, #tpu.memory_space<vmem>>, vector<1x900xf32>,
    %c1_139 = arith.constant 1 : index
    %c0_140 = arith.constant 0 : index
    %c33_141 = arith.constant 33 : index
    %122 = vector.load %arg0[%c1_139, %c0_140, %c33_141] : memref<2x1x1024xf32, #tpu.memory_space<vmem>>, vector<1x1x900xf32>
    %123 = vector.shape_cast %122 : vector<1x1x900xf32> to vector<1x900xf32>
    %c8_142 = arith.constant 8 : index
    %c0_143 = arith.constant 0 : index
    %124 = vector.load %arg9[%c8_142, %c0_143] : memref<25x900xf32, #tpu.memory_space<vmem>>, vector<1x900xf32>
    tpu.vector_store %arg9[%c8_142, %c0_143], %123 {strides = array<i32>} : memref<25x900xf32, #tpu.memory_space<vmem>>, vector<1x900xf32>,
    %c1_144 = arith.constant 1 : index
    %c0_145 = arith.constant 0 : index
    %c34_146 = arith.constant 34 : index
    %125 = vector.load %arg0[%c1_144, %c0_145, %c34_146] : memref<2x1x1024xf32, #tpu.memory_space<vmem>>, vector<1x1x900xf32>
    %126 = vector.shape_cast %125 : vector<1x1x900xf32> to vector<1x900xf32>
    %c9_147 = arith.constant 9 : index
    %c0_148 = arith.constant 0 : index
    %127 = vector.load %arg9[%c9_147, %c0_148] : memref<25x900xf32, #tpu.memory_space<vmem>>, vector<1x900xf32>
    tpu.vector_store %arg9[%c9_147, %c0_148], %126 {strides = array<i32>} : memref<25x900xf32, #tpu.memory_space<vmem>>, vector<1x900xf32>,
    %c1_149 = arith.constant 1 : index
    %c0_150 = arith.constant 0 : index
    %c60_151 = arith.constant 60 : index
    %128 = vector.load %arg0[%c1_149, %c0_150, %c60_151] : memref<2x1x1024xf32, #tpu.memory_space<vmem>>, vector<1x1x900xf32>
    %129 = vector.shape_cast %128 : vector<1x1x900xf32> to vector<1x900xf32>
    %c10_152 = arith.constant 10 : index
    %c0_153 = arith.constant 0 : index
    %130 = vector.load %arg9[%c10_152, %c0_153] : memref<25x900xf32, #tpu.memory_space<vmem>>, vector<1x900xf32>
    tpu.vector_store %arg9[%c10_152, %c0_153], %129 {strides = array<i32>} : memref<25x900xf32, #tpu.memory_space<vmem>>, vector<1x900xf32>,
    %c1_154 = arith.constant 1 : index
    %c0_155 = arith.constant 0 : index
    %c61_156 = arith.constant 61 : index
    %131 = vector.load %arg0[%c1_154, %c0_155, %c61_156] : memref<2x1x1024xf32, #tpu.memory_space<vmem>>, vector<1x1x900xf32>
    %132 = vector.shape_cast %131 : vector<1x1x900xf32> to vector<1x900xf32>
    %c11_157 = arith.constant 11 : index
    %c0_158 = arith.constant 0 : index
    %133 = vector.load %arg9[%c11_157, %c0_158] : memref<25x900xf32, #tpu.memory_space<vmem>>, vector<1x900xf32>
    tpu.vector_store %arg9[%c11_157, %c0_158], %132 {strides = array<i32>} : memref<25x900xf32, #tpu.memory_space<vmem>>, vector<1x900xf32>,
    %c1_159 = arith.constant 1 : index
    %c0_160 = arith.constant 0 : index
    %c62_161 = arith.constant 62 : index
    %134 = vector.load %arg0[%c1_159, %c0_160, %c62_161] : memref<2x1x1024xf32, #tpu.memory_space<vmem>>, vector<1x1x900xf32>
    %135 = vector.shape_cast %134 : vector<1x1x900xf32> to vector<1x900xf32>
    %c12_162 = arith.constant 12 : index
    %c0_163 = arith.constant 0 : index
    %136 = vector.load %arg9[%c12_162, %c0_163] : memref<25x900xf32, #tpu.memory_space<vmem>>, vector<1x900xf32>
    tpu.vector_store %arg9[%c12_162, %c0_163], %135 {strides = array<i32>} : memref<25x900xf32, #tpu.memory_space<vmem>>, vector<1x900xf32>,
    %c1_164 = arith.constant 1 : index
    %c0_165 = arith.constant 0 : index
    %c63_166 = arith.constant 63 : index
    %137 = vector.load %arg0[%c1_164, %c0_165, %c63_166] : memref<2x1x1024xf32, #tpu.memory_space<vmem>>, vector<1x1x900xf32>
    %138 = vector.shape_cast %137 : vector<1x1x900xf32> to vector<1x900xf32>
    %c13_167 = arith.constant 13 : index
    %c0_168 = arith.constant 0 : index
    %139 = vector.load %arg9[%c13_167, %c0_168] : memref<25x900xf32, #tpu.memory_space<vmem>>, vector<1x900xf32>
    tpu.vector_store %arg9[%c13_167, %c0_168], %138 {strides = array<i32>} : memref<25x900xf32, #tpu.memory_space<vmem>>, vector<1x900xf32>,
    %c1_169 = arith.constant 1 : index
    %c0_170 = arith.constant 0 : index
    %c64_171 = arith.constant 64 : index
    %140 = vector.load %arg0[%c1_169, %c0_170, %c64_171] : memref<2x1x1024xf32, #tpu.memory_space<vmem>>, vector<1x1x900xf32>
    %141 = vector.shape_cast %140 : vector<1x1x900xf32> to vector<1x900xf32>
    %c14_172 = arith.constant 14 : index
    %c0_173 = arith.constant 0 : index
    %142 = vector.load %arg9[%c14_172, %c0_173] : memref<25x900xf32, #tpu.memory_space<vmem>>, vector<1x900xf32>
    tpu.vector_store %arg9[%c14_172, %c0_173], %141 {strides = array<i32>} : memref<25x900xf32, #tpu.memory_space<vmem>>, vector<1x900xf32>,
    %c1_174 = arith.constant 1 : index
    %c0_175 = arith.constant 0 : index
    %c90_176 = arith.constant 90 : index
    %143 = vector.load %arg0[%c1_174, %c0_175, %c90_176] : memref<2x1x1024xf32, #tpu.memory_space<vmem>>, vector<1x1x900xf32>
    %144 = vector.shape_cast %143 : vector<1x1x900xf32> to vector<1x900xf32>
    %c15_177 = arith.constant 15 : index
    %c0_178 = arith.constant 0 : index
    %145 = vector.load %arg9[%c15_177, %c0_178] : memref<25x900xf32, #tpu.memory_space<vmem>>, vector<1x900xf32>
    tpu.vector_store %arg9[%c15_177, %c0_178], %144 {strides = array<i32>} : memref<25x900xf32, #tpu.memory_space<vmem>>, vector<1x900xf32>,
    %c1_179 = arith.constant 1 : index
    %c0_180 = arith.constant 0 : index
    %c91_181 = arith.constant 91 : index
    %146 = vector.load %arg0[%c1_179, %c0_180, %c91_181] : memref<2x1x1024xf32, #tpu.memory_space<vmem>>, vector<1x1x900xf32>
    %147 = vector.shape_cast %146 : vector<1x1x900xf32> to vector<1x900xf32>
    %c16_182 = arith.constant 16 : index
    %c0_183 = arith.constant 0 : index
    %148 = vector.load %arg9[%c16_182, %c0_183] : memref<25x900xf32, #tpu.memory_space<vmem>>, vector<1x900xf32>
    tpu.vector_store %arg9[%c16_182, %c0_183], %147 {strides = array<i32>} : memref<25x900xf32, #tpu.memory_space<vmem>>, vector<1x900xf32>,
    %c1_184 = arith.constant 1 : index
    %c0_185 = arith.constant 0 : index
    %c92_186 = arith.constant 92 : index
    %149 = vector.load %arg0[%c1_184, %c0_185, %c92_186] : memref<2x1x1024xf32, #tpu.memory_space<vmem>>, vector<1x1x900xf32>
    %150 = vector.shape_cast %149 : vector<1x1x900xf32> to vector<1x900xf32>
    %c17_187 = arith.constant 17 : index
    %c0_188 = arith.constant 0 : index
    %151 = vector.load %arg9[%c17_187, %c0_188] : memref<25x900xf32, #tpu.memory_space<vmem>>, vector<1x900xf32>
    tpu.vector_store %arg9[%c17_187, %c0_188], %150 {strides = array<i32>} : memref<25x900xf32, #tpu.memory_space<vmem>>, vector<1x900xf32>,
    %c1_189 = arith.constant 1 : index
    %c0_190 = arith.constant 0 : index
    %c93_191 = arith.constant 93 : index
    %152 = vector.load %arg0[%c1_189, %c0_190, %c93_191] : memref<2x1x1024xf32, #tpu.memory_space<vmem>>, vector<1x1x900xf32>
    %153 = vector.shape_cast %152 : vector<1x1x900xf32> to vector<1x900xf32>
    %c18_192 = arith.constant 18 : index
    %c0_193 = arith.constant 0 : index
    %154 = vector.load %arg9[%c18_192, %c0_193] : memref<25x900xf32, #tpu.memory_space<vmem>>, vector<1x900xf32>
    tpu.vector_store %arg9[%c18_192, %c0_193], %153 {strides = array<i32>} : memref<25x900xf32, #tpu.memory_space<vmem>>, vector<1x900xf32>,
    %c1_194 = arith.constant 1 : index
    %c0_195 = arith.constant 0 : index
    %c94_196 = arith.constant 94 : index
    %155 = vector.load %arg0[%c1_194, %c0_195, %c94_196] : memref<2x1x1024xf32, #tpu.memory_space<vmem>>, vector<1x1x900xf32>
    %156 = vector.shape_cast %155 : vector<1x1x900xf32> to vector<1x900xf32>
    %c19_197 = arith.constant 19 : index
    %c0_198 = arith.constant 0 : index
    %157 = vector.load %arg9[%c19_197, %c0_198] : memref<25x900xf32, #tpu.memory_space<vmem>>, vector<1x900xf32>
    tpu.vector_store %arg9[%c19_197, %c0_198], %156 {strides = array<i32>} : memref<25x900xf32, #tpu.memory_space<vmem>>, vector<1x900xf32>,
    %c1_199 = arith.constant 1 : index
    %c0_200 = arith.constant 0 : index
    %c120_201 = arith.constant 120 : index
    %158 = vector.load %arg0[%c1_199, %c0_200, %c120_201] : memref<2x1x1024xf32, #tpu.memory_space<vmem>>, vector<1x1x900xf32>
    %159 = vector.shape_cast %158 : vector<1x1x900xf32> to vector<1x900xf32>
    %c20_202 = arith.constant 20 : index
    %c0_203 = arith.constant 0 : index
    %160 = vector.load %arg9[%c20_202, %c0_203] : memref<25x900xf32, #tpu.memory_space<vmem>>, vector<1x900xf32>
    tpu.vector_store %arg9[%c20_202, %c0_203], %159 {strides = array<i32>} : memref<25x900xf32, #tpu.memory_space<vmem>>, vector<1x900xf32>,
    %c1_204 = arith.constant 1 : index
    %c0_205 = arith.constant 0 : index
    %c121_206 = arith.constant 121 : index
    %161 = vector.load %arg0[%c1_204, %c0_205, %c121_206] : memref<2x1x1024xf32, #tpu.memory_space<vmem>>, vector<1x1x900xf32>
    %162 = vector.shape_cast %161 : vector<1x1x900xf32> to vector<1x900xf32>
    %c21_207 = arith.constant 21 : index
    %c0_208 = arith.constant 0 : index
    %163 = vector.load %arg9[%c21_207, %c0_208] : memref<25x900xf32, #tpu.memory_space<vmem>>, vector<1x900xf32>
    tpu.vector_store %arg9[%c21_207, %c0_208], %162 {strides = array<i32>} : memref<25x900xf32, #tpu.memory_space<vmem>>, vector<1x900xf32>,
    %c1_209 = arith.constant 1 : index
    %c0_210 = arith.constant 0 : index
    %c122_211 = arith.constant 122 : index
    %164 = vector.load %arg0[%c1_209, %c0_210, %c122_211] : memref<2x1x1024xf32, #tpu.memory_space<vmem>>, vector<1x1x900xf32>
    %165 = vector.shape_cast %164 : vector<1x1x900xf32> to vector<1x900xf32>
    %c22_212 = arith.constant 22 : index
    %c0_213 = arith.constant 0 : index
    %166 = vector.load %arg9[%c22_212, %c0_213] : memref<25x900xf32, #tpu.memory_space<vmem>>, vector<1x900xf32>
    tpu.vector_store %arg9[%c22_212, %c0_213], %165 {strides = array<i32>} : memref<25x900xf32, #tpu.memory_space<vmem>>, vector<1x900xf32>,
    %c1_214 = arith.constant 1 : index
    %c0_215 = arith.constant 0 : index
    %c123_216 = arith.constant 123 : index
    %167 = vector.load %arg0[%c1_214, %c0_215, %c123_216] : memref<2x1x1024xf32, #tpu.memory_space<vmem>>, vector<1x1x900xf32>
    %168 = vector.shape_cast %167 : vector<1x1x900xf32> to vector<1x900xf32>
    %c23_217 = arith.constant 23 : index
    %c0_218 = arith.constant 0 : index
    %169 = vector.load %arg9[%c23_217, %c0_218] : memref<25x900xf32, #tpu.memory_space<vmem>>, vector<1x900xf32>
    tpu.vector_store %arg9[%c23_217, %c0_218], %168 {strides = array<i32>} : memref<25x900xf32, #tpu.memory_space<vmem>>, vector<1x900xf32>,
    %c1_219 = arith.constant 1 : index
    %c0_220 = arith.constant 0 : index
    %c124_221 = arith.constant 124 : index
    %170 = vector.load %arg0[%c1_219, %c0_220, %c124_221] : memref<2x1x1024xf32, #tpu.memory_space<vmem>>, vector<1x1x900xf32>
    %171 = vector.shape_cast %170 : vector<1x1x900xf32> to vector<1x900xf32>
    %c24_222 = arith.constant 24 : index
    %c0_223 = arith.constant 0 : index
    %172 = vector.load %arg9[%c24_222, %c0_223] : memref<25x900xf32, #tpu.memory_space<vmem>>, vector<1x900xf32>
    tpu.vector_store %arg9[%c24_222, %c0_223], %171 {strides = array<i32>} : memref<25x900xf32, #tpu.memory_space<vmem>>, vector<1x900xf32>,
    %c0_224 = arith.constant 0 : index
    %c0_225 = arith.constant 0 : index
    %173 = vector.load %arg9[%c0_224, %c0_225] : memref<25x900xf32, #tpu.memory_space<vmem>>, vector<25x900xf32>
    %cst_226 = arith.constant dense<0.000000e+00> : vector<20x900xf32>
    %174 = tpu.matmul %0, %173, %cst_226 {dimension_numbers = #tpu.dot_dimension_numbers<[1], [0], [0], [1], [0, 0, 1, 1], [], []>} : vector<20x25xf32>, vector<25x900xf32>, vector<20x900xf32> -> vector<20x900xf32>
    %175 = vector.broadcast %1 : vector<20x1xf32> to vector<20x900xf32>
    %176 = arith.addf %174, %175 : vector<20x900xf32>
    %cst_227 = arith.constant 0.000000e+00 : f32
    %177 = vector.broadcast %cst_227 : f32 to vector<20x900xf32>
    %178 = arith.maximumf %176, %177 : vector<20x900xf32>
    %179 = vector.broadcast %4 : vector<1x900xf32> to vector<20x900xf32>
    %180 = arith.mulf %178, %179 : vector<20x900xf32>
    %cst_228 = arith.constant dense<0.000000e+00> : vector<20xf32>
    %181 = vector.multi_reduction <add>, %180, %cst_228 [1] : vector<20x900xf32> to vector<20xf32>
    %182 = vector.shape_cast %181 : vector<20xf32> to vector<20x1xf32>
    %183 = arith.addf %92, %182 : vector<20x1xf32>
    %184 = arith.mulf %180, %178 : vector<20x900xf32>
    %cst_229 = arith.constant dense<0.000000e+00> : vector<20xf32>
    %185 = vector.multi_reduction <add>, %184, %cst_229 [1] : vector<20x900xf32> to vector<20xf32>
    %186 = vector.shape_cast %185 : vector<20xf32> to vector<20x1xf32>
    %187 = arith.addf %96, %186 : vector<20x1xf32>
    %c20_230 = arith.constant 20 : index
    %c0_231 = arith.constant 0 : index
    %188 = vector.load %arg10[%c20_230, %c0_231] : memref<40x900xf32, #tpu.memory_space<vmem>>, vector<20x900xf32>
    tpu.vector_store %arg10[%c20_230, %c0_231], %178 {strides = array<i32>} : memref<40x900xf32, #tpu.memory_space<vmem>>, vector<20x900xf32>,
    %cst_232 = arith.constant 7.396450e-04 : f32
    %189 = vector.broadcast %cst_232 : f32 to vector<20x1xf32>
    %190 = arith.mulf %183, %189 : vector<20x1xf32>
    %cst_233 = arith.constant 7.396450e-04 : f32
    %191 = vector.broadcast %cst_233 : f32 to vector<20x1xf32>
    %192 = arith.mulf %187, %191 : vector<20x1xf32>
    %193 = arith.mulf %190, %190 : vector<20x1xf32>
    %194 = arith.subf %192, %193 : vector<20x1xf32>
    %cst_234 = arith.constant 9.99999974E-6 : f32
    %195 = vector.broadcast %cst_234 : f32 to vector<20x1xf32>
    %196 = arith.addf %194, %195 : vector<20x1xf32>
    %197 = math.rsqrt %196 : vector<20x1xf32>
    %198 = arith.mulf %2, %197 : vector<20x1xf32>
    %199 = arith.mulf %190, %198 : vector<20x1xf32>
    %200 = arith.subf %3, %199 : vector<20x1xf32>
    %cst_235 = arith.constant 0.000000e+00 : f32
    %201 = vector.broadcast %cst_235 : f32 to vector<20x1024xf32>
    %c0_236 = arith.constant 0 : index
    %c0_237 = arith.constant 0 : index
    %202 = vector.load %arg11[%c0_236, %c0_237] : memref<20x1024xf32, #tpu.memory_space<vmem>>, vector<20x1024xf32>
    tpu.vector_store %arg11[%c0_236, %c0_237], %201 {strides = array<i32>} : memref<20x1024xf32, #tpu.memory_space<vmem>>, vector<20x1024xf32>,
    %c0_238 = arith.constant 0 : index
    %c0_239 = arith.constant 0 : index
    %203 = vector.load %arg10[%c0_238, %c0_239] : memref<40x900xf32, #tpu.memory_space<vmem>>, vector<20x900xf32>
    %204 = vector.broadcast %198 : vector<20x1xf32> to vector<20x900xf32>
    %205 = arith.mulf %203, %204 : vector<20x900xf32>
    %206 = vector.broadcast %200 : vector<20x1xf32> to vector<20x900xf32>
    %207 = arith.addf %205, %206 : vector<20x900xf32>
    %c0_240 = arith.constant 0 : index
    %c0_241 = arith.constant 0 : index
    %208 = vector.load %arg11[%c0_240, %c0_241] : memref<20x1024xf32, #tpu.memory_space<vmem>>, vector<20x900xf32>
    tpu.vector_store %arg11[%c0_240, %c0_241], %207 {strides = array<i32>} : memref<20x1024xf32, #tpu.memory_space<vmem>>, vector<20x900xf32>,
    %c0_242 = arith.constant 0 : index
    %c1_243 = arith.constant 1 : index
    %209 = vector.load %arg11[%c0_242, %c1_243] : memref<20x1024xf32, #tpu.memory_space<vmem>>, vector<20x900xf32>
    %c0_244 = arith.constant 0 : index
    %c30_245 = arith.constant 30 : index
    %210 = vector.load %arg11[%c0_244, %c30_245] : memref<20x1024xf32, #tpu.memory_space<vmem>>, vector<20x900xf32>
    %c0_246 = arith.constant 0 : index
    %c31_247 = arith.constant 31 : index
    %211 = vector.load %arg11[%c0_246, %c31_247] : memref<20x1024xf32, #tpu.memory_space<vmem>>, vector<20x900xf32>
    %212 = arith.maximumf %207, %209 : vector<20x900xf32>
    %213 = arith.maximumf %210, %211 : vector<20x900xf32>
    %214 = arith.maximumf %212, %213 : vector<20x900xf32>
    %c0_248 = arith.constant 0 : index
    %c0_249 = arith.constant 0 : index
    %215 = vector.load %arg10[%c0_248, %c0_249] : memref<40x900xf32, #tpu.memory_space<vmem>>, vector<20x900xf32>
    tpu.vector_store %arg10[%c0_248, %c0_249], %214 {strides = array<i32>} : memref<40x900xf32, #tpu.memory_space<vmem>>, vector<20x900xf32>,
    %c20_250 = arith.constant 20 : index
    %c0_251 = arith.constant 0 : index
    %216 = vector.load %arg10[%c20_250, %c0_251] : memref<40x900xf32, #tpu.memory_space<vmem>>, vector<20x900xf32>
    %217 = vector.broadcast %198 : vector<20x1xf32> to vector<20x900xf32>
    %218 = arith.mulf %216, %217 : vector<20x900xf32>
    %219 = vector.broadcast %200 : vector<20x1xf32> to vector<20x900xf32>
    %220 = arith.addf %218, %219 : vector<20x900xf32>
    %c0_252 = arith.constant 0 : index
    %c0_253 = arith.constant 0 : index
    %221 = vector.load %arg11[%c0_252, %c0_253] : memref<20x1024xf32, #tpu.memory_space<vmem>>, vector<20x900xf32>
    tpu.vector_store %arg11[%c0_252, %c0_253], %220 {strides = array<i32>} : memref<20x1024xf32, #tpu.memory_space<vmem>>, vector<20x900xf32>,
    %c0_254 = arith.constant 0 : index
    %c1_255 = arith.constant 1 : index
    %222 = vector.load %arg11[%c0_254, %c1_255] : memref<20x1024xf32, #tpu.memory_space<vmem>>, vector<20x900xf32>
    %c0_256 = arith.constant 0 : index
    %c30_257 = arith.constant 30 : index
    %223 = vector.load %arg11[%c0_256, %c30_257] : memref<20x1024xf32, #tpu.memory_space<vmem>>, vector<20x900xf32>
    %c0_258 = arith.constant 0 : index
    %c31_259 = arith.constant 31 : index
    %224 = vector.load %arg11[%c0_258, %c31_259] : memref<20x1024xf32, #tpu.memory_space<vmem>>, vector<20x900xf32>
    %225 = arith.maximumf %220, %222 : vector<20x900xf32>
    %226 = arith.maximumf %223, %224 : vector<20x900xf32>
    %227 = arith.maximumf %225, %226 : vector<20x900xf32>
    %c20_260 = arith.constant 20 : index
    %c0_261 = arith.constant 0 : index
    %228 = vector.load %arg10[%c20_260, %c0_261] : memref<40x900xf32, #tpu.memory_space<vmem>>, vector<20x900xf32>
    tpu.vector_store %arg10[%c20_260, %c0_261], %227 {strides = array<i32>} : memref<40x900xf32, #tpu.memory_space<vmem>>, vector<20x900xf32>,
    %c0_262 = arith.constant 0 : index
    %c0_263 = arith.constant 0 : index
    %229 = vector.load %arg5[%c0_262, %c0_263] : memref<1x64xf32, #tpu.memory_space<vmem>>, vector<1x64xf32>
    %cst_264 = arith.constant 0.000000e+00 : f32
    %230 = vector.broadcast %cst_264 : f32 to vector<2x64xf32>
    %231 = vector.broadcast %229 : vector<1x64xf32> to vector<2x64xf32>
    %232 = arith.addf %231, %230 : vector<2x64xf32>
    %c0_265 = arith.constant 0 : index
    %c0_266 = arith.constant 0 : index
    %233 = vector.load %arg10[%c0_265, %c0_266] : memref<40x900xf32, #tpu.memory_space<vmem>>, vector<1x900xf32>
    %c20_267 = arith.constant 20 : index
    %c0_268 = arith.constant 0 : index
    %234 = vector.load %arg10[%c20_267, %c0_268] : memref<40x900xf32, #tpu.memory_space<vmem>>, vector<1x900xf32>
    %235 = tpu.concatenate %233, %234 in 0 : vector<1x900xf32>, vector<1x900xf32> -> vector<2x900xf32>
    %236 = arith.truncf %235 : vector<2x900xf32> to vector<2x900xbf16>
    %c0_269 = arith.constant 0 : index
    %c0_270 = arith.constant 0 : index
    %c0_271 = arith.constant 0 : index
    %237 = vector.load %arg4[%c0_269, %c0_270, %c0_271] : memref<20x900x64xbf16, #tpu.memory_space<vmem>>, vector<1x900x64xbf16>
    %238 = vector.shape_cast %237 : vector<1x900x64xbf16> to vector<900x64xbf16>
    %cst_272 = arith.constant dense<0.000000e+00> : vector<2x64xf32>
    %239 = tpu.matmul %236, %238, %cst_272 {dimension_numbers = #tpu.dot_dimension_numbers<[1], [0], [0], [1], [0, 0, 1, 1], [], []>} : vector<2x900xbf16>, vector<900x64xbf16>, vector<2x64xf32> -> vector<2x64xf32>
    %240 = arith.addf %232, %239 : vector<2x64xf32>
    %c1_273 = arith.constant 1 : index
    %c0_274 = arith.constant 0 : index
    %241 = vector.load %arg10[%c1_273, %c0_274] : memref<40x900xf32, #tpu.memory_space<vmem>>, vector<1x900xf32>
    %c21_275 = arith.constant 21 : index
    %c0_276 = arith.constant 0 : index
    %242 = vector.load %arg10[%c21_275, %c0_276] : memref<40x900xf32, #tpu.memory_space<vmem>>, vector<1x900xf32>
    %243 = tpu.concatenate %241, %242 in 0 : vector<1x900xf32>, vector<1x900xf32> -> vector<2x900xf32>
    %244 = arith.truncf %243 : vector<2x900xf32> to vector<2x900xbf16>
    %c1_277 = arith.constant 1 : index
    %c0_278 = arith.constant 0 : index
    %c0_279 = arith.constant 0 : index
    %245 = vector.load %arg4[%c1_277, %c0_278, %c0_279] : memref<20x900x64xbf16, #tpu.memory_space<vmem>>, vector<1x900x64xbf16>
    %246 = vector.shape_cast %245 : vector<1x900x64xbf16> to vector<900x64xbf16>
    %cst_280 = arith.constant dense<0.000000e+00> : vector<2x64xf32>
    %247 = tpu.matmul %244, %246, %cst_280 {dimension_numbers = #tpu.dot_dimension_numbers<[1], [0], [0], [1], [0, 0, 1, 1], [], []>} : vector<2x900xbf16>, vector<900x64xbf16>, vector<2x64xf32> -> vector<2x64xf32>
    %248 = arith.addf %240, %247 : vector<2x64xf32>
    %c2_281 = arith.constant 2 : index
    %c0_282 = arith.constant 0 : index
    %249 = vector.load %arg10[%c2_281, %c0_282] : memref<40x900xf32, #tpu.memory_space<vmem>>, vector<1x900xf32>
    %c22_283 = arith.constant 22 : index
    %c0_284 = arith.constant 0 : index
    %250 = vector.load %arg10[%c22_283, %c0_284] : memref<40x900xf32, #tpu.memory_space<vmem>>, vector<1x900xf32>
    %251 = tpu.concatenate %249, %250 in 0 : vector<1x900xf32>, vector<1x900xf32> -> vector<2x900xf32>
    %252 = arith.truncf %251 : vector<2x900xf32> to vector<2x900xbf16>
    %c2_285 = arith.constant 2 : index
    %c0_286 = arith.constant 0 : index
    %c0_287 = arith.constant 0 : index
    %253 = vector.load %arg4[%c2_285, %c0_286, %c0_287] : memref<20x900x64xbf16, #tpu.memory_space<vmem>>, vector<1x900x64xbf16>
    %254 = vector.shape_cast %253 : vector<1x900x64xbf16> to vector<900x64xbf16>
    %cst_288 = arith.constant dense<0.000000e+00> : vector<2x64xf32>
    %255 = tpu.matmul %252, %254, %cst_288 {dimension_numbers = #tpu.dot_dimension_numbers<[1], [0], [0], [1], [0, 0, 1, 1], [], []>} : vector<2x900xbf16>, vector<900x64xbf16>, vector<2x64xf32> -> vector<2x64xf32>
    %256 = arith.addf %248, %255 : vector<2x64xf32>
    %c3_289 = arith.constant 3 : index
    %c0_290 = arith.constant 0 : index
    %257 = vector.load %arg10[%c3_289, %c0_290] : memref<40x900xf32, #tpu.memory_space<vmem>>, vector<1x900xf32>
    %c23_291 = arith.constant 23 : index
    %c0_292 = arith.constant 0 : index
    %258 = vector.load %arg10[%c23_291, %c0_292] : memref<40x900xf32, #tpu.memory_space<vmem>>, vector<1x900xf32>
    %259 = tpu.concatenate %257, %258 in 0 : vector<1x900xf32>, vector<1x900xf32> -> vector<2x900xf32>
    %260 = arith.truncf %259 : vector<2x900xf32> to vector<2x900xbf16>
    %c3_293 = arith.constant 3 : index
    %c0_294 = arith.constant 0 : index
    %c0_295 = arith.constant 0 : index
    %261 = vector.load %arg4[%c3_293, %c0_294, %c0_295] : memref<20x900x64xbf16, #tpu.memory_space<vmem>>, vector<1x900x64xbf16>
    %262 = vector.shape_cast %261 : vector<1x900x64xbf16> to vector<900x64xbf16>
    %cst_296 = arith.constant dense<0.000000e+00> : vector<2x64xf32>
    %263 = tpu.matmul %260, %262, %cst_296 {dimension_numbers = #tpu.dot_dimension_numbers<[1], [0], [0], [1], [0, 0, 1, 1], [], []>} : vector<2x900xbf16>, vector<900x64xbf16>, vector<2x64xf32> -> vector<2x64xf32>
    %264 = arith.addf %256, %263 : vector<2x64xf32>
    %c4_297 = arith.constant 4 : index
    %c0_298 = arith.constant 0 : index
    %265 = vector.load %arg10[%c4_297, %c0_298] : memref<40x900xf32, #tpu.memory_space<vmem>>, vector<1x900xf32>
    %c24_299 = arith.constant 24 : index
    %c0_300 = arith.constant 0 : index
    %266 = vector.load %arg10[%c24_299, %c0_300] : memref<40x900xf32, #tpu.memory_space<vmem>>, vector<1x900xf32>
    %267 = tpu.concatenate %265, %266 in 0 : vector<1x900xf32>, vector<1x900xf32> -> vector<2x900xf32>
    %268 = arith.truncf %267 : vector<2x900xf32> to vector<2x900xbf16>
    %c4_301 = arith.constant 4 : index
    %c0_302 = arith.constant 0 : index
    %c0_303 = arith.constant 0 : index
    %269 = vector.load %arg4[%c4_301, %c0_302, %c0_303] : memref<20x900x64xbf16, #tpu.memory_space<vmem>>, vector<1x900x64xbf16>
    %270 = vector.shape_cast %269 : vector<1x900x64xbf16> to vector<900x64xbf16>
    %cst_304 = arith.constant dense<0.000000e+00> : vector<2x64xf32>
    %271 = tpu.matmul %268, %270, %cst_304 {dimension_numbers = #tpu.dot_dimension_numbers<[1], [0], [0], [1], [0, 0, 1, 1], [], []>} : vector<2x900xbf16>, vector<900x64xbf16>, vector<2x64xf32> -> vector<2x64xf32>
    %272 = arith.addf %264, %271 : vector<2x64xf32>
    %c5_305 = arith.constant 5 : index
    %c0_306 = arith.constant 0 : index
    %273 = vector.load %arg10[%c5_305, %c0_306] : memref<40x900xf32, #tpu.memory_space<vmem>>, vector<1x900xf32>
    %c25 = arith.constant 25 : index
    %c0_307 = arith.constant 0 : index
    %274 = vector.load %arg10[%c25, %c0_307] : memref<40x900xf32, #tpu.memory_space<vmem>>, vector<1x900xf32>
    %275 = tpu.concatenate %273, %274 in 0 : vector<1x900xf32>, vector<1x900xf32> -> vector<2x900xf32>
    %276 = arith.truncf %275 : vector<2x900xf32> to vector<2x900xbf16>
    %c5_308 = arith.constant 5 : index
    %c0_309 = arith.constant 0 : index
    %c0_310 = arith.constant 0 : index
    %277 = vector.load %arg4[%c5_308, %c0_309, %c0_310] : memref<20x900x64xbf16, #tpu.memory_space<vmem>>, vector<1x900x64xbf16>
    %278 = vector.shape_cast %277 : vector<1x900x64xbf16> to vector<900x64xbf16>
    %cst_311 = arith.constant dense<0.000000e+00> : vector<2x64xf32>
    %279 = tpu.matmul %276, %278, %cst_311 {dimension_numbers = #tpu.dot_dimension_numbers<[1], [0], [0], [1], [0, 0, 1, 1], [], []>} : vector<2x900xbf16>, vector<900x64xbf16>, vector<2x64xf32> -> vector<2x64xf32>
    %280 = arith.addf %272, %279 : vector<2x64xf32>
    %c6_312 = arith.constant 6 : index
    %c0_313 = arith.constant 0 : index
    %281 = vector.load %arg10[%c6_312, %c0_313] : memref<40x900xf32, #tpu.memory_space<vmem>>, vector<1x900xf32>
    %c26 = arith.constant 26 : index
    %c0_314 = arith.constant 0 : index
    %282 = vector.load %arg10[%c26, %c0_314] : memref<40x900xf32, #tpu.memory_space<vmem>>, vector<1x900xf32>
    %283 = tpu.concatenate %281, %282 in 0 : vector<1x900xf32>, vector<1x900xf32> -> vector<2x900xf32>
    %284 = arith.truncf %283 : vector<2x900xf32> to vector<2x900xbf16>
    %c6_315 = arith.constant 6 : index
    %c0_316 = arith.constant 0 : index
    %c0_317 = arith.constant 0 : index
    %285 = vector.load %arg4[%c6_315, %c0_316, %c0_317] : memref<20x900x64xbf16, #tpu.memory_space<vmem>>, vector<1x900x64xbf16>
    %286 = vector.shape_cast %285 : vector<1x900x64xbf16> to vector<900x64xbf16>
    %cst_318 = arith.constant dense<0.000000e+00> : vector<2x64xf32>
    %287 = tpu.matmul %284, %286, %cst_318 {dimension_numbers = #tpu.dot_dimension_numbers<[1], [0], [0], [1], [0, 0, 1, 1], [], []>} : vector<2x900xbf16>, vector<900x64xbf16>, vector<2x64xf32> -> vector<2x64xf32>
    %288 = arith.addf %280, %287 : vector<2x64xf32>
    %c7_319 = arith.constant 7 : index
    %c0_320 = arith.constant 0 : index
    %289 = vector.load %arg10[%c7_319, %c0_320] : memref<40x900xf32, #tpu.memory_space<vmem>>, vector<1x900xf32>
    %c27 = arith.constant 27 : index
    %c0_321 = arith.constant 0 : index
    %290 = vector.load %arg10[%c27, %c0_321] : memref<40x900xf32, #tpu.memory_space<vmem>>, vector<1x900xf32>
    %291 = tpu.concatenate %289, %290 in 0 : vector<1x900xf32>, vector<1x900xf32> -> vector<2x900xf32>
    %292 = arith.truncf %291 : vector<2x900xf32> to vector<2x900xbf16>
    %c7_322 = arith.constant 7 : index
    %c0_323 = arith.constant 0 : index
    %c0_324 = arith.constant 0 : index
    %293 = vector.load %arg4[%c7_322, %c0_323, %c0_324] : memref<20x900x64xbf16, #tpu.memory_space<vmem>>, vector<1x900x64xbf16>
    %294 = vector.shape_cast %293 : vector<1x900x64xbf16> to vector<900x64xbf16>
    %cst_325 = arith.constant dense<0.000000e+00> : vector<2x64xf32>
    %295 = tpu.matmul %292, %294, %cst_325 {dimension_numbers = #tpu.dot_dimension_numbers<[1], [0], [0], [1], [0, 0, 1, 1], [], []>} : vector<2x900xbf16>, vector<900x64xbf16>, vector<2x64xf32> -> vector<2x64xf32>
    %296 = arith.addf %288, %295 : vector<2x64xf32>
    %c8_326 = arith.constant 8 : index
    %c0_327 = arith.constant 0 : index
    %297 = vector.load %arg10[%c8_326, %c0_327] : memref<40x900xf32, #tpu.memory_space<vmem>>, vector<1x900xf32>
    %c28 = arith.constant 28 : index
    %c0_328 = arith.constant 0 : index
    %298 = vector.load %arg10[%c28, %c0_328] : memref<40x900xf32, #tpu.memory_space<vmem>>, vector<1x900xf32>
    %299 = tpu.concatenate %297, %298 in 0 : vector<1x900xf32>, vector<1x900xf32> -> vector<2x900xf32>
    %300 = arith.truncf %299 : vector<2x900xf32> to vector<2x900xbf16>
    %c8_329 = arith.constant 8 : index
    %c0_330 = arith.constant 0 : index
    %c0_331 = arith.constant 0 : index
    %301 = vector.load %arg4[%c8_329, %c0_330, %c0_331] : memref<20x900x64xbf16, #tpu.memory_space<vmem>>, vector<1x900x64xbf16>
    %302 = vector.shape_cast %301 : vector<1x900x64xbf16> to vector<900x64xbf16>
    %cst_332 = arith.constant dense<0.000000e+00> : vector<2x64xf32>
    %303 = tpu.matmul %300, %302, %cst_332 {dimension_numbers = #tpu.dot_dimension_numbers<[1], [0], [0], [1], [0, 0, 1, 1], [], []>} : vector<2x900xbf16>, vector<900x64xbf16>, vector<2x64xf32> -> vector<2x64xf32>
    %304 = arith.addf %296, %303 : vector<2x64xf32>
    %c9_333 = arith.constant 9 : index
    %c0_334 = arith.constant 0 : index
    %305 = vector.load %arg10[%c9_333, %c0_334] : memref<40x900xf32, #tpu.memory_space<vmem>>, vector<1x900xf32>
    %c29 = arith.constant 29 : index
    %c0_335 = arith.constant 0 : index
    %306 = vector.load %arg10[%c29, %c0_335] : memref<40x900xf32, #tpu.memory_space<vmem>>, vector<1x900xf32>
    %307 = tpu.concatenate %305, %306 in 0 : vector<1x900xf32>, vector<1x900xf32> -> vector<2x900xf32>
    %308 = arith.truncf %307 : vector<2x900xf32> to vector<2x900xbf16>
    %c9_336 = arith.constant 9 : index
    %c0_337 = arith.constant 0 : index
    %c0_338 = arith.constant 0 : index
    %309 = vector.load %arg4[%c9_336, %c0_337, %c0_338] : memref<20x900x64xbf16, #tpu.memory_space<vmem>>, vector<1x900x64xbf16>
    %310 = vector.shape_cast %309 : vector<1x900x64xbf16> to vector<900x64xbf16>
    %cst_339 = arith.constant dense<0.000000e+00> : vector<2x64xf32>
    %311 = tpu.matmul %308, %310, %cst_339 {dimension_numbers = #tpu.dot_dimension_numbers<[1], [0], [0], [1], [0, 0, 1, 1], [], []>} : vector<2x900xbf16>, vector<900x64xbf16>, vector<2x64xf32> -> vector<2x64xf32>
    %312 = arith.addf %304, %311 : vector<2x64xf32>
    %c10_340 = arith.constant 10 : index
    %c0_341 = arith.constant 0 : index
    %313 = vector.load %arg10[%c10_340, %c0_341] : memref<40x900xf32, #tpu.memory_space<vmem>>, vector<1x900xf32>
    %c30_342 = arith.constant 30 : index
    %c0_343 = arith.constant 0 : index
    %314 = vector.load %arg10[%c30_342, %c0_343] : memref<40x900xf32, #tpu.memory_space<vmem>>, vector<1x900xf32>
    %315 = tpu.concatenate %313, %314 in 0 : vector<1x900xf32>, vector<1x900xf32> -> vector<2x900xf32>
    %316 = arith.truncf %315 : vector<2x900xf32> to vector<2x900xbf16>
    %c10_344 = arith.constant 10 : index
    %c0_345 = arith.constant 0 : index
    %c0_346 = arith.constant 0 : index
    %317 = vector.load %arg4[%c10_344, %c0_345, %c0_346] : memref<20x900x64xbf16, #tpu.memory_space<vmem>>, vector<1x900x64xbf16>
    %318 = vector.shape_cast %317 : vector<1x900x64xbf16> to vector<900x64xbf16>
    %cst_347 = arith.constant dense<0.000000e+00> : vector<2x64xf32>
    %319 = tpu.matmul %316, %318, %cst_347 {dimension_numbers = #tpu.dot_dimension_numbers<[1], [0], [0], [1], [0, 0, 1, 1], [], []>} : vector<2x900xbf16>, vector<900x64xbf16>, vector<2x64xf32> -> vector<2x64xf32>
    %320 = arith.addf %312, %319 : vector<2x64xf32>
    %c11_348 = arith.constant 11 : index
    %c0_349 = arith.constant 0 : index
    %321 = vector.load %arg10[%c11_348, %c0_349] : memref<40x900xf32, #tpu.memory_space<vmem>>, vector<1x900xf32>
    %c31_350 = arith.constant 31 : index
    %c0_351 = arith.constant 0 : index
    %322 = vector.load %arg10[%c31_350, %c0_351] : memref<40x900xf32, #tpu.memory_space<vmem>>, vector<1x900xf32>
    %323 = tpu.concatenate %321, %322 in 0 : vector<1x900xf32>, vector<1x900xf32> -> vector<2x900xf32>
    %324 = arith.truncf %323 : vector<2x900xf32> to vector<2x900xbf16>
    %c11_352 = arith.constant 11 : index
    %c0_353 = arith.constant 0 : index
    %c0_354 = arith.constant 0 : index
    %325 = vector.load %arg4[%c11_352, %c0_353, %c0_354] : memref<20x900x64xbf16, #tpu.memory_space<vmem>>, vector<1x900x64xbf16>
    %326 = vector.shape_cast %325 : vector<1x900x64xbf16> to vector<900x64xbf16>
    %cst_355 = arith.constant dense<0.000000e+00> : vector<2x64xf32>
    %327 = tpu.matmul %324, %326, %cst_355 {dimension_numbers = #tpu.dot_dimension_numbers<[1], [0], [0], [1], [0, 0, 1, 1], [], []>} : vector<2x900xbf16>, vector<900x64xbf16>, vector<2x64xf32> -> vector<2x64xf32>
    %328 = arith.addf %320, %327 : vector<2x64xf32>
    %c12_356 = arith.constant 12 : index
    %c0_357 = arith.constant 0 : index
    %329 = vector.load %arg10[%c12_356, %c0_357] : memref<40x900xf32, #tpu.memory_space<vmem>>, vector<1x900xf32>
    %c32_358 = arith.constant 32 : index
    %c0_359 = arith.constant 0 : index
    %330 = vector.load %arg10[%c32_358, %c0_359] : memref<40x900xf32, #tpu.memory_space<vmem>>, vector<1x900xf32>
    %331 = tpu.concatenate %329, %330 in 0 : vector<1x900xf32>, vector<1x900xf32> -> vector<2x900xf32>
    %332 = arith.truncf %331 : vector<2x900xf32> to vector<2x900xbf16>
    %c12_360 = arith.constant 12 : index
    %c0_361 = arith.constant 0 : index
    %c0_362 = arith.constant 0 : index
    %333 = vector.load %arg4[%c12_360, %c0_361, %c0_362] : memref<20x900x64xbf16, #tpu.memory_space<vmem>>, vector<1x900x64xbf16>
    %334 = vector.shape_cast %333 : vector<1x900x64xbf16> to vector<900x64xbf16>
    %cst_363 = arith.constant dense<0.000000e+00> : vector<2x64xf32>
    %335 = tpu.matmul %332, %334, %cst_363 {dimension_numbers = #tpu.dot_dimension_numbers<[1], [0], [0], [1], [0, 0, 1, 1], [], []>} : vector<2x900xbf16>, vector<900x64xbf16>, vector<2x64xf32> -> vector<2x64xf32>
    %336 = arith.addf %328, %335 : vector<2x64xf32>
    %c13_364 = arith.constant 13 : index
    %c0_365 = arith.constant 0 : index
    %337 = vector.load %arg10[%c13_364, %c0_365] : memref<40x900xf32, #tpu.memory_space<vmem>>, vector<1x900xf32>
    %c33_366 = arith.constant 33 : index
    %c0_367 = arith.constant 0 : index
    %338 = vector.load %arg10[%c33_366, %c0_367] : memref<40x900xf32, #tpu.memory_space<vmem>>, vector<1x900xf32>
    %339 = tpu.concatenate %337, %338 in 0 : vector<1x900xf32>, vector<1x900xf32> -> vector<2x900xf32>
    %340 = arith.truncf %339 : vector<2x900xf32> to vector<2x900xbf16>
    %c13_368 = arith.constant 13 : index
    %c0_369 = arith.constant 0 : index
    %c0_370 = arith.constant 0 : index
    %341 = vector.load %arg4[%c13_368, %c0_369, %c0_370] : memref<20x900x64xbf16, #tpu.memory_space<vmem>>, vector<1x900x64xbf16>
    %342 = vector.shape_cast %341 : vector<1x900x64xbf16> to vector<900x64xbf16>
    %cst_371 = arith.constant dense<0.000000e+00> : vector<2x64xf32>
    %343 = tpu.matmul %340, %342, %cst_371 {dimension_numbers = #tpu.dot_dimension_numbers<[1], [0], [0], [1], [0, 0, 1, 1], [], []>} : vector<2x900xbf16>, vector<900x64xbf16>, vector<2x64xf32> -> vector<2x64xf32>
    %344 = arith.addf %336, %343 : vector<2x64xf32>
    %c14_372 = arith.constant 14 : index
    %c0_373 = arith.constant 0 : index
    %345 = vector.load %arg10[%c14_372, %c0_373] : memref<40x900xf32, #tpu.memory_space<vmem>>, vector<1x900xf32>
    %c34_374 = arith.constant 34 : index
    %c0_375 = arith.constant 0 : index
    %346 = vector.load %arg10[%c34_374, %c0_375] : memref<40x900xf32, #tpu.memory_space<vmem>>, vector<1x900xf32>
    %347 = tpu.concatenate %345, %346 in 0 : vector<1x900xf32>, vector<1x900xf32> -> vector<2x900xf32>
    %348 = arith.truncf %347 : vector<2x900xf32> to vector<2x900xbf16>
    %c14_376 = arith.constant 14 : index
    %c0_377 = arith.constant 0 : index
    %c0_378 = arith.constant 0 : index
    %349 = vector.load %arg4[%c14_376, %c0_377, %c0_378] : memref<20x900x64xbf16, #tpu.memory_space<vmem>>, vector<1x900x64xbf16>
    %350 = vector.shape_cast %349 : vector<1x900x64xbf16> to vector<900x64xbf16>
    %cst_379 = arith.constant dense<0.000000e+00> : vector<2x64xf32>
    %351 = tpu.matmul %348, %350, %cst_379 {dimension_numbers = #tpu.dot_dimension_numbers<[1], [0], [0], [1], [0, 0, 1, 1], [], []>} : vector<2x900xbf16>, vector<900x64xbf16>, vector<2x64xf32> -> vector<2x64xf32>
    %352 = arith.addf %344, %351 : vector<2x64xf32>
    %c15_380 = arith.constant 15 : index
    %c0_381 = arith.constant 0 : index
    %353 = vector.load %arg10[%c15_380, %c0_381] : memref<40x900xf32, #tpu.memory_space<vmem>>, vector<1x900xf32>
    %c35 = arith.constant 35 : index
    %c0_382 = arith.constant 0 : index
    %354 = vector.load %arg10[%c35, %c0_382] : memref<40x900xf32, #tpu.memory_space<vmem>>, vector<1x900xf32>
    %355 = tpu.concatenate %353, %354 in 0 : vector<1x900xf32>, vector<1x900xf32> -> vector<2x900xf32>
    %356 = arith.truncf %355 : vector<2x900xf32> to vector<2x900xbf16>
    %c15_383 = arith.constant 15 : index
    %c0_384 = arith.constant 0 : index
    %c0_385 = arith.constant 0 : index
    %357 = vector.load %arg4[%c15_383, %c0_384, %c0_385] : memref<20x900x64xbf16, #tpu.memory_space<vmem>>, vector<1x900x64xbf16>
    %358 = vector.shape_cast %357 : vector<1x900x64xbf16> to vector<900x64xbf16>
    %cst_386 = arith.constant dense<0.000000e+00> : vector<2x64xf32>
    %359 = tpu.matmul %356, %358, %cst_386 {dimension_numbers = #tpu.dot_dimension_numbers<[1], [0], [0], [1], [0, 0, 1, 1], [], []>} : vector<2x900xbf16>, vector<900x64xbf16>, vector<2x64xf32> -> vector<2x64xf32>
    %360 = arith.addf %352, %359 : vector<2x64xf32>
    %c16_387 = arith.constant 16 : index
    %c0_388 = arith.constant 0 : index
    %361 = vector.load %arg10[%c16_387, %c0_388] : memref<40x900xf32, #tpu.memory_space<vmem>>, vector<1x900xf32>
    %c36 = arith.constant 36 : index
    %c0_389 = arith.constant 0 : index
    %362 = vector.load %arg10[%c36, %c0_389] : memref<40x900xf32, #tpu.memory_space<vmem>>, vector<1x900xf32>
    %363 = tpu.concatenate %361, %362 in 0 : vector<1x900xf32>, vector<1x900xf32> -> vector<2x900xf32>
    %364 = arith.truncf %363 : vector<2x900xf32> to vector<2x900xbf16>
    %c16_390 = arith.constant 16 : index
    %c0_391 = arith.constant 0 : index
    %c0_392 = arith.constant 0 : index
    %365 = vector.load %arg4[%c16_390, %c0_391, %c0_392] : memref<20x900x64xbf16, #tpu.memory_space<vmem>>, vector<1x900x64xbf16>
    %366 = vector.shape_cast %365 : vector<1x900x64xbf16> to vector<900x64xbf16>
    %cst_393 = arith.constant dense<0.000000e+00> : vector<2x64xf32>
    %367 = tpu.matmul %364, %366, %cst_393 {dimension_numbers = #tpu.dot_dimension_numbers<[1], [0], [0], [1], [0, 0, 1, 1], [], []>} : vector<2x900xbf16>, vector<900x64xbf16>, vector<2x64xf32> -> vector<2x64xf32>
    %368 = arith.addf %360, %367 : vector<2x64xf32>
    %c17_394 = arith.constant 17 : index
    %c0_395 = arith.constant 0 : index
    %369 = vector.load %arg10[%c17_394, %c0_395] : memref<40x900xf32, #tpu.memory_space<vmem>>, vector<1x900xf32>
    %c37 = arith.constant 37 : index
    %c0_396 = arith.constant 0 : index
    %370 = vector.load %arg10[%c37, %c0_396] : memref<40x900xf32, #tpu.memory_space<vmem>>, vector<1x900xf32>
    %371 = tpu.concatenate %369, %370 in 0 : vector<1x900xf32>, vector<1x900xf32> -> vector<2x900xf32>
    %372 = arith.truncf %371 : vector<2x900xf32> to vector<2x900xbf16>
    %c17_397 = arith.constant 17 : index
    %c0_398 = arith.constant 0 : index
    %c0_399 = arith.constant 0 : index
    %373 = vector.load %arg4[%c17_397, %c0_398, %c0_399] : memref<20x900x64xbf16, #tpu.memory_space<vmem>>, vector<1x900x64xbf16>
    %374 = vector.shape_cast %373 : vector<1x900x64xbf16> to vector<900x64xbf16>
    %cst_400 = arith.constant dense<0.000000e+00> : vector<2x64xf32>
    %375 = tpu.matmul %372, %374, %cst_400 {dimension_numbers = #tpu.dot_dimension_numbers<[1], [0], [0], [1], [0, 0, 1, 1], [], []>} : vector<2x900xbf16>, vector<900x64xbf16>, vector<2x64xf32> -> vector<2x64xf32>
    %376 = arith.addf %368, %375 : vector<2x64xf32>
    %c18_401 = arith.constant 18 : index
    %c0_402 = arith.constant 0 : index
    %377 = vector.load %arg10[%c18_401, %c0_402] : memref<40x900xf32, #tpu.memory_space<vmem>>, vector<1x900xf32>
    %c38 = arith.constant 38 : index
    %c0_403 = arith.constant 0 : index
    %378 = vector.load %arg10[%c38, %c0_403] : memref<40x900xf32, #tpu.memory_space<vmem>>, vector<1x900xf32>
    %379 = tpu.concatenate %377, %378 in 0 : vector<1x900xf32>, vector<1x900xf32> -> vector<2x900xf32>
    %380 = arith.truncf %379 : vector<2x900xf32> to vector<2x900xbf16>
    %c18_404 = arith.constant 18 : index
    %c0_405 = arith.constant 0 : index
    %c0_406 = arith.constant 0 : index
    %381 = vector.load %arg4[%c18_404, %c0_405, %c0_406] : memref<20x900x64xbf16, #tpu.memory_space<vmem>>, vector<1x900x64xbf16>
    %382 = vector.shape_cast %381 : vector<1x900x64xbf16> to vector<900x64xbf16>
    %cst_407 = arith.constant dense<0.000000e+00> : vector<2x64xf32>
    %383 = tpu.matmul %380, %382, %cst_407 {dimension_numbers = #tpu.dot_dimension_numbers<[1], [0], [0], [1], [0, 0, 1, 1], [], []>} : vector<2x900xbf16>, vector<900x64xbf16>, vector<2x64xf32> -> vector<2x64xf32>
    %384 = arith.addf %376, %383 : vector<2x64xf32>
    %c19_408 = arith.constant 19 : index
    %c0_409 = arith.constant 0 : index
    %385 = vector.load %arg10[%c19_408, %c0_409] : memref<40x900xf32, #tpu.memory_space<vmem>>, vector<1x900xf32>
    %c39 = arith.constant 39 : index
    %c0_410 = arith.constant 0 : index
    %386 = vector.load %arg10[%c39, %c0_410] : memref<40x900xf32, #tpu.memory_space<vmem>>, vector<1x900xf32>
    %387 = tpu.concatenate %385, %386 in 0 : vector<1x900xf32>, vector<1x900xf32> -> vector<2x900xf32>
    %388 = arith.truncf %387 : vector<2x900xf32> to vector<2x900xbf16>
    %c19_411 = arith.constant 19 : index
    %c0_412 = arith.constant 0 : index
    %c0_413 = arith.constant 0 : index
    %389 = vector.load %arg4[%c19_411, %c0_412, %c0_413] : memref<20x900x64xbf16, #tpu.memory_space<vmem>>, vector<1x900x64xbf16>
    %390 = vector.shape_cast %389 : vector<1x900x64xbf16> to vector<900x64xbf16>
    %cst_414 = arith.constant dense<0.000000e+00> : vector<2x64xf32>
    %391 = tpu.matmul %388, %390, %cst_414 {dimension_numbers = #tpu.dot_dimension_numbers<[1], [0], [0], [1], [0, 0, 1, 1], [], []>} : vector<2x900xbf16>, vector<900x64xbf16>, vector<2x64xf32> -> vector<2x64xf32>
    %392 = arith.addf %384, %391 : vector<2x64xf32>
    %c0_415 = arith.constant 0 : index
    %c0_416 = arith.constant 0 : index
    %393 = vector.load %arg6[%c0_415, %c0_416] : memref<64x10xf32, #tpu.memory_space<vmem>>, vector<64x10xf32>
    %cst_417 = arith.constant dense<0.000000e+00> : vector<2x10xf32>
    %394 = tpu.matmul %392, %393, %cst_417 {dimension_numbers = #tpu.dot_dimension_numbers<[1], [0], [0], [1], [0, 0, 1, 1], [], []>} : vector<2x64xf32>, vector<64x10xf32>, vector<2x10xf32> -> vector<2x10xf32>
    %c0_418 = arith.constant 0 : index
    %c0_419 = arith.constant 0 : index
    %395 = vector.load %arg7[%c0_418, %c0_419] : memref<1x10xf32, #tpu.memory_space<vmem>>, vector<1x10xf32>
    %396 = vector.broadcast %395 : vector<1x10xf32> to vector<2x10xf32>
    %397 = arith.addf %394, %396 : vector<2x10xf32>
    %c0_420 = arith.constant 0 : index
    %c0_421 = arith.constant 0 : index
    %398 = vector.load %arg8[%c0_420, %c0_421] : memref<2x10xf32, #tpu.memory_space<vmem>>, vector<2x10xf32>
    tpu.vector_store %arg8[%c0_420, %c0_421], %397 {strides = array<i32>} : memref<2x10xf32, #tpu.memory_space<vmem>>, vector<2x10xf32>,
    return
  }
}

</mosaic_0001>

<bundles_post_ra>
// kernel: cnn_forward.1
= control target key start
LH: loop header
LB: loop body
LE: loop exit
PB: predicated region body
PF: predicated region fallthrough
CT: control target
= control target key end

     0   :  { %v39_v1 = vlaneseq  ;;  %s23843_s29 = smov 125   ;;  %s23844_s30 = smov 127   ;;  %v23867_v4 = vmov 0.0   ;;  %vm72_vm1 = vcmask 1022976   ;;  %vm50_vm2 = vcmask 1039360   ;;  %s30805_s0 = inlined_call_operand.vmem [shape: f32[2,1,1024], index: 0, kind: input, shape index: {}]   ;;  %s30806_s1 = inlined_call_operand.vmem [shape: f32[20,25], index: 1, kind: input, shape index: {}]   ;;  %s30807_s2 = inlined_call_operand.vmem [shape: f32[20,3], index: 2, kind: input, shape index: {}]   ;;  %s30808_s3 = inlined_call_operand.vmem [shape: f32[1,900], index: 3, kind: input, shape index: {}]   ;;  %s30809_s4 = inlined_call_operand.vmem [shape: bf16[20,900,64], index: 4, kind: input, shape index: {}]   ;;  %s30810_s5 = inlined_call_operand.vmem [shape: f32[1,64], index: 5, kind: input, shape index: {}]   ;;  %s30811_s6 = inlined_call_operand.vmem [shape: f32[64,10], index: 6, kind: input, shape index: {}]   ;;  %s30812_s7 = inlined_call_operand.vmem [shape: f32[1,10], index: 7, kind: input, shape index: {}]   ;;  %s30813_s8 = inlined_call_operand.hbm [shape: f32[2,10], index: 8, kind: output, shape index: {}]  }
   0x1   :  { %v67_v0 = vld [vmem:[%s30805_s0] sm:$0xff]  ;;  %s23845_s9 = smov 124   ;;  %s23846_s10 = smov 126   ;;  %v23960_v3 = vld [vmem:[%s30805_s0 + $0x8] sm:$0xff]  ;;  %455 = vmatprep.mubr.f32.mxu0 %v23867_v4  ;;  %1861 = vst [vmem:[#allocation4 + $0x38] sm:$0xff] %v23867_v4  ;;  %1869 = vst [vmem:[#allocation4 + $0x78] sm:$0xff] %v23867_v4  ;;  %538 = vmatprep.mubr.f32.mxu1 %v23867_v4 }
   0x2   :  { %69 = vrot.lane.b32.xlu1 %v67_v0, %s23843_s29  ;;  %47 = vrot.lane.b32.xlu0 %v67_v0, %s23844_s30  ;;  %vm23927_vm0 = vcmp.lt.s32.totalorder %v39_v1, 900  ;;  %s23847_s11 = smov 97   ;;  %s23848_s12 = smov 98   ;;  %1870 = vst [vmem:[#allocation4 + $0x80] sm:$0xf] %v23867_v4  ;;  %vm83_vm3 = vcmask 1014784  }
   0x3   :  { %43 = vst.msk [vmem:[#allocation2] ss:$8 sm:$0xf] %vm23927_vm0, %v67_v0  ;;  %44 = vst.msk [vmem:[#allocation2] ss:$8 sm:$0xf0] %vm23927_vm0, %v67_v0 }
   0x4   :  { %s23849_s13 = smov 95   ;;  %s23850_s14 = smov 96   ;;  %1871 = vst [vmem:[#allocation4 + $0x88] sm:$0xf] %v23867_v4  ;;  %1872 = vst [vmem:[#allocation4 + $0x90] sm:$0xf] %v23867_v4 }
   0x5   :  { %s23851_s15 = smov 68   ;;  %s23852_s16 = smov 94   ;;  %1873 = vst [vmem:[#allocation4 + $0x98] sm:$0xf] %v23867_v4  ;;  %1874 = vst [vmem:[#allocation4 + $0xa0] sm:$0xf] %v23867_v4 }
   0x6   :  { %80 = vrot.lane.b32.xlu1 %v67_v0, %s23845_s9  ;;  %58 = vrot.lane.b32.xlu0 %v67_v0, %s23846_s10  ;;  %s23853_s17 = smov 66   ;;  %s23854_s18 = smov 67   ;;  %1875 = vst [vmem:[#allocation4 + $0xa8] sm:$0xf] %v23867_v4  ;;  %1876 = vst [vmem:[#allocation4 + $0xb0] sm:$0xf] %v23867_v4 }
   0x7   :  { %s23855_s19 = smov 64   ;;  %s23856_s20 = smov 65   ;;  %1877 = vst [vmem:[#allocation4 + $0xb8] sm:$0xf] %v23867_v4  ;;  %vm61_vm4 = vcmask 1031168   ;;  %v34_v5 = vld [vmem:[%s30807_s2] sm:$0xff] }
   0x8   :  { %s30814_s21 = smov 37   ;;  %s30815_s22 = smov 38   ;;  %v35_v6 = vld [vmem:[%s30807_s2 + $0x8] sm:$0xff]  ;;  %vm105_vm5 = vcmask 793600   ;;  %vm94_vm6 = vcmask 801792   ;;  %v30829_v9 = vmov 0  }
   0x9   :  { %s30816_s23 = smov 35   ;;  %s30817_s24 = smov 36   ;;  %22661 = vset.pattern.permute.xlu0 %v30829_v9  ;;  %22662 = vset.pattern.permute.xlu1 %v30829_v9  ;;  %vm127_vm7 = vcmask 777216   ;;  %vm30822_vm8 = vcmask 785408   ;;  %vm30821_vm9 = vcmask 556032   ;;  %vm30820_vm10 = vcmask 769024  }
   0xa   :  { %102 = vrot.lane.b32.xlu1 %v67_v0, %s23847_s11  ;;  %91 = vrot.lane.b32.xlu0 %v67_v0, %s23848_s12  ;;  %s23861_s25 = smov 8   ;;  %s23862_s26 = smov 34   ;;  %vm30819_vm11 = vcmask 539648   ;;  %vm30818_vm12 = vcmask 547840   ;;  %vm193_vm13 = vcmask 523264   ;;  %vm182_vm14 = vcmask 531456  }
   0xb   :  { %s23863_s27 = smov 6   ;;  %s23864_s28 = smov 7   ;;  %vm215_vm15 = vcmask 302080  }
   0xc   :  { %s30937_s0 = smov 37  }
   0xe   :  { %124 = vrot.lane.b32.xlu1 %v67_v0, %s23849_s13  ;;  %113 = vrot.lane.b32.xlu0 %v67_v0, %s23850_s14 }
  0x12   :  { %146 = vrot.lane.b32.xlu1 %v67_v0, %s23851_s15  ;;  %135 = vrot.lane.b32.xlu0 %v67_v0, %s23852_s16 }
  0x16   :  { %168 = vrot.lane.b32.xlu1 %v67_v0, %s23853_s17  ;;  %157 = vrot.lane.b32.xlu0 %v67_v0, %s23854_s18 }
  0x1a   :  { %190 = vrot.lane.b32.xlu1 %v67_v0, %s23855_s19  ;;  %179 = vrot.lane.b32.xlu0 %v67_v0, %s23856_s20 }
  0x1e   :  { %212 = vrot.lane.b32.xlu1 %v67_v0, %s30814_s21  ;;  %201 = vrot.lane.b32.xlu0 %v67_v0, %s30815_s22  ;;  %s23865_s21 = smov 4   ;;  %s23866_s22 = smov 5  }
  0x22   :  { %234 = vrot.lane.b32.xlu1 %v67_v0, %s30816_s23  ;;  %223 = vrot.lane.b32.xlu0 %v67_v0, %s30817_s24  ;;  %s23871_s24 = smov 1  }
  0x26   :  { %256 = vrot.lane.b32.xlu1 %v67_v0, %s23861_s25  ;;  %245 = vrot.lane.b32.xlu0 %v67_v0, %s23862_s26 }
  0x2a   :  { %278 = vrot.lane.b32.xlu1 %v67_v0, %s23863_s27  ;;  %267 = vrot.lane.b32.xlu0 %v67_v0, %s23864_s28 }
  0x2e   :  { %300 = vrot.lane.b32.xlu1 %v67_v0, %s23865_s21  ;;  %289 = vrot.lane.b32.xlu0 %v67_v0, %s23866_s22 }
  0x32   :  { %957 = vrot.lane.b32.xlu1 %v23960_v3, %s23846_s10  ;;  %948 = vrot.lane.b32.xlu0 %v23960_v3, %s23844_s30  ;;  %s30940_s10 = smov 36  }
  0x36   :  { %975 = vrot.lane.b32.xlu1 %v23960_v3, %s23845_s9  ;;  %966 = vrot.lane.b32.xlu0 %v23960_v3, %s23843_s29  ;;  %s30938_s29 = smov 38   ;;  %s30939_s9 = smov 35  }
  0x3a   :  { %993 = vrot.lane.b32.xlu1 %v23960_v3, %s23847_s11  ;;  %984 = vrot.lane.b32.xlu0 %v23960_v3, %s23848_s12 }
  0x3e   :  { %1011 = vrot.lane.b32.xlu1 %v23960_v3, %s23849_s13  ;;  %1002 = vrot.lane.b32.xlu0 %v23960_v3, %s23850_s14 }
  0x42   :  { %1029 = vrot.lane.b32.xlu1 %v23960_v3, %s23851_s15  ;;  %1020 = vrot.lane.b32.xlu0 %v23960_v3, %s23852_s16 }
  0x46   :  { %1047 = vrot.lane.b32.xlu1 %v23960_v3, %s23853_s17  ;;  %1038 = vrot.lane.b32.xlu0 %v23960_v3, %s23854_s18 }
  0x4a   :  { %1065 = vrot.lane.b32.xlu1 %v23960_v3, %s23855_s19  ;;  %1056 = vrot.lane.b32.xlu0 %v23960_v3, %s23856_s20 }
  0x4e   :  { %1083 = vrot.lane.b32.xlu1 %v23960_v3, %s30937_s0  ;;  %1074 = vrot.lane.b32.xlu0 %v23960_v3, %s30938_s29 }
  0x52   :  { %1101 = vrot.lane.b32.xlu1 %v23960_v3, %s30939_s9  ;;  %1092 = vrot.lane.b32.xlu0 %v23960_v3, %s30940_s10 }
  0x56   :  { %1119 = vrot.lane.b32.xlu1 %v23960_v3, %s23861_s25  ;;  %1110 = vrot.lane.b32.xlu0 %v23960_v3, %s23862_s26 }
  0x5a   :  { %1137 = vrot.lane.b32.xlu1 %v23960_v3, %s23863_s27  ;;  %1128 = vrot.lane.b32.xlu0 %v23960_v3, %s23864_s28 }
  0x5e   :  { %1155 = vrot.lane.b32.xlu1 %v23960_v3, %s23865_s21  ;;  %1146 = vrot.lane.b32.xlu0 %v23960_v3, %s23866_s22 }
  0x62   :  { %343 = vperm.xlu0 %22661, %v34_v5   ;;  %348 = vperm.xlu1 %22662, %v35_v6  }
  0x74   :  { %v70_v7 = vpop.permute.xlu1 %69  ;;  %v48_v8 = vpop.permute.xlu0 %47 }
  0x75   :  { %v71_v10 = vrot.slane %v70_v7, 1  ;;  %v49_v11 = vrot.slane %v48_v8, 1 }
  0x77   :  { %v73_v12 = vsel %vm72_vm1, %v70_v7, %v71_v10  ;;  %v51_v13 = vsel %vm50_vm2, %v48_v8, %v49_v11 }
  0x78   :  { %76 = vst.msk [vmem:[#allocation2 + $0x3] ss:$8 sm:$0xf] %vm23927_vm0, %v73_v12  ;;  %77 = vst.msk [vmem:[#allocation2 + $0x3] ss:$8 sm:$0xf0] %vm23927_vm0, %v73_v12  ;;  %v81_v14 = vpop.permute.xlu1 %80  ;;  %v59_v15 = vpop.permute.xlu0 %58 }
  0x79   :  { %54 = vst.msk [vmem:[#allocation2 + $0x1] ss:$8 sm:$0xf] %vm23927_vm0, %v51_v13  ;;  %55 = vst.msk [vmem:[#allocation2 + $0x1] ss:$8 sm:$0xf0] %vm23927_vm0, %v51_v13 }
  0x7a   :  { %v82_v16 = vrot.slane %v81_v14, 1  ;;  %v60_v17 = vrot.slane %v59_v15, 1 }
  0x7c   :  { %v84_v18 = vsel %vm83_vm3, %v81_v14, %v82_v16  ;;  %v62_v19 = vsel %vm61_vm4, %v59_v15, %v60_v17  ;;  %v103_v20 = vpop.permute.xlu1 %102  ;;  %v92_v21 = vpop.permute.xlu0 %91 }
  0x7d   :  { %87 = vst.msk [vmem:[#allocation2 + $0x4] ss:$8 sm:$0xf] %vm23927_vm0, %v84_v18  ;;  %88 = vst.msk [vmem:[#allocation2 + $0x4] ss:$8 sm:$0xf0] %vm23927_vm0, %v84_v18 }
  0x7e   :  { %65 = vst.msk [vmem:[#allocation2 + $0x2] ss:$8 sm:$0xf] %vm23927_vm0, %v62_v19  ;;  %66 = vst.msk [vmem:[#allocation2 + $0x2] ss:$8 sm:$0xf0] %vm23927_vm0, %v62_v19 }
  0x7f   :  { %v104_v22 = vrot.slane %v103_v20, 1  ;;  %v93_v23 = vrot.slane %v92_v21, 1 }
  0x80   :  { %v125_v26 = vpop.permute.xlu1 %124  ;;  %v114_v27 = vpop.permute.xlu0 %113 }
  0x81   :  { %v106_v24 = vsel %vm105_vm5, %v103_v20, %v104_v22  ;;  %v95_v25 = vsel %vm94_vm6, %v92_v21, %v93_v23  ;;  %v126_v28 = vrot.slane %v125_v26, 1  ;;  %v115_v29 = vrot.slane %v114_v27, 1 }
  0x82   :  { %109 = vst.msk [vmem:[#allocation2 + $0x6] ss:$8 sm:$0xf] %vm23927_vm0, %v106_v24  ;;  %110 = vst.msk [vmem:[#allocation2 + $0x6] ss:$8 sm:$0xf0] %vm23927_vm0, %v106_v24 }
  0x83   :  { %98 = vst.msk [vmem:[#allocation2 + $0x5] ss:$8 sm:$0xf] %vm23927_vm0, %v95_v25  ;;  %99 = vst.msk [vmem:[#allocation2 + $0x5] ss:$8 sm:$0xf0] %vm23927_vm0, %v95_v25  ;;  %v128_v30 = vsel %vm127_vm7, %v125_v26, %v126_v28  ;;  %v117_v31 = vsel %vm30822_vm8, %v114_v27, %v115_v29 }
  0x84   :  { %131 = vst.msk [vmem:[#allocation2 + $0x40] ss:$8 sm:$0xf] %vm23927_vm0, %v128_v30  ;;  %132 = vst.msk [vmem:[#allocation2 + $0x40] ss:$8 sm:$0xf0] %vm23927_vm0, %v128_v30  ;;  %v147_v32 = vpop.permute.xlu1 %146  ;;  %v136_v33 = vpop.permute.xlu0 %135 }
  0x85   :  { %120 = vst.msk [vmem:[#allocation2 + $0x7] ss:$8 sm:$0xf] %vm23927_vm0, %v117_v31  ;;  %121 = vst.msk [vmem:[#allocation2 + $0x7] ss:$8 sm:$0xf0] %vm23927_vm0, %v117_v31 }
  0x86   :  { %v148_v34 = vrot.slane %v147_v32, 1  ;;  %v137_v35 = vrot.slane %v136_v33, 1  ;;  %vm30825_vm8 = vcmask 277504  }
  0x88   :  { %v150_v36 = vsel %vm30821_vm9, %v147_v32, %v148_v34  ;;  %v139_v37 = vsel %vm30820_vm10, %v136_v33, %v137_v35  ;;  %v169_v38 = vpop.permute.xlu1 %168  ;;  %v158_v39 = vpop.permute.xlu0 %157  ;;  %vm30823_vm10 = vcmask 293888   ;;  %vm30826_vm9 = vcmask 64512  }
  0x89   :  { %153 = vst.msk [vmem:[#allocation2 + $0x42] ss:$8 sm:$0xf] %vm23927_vm0, %v150_v36  ;;  %154 = vst.msk [vmem:[#allocation2 + $0x42] ss:$8 sm:$0xf0] %vm23927_vm0, %v150_v36 }
  0x8a   :  { %142 = vst.msk [vmem:[#allocation2 + $0x41] ss:$8 sm:$0xf] %vm23927_vm0, %v139_v37  ;;  %143 = vst.msk [vmem:[#allocation2 + $0x41] ss:$8 sm:$0xf0] %vm23927_vm0, %v139_v37 }
  0x8b   :  { %v170_v40 = vrot.slane %v169_v38, 1  ;;  %v159_v41 = vrot.slane %v158_v39, 1 }
  0x8c   :  { %v24070_v44 = vld [vmem:[#allocation2 + $0x8] sm:$0xff]  ;;  %v24072_v45 = vld [vmem:[#allocation2 + $0x18] sm:$0xff]  ;;  %v24074_v46 = vld [vmem:[#allocation2] sm:$0xff]  ;;  %v191_v47 = vpop.permute.xlu1 %190  ;;  %v180_v48 = vpop.permute.xlu0 %179 }
  0x8d   :  { %v172_v42 = vsel %vm30819_vm11, %v169_v38, %v170_v40  ;;  %v161_v43 = vsel %vm30818_vm12, %v158_v39, %v159_v41  ;;  %vm30827_vm12 = vcmask 310272   ;;  %vm30824_vm11 = vcmask 285696   ;;  %v24084_v49 = vld [vmem:[#allocation2 + $0x10] sm:$0xff]  ;;  %v24086_v50 = vld [vmem:[#allocation2 + $0x20] sm:$0xff]  ;;  %v24088_v51 = vld [vmem:[#allocation2 + $0x28] sm:$0xff] }
  0x8e   :  { %175 = vst.msk [vmem:[#allocation2 + $0x44] ss:$8 sm:$0xf] %vm23927_vm0, %v172_v42  ;;  %176 = vst.msk [vmem:[#allocation2 + $0x44] ss:$8 sm:$0xf0] %vm23927_vm0, %v172_v42 }
  0x8f   :  { %164 = vst.msk [vmem:[#allocation2 + $0x43] ss:$8 sm:$0xf] %vm23927_vm0, %v161_v43  ;;  %165 = vst.msk [vmem:[#allocation2 + $0x43] ss:$8 sm:$0xf0] %vm23927_vm0, %v161_v43 }
  0x90   :  { %v192_v52 = vrot.slane %v191_v47, 1  ;;  %v181_v53 = vrot.slane %v180_v48, 1  ;;  %v24090_v54 = vld [vmem:[#allocation2 + $0x30] sm:$0xff]  ;;  %v24092_v55 = vld [vmem:[#allocation2 + $0x38] sm:$0xff]  ;;  %v213_v58 = vpop.permute.xlu1 %212  ;;  %v202_v59 = vpop.permute.xlu0 %201 }
  0x91   :  { %944 = vst.msk [vmem:[#allocation2] ss:$8 sm:$0xf] %vm23927_vm0, %v23960_v3  ;;  %945 = vst.msk [vmem:[#allocation2] ss:$8 sm:$0xf0] %vm23927_vm0, %v23960_v3 }
  0x92   :  { %v194_v56 = vsel %vm193_vm13, %v191_v47, %v192_v52  ;;  %v183_v57 = vsel %vm182_vm14, %v180_v48, %v181_v53  ;;  %v214_v60 = vrot.slane %v213_v58, 1  ;;  %v203_v61 = vrot.slane %v202_v59, 1 }
  0x93   :  { %197 = vst.msk [vmem:[#allocation2 + $0x46] ss:$8 sm:$0xf] %vm23927_vm0, %v194_v56  ;;  %198 = vst.msk [vmem:[#allocation2 + $0x46] ss:$8 sm:$0xf0] %vm23927_vm0, %v194_v56 }
  0x94   :  { %186 = vst.msk [vmem:[#allocation2 + $0x45] ss:$8 sm:$0xf] %vm23927_vm0, %v183_v57  ;;  %187 = vst.msk [vmem:[#allocation2 + $0x45] ss:$8 sm:$0xf0] %vm23927_vm0, %v183_v57  ;;  %v216_v62 = vsel %vm215_vm15, %v213_v58, %v214_v60  ;;  %v205_v63 = vsel %vm30827_vm12, %v202_v59, %v203_v61  ;;  %v235_v0 = vpop.permute.xlu1 %234  ;;  %v224_v3 = vpop.permute.xlu0 %223 }
  0x95   :  { %219 = vst.msk [vmem:[#allocation2 + $0x80] ss:$8 sm:$0xf] %vm23927_vm0, %v216_v62  ;;  %220 = vst.msk [vmem:[#allocation2 + $0x80] ss:$8 sm:$0xf0] %vm23927_vm0, %v216_v62 }
  0x96   :  { %208 = vst.msk [vmem:[#allocation2 + $0x47] ss:$8 sm:$0xf] %vm23927_vm0, %v205_v63  ;;  %209 = vst.msk [vmem:[#allocation2 + $0x47] ss:$8 sm:$0xf0] %vm23927_vm0, %v205_v63 }
  0x97   :  { %v236_v4 = vrot.slane %v235_v0, 1  ;;  %v225_v5 = vrot.slane %v224_v3, 1  ;;  %vm366_vm12 = vcmask 1040384  }
  0x98   :  { %v257_v8 = vpop.permute.xlu1 %256  ;;  %v246_v10 = vpop.permute.xlu0 %245 }
  0x99   :  { %v238_v6 = vsel %vm30824_vm11, %v235_v0, %v236_v4  ;;  %v227_v7 = vsel %vm30823_vm10, %v224_v3, %v225_v5  ;;  %v258_v11 = vrot.slane %v257_v8, 1  ;;  %v247_v12 = vrot.slane %v246_v10, 1 }
  0x9a   :  { %241 = vst.msk [vmem:[#allocation2 + $0x82] ss:$8 sm:$0xf] %vm23927_vm0, %v238_v6  ;;  %242 = vst.msk [vmem:[#allocation2 + $0x82] ss:$8 sm:$0xf0] %vm23927_vm0, %v238_v6 }
  0x9b   :  { %230 = vst.msk [vmem:[#allocation2 + $0x81] ss:$8 sm:$0xf] %vm23927_vm0, %v227_v7  ;;  %231 = vst.msk [vmem:[#allocation2 + $0x81] ss:$8 sm:$0xf0] %vm23927_vm0, %v227_v7  ;;  %v260_v13 = vsel %vm30826_vm9, %v257_v8, %v258_v11  ;;  %v249_v14 = vsel %vm30825_vm8, %v246_v10, %v247_v12 }
  0x9c   :  { %vm281_vm10 = vcmask 48128   ;;  %vm270_vm11 = vcmask 56320   ;;  %263 = vst.msk [vmem:[#allocation2 + $0x84] ss:$8 sm:$0xf] %vm23927_vm0, %v260_v13  ;;  %v279_v18 = vpop.permute.xlu1 %278  ;;  %v268_v19 = vpop.permute.xlu0 %267  ;;  %vm303_vm8 = vcmask 31744  }
  0x9d   :  { %v318_v15 = vld [vmem:[#allocation2 + $0x48] sm:$0xff]  ;;  %v320_v16 = vld [vmem:[#allocation2 + $0x58] sm:$0xff]  ;;  %v317_v17 = vld [vmem:[#allocation2 + $0x40] sm:$0xff]  ;;  %264 = vst.msk [vmem:[#allocation2 + $0x84] ss:$8 sm:$0xf0] %vm23927_vm0, %v260_v13 }
  0x9e   :  { %252 = vst.msk [vmem:[#allocation2 + $0x83] ss:$8 sm:$0xf] %vm23927_vm0, %v249_v14  ;;  %253 = vst.msk [vmem:[#allocation2 + $0x83] ss:$8 sm:$0xf0] %vm23927_vm0, %v249_v14  ;;  %v22439_v20 = vpack.c.bf16 %v318_v15, %v24070_v44  ;;  %v22449_v21 = vpack.c.bf16 %v320_v16, %v24072_v45  ;;  %v22441_v22 = vpack.c.bf16 %v317_v17, %v24074_v46 }
  0x9f   :  { %v319_v23 = vld [vmem:[#allocation2 + $0x50] sm:$0xff]  ;;  %v280_v24 = vrot.slane %v279_v18, 1  ;;  %v269_v25 = vrot.slane %v268_v19, 1  ;;  %vm30828_vm9 = vcmask 39936   ;;  %v322_v46 = vld [vmem:[#allocation2 + $0x68] sm:$0xff]  ;;  %v324_v47 = vld [vmem:[#allocation2 + $0x78] sm:$0xff] }
  0xa0   :  { %v22451_v26 = vpack.c.bf16 %v319_v23, %v24084_v49  ;;  %22440 = vmatprep.subr.bf16.mxu0 %v22439_v20  ;;  %22450 = vmatprep.subr.bf16.mxu1 %v22449_v21  ;;  %v301_v29 = vpop.permute.xlu1 %300  ;;  %v290_v30 = vpop.permute.xlu0 %289  ;;  %v24192_v7 = vld [vmem:[%s30806_s1] sm:$0xff]  ;;  %v323_v11 = vld [vmem:[#allocation2 + $0x70] sm:$0xff]  ;;  %v22459_v12 = vpack.c.bf16 %v322_v46, %v24088_v51  ;;  %v22469_v16 = vpack.c.bf16 %v324_v47, %v24092_v55  ;;  %v749_v45 = vshrl.u32 %v39_v1, 7 }
  0xa1   :  { %v282_v27 = vsel %vm281_vm10, %v279_v18, %v280_v24  ;;  %v271_v28 = vsel %vm270_vm11, %v268_v19, %v269_v25  ;;  %22442 = vmatpush1.bf16.msra.mxu0 %v22441_v22  ;;  %v302_v31 = vrot.slane %v301_v29, 1  ;;  %v291_v32 = vrot.slane %v290_v30, 1  ;;  %v321_v10 = vld [vmem:[#allocation2 + $0x60] sm:$0xff] }
  0xa2   :  { %22452 = vmatpush1.bf16.msra.mxu1 %v22451_v26  ;;  %285 = vst.msk [vmem:[#allocation2 + $0x86] ss:$8 sm:$0xf] %vm23927_vm0, %v282_v27  ;;  %286 = vst.msk [vmem:[#allocation2 + $0x86] ss:$8 sm:$0xf0] %vm23927_vm0, %v282_v27  ;;  %v22461_v24 = vpack.c.bf16 %v321_v10, %v24086_v50 }
  0xa3   :  { %274 = vst.msk [vmem:[#allocation2 + $0x85] ss:$8 sm:$0xf] %vm23927_vm0, %v271_v28  ;;  %275 = vst.msk [vmem:[#allocation2 + $0x85] ss:$8 sm:$0xf0] %vm23927_vm0, %v271_v28  ;;  %v304_v33 = vsel %vm303_vm8, %v301_v29, %v302_v31  ;;  %v293_v34 = vsel %vm30828_vm9, %v290_v30, %v291_v32  ;;  %v22471_v28 = vpack.c.bf16 %v323_v11, %v24090_v54 }
  0xa4   :  { %307 = vst.msk [vmem:[#allocation2 + $0xc0] ss:$8 sm:$0xf] %vm23927_vm0, %v304_v33  ;;  %308 = vst.msk [vmem:[#allocation2 + $0xc0] ss:$8 sm:$0xf0] %vm23927_vm0, %v304_v33  ;;  %v958_v35 = vpop.permute.xlu1 %957  ;;  %v949_v36 = vpop.permute.xlu0 %948 }
  0xa5   :  { %296 = vst.msk [vmem:[#allocation2 + $0x87] ss:$8 sm:$0xf] %vm23927_vm0, %v293_v34  ;;  %297 = vst.msk [vmem:[#allocation2 + $0x87] ss:$8 sm:$0xf0] %vm23927_vm0, %v293_v34 }
  0xa6   :  { %v959_v37 = vrot.slane %v958_v35, 1  ;;  %v950_v38 = vrot.slane %v949_v36, 1  ;;  %vm23869_vm9 = vmmov 1   ;;  %v24218_v27 = vld [vmem:[%s30806_s1 + $0x8] sm:$0xff] }
  0xa8   :  { %v960_v39 = vsel %vm61_vm4, %v958_v35, %v959_v37  ;;  %v951_v40 = vsel %vm50_vm2, %v949_v36, %v950_v38  ;;  %v976_v41 = vpop.permute.xlu1 %975  ;;  %v967_v42 = vpop.permute.xlu0 %966  ;;  %vm24175_vm4 = vmpackc.low %vm366_vm12, %vm23869_vm9  ;;  %v24239_v36 = vld [vmem:[#allocation4 + $0x38] sm:$0xff]  ;;  %v24245_v37 = vld [vmem:[%s30806_s1 + $0x10] sm:$0xf]  ;;  %vm30947_vm9 = vcmask 539648  }
  0xa9   :  { %962 = vst.msk [vmem:[#allocation2 + $0x2] ss:$8 sm:$0xf] %vm23927_vm0, %v960_v39  ;;  %963 = vst.msk [vmem:[#allocation2 + $0x2] ss:$8 sm:$0xf0] %vm23927_vm0, %v960_v39 }
  0xaa   :  { %953 = vst.msk [vmem:[#allocation2 + $0x1] ss:$8 sm:$0xf] %vm23927_vm0, %v951_v40  ;;  %954 = vst.msk [vmem:[#allocation2 + $0x1] ss:$8 sm:$0xf0] %vm23927_vm0, %v951_v40 }
  0xab   :  { %v977_v43 = vrot.slane %v976_v41, 1  ;;  %v968_v44 = vrot.slane %v967_v42, 1  ;;  %v334_v53 = vld [vmem:[#allocation2 + $0xc8] sm:$0x1]  ;;  %v336_v60 = vld [vmem:[#allocation2 + $0xd8] sm:$0x1] }
  0xac   :  { %v326_v52 = vld [vmem:[#allocation2 + $0x88] sm:$0xff]  ;;  %v328_v56 = vld [vmem:[#allocation2 + $0x98] sm:$0xff]  ;;  %v994_v57 = vpop.permute.xlu1 %993  ;;  %v985_v58 = vpop.permute.xlu0 %984  ;;  %v325_v61 = vld [vmem:[#allocation2 + $0x80] sm:$0xff]  ;;  %30944 = vst [vmem:[#allocation8_spill] sm:$0xff] %v24239_v36 }
  0xad   :  { %v978_v48 = vsel %vm83_vm3, %v976_v41, %v977_v43  ;;  %v969_v49 = vsel %vm72_vm1, %v967_v42, %v968_v44  ;;  %v22443_v59 = vpack.c.bf16 %v334_v53, %v326_v52  ;;  %v333_v62 = vld [vmem:[#allocation2 + $0xc0] sm:$0x1]  ;;  %v995_v63 = vrot.slane %v994_v57, 1  ;;  %v327_v5 = vld [vmem:[#allocation2 + $0x90] sm:$0xff]  ;;  %v330_v13 = vld [vmem:[#allocation2 + $0xa8] sm:$0xff] }
  0xae   :  { %980 = vst.msk [vmem:[#allocation2 + $0x4] ss:$8 sm:$0xf] %vm23927_vm0, %v978_v48  ;;  %981 = vst.msk [vmem:[#allocation2 + $0x4] ss:$8 sm:$0xf0] %vm23927_vm0, %v978_v48  ;;  %v22453_v3 = vpack.c.bf16 %v336_v60, %v328_v56  ;;  %v22446_v4 = vpack.c.bf16 %v333_v62, %v325_v61 }
  0xaf   :  { %971 = vst.msk [vmem:[#allocation2 + $0x3] ss:$8 sm:$0xf] %vm23927_vm0, %v969_v49  ;;  %972 = vst.msk [vmem:[#allocation2 + $0x3] ss:$8 sm:$0xf0] %vm23927_vm0, %v969_v49  ;;  %22445 = vmatprep.subr.msk.bf16.mxu0 %vm24175_vm4, %v22443_v59  ;;  %v996_v14 = vsel %vm105_vm5, %v994_v57, %v995_v63 }
  0xb0   :  { %v986_v0 = vrot.slane %v985_v58, 1  ;;  %v335_v6 = vld [vmem:[#allocation2 + $0xd0] sm:$0x1]  ;;  %22455 = vmatprep.subr.msk.bf16.mxu1 %vm24175_vm4, %v22453_v3  ;;  %22448 = vmatpush1.bf16.msk.msra.mxu0 %vm24175_vm4, %v22446_v4  ;;  %vm356_vm1 = vcmask 203776   ;;  %v338_v17 = vld [vmem:[#allocation2 + $0xe8] sm:$0x1]  ;;  %v1012_v51 = vpop.permute.xlu1 %1011  ;;  %v1003_v55 = vpop.permute.xlu0 %1002 }
  0xb1   :  { %v22456_v8 = vpack.c.bf16 %v335_v6, %v327_v5  ;;  %v332_v18 = vld [vmem:[#allocation2 + $0xb8] sm:$0xff]  ;;  %998 = vst.msk [vmem:[#allocation2 + $0x6] ss:$8 sm:$0xf] %vm23927_vm0, %v996_v14  ;;  %22460 = vmatprep.subr.bf16.mxu0 %v22459_v12  ;;  %v329_v20 = vld [vmem:[#allocation2 + $0xa0] sm:$0xff]  ;;  %v1013_v22 = vrot.slane %v1012_v51, 1  ;;  %v22463_v29 = vpack.c.bf16 %v338_v17, %v330_v13 }
  0xb2   :  { %v987_v15 = vsel %vm94_vm6, %v985_v58, %v986_v0  ;;  %v340_v19 = vld [vmem:[#allocation2 + $0xf8] sm:$0x1]  ;;  %999 = vst.msk [vmem:[#allocation2 + $0x6] ss:$8 sm:$0xf0] %vm23927_vm0, %v996_v14  ;;  %v1004_v23 = vrot.slane %v1003_v55, 1 }
  0xb3   :  { %989 = vst.msk [vmem:[#allocation2 + $0x5] ss:$8 sm:$0xf] %vm23927_vm0, %v987_v15  ;;  %990 = vst.msk [vmem:[#allocation2 + $0x5] ss:$8 sm:$0xf0] %vm23927_vm0, %v987_v15  ;;  %22458 = vmatpush1.bf16.msk.msra.mxu1 %vm24175_vm4, %v22456_v8  ;;  %17718 = vmatmul.mubr.msk.f32.vlgmr.msra.gmra.mrb[0].mxu0 %vm356_vm1, %v24192_v7  ;;  %v1014_v30 = vsel %vm127_vm7, %v1012_v51, %v1013_v22  ;;  %v22473_v50 = vpack.c.bf16 %v340_v19, %v332_v18 }
  0xb4   :  { %v337_v21 = vld [vmem:[#allocation2 + $0xe0] sm:$0x1]  ;;  %22470 = vmatprep.subr.bf16.mxu1 %v22469_v16  ;;  %v331_v25 = vld [vmem:[#allocation2 + $0xb0] sm:$0xff]  ;;  %vm30943_vm3 = vcmask 785408   ;;  %22462 = vmatpush1.bf16.msra.mxu0 %v22461_v24  ;;  %v1030_v54 = vpop.permute.xlu1 %1029  ;;  %v1021_v32 = vpop.permute.xlu0 %1020  ;;  %vm30945_vm5 = vcmask 556032   ;;  %vm30946_vm7 = vcmask 769024  }
  0xb5   :  { %v339_v26 = vld [vmem:[#allocation2 + $0xf0] sm:$0x1]  ;;  %v1005_v31 = vsel %vm30943_vm3, %v1003_v55, %v1004_v23  ;;  %1016 = vst.msk [vmem:[#allocation2 + $0x40] ss:$8 sm:$0xf] %vm23927_vm0, %v1014_v30  ;;  %22465 = vmatprep.subr.msk.bf16.mxu0 %vm24175_vm4, %v22463_v29  ;;  %v1031_v33 = vrot.slane %v1030_v54, 1  ;;  %v22466_v35 = vpack.c.bf16 %v337_v21, %v329_v20  ;;  %461 = vmatprep.mubr.f32.mxu0 %v24239_v36 }
  0xb6   :  { %17723 = vmatmul.mubr.msk.f32.vlgmr.msra.gmra.mrb[0].mxu1 %vm356_vm1, %v24192_v7  ;;  %1017 = vst.msk [vmem:[#allocation2 + $0x40] ss:$8 sm:$0xf0] %vm23927_vm0, %v1014_v30  ;;  %1007 = vst.msk [vmem:[#allocation2 + $0x7] ss:$8 sm:$0xf] %vm23927_vm0, %v1005_v31  ;;  %v22476_v38 = vpack.c.bf16 %v339_v26, %v331_v25 }
  0xb7   :  { %1008 = vst.msk [vmem:[#allocation2 + $0x7] ss:$8 sm:$0xf0] %vm23927_vm0, %v1005_v31  ;;  %22472 = vmatpush1.bf16.msra.mxu1 %v22471_v28  ;;  %v1022_v34 = vrot.slane %v1021_v32, 1  ;;  %544 = vmatprep.mubr.f32.mxu1 %v24239_v36  ;;  %v1032_v39 = vsel %vm30945_vm5, %v1030_v54, %v1031_v33  ;;  %vm30948_vm3 = vcmask 547840   ;;  %vm30951_vm5 = vcmask 293888  }
  0xb8   :  { %22475 = vmatprep.subr.msk.bf16.mxu1 %vm24175_vm4, %v22473_v50  ;;  %17719 = vmatmul.mubr.msk.f32.gmra.mrb[2].mxu0 %vm356_vm1, %v24218_v27  ;;  %1034 = vst.msk [vmem:[#allocation2 + $0x42] ss:$8 sm:$0xf] %vm23927_vm0, %v1032_v39  ;;  %1035 = vst.msk [vmem:[#allocation2 + $0x42] ss:$8 sm:$0xf0] %vm23927_vm0, %v1032_v39  ;;  %v1048_v41 = vpop.permute.xlu1 %1047  ;;  %v1039_v42 = vpop.permute.xlu0 %1038 }
  0xb9   :  { %v1023_v40 = vsel %vm30946_vm7, %v1021_v32, %v1022_v34  ;;  %22468 = vmatpush1.bf16.msk.msra.mxu0 %vm24175_vm4, %v22466_v35  ;;  %467 = vmatprep.mubr.f32.mxu0 %v24239_v36  ;;  %v1049_v43 = vrot.slane %v1048_v41, 1  ;;  %v1040_v44 = vrot.slane %v1039_v42, 1  ;;  %vm30952_vm7 = vcmask 64512  }
  0xba   :  { %17724 = vmatmul.mubr.msk.f32.gmra.mrb[2].mxu1 %vm356_vm1, %v24218_v27  ;;  %1025 = vst.msk [vmem:[#allocation2 + $0x41] ss:$8 sm:$0xf] %vm23927_vm0, %v1023_v40  ;;  %1026 = vst.msk [vmem:[#allocation2 + $0x41] ss:$8 sm:$0xf0] %vm23927_vm0, %v1023_v40 }
  0xbb   :  { %22478 = vmatpush1.bf16.msk.msra.mxu1 %vm24175_vm4, %v22476_v38  ;;  %550 = vmatprep.mubr.f32.mxu1 %v24239_v36  ;;  %v1050_v46 = vsel %vm30947_vm9, %v1048_v41, %v1049_v43  ;;  %v1041_v47 = vsel %vm30948_vm3, %v1039_v42, %v1040_v44  ;;  %vm30953_vm9 = vcmask 277504  }
  0xbc   :  { %17720 = vmatmul.mubr.msk.f32.gmra.mrb[4].mxu0 %vm356_vm1, %v24245_v37  ;;  %1052 = vst.msk [vmem:[#allocation2 + $0x44] ss:$8 sm:$0xf] %vm23927_vm0, %v1050_v46  ;;  %1053 = vst.msk [vmem:[#allocation2 + $0x44] ss:$8 sm:$0xf0] %vm23927_vm0, %v1050_v46  ;;  %v1066_v48 = vpop.permute.xlu1 %1065  ;;  %v1057_v49 = vpop.permute.xlu0 %1056 }
  0xbd   :  { %621 = vmatprep.mubr.f32.mxu0 %v24239_v36  ;;  %1043 = vst.msk [vmem:[#allocation2 + $0x43] ss:$8 sm:$0xf] %vm23927_vm0, %v1041_v47  ;;  %1044 = vst.msk [vmem:[#allocation2 + $0x43] ss:$8 sm:$0xf0] %vm23927_vm0, %v1041_v47 }
  0xbe   :  { %17725 = vmatmul.mubr.msk.f32.gmra.mrb[4].mxu1 %vm356_vm1, %v24245_v37  ;;  %v1067_v52 = vrot.slane %v1066_v48, 1  ;;  %v1058_v53 = vrot.slane %v1057_v49, 1  ;;  %v1163_v14 = vld [vmem:[#allocation2 + $0x8] sm:$0xff]  ;;  %v1165_v15 = vld [vmem:[#allocation2 + $0x18] sm:$0xff]  ;;  %v1162_v16 = vld [vmem:[#allocation2] sm:$0xff] }
  0xbf   :  { %704 = vmatprep.mubr.f32.mxu1 %v24239_v36  ;;  %v1164_v25 = vld [vmem:[#allocation2 + $0x10] sm:$0xff]  ;;  %v1167_v44 = vld [vmem:[#allocation2 + $0x28] sm:$0xff] }
  0xc0   :  { %17728 = vmatmul.mubr.msk.f32.vlgmr.msra.gmra.mrb[6].mxu0 %vm356_vm1, %v24192_v7  ;;  %v1068_v56 = vsel %vm193_vm13, %v1066_v48, %v1067_v52  ;;  %v1059_v57 = vsel %vm182_vm14, %v1057_v49, %v1058_v53  ;;  %v1084_v58 = vpop.permute.xlu1 %1083  ;;  %v1075_v59 = vpop.permute.xlu0 %1074  ;;  %vm30949_vm14 = vcmask 310272  }
  0xc1   :  { %627 = vmatprep.mubr.f32.mxu0 %v24239_v36  ;;  %1070 = vst.msk [vmem:[#allocation2 + $0x46] ss:$8 sm:$0xf] %vm23927_vm0, %v1068_v56  ;;  %1071 = vst.msk [vmem:[#allocation2 + $0x46] ss:$8 sm:$0xf0] %vm23927_vm0, %v1068_v56 }
  0xc2   :  { %17733 = vmatmul.mubr.msk.f32.vlgmr.msra.gmra.mrb[6].mxu1 %vm356_vm1, %v24192_v7  ;;  %1061 = vst.msk [vmem:[#allocation2 + $0x45] ss:$8 sm:$0xf] %vm23927_vm0, %v1059_v57  ;;  %1062 = vst.msk [vmem:[#allocation2 + $0x45] ss:$8 sm:$0xf0] %vm23927_vm0, %v1059_v57 }
  0xc3   :  { %710 = vmatprep.mubr.f32.mxu1 %v24239_v36  ;;  %v1085_v60 = vrot.slane %v1084_v58, 1  ;;  %v1076_v61 = vrot.slane %v1075_v59, 1 }
  0xc4   :  { %17729 = vmatmul.mubr.msk.f32.gmra.mrb[8].mxu0 %vm356_vm1, %v24218_v27  ;;  %v1102_v0 = vpop.permute.xlu1 %1101  ;;  %v1093_v3 = vpop.permute.xlu0 %1092 }
  0xc5   :  { %v1086_v62 = vsel %vm215_vm15, %v1084_v58, %v1085_v60  ;;  %v1077_v63 = vsel %vm30949_vm14, %v1075_v59, %v1076_v61  ;;  %633 = vmatprep.mubr.f32.mxu0 %v24239_v36  ;;  %v1103_v4 = vrot.slane %v1102_v0, 1  ;;  %v1094_v5 = vrot.slane %v1093_v3, 1  ;;  %v1169_v58 = vld [vmem:[#allocation2 + $0x38] sm:$0xff]  ;;  %v1166_v60 = vld [vmem:[#allocation2 + $0x20] sm:$0xff] }
  0xc6   :  { %17734 = vmatmul.mubr.msk.f32.gmra.mrb[8].mxu1 %vm356_vm1, %v24218_v27  ;;  %1088 = vst.msk [vmem:[#allocation2 + $0x80] ss:$8 sm:$0xf] %vm23927_vm0, %v1086_v62  ;;  %1089 = vst.msk [vmem:[#allocation2 + $0x80] ss:$8 sm:$0xf0] %vm23927_vm0, %v1086_v62 }
  0xc7   :  { %1079 = vst.msk [vmem:[#allocation2 + $0x47] ss:$8 sm:$0xf] %vm23927_vm0, %v1077_v63  ;;  %1080 = vst.msk [vmem:[#allocation2 + $0x47] ss:$8 sm:$0xf0] %vm23927_vm0, %v1077_v63  ;;  %716 = vmatprep.mubr.f32.mxu1 %v24239_v36  ;;  %v1095_v8 = vsel %vm30951_vm5, %v1093_v3, %v1094_v5 }
  0xc8   :  { %17730 = vmatmul.mubr.msk.f32.gmra.mrb[10].mxu0 %vm356_vm1, %v24245_v37  ;;  %vm30950_vm15 = vcmask 285696   ;;  %1097 = vst.msk [vmem:[#allocation2 + $0x81] ss:$8 sm:$0xf] %vm23927_vm0, %v1095_v8  ;;  %v1120_v10 = vpop.permute.xlu1 %1119  ;;  %v1111_v11 = vpop.permute.xlu0 %1110  ;;  %v1168_v3 = vld [vmem:[#allocation2 + $0x30] sm:$0xff] }
  0xc9   :  { %v1104_v6 = vsel %vm30950_vm15, %v1102_v0, %v1103_v4  ;;  %1282 = vmatprep.mubr.f32.mxu0 %v24239_v36  ;;  %1098 = vst.msk [vmem:[#allocation2 + $0x81] ss:$8 sm:$0xf0] %vm23927_vm0, %v1095_v8  ;;  %v1121_v12 = vrot.slane %v1120_v10, 1  ;;  %v1112_v13 = vrot.slane %v1111_v11, 1 }
  0xca   :  { %17735 = vmatmul.mubr.msk.f32.gmra.mrb[10].mxu1 %vm356_vm1, %v24245_v37  ;;  %1106 = vst.msk [vmem:[#allocation2 + $0x82] ss:$8 sm:$0xf] %vm23927_vm0, %v1104_v6  ;;  %1107 = vst.msk [vmem:[#allocation2 + $0x82] ss:$8 sm:$0xf0] %vm23927_vm0, %v1104_v6 }
  0xcb   :  { %1365 = vmatprep.mubr.f32.mxu1 %v24239_v36  ;;  %v1122_v17 = vsel %vm30952_vm7, %v1120_v10, %v1121_v12  ;;  %v1113_v18 = vsel %vm30953_vm9, %v1111_v11, %v1112_v13 }
  0xcc   :  { %1124 = vst.msk [vmem:[#allocation2 + $0x84] ss:$8 sm:$0xf] %vm23927_vm0, %v1122_v17  ;;  %1125 = vst.msk [vmem:[#allocation2 + $0x84] ss:$8 sm:$0xf0] %vm23927_vm0, %v1122_v17  ;;  %v1138_v20 = vpop.permute.xlu1 %1137  ;;  %v1129_v21 = vpop.permute.xlu0 %1128 }
  0xcd   :  { %1115 = vst.msk [vmem:[#allocation2 + $0x83] ss:$8 sm:$0xf] %vm23927_vm0, %v1113_v18  ;;  %1116 = vst.msk [vmem:[#allocation2 + $0x83] ss:$8 sm:$0xf0] %vm23927_vm0, %v1113_v18 }
  0xce   :  { %v1171_v19 = vld [vmem:[#allocation2 + $0x48] sm:$0xff]  ;;  %v1173_v51 = vld [vmem:[#allocation2 + $0x58] sm:$0xff]  ;;  %v1170_v55 = vld [vmem:[#allocation2 + $0x40] sm:$0xff]  ;;  %v1139_v28 = vrot.slane %v1138_v20, 1  ;;  %v1130_v29 = vrot.slane %v1129_v21, 1 }
  0xcf   :  { %v22479_v22 = vpack.c.bf16 %v1171_v19, %v1163_v14  ;;  %v22489_v23 = vpack.c.bf16 %v1173_v51, %v1165_v15  ;;  %v22481_v24 = vpack.c.bf16 %v1170_v55, %v1162_v16  ;;  %v1172_v26 = vld [vmem:[#allocation2 + $0x50] sm:$0xff]  ;;  %v1175_v39 = vld [vmem:[#allocation2 + $0x68] sm:$0xff]  ;;  %v1177_v40 = vld [vmem:[#allocation2 + $0x78] sm:$0xff]  ;;  %v24415_v19 = vsub.s32 1, %v749_v45 }
  0xd0   :  { %v22491_v30 = vpack.c.bf16 %v1172_v26, %v1164_v25  ;;  %v1140_v31 = vsel %vm281_vm10, %v1138_v20, %v1139_v28  ;;  %v1131_v50 = vsel %vm270_vm11, %v1129_v21, %v1130_v29  ;;  %v1156_v54 = vpop.permute.xlu1 %1155  ;;  %v1147_v32 = vpop.permute.xlu0 %1146  ;;  %vm30954_vm10 = vcmask 39936   ;;  %v1174_v61 = vld [vmem:[#allocation2 + $0x60] sm:$0xff]  ;;  %v1176_v62 = vld [vmem:[#allocation2 + $0x70] sm:$0xff] }
  0xd1   :  { %22480 = vmatprep.subr.bf16.mxu0 %v22479_v22  ;;  %22490 = vmatprep.subr.bf16.mxu1 %v22489_v23  ;;  %1142 = vst.msk [vmem:[#allocation2 + $0x86] ss:$8 sm:$0xf] %vm23927_vm0, %v1140_v31  ;;  %1143 = vst.msk [vmem:[#allocation2 + $0x86] ss:$8 sm:$0xf0] %vm23927_vm0, %v1140_v31  ;;  %v22499_v59 = vpack.c.bf16 %v1175_v39, %v1167_v44  ;;  %v22509_v0 = vpack.c.bf16 %v1177_v40, %v1169_v58 }
  0xd2   :  { %22482 = vmatpush1.bf16.msra.mxu0 %v22481_v24  ;;  %22492 = vmatpush1.bf16.msra.mxu1 %v22491_v30  ;;  %1133 = vst.msk [vmem:[#allocation2 + $0x85] ss:$8 sm:$0xf] %vm23927_vm0, %v1131_v50  ;;  %1134 = vst.msk [vmem:[#allocation2 + $0x85] ss:$8 sm:$0xf0] %vm23927_vm0, %v1131_v50  ;;  %v22501_v11 = vpack.c.bf16 %v1174_v61, %v1166_v60  ;;  %v22511_v14 = vpack.c.bf16 %v1176_v62, %v1168_v3 }
  0xd3   :  { %v1157_v33 = vrot.slane %v1156_v54, 1  ;;  %v1148_v34 = vrot.slane %v1147_v32, 1  ;;  %30956 = vst [vmem:[#allocation10_spill] sm:$0xff] %v24415_v19  ;;  %v24417_v51 = vsub.s32 2, %v749_v45  ;;  %v24426_v21 = vsub.s32 3, %v749_v45 }
  0xd4   :  { %vm832_vm11 = vcmask 1043456  }
  0xd5   :  { %v1158_v35 = vsel %vm303_vm8, %v1156_v54, %v1157_v33  ;;  %v1149_v38 = vsel %vm30954_vm10, %v1147_v32, %v1148_v34  ;;  %30957 = vst [vmem:[#allocation11_spill] sm:$0xff] %v24417_v51  ;;  %30958 = vst [vmem:[#allocation12_spill] sm:$0xff] %v24426_v21 }
  0xd6   :  { %1160 = vst.msk [vmem:[#allocation2 + $0xc0] ss:$8 sm:$0xf] %vm23927_vm0, %v1158_v35  ;;  %1161 = vst.msk [vmem:[#allocation2 + $0xc0] ss:$8 sm:$0xf0] %vm23927_vm0, %v1158_v35 }
  0xd7   :  { %1151 = vst.msk [vmem:[#allocation2 + $0x87] ss:$8 sm:$0xf] %vm23927_vm0, %v1149_v38  ;;  %1152 = vst.msk [vmem:[#allocation2 + $0x87] ss:$8 sm:$0xf0] %vm23927_vm0, %v1149_v38 }
  0xd8   :  { %vm1797_vm0 = vcmask 31748  }
  0xdd   :  { %v1187_v42 = vld [vmem:[#allocation2 + $0xc8] sm:$0x1]  ;;  %v1189_v47 = vld [vmem:[#allocation2 + $0xd8] sm:$0x1]  ;;  %v1186_v49 = vld [vmem:[#allocation2 + $0xc0] sm:$0x1] }
  0xde   :  { %v1179_v41 = vld [vmem:[#allocation2 + $0x88] sm:$0xff]  ;;  %v1181_v43 = vld [vmem:[#allocation2 + $0x98] sm:$0xff]  ;;  %v1178_v48 = vld [vmem:[#allocation2 + $0x80] sm:$0xff] }
  0xdf   :  { %v22483_v46 = vpack.c.bf16 %v1187_v42, %v1179_v41  ;;  %v22493_v52 = vpack.c.bf16 %v1189_v47, %v1181_v43  ;;  %v22486_v53 = vpack.c.bf16 %v1186_v49, %v1178_v48  ;;  %v1180_v56 = vld [vmem:[#allocation2 + $0x90] sm:$0xff]  ;;  %v1183_v63 = vld [vmem:[#allocation2 + $0xa8] sm:$0xff]  ;;  %v1185_v5 = vld [vmem:[#allocation2 + $0xb8] sm:$0xff]  ;;  %v24459_v41 = vsub.s32 4, %v749_v45 }
  0xe0   :  { %v1188_v57 = vld [vmem:[#allocation2 + $0xd0] sm:$0x1]  ;;  %v1191_v4 = vld [vmem:[#allocation2 + $0xe8] sm:$0x1]  ;;  %v1193_v6 = vld [vmem:[#allocation2 + $0xf8] sm:$0x1] }
  0xe1   :  { %22485 = vmatprep.subr.msk.bf16.mxu0 %vm24175_vm4, %v22483_v46  ;;  %v22496_v2 = vpack.c.bf16 %v1188_v57, %v1180_v56  ;;  %22495 = vmatprep.subr.msk.bf16.mxu1 %vm24175_vm4, %v22493_v52  ;;  %v1182_v8 = vld [vmem:[#allocation2 + $0xa0] sm:$0xff]  ;;  %v1184_v12 = vld [vmem:[#allocation2 + $0xb0] sm:$0xff]  ;;  %v22503_v15 = vpack.c.bf16 %v1191_v4, %v1183_v63  ;;  %v22513_v16 = vpack.c.bf16 %v1193_v6, %v1185_v5  ;;  %v24424_v55 = vpop.permute.xlu0 %343  ;;  %v24439_v29 = vpop.permute.xlu1 %348  ;;  %v24461_v42 = vsub.s32 5, %v749_v45 }
  0xe2   :  { %22488 = vmatpush1.bf16.msk.msra.mxu0 %vm24175_vm4, %v22486_v53  ;;  %v1190_v10 = vld [vmem:[#allocation2 + $0xe0] sm:$0x1]  ;;  %v1192_v13 = vld [vmem:[#allocation2 + $0xf0] sm:$0x1]  ;;  %30962 = vst [vmem:[#allocation16_spill] sm:$0xff] %v24459_v41  ;;  %v24467_v48 = vsub.s32 6, %v749_v45 }
  0xe3   :  { %22498 = vmatpush1.bf16.msk.msra.mxu1 %vm24175_vm4, %v22496_v2  ;;  %22500 = vmatprep.subr.bf16.mxu0 %v22499_v59  ;;  %v22506_v17 = vpack.c.bf16 %v1190_v10, %v1182_v8  ;;  %v22516_v18 = vpack.c.bf16 %v1192_v13, %v1184_v12  ;;  %30963 = vst [vmem:[#allocation17_spill] sm:$0xff] %v24461_v42 }
  0xe4   :  { %22510 = vmatprep.subr.bf16.mxu1 %v22509_v0  ;;  %30964 = vst [vmem:[#allocation18_spill] sm:$0xff] %v24467_v48  ;;  %v24488_v0 = vsub.s32 7, %v749_v45 }
  0xe5   :  { %17763 = vmatmul.mubr.msk.f32.vlgmr.msra.gmra.mrb[12].mxu0 %vm356_vm1, %v24192_v7 }
  0xe6   :  { %17768 = vmatmul.mubr.msk.f32.vlgmr.msra.gmra.mrb[12].mxu1 %vm356_vm1, %v24192_v7  ;;  %22502 = vmatpush1.bf16.msra.mxu0 %v22501_v11  ;;  %30969 = vst [vmem:[#allocation23_spill] sm:$0xff] %v24488_v0 }
  0xe7   :  { %22512 = vmatpush1.bf16.msra.mxu1 %v22511_v14  ;;  %22505 = vmatprep.subr.msk.bf16.mxu0 %vm24175_vm4, %v22503_v15 }
  0xe8   :  { %22515 = vmatprep.subr.msk.bf16.mxu1 %vm24175_vm4, %v22513_v16  ;;  %1288 = vmatprep.mubr.f32.mxu0 %v24239_v36 }
  0xe9   :  { %1371 = vmatprep.mubr.f32.mxu1 %v24239_v36  ;;  %17764 = vmatmul.mubr.msk.f32.gmra.mrb[14].mxu0 %vm356_vm1, %v24218_v27 }
  0xea   :  { %17769 = vmatmul.mubr.msk.f32.gmra.mrb[14].mxu1 %vm356_vm1, %v24218_v27  ;;  %22508 = vmatpush1.bf16.msk.msra.mxu0 %vm24175_vm4, %v22506_v17 }
  0xeb   :  { %22518 = vmatpush1.bf16.msk.msra.mxu1 %vm24175_vm4, %v22516_v18  ;;  %1294 = vmatprep.mubr.f32.mxu0 %v24239_v36  ;;  %vm846_vm4 = vcmask 27648  }
  0xec   :  { %1377 = vmatprep.mubr.f32.mxu1 %v24239_v36 }
  0xed   :  { %17765 = vmatmul.mubr.msk.f32.gmra.mrb[16].mxu0 %vm356_vm1, %v24245_v37 }
  0xee   :  { %17770 = vmatmul.mubr.msk.f32.gmra.mrb[16].mxu1 %vm356_vm1, %v24245_v37  ;;  %1448 = vmatprep.mubr.f32.mxu0 %v24239_v36 }
  0xef   :  { %1531 = vmatprep.mubr.f32.mxu1 %v24239_v36 }
  0xf1   :  { %17773 = vmatmul.mubr.msk.f32.vlgmr.msra.gmra.mrb[18].mxu0 %vm356_vm1, %v24192_v7 }
  0xf2   :  { %17778 = vmatmul.mubr.msk.f32.vlgmr.msra.gmra.mrb[18].mxu1 %vm356_vm1, %v24192_v7  ;;  %1454 = vmatprep.mubr.f32.mxu0 %v24239_v36  ;;  %v24413_v7 = vsub.s32 0, %v749_v45 }
  0xf3   :  { %1537 = vmatprep.mubr.f32.mxu1 %v24239_v36 }
  0xf4   :  { %30955 = vst [vmem:[#allocation9_spill] sm:$0xff] %v24413_v7 }
  0xf5   :  { %17774 = vmatmul.mubr.msk.f32.gmra.mrb[20].mxu0 %vm356_vm1, %v24218_v27 }
  0xf6   :  { %17779 = vmatmul.mubr.msk.f32.gmra.mrb[20].mxu1 %vm356_vm1, %v24218_v27  ;;  %1460 = vmatprep.mubr.f32.mxu0 %v24239_v36  ;;  %v24422_v27 = vld [vmem:[%s30808_s3] sm:$0xff] }
  0xf7   :  { %1543 = vmatprep.mubr.f32.mxu1 %v24239_v36  ;;  %v24431_v1 = vrot.slane %v24422_v27, %v24413_v7  ;;  %v24436_v25 = vrot.slane %v24422_v27, %v24415_v19  ;;  %v24445_v31 = vrot.slane %v24422_v27, %v24417_v51  ;;  %v24454_v34 = vrot.slane %v24422_v27, %v24426_v21 }
  0xf8   :  { %v24514_v17 = vrot.slane %v24422_v27, %v24459_v41  ;;  %v24518_v45 = vrot.slane %v24422_v27, %v24461_v42 }
  0xf9   :  { %17775 = vmatmul.mubr.msk.f32.gmra.mrb[22].mxu0 %vm356_vm1, %v24245_v37 }
  0xfa   :  { %17780 = vmatmul.mubr.msk.f32.gmra.mrb[22].mxu1 %vm356_vm1, %v24245_v37 }
 0x186   :  { %v457_v20 = vpop.f32.mrb[0].mxu0 }
 0x187   :  { %v458_v37 = vadd.f32 %v457_v20, %v24424_v55  ;;  %v459_v22 = vpop.f32.mrb[1].mxu0 }
 0x188   :  { %v460_v24 = vadd.f32 %v459_v22, %v24424_v55 }
 0x189   :  { %v540_v23 = vpop.f32.mrb[0].mxu1  ;;  %v24441_v30 = vmax.f32 %v458_v37, 0.0 }
 0x18a   :  { %v541_v26 = vadd.f32 %v540_v23, %v24424_v55  ;;  %v542_v28 = vpop.f32.mrb[1].mxu1  ;;  %v24448_v54 = vmax.f32 %v460_v24, 0.0 }
 0x18b   :  { %30959 = vst [vmem:[#allocation13_spill] sm:$0xff] %v24441_v30  ;;  %v543_v50 = vadd.f32 %v542_v28, %v24424_v55  ;;  %v463_v32 = vpop.f32.mrb[2].mxu0  ;;  %v788_v35 = vmul.f32 %v24431_v1, %v24441_v30 }
 0x18c   :  { %30960 = vst [vmem:[#allocation14_spill] sm:$0xff] %v24448_v54  ;;  %v24450_v33 = vmax.f32 %v541_v26, 0.0  ;;  %v465_v38 = vpop.f32.mrb[3].mxu0  ;;  %v464_v39 = vadd.f32 %v463_v32, %v24439_v29  ;;  %v789_v43 = vmul.f32 %v24436_v25, %v24448_v54  ;;  %v24524_v26 = vrot.slane %v24422_v27, %v24467_v48 }
 0x18d   :  { %v546_v40 = vpop.f32.mrb[2].mxu1  ;;  %v466_v44 = vadd.f32 %v465_v38, %v24439_v29  ;;  %v854_v49 = vmul.f32 %v788_v35, %v24441_v30  ;;  %v24472_v53 = vmax.f32 %v543_v50, 0.0 }
 0x18e   :  { %30961 = vst [vmem:[#allocation15_spill] sm:$0xff] %v24450_v33  ;;  %v547_v46 = vadd.f32 %v546_v40, %v24439_v29  ;;  %v548_v47 = vpop.f32.mrb[3].mxu1  ;;  %v790_v52 = vmul.f32 %v24445_v31, %v24450_v33  ;;  %v24474_v56 = vmax.f32 %v464_v39, 0.0  ;;  %v812_v57 = vadd.f32 %v789_v43, %v788_v35 }
 0x18f   :  { %30965 = vst [vmem:[#allocation19_spill] sm:$0xff] %v24472_v53  ;;  %v855_v58 = vmul.f32 %v789_v43, %v24448_v54  ;;  %v24477_v2 = vpop.f32.mrb[4].mxu0  ;;  %v24479_v59 = vmax.f32 %v466_v44, 0.0  ;;  %v549_v60 = vadd.f32 %v548_v47, %v24439_v29  ;;  %v791_v11 = vmul.f32 %v24454_v34, %v24472_v53 }
 0x190   :  { %30966 = vst [vmem:[#allocation20_spill] sm:$0xff] %v24474_v56  ;;  %v24482_v61 = vpop.f32.mrb[5].mxu0  ;;  %v24484_v62 = vmax.f32 %v547_v46, 0.0  ;;  %v856_v4 = vmul.f32 %v790_v52, %v24450_v33  ;;  %v24493_v5 = vmul.f32 %v24431_v1, %v24474_v56  ;;  %v813_v10 = vadd.f32 %v812_v57, %v790_v52 }
 0x191   :  { %30967 = vst [vmem:[#allocation21_spill] sm:$0xff] %v24479_v59  ;;  %v24486_v63 = vpop.f32.mrb[4].mxu1  ;;  %v878_v3 = vadd.f32 %v855_v58, %v854_v49  ;;  %v24497_v6 = vmul.f32 %v24436_v25, %v24479_v59  ;;  %v24505_v14 = vmax.f32 %v549_v60, 0.0  ;;  %v857_v22 = vmul.f32 %v791_v11, %v24472_v53 }
 0x192   :  { %30968 = vst [vmem:[#allocation22_spill] sm:$0xff] %v24484_v62  ;;  %v24499_v8 = vpop.f32.mrb[5].mxu1  ;;  %v24509_v15 = vmul.f32 %v24445_v31, %v24484_v62  ;;  %v814_v38 = vadd.f32 %v813_v10, %v791_v11  ;;  %v24539_v44 = vrot.slane %v24422_v27, %v24488_v0 }
 0x193   :  { %v822_v12 = vadd.f32 %v24497_v6, %v24493_v5  ;;  %v623_v13 = vpop.f32.mrb[6].mxu0  ;;  %30970 = vst [vmem:[#allocation24_spill] sm:$0xff] %v24505_v14  ;;  %v879_v37 = vadd.f32 %v878_v3, %v856_v4  ;;  %v24533_v39 = vmul.f32 %v24454_v34, %v24505_v14 }
 0x194   :  { %v624_v16 = vadd.f32 %v623_v13, %v24424_v55  ;;  %v625_v18 = vpop.f32.mrb[7].mxu0 }
 0x195   :  { %v706_v20 = vpop.f32.mrb[6].mxu1  ;;  %v626_v23 = vadd.f32 %v625_v18, %v24424_v55  ;;  %v823_v28 = vadd.f32 %v822_v12, %v24509_v15  ;;  %v880_v60 = vadd.f32 %v879_v37, %v857_v22 }
 0x196   :  { %v708_v24 = vpop.f32.mrb[7].mxu1  ;;  %v24527_v50 = vmax.f32 %v624_v16, 0.0  ;;  %v707_v32 = vadd.f32 %v706_v20, %v24424_v55 }
 0x197   :  { %v709_v35 = vadd.f32 %v708_v24, %v24424_v55  ;;  %v24535_v40 = vmax.f32 %v626_v23, 0.0  ;;  %v629_v43 = vpop.f32.mrb[8].mxu0  ;;  %v824_v12 = vadd.f32 %v823_v28, %v24533_v39 }
 0x198   :  { %30971 = vst [vmem:[#allocation25_spill] sm:$0xff] %v24527_v50  ;;  %v792_v46 = vmul.f32 %v24514_v17, %v24527_v50  ;;  %v24543_v47 = vmax.f32 %v707_v32, 0.0  ;;  %v630_v52 = vadd.f32 %v629_v43, %v24439_v29  ;;  %v631_v57 = vpop.f32.mrb[9].mxu0 }
 0x199   :  { %30972 = vst [vmem:[#allocation26_spill] sm:$0xff] %v24535_v40  ;;  %v730_v49 = vmax.f32 %v709_v35, 0.0  ;;  %v712_v58 = vpop.f32.mrb[8].mxu1  ;;  %v793_v3 = vmul.f32 %v24518_v45, %v24535_v40  ;;  %v632_v4 = vadd.f32 %v631_v57, %v24439_v29 }
 0x19a   :  { %30973 = vst [vmem:[#allocation27_spill] sm:$0xff] %v24543_v47  ;;  %v713_v10 = vadd.f32 %v712_v58, %v24439_v29  ;;  %v714_v27 = vpop.f32.mrb[9].mxu1  ;;  %v858_v11 = vmul.f32 %v792_v46, %v24527_v50  ;;  %v24553_v13 = vmax.f32 %v630_v52, 0.0  ;;  %v794_v37 = vmul.f32 %v24524_v26, %v24543_v47 }
 0x19b   :  { %925 = vst.msk [vmem:[#allocation3 + $0x38] sm:$0xff] %vm303_vm8, %v730_v49  ;;  %v715_v16 = vadd.f32 %v714_v27, %v24439_v29  ;;  %v859_v18 = vmul.f32 %v793_v3, %v24535_v40  ;;  %v24557_v20 = vmax.f32 %v632_v4, 0.0  ;;  %v795_v22 = vmul.f32 %v24539_v44, %v730_v49  ;;  %v24562_v23 = vpop.f32.mrb[10].mxu0 }
 0x19c   :  { %30974 = vst [vmem:[#allocation28_spill] sm:$0xff] %v24553_v13  ;;  %v24564_v24 = vmax.f32 %v713_v10, 0.0  ;;  %v815_v32 = vadd.f32 %v814_v38, %v792_v46  ;;  %v24570_v43 = vpop.f32.mrb[11].mxu0  ;;  %v24574_v52 = vmul.f32 %v24514_v17, %v24553_v13  ;;  %v860_v58 = vmul.f32 %v794_v37, %v24543_v47 }
 0x19d   :  { %30975 = vst [vmem:[#allocation29_spill] sm:$0xff] %v24557_v20  ;;  %v24566_v28 = vmax.f32 %v715_v16, 0.0  ;;  %v24568_v35 = vpop.f32.mrb[10].mxu1  ;;  %v861_v4 = vmul.f32 %v795_v22, %v730_v49  ;;  %v881_v27 = vadd.f32 %v880_v60, %v858_v11  ;;  %v24583_v38 = vmul.f32 %v24518_v45, %v24557_v20 }
 0x19e   :  { %30976 = vst [vmem:[#allocation30_spill] sm:$0xff] %v24564_v24  ;;  %v24576_v57 = vpop.f32.mrb[11].mxu1  ;;  %v816_v10 = vadd.f32 %v815_v32, %v793_v3  ;;  %v818_v46 = vsel %vm303_vm8, %v795_v22, 0.0  ;;  %v825_v9 = vadd.f32 %v824_v12, %v24574_v52  ;;  %v24594_v3 = vmul.f32 %v24524_v26, %v24564_v24 }
 0x19f   :  { %933 = vst.msk [vmem:[#allocation3 + $0x78] sm:$0xff] %vm303_vm8, %v24566_v28  ;;  %v882_v16 = vadd.f32 %v881_v27, %v859_v18  ;;  %v24589_v41 = vmul.f32 %v24539_v44, %v24566_v28  ;;  %v884_v60 = vsel %vm303_vm8, %v861_v4, 0.0 }
 0x1a0   :  { %v817_v36 = vadd.f32 %v816_v10, %v794_v37  ;;  %v826_v11 = vadd.f32 %v825_v9, %v24583_v38 }
 0x1a1   :  { %v883_v49 = vadd.f32 %v882_v16, %v860_v58  ;;  %v828_v18 = vsel %vm303_vm8, %v24589_v41, 0.0 }
 0x1a2   :  { %v819_v32 = vadd.f32 %v818_v46, %v817_v36  ;;  %v827_v12 = vadd.f32 %v826_v11, %v24594_v3  ;;  %v862_v46 = vmul.f32 %v24493_v5, %v24474_v56  ;;  %v863_v11 = vmul.f32 %v24497_v6, %v24479_v59 }
 0x1a3   :  { %v885_v37 = vadd.f32 %v884_v60, %v883_v49 }
 0x1a4   :  { %820 = vadd.xlane.f32.xlu1 %v819_v32  ;;  %v829_v22 = vadd.f32 %v828_v18, %v827_v12  ;;  %v864_v32 = vmul.f32 %v24509_v15, %v24484_v62  ;;  %v888_v48 = vadd.f32 %v863_v11, %v862_v46 }
 0x1a6   :  { %830 = vadd.xlane.f32.xlu0 %v829_v22  ;;  %v889_v50 = vadd.f32 %v888_v48, %v864_v32 }
 0x1a8   :  { %886 = vadd.xlane.f32.xlu1 %v885_v37 }
 0x1b8   :  { %v1284_v58 = vpop.f32.mrb[12].mxu0 }
 0x1b9   :  { %v1285_v4 = vadd.f32 %v1284_v58, %v24424_v55  ;;  %v1367_v27 = vpop.f32.mrb[12].mxu1  ;;  %v1286_v10 = vpop.f32.mrb[13].mxu0 }
 0x1ba   :  { %v1368_v16 = vadd.f32 %v1367_v27, %v24424_v55  ;;  %v1287_v9 = vadd.f32 %v1286_v10, %v24424_v55  ;;  %v1369_v36 = vpop.f32.mrb[13].mxu1 }
 0x1bb   :  { %v24607_v49 = vmax.f32 %v1285_v4, 0.0  ;;  %v1370_v60 = vadd.f32 %v1369_v36, %v24424_v55 }
 0x1bc   :  { %v24612_v18 = vmax.f32 %v1368_v16, 0.0  ;;  %v24614_v12 = vmax.f32 %v1287_v9, 0.0  ;;  %v1290_v37 = vpop.f32.mrb[14].mxu0 }
 0x1bd   :  { %v1574_v22 = vmul.f32 %v24607_v49, %v24431_v1  ;;  %v24619_v58 = vmax.f32 %v1370_v60, 0.0  ;;  %v1291_v6 = vadd.f32 %v1290_v37, %v24439_v29  ;;  %v1373_v4 = vpop.f32.mrb[14].mxu1  ;;  %v1292_v27 = vpop.f32.mrb[15].mxu0  ;;  %v30979_v60 = vrot.slane %v24607_v49, 4 }
 0x1be   :  { %30977 = vst [vmem:[#allocation31_spill] sm:$0xff] %v24614_v12  ;;  %v1576_v10 = vmul.f32 %v24612_v18, %v24445_v31  ;;  %v30845_v15 = vrot.slane %v24612_v18, 4  ;;  %v1575_v16 = vmul.f32 %v24614_v12, %v24436_v25  ;;  %v30844_v9 = vrot.slane %v24614_v12, 4  ;;  %v1375_v36 = vpop.f32.mrb[15].mxu1 }
 0x1bf   :  { %30978 = vst [vmem:[#allocation32_spill] sm:$0xff] %v24619_v58  ;;  %v1638_v5 = vmul.f32 %v1574_v22, %v24607_v49  ;;  %1790 = vst [vmem:[#allocation3 + $0x80] sm:$0xf0] %v30979_v60  ;;  %v30852_v37 = vrot.slane %v24619_v58, 4  ;;  %v24632_v0 = vmax.f32 %v1291_v6, 0.0  ;;  %v1577_v46 = vmul.f32 %v24619_v58, %v24454_v34 }
 0x1c0   :  { %1792 = vst [vmem:[#allocation3 + $0x90] sm:$0xf0] %v30845_v15  ;;  %v1598_v42 = vadd.f32 %v1575_v16, %v1574_v22  ;;  %v1639_v51 = vmul.f32 %v1575_v16, %v24614_v12  ;;  %1791 = vst [vmem:[#allocation3 + $0x88] sm:$0xf0] %v30844_v9  ;;  %v1374_v11 = vadd.f32 %v1373_v4, %v24439_v29  ;;  %v24642_v7 = vpop.f32.mrb[16].mxu0 }
 0x1c1   :  { %v1640_v60 = vmul.f32 %v1576_v10, %v24612_v18  ;;  %1793 = vst [vmem:[#allocation3 + $0x98] sm:$0xf0] %v30852_v37  ;;  %v1582_v22 = vmul.f32 %v24632_v0, %v24431_v1  ;;  %v1293_v6 = vadd.f32 %v1292_v27, %v24439_v29  ;;  %v24650_v16 = vpop.f32.mrb[16].mxu1  ;;  %v24652_v9 = vpop.f32.mrb[17].mxu0  ;;  %v1376_v4 = vadd.f32 %v1375_v36, %v24439_v29 }
 0x1c2   :  { %v1662_v15 = vadd.f32 %v1639_v51, %v1638_v5  ;;  %v1599_v21 = vadd.f32 %v1598_v42, %v1576_v10  ;;  %v24654_v19 = vmax.f32 %v1374_v11, 0.0  ;;  %v24657_v47 = vpop.f32.mrb[17].mxu1  ;;  %v865_v37 = vmul.f32 %v24533_v39, %v24505_v14 }
 0x1c3   :  { %v24661_v40 = vmax.f32 %v1293_v6, 0.0  ;;  %v1641_v27 = vmul.f32 %v1577_v46, %v24619_v58  ;;  %v1646_v30 = vmul.f32 %v1582_v22, %v24632_v0  ;;  %v24669_v10 = vmax.f32 %v1376_v4, 0.0 }
 0x1c4   :  { %v1600_v33 = vadd.f32 %v1599_v21, %v1577_v46  ;;  %v1663_v53 = vadd.f32 %v1662_v15, %v1640_v60  ;;  %v1450_v51 = vpop.f32.mrb[18].mxu0  ;;  %v1584_v42 = vmul.f32 %v24654_v19, %v24445_v31  ;;  %v890_v6 = vadd.f32 %v889_v50, %v865_v37 }
 0x1c5   :  { %v1583_v5 = vmul.f32 %v24661_v40, %v24436_v25  ;;  %v1451_v48 = vadd.f32 %v1450_v51, %v24424_v55  ;;  %v1533_v39 = vpop.f32.mrb[18].mxu1  ;;  %v1452_v32 = vpop.f32.mrb[19].mxu0  ;;  %v1585_v60 = vmul.f32 %v24669_v10, %v24454_v34 }
 0x1c6   :  { %v24672_v36 = vadd.f32 %v1663_v53, %v1641_v27  ;;  %v1534_v21 = vadd.f32 %v1533_v39, %v24424_v55  ;;  %v1535_v15 = vpop.f32.mrb[19].mxu1  ;;  %v1453_v51 = vadd.f32 %v1452_v32, %v24424_v55  ;;  %v1648_v53 = vmul.f32 %v1584_v42, %v24654_v19 }
 0x1c7   :  { %v1608_v46 = vadd.f32 %v1583_v5, %v1582_v22  ;;  %v1647_v11 = vmul.f32 %v1583_v5, %v24661_v40  ;;  %v24678_v54 = vmax.f32 %v1451_v48, 0.0  ;;  %v1536_v22 = vadd.f32 %v1535_v15, %v24424_v55 }
 0x1c8   :  { %v24680_v4 = vmax.f32 %v1534_v21, 0.0  ;;  %v1456_v14 = vpop.f32.mrb[20].mxu0  ;;  %v1649_v59 = vmul.f32 %v1585_v60, %v24669_v10  ;;  %v24690_v58 = vmax.f32 %v1453_v51, 0.0 }
 0x1c9   :  { %30980 = vst [vmem:[#allocation33_spill] sm:$0xff] %v24678_v54  ;;  %v1672_v27 = vadd.f32 %v1647_v11, %v1646_v30  ;;  %v1609_v39 = vadd.f32 %v1608_v46, %v1584_v42  ;;  %v1539_v62 = vpop.f32.mrb[20].mxu1  ;;  %v1458_v5 = vpop.f32.mrb[21].mxu0  ;;  %v1578_v50 = vmul.f32 %v24678_v54, %v24514_v17  ;;  %v30865_v37 = vrot.slane %v24678_v54, 4 }
 0x1ca   :  { %v30864_v48 = vrot.slane %v24680_v4, 4  ;;  %v1541_v21 = vpop.f32.mrb[21].mxu1  ;;  %30981 = vst [vmem:[#allocation34_spill] sm:$0xff] %v24690_v58  ;;  %v1557_v30 = vmax.f32 %v1536_v22, 0.0  ;;  %v1457_v55 = vadd.f32 %v1456_v14, %v24439_v29  ;;  %v1540_v42 = vadd.f32 %v1539_v62, %v24439_v29 }
 0x1cb   :  { %v1610_v32 = vadd.f32 %v1609_v39, %v1585_v60  ;;  %v1673_v56 = vadd.f32 %v1672_v27, %v1648_v53  ;;  %1794 = vst [vmem:[#allocation3 + $0xa0] sm:$0xf0] %v30865_v37  ;;  %v1459_v15 = vadd.f32 %v1458_v5, %v24439_v29  ;;  %v869_v46 = vmul.f32 %v24589_v41, %v24566_v28 }
 0x1cc   :  { %1796 = vst [vmem:[#allocation3 + $0xb0] sm:$0xf0] %v30864_v48  ;;  %v1579_v60 = vmul.f32 %v24690_v58, %v24518_v45  ;;  %v30863_v51 = vrot.slane %v24690_v58, 4  ;;  %v1733_v53 = vrot.slane %v1557_v30, 4  ;;  %v866_v27 = vmul.f32 %v24574_v52, %v24553_v13 }
 0x1cd   :  { %v1674_v11 = vadd.f32 %v1673_v56, %v1649_v59  ;;  %v24706_v39 = vmax.f32 %v1457_v55, 0.0  ;;  %v24708_v14 = vmax.f32 %v1459_v15, 0.0  ;;  %v1542_v62 = vadd.f32 %v1541_v21, %v24439_v29 }
 0x1ce   :  { %v867_v22 = vmul.f32 %v24583_v38, %v24557_v20  ;;  %1795 = vst [vmem:[#allocation3 + $0xa8] sm:$0xf0] %v30863_v51  ;;  %1798 = vst.msk [vmem:[#allocation3 + $0xb8] sm:$0xf0] %vm1797_vm0, %v1733_v53  ;;  %v1581_v41 = vmul.f32 %v1557_v30, %v24539_v44  ;;  %v1601_v56 = vadd.f32 %v1600_v33, %v1578_v50  ;;  %v24720_v52 = vmax.f32 %v1540_v42, 0.0 }
 0x1cf   :  { %v1642_v59 = vmul.f32 %v1578_v50, %v24678_v54  ;;  %v1586_v28 = vmul.f32 %v24706_v39, %v24514_v17  ;;  %v1587_v29 = vmul.f32 %v24708_v14, %v24518_v45  ;;  %v24724_v5 = vmax.f32 %v1542_v62, 0.0 }
 0x1d0   :  { %v1580_v38 = vmul.f32 %v24680_v4, %v24524_v26  ;;  %v1602_v21 = vadd.f32 %v1601_v56, %v1579_v60  ;;  %v894_v55 = vsel %vm303_vm8, %v869_v46, 0.0  ;;  %v1643_v33 = vmul.f32 %v1579_v60, %v24690_v58 }
 0x1d1   :  { %v1650_v50 = vmul.f32 %v1586_v28, %v24706_v39  ;;  %v868_v15 = vmul.f32 %v24594_v3, %v24564_v24  ;;  %v891_v42 = vadd.f32 %v890_v6, %v866_v27  ;;  %v1651_v51 = vmul.f32 %v1587_v29, %v24708_v14 }
 0x1d2   :  { %v30872_v48 = vrot.slane %v24724_v5, 4  ;;  %v1603_v62 = vadd.f32 %v1602_v21, %v1580_v38  ;;  %v1604_v37 = vsel %vm303_vm8, %v1581_v41, 0.0  ;;  %v1645_v20 = vmul.f32 %v1581_v41, %v1557_v30 }
 0x1d3   :  { %v1665_v56 = vadd.f32 %v24672_v36, %v1642_v59  ;;  %v1588_v46 = vmul.f32 %v24720_v52, %v24524_v26  ;;  %v1589_v60 = vmul.f32 %v24724_v5, %v24539_v44  ;;  %v1611_v27 = vadd.f32 %v1610_v32, %v1586_v28 }
 0x1d4   :  { %v1749_v3 = vsel %vm832_vm11, %v1733_v53, %v30872_v48  ;;  %v1605_v6 = vadd.f32 %v1604_v37, %v1603_v62  ;;  %v1675_v24 = vadd.f32 %v1674_v11, %v1650_v50  ;;  %v1644_v21 = vmul.f32 %v1580_v38, %v24680_v4 }
 0x1d5   :  { %1806 = vst.msk [vmem:[#allocation3 + $0xf8] sm:$0xff] %vm303_vm8, %v1749_v3  ;;  %v1666_v30 = vadd.f32 %v1665_v56, %v1643_v33  ;;  %v1668_v36 = vsel %vm303_vm8, %v1645_v20, 0.0  ;;  %v892_v41 = vadd.f32 %v891_v42, %v867_v22  ;;  %v1612_v59 = vadd.f32 %v1611_v27, %v1587_v29 }
 0x1d6   :  { %1606 = vadd.xlane.f32.xlu0 %v1605_v6  ;;  %v1652_v13 = vmul.f32 %v1588_v46, %v24720_v52  ;;  %v1653_v58 = vmul.f32 %v1589_v60, %v24724_v5  ;;  %v1676_v54 = vadd.f32 %v1675_v24, %v1651_v51  ;;  %v1614_v37 = vsel %vm303_vm8, %v1589_v60, 0.0 }
 0x1d7   :  { %v1667_v12 = vadd.f32 %v1666_v30, %v1644_v21  ;;  %v1613_v53 = vadd.f32 %v1612_v59, %v1588_v46  ;;  %v893_v50 = vadd.f32 %v892_v41, %v868_v15  ;;  %v23870_v22 = vmov 1  }
 0x1d8   :  { %v1677_v32 = vadd.f32 %v1676_v54, %v1652_v13  ;;  %v1678_v11 = vsel %vm303_vm8, %v1653_v58, 0.0  ;;  %22664 = vset.pattern.permute.xlu0 %v23870_v22  ;;  %22663 = vset.pattern.permute.xlu1 %v23870_v22 }
 0x1d9   :  { %v1669_v28 = vadd.f32 %v1668_v36, %v1667_v12  ;;  %v1615_v38 = vadd.f32 %v1614_v37, %v1613_v53  ;;  %v895_v20 = vadd.f32 %v894_v55, %v893_v50  ;;  %v23816_v37 = vld [vmem:[%s30807_s2] sm:$0xff] }
 0x1da   :  { %v1679_v33 = vadd.f32 %v1678_v11, %v1677_v32 }
 0x1db   :  { %1670 = vadd.xlane.f32.xlu1 %v1669_v28  ;;  %1616 = vadd.xlane.f32.xlu0 %v1615_v38  ;;  %v23817_v38 = vld [vmem:[%s30807_s2 + $0x8] sm:$0xff] }
 0x1df   :  { %1680 = vadd.xlane.f32.xlu1 %v1679_v33  ;;  %896 = vadd.xlane.f32.xlu0 %v895_v20  ;;  %v36_v20 = vld [vmem:[%s30807_s2 + $0x10] sm:$0xf] }
 0x231   :  { %v821_v24 = vpop.xlane.xlu1 %820 }
 0x233   :  { %v831_v51 = vpop.xlane.xlu0 %830 }
 0x235   :  { %v887_v42 = vpop.xlane.xlu1 %886 }
 0x263   :  { %v1607_v29 = vpop.xlane.xlu0 %1606 }
 0x264   :  { %v1635_v62 = vadd.f32 %v1607_v29, %v821_v24  ;;  %v24762_v24 = vpop.f32.mrb[22].mxu0 }
 0x265   :  { %v24766_v29 = vpop.f32.mrb[23].mxu0 }
 0x266   :  { %v1815_v54 = vmul.f32 0.000739645, %v1635_v62  ;;  %v30982_v62 = vmov 0  }
 0x268   :  { %v1671_v13 = vpop.xlane.xlu1 %1670  ;;  %v1821_v58 = vmul.f32 %v1815_v54, %v1815_v54  ;;  %v1617_v56 = vpop.xlane.xlu0 %1616 }
 0x269   :  { %v1699_v12 = vadd.f32 %v1671_v13, %v887_v42  ;;  %v1636_v46 = vadd.f32 %v1617_v56, %v831_v51  ;;  %v24764_v51 = vpop.f32.mrb[22].mxu1 }
 0x26a   :  { %v24768_v42 = vpop.f32.mrb[23].mxu1 }
 0x26b   :  { %v1818_v15 = vmul.f32 0.000739645, %v1699_v12  ;;  %v1816_v60 = vmul.f32 0.000739645, %v1636_v46 }
 0x26c   :  { %v1681_v55 = vpop.xlane.xlu1 %1680  ;;  %v897_v6 = vpop.xlane.xlu0 %896 }
 0x26d   :  { %v1824_v3 = vsub.f32 %v1818_v15, %v1821_v58  ;;  %v1700_v27 = vadd.f32 %v1681_v55, %v897_v6  ;;  %v1822_v30 = vmul.f32 %v1816_v60, %v1816_v60 }
 0x26f   :  { %v1827_v21 = vadd.f32 1e-05, %v1824_v3  ;;  %v1819_v36 = vmul.f32 0.000739645, %v1700_v27 }
 0x271   :  { %23809 = vrsqrt.f32 %v1827_v21  ;;  %v1825_v41 = vsub.f32 %v1819_v36, %v1822_v30 }
 0x273   :  { %v1828_v59 = vadd.f32 1e-05, %v1825_v41 }
 0x275   :  { %23811 = vrsqrt.f32 %v1828_v59 }
 0x27b   :  { %v23810_v53 = vpop.eup %23809 }
 0x27c   :  { %v1833_v32 = vmul.f32 %v23816_v37, %v23810_v53 }
 0x27e   :  { %v1836_v11 = vmul.f32 %v1833_v32, %v1815_v54  ;;  %v23872_v54 = vmov 2  }
 0x27f   :  { %v23812_v28 = vpop.eup %23811 }
 0x280   :  { %1842 = vrot.lane.b32.xlu0 %v1836_v11, %s23871_s24  ;;  %v1834_v33 = vmul.f32 %v23817_v38, %v23812_v28 }
 0x282   :  { %v1837_v50 = vmul.f32 %v1834_v33, %v1816_v60 }
 0x284   :  { %1909 = vperm.xlu0 %22664, %v1834_v33   ;;  %1844 = vrot.lane.b32.xlu1 %v1837_v50, %s23871_s24 }
 0x288   :  { %22666 = vset.pattern.permute.xlu0 %v30982_v62  ;;  %1904 = vperm.xlu1 %22663, %v1833_v32  }
 0x289   :  { %353 = vperm.xlu0 %22666, %v36_v20  }
 0x28c   :  { %22665 = vset.pattern.permute.xlu1 %v23872_v54 }
 0x28d   :  { %22668 = vset.pattern.permute.xlu0 %v23872_v54 }
 0x2f2   :  { %v1843_v13 = vpop.permute.xlu0 %1842 }
 0x2f3   :  { %v1851_v58 = vsub.f32 %v23816_v37, %v1843_v13 }
 0x2f5   :  { %1943 = vperm.xlu1 %22665, %v1851_v58  }
 0x2f6   :  { %v1845_v12 = vpop.permute.xlu1 %1844 }
 0x2f7   :  { %v1852_v56 = vsub.f32 %v23817_v38, %v1845_v12 }
 0x2f9   :  { %1948 = vperm.xlu1 %22665, %v1852_v56  }
 0x2fd   :  { %22667 = vset.pattern.permute.xlu1 %v23870_v22 }
 0x303   :  { %v24771_v46 = vpop.permute.xlu0 %1909 }
 0x308   :  { %v24773_v15 = vpop.permute.xlu0 %353 }
 0x309   :  { %v470_v60 = vadd.f32 %v24477_v2, %v24773_v15  ;;  %v472_v3 = vadd.f32 %v24482_v61, %v24773_v15  ;;  %v553_v55 = vadd.f32 %v24486_v63, %v24773_v15  ;;  %v555_v6 = vadd.f32 %v24499_v8, %v24773_v15 }
 0x30a   :  { %v636_v22 = vadd.f32 %v24562_v23, %v24773_v15  ;;  %v638_v27 = vadd.f32 %v24570_v43, %v24773_v15  ;;  %v719_v21 = vadd.f32 %v24568_v35, %v24773_v15  ;;  %v721_v2 = vadd.f32 %v24576_v57, %v24773_v15 }
 0x30b   :  { %v739_v61 = vmax.f32 %v470_v60, 0.0  ;;  %v740_v30 = vmax.f32 %v472_v3, 0.0  ;;  %v741_v36 = vmax.f32 %v553_v55, 0.0  ;;  %v742_v63 = vmax.f32 %v555_v6, 0.0 }
 0x30c   :  { %v743_v41 = vmax.f32 %v636_v22, 0.0  ;;  %v744_v59 = vmax.f32 %v638_v27, 0.0  ;;  %v745_v53 = vmax.f32 %v719_v21, 0.0  ;;  %v746_v8 = vmax.f32 %v721_v2, 0.0 }
 0x30d   :  { %v804_v37 = vmul.f32 %v24431_v1, %v739_v61  ;;  %v805_v23 = vmul.f32 %v24436_v25, %v740_v30  ;;  %v806_v43 = vmul.f32 %v24445_v31, %v741_v36  ;;  %934 = vst [vmem:[#allocation3 + $0x80] sm:$0xf] %v739_v61  ;;  %935 = vst [vmem:[#allocation3 + $0x88] sm:$0xf] %v740_v30 }
 0x30e   :  { %936 = vst [vmem:[#allocation3 + $0x90] sm:$0xf] %v741_v36  ;;  %v807_v35 = vmul.f32 %v24454_v34, %v742_v63  ;;  %937 = vst [vmem:[#allocation3 + $0x98] sm:$0xf] %v742_v63  ;;  %v808_v38 = vmul.f32 %v24514_v17, %v743_v41  ;;  %v809_v20 = vmul.f32 %v24518_v45, %v744_v59 }
 0x30f   :  { %938 = vst [vmem:[#allocation3 + $0xa0] sm:$0xf] %v743_v41  ;;  %939 = vst [vmem:[#allocation3 + $0xa8] sm:$0xf] %v744_v59  ;;  %v833_v57 = vsel %vm832_vm11, %v804_v37, 0.0  ;;  %v834_v32 = vsel %vm832_vm11, %v805_v23, 0.0  ;;  %v810_v54 = vmul.f32 %v24524_v26, %v745_v53  ;;  %v811_v27 = vmul.f32 %v24539_v44, %v746_v8 }
 0x310   :  { %940 = vst [vmem:[#allocation3 + $0xb0] sm:$0xf] %v745_v53  ;;  %941 = vst.msk [vmem:[#allocation3 + $0xb8] sm:$0xf] %vm846_vm4, %v746_v8  ;;  %v835_v28 = vadd.f32 %v834_v32, %v833_v57  ;;  %v836_v33 = vsel %vm832_vm11, %v806_v43, 0.0  ;;  %v838_v50 = vsel %vm832_vm11, %v807_v35, 0.0  ;;  %v872_v48 = vmul.f32 %v806_v43, %v741_v36 }
 0x311   :  { %v840_v22 = vsel %vm832_vm11, %v808_v38, 0.0  ;;  %v842_v2 = vsel %vm832_vm11, %v809_v20, 0.0  ;;  %v844_v57 = vsel %vm832_vm11, %v810_v54, 0.0  ;;  %v875_v56 = vmul.f32 %v809_v20, %v744_v59 }
 0x312   :  { %v837_v13 = vadd.f32 %v836_v33, %v835_v28  ;;  %v870_v28 = vmul.f32 %v804_v37, %v739_v61  ;;  %v871_v33 = vmul.f32 %v805_v23, %v740_v30  ;;  %v876_v55 = vmul.f32 %v810_v54, %v745_v53 }
 0x313   :  { %v877_v58 = vmul.f32 %v811_v27, %v746_v8  ;;  %v847_v6 = vsel %vm846_vm4, %v811_v27, 0.0  ;;  %v907_v36 = vsel %vm832_vm11, %v875_v56, 0.0  ;;  %v1299_v59 = vadd.f32 %v24652_v9, %v24773_v15 }
 0x314   :  { %v839_v60 = vadd.f32 %v838_v50, %v837_v13  ;;  %v873_v50 = vmul.f32 %v807_v35, %v742_v63  ;;  %v874_v13 = vmul.f32 %v808_v38, %v743_v41  ;;  %v898_v12 = vsel %vm832_vm11, %v870_v28, 0.0 }
 0x315   :  { %v909_v63 = vsel %vm832_vm11, %v876_v55, 0.0  ;;  %v1297_v41 = vadd.f32 %v24642_v7, %v24773_v15  ;;  %v1382_v8 = vadd.f32 %v24657_v47, %v24773_v15  ;;  %v1463_v37 = vadd.f32 %v24762_v24, %v24773_v15 }
 0x316   :  { %v841_v21 = vadd.f32 %v840_v22, %v839_v60  ;;  %v899_v60 = vsel %vm832_vm11, %v871_v33, 0.0  ;;  %v901_v22 = vsel %vm832_vm11, %v872_v48, 0.0  ;;  %v903_v61 = vsel %vm832_vm11, %v873_v50, 0.0 }
 0x317   :  { %v900_v62 = vadd.f32 %v899_v60, %v898_v12  ;;  %v905_v30 = vsel %vm832_vm11, %v874_v13, 0.0  ;;  %v1380_v48 = vadd.f32 %v24650_v16, %v24773_v15  ;;  %v1465_v23 = vadd.f32 %v24766_v29, %v24773_v15 }
 0x318   :  { %v843_v32 = vadd.f32 %v842_v2, %v841_v21  ;;  %v1546_v7 = vadd.f32 %v24764_v51, %v24773_v15  ;;  %v1548_v9 = vadd.f32 %v24768_v42, %v24773_v15  ;;  %v1566_v43 = vmax.f32 %v1297_v41, 0.0 }
 0x319   :  { %v902_v53 = vadd.f32 %v901_v22, %v900_v62  ;;  %v1567_v35 = vmax.f32 %v1299_v59, 0.0  ;;  %v1569_v16 = vmax.f32 %v1382_v8, 0.0  ;;  %v1570_v38 = vmax.f32 %v1463_v37, 0.0 }
 0x31a   :  { %v845_v3 = vadd.f32 %v844_v57, %v843_v32  ;;  %v1571_v20 = vmax.f32 %v1465_v23, 0.0  ;;  %v1572_v47 = vmax.f32 %v1546_v7, 0.0  ;;  %v1573_v54 = vmax.f32 %v1548_v9, 0.0 }
 0x31b   :  { %v904_v62 = vadd.f32 %v903_v61, %v902_v53  ;;  %v1590_v24 = vmul.f32 %v1566_v43, %v24431_v1  ;;  %v1591_v29 = vmul.f32 %v1567_v35, %v24436_v25  ;;  %v1593_v51 = vmul.f32 %v1569_v16, %v24454_v34 }
 0x31c   :  { %v848_v11 = vadd.f32 %v847_v6, %v845_v3  ;;  %v1594_v42 = vmul.f32 %v1570_v38, %v24514_v17  ;;  %v1595_v15 = vmul.f32 %v1571_v20, %v24518_v45  ;;  %v24845_v3 = vmul.f32 %v1572_v47, %v24524_v26 }
 0x31d   :  { %v906_v12 = vadd.f32 %v905_v30, %v904_v62  ;;  %v24848_v6 = vmul.f32 %v1573_v54, %v24539_v44  ;;  %v1654_v27 = vmul.f32 %v1590_v24, %v1566_v43  ;;  %v1655_v21 = vmul.f32 %v1591_v29, %v1567_v35 }
 0x31e   :  { %849 = vadd.xlane.f32.xlu0 %v848_v11  ;;  %v1568_v11 = vmax.f32 %v1380_v48, 0.0  ;;  %v1657_v2 = vmul.f32 %v1593_v51, %v1569_v16  ;;  %v1658_v25 = vmul.f32 %v1594_v42, %v1570_v38  ;;  %v1659_v57 = vmul.f32 %v1595_v15, %v1571_v20 }
 0x31f   :  { %v908_v55 = vadd.f32 %v907_v36, %v906_v12  ;;  %v911_v34 = vsel %vm846_vm4, %v877_v58, 0.0  ;;  %v1682_v17 = vsel %vm832_vm11, %v1654_v27, 0.0  ;;  %v1660_v45 = vmul.f32 %v24845_v3, %v1572_v47 }
 0x320   :  { %v1592_v56 = vmul.f32 %v1568_v11, %v24445_v31  ;;  %v1661_v26 = vmul.f32 %v24848_v6, %v1573_v54  ;;  %v1683_v32 = vsel %vm832_vm11, %v1655_v21, 0.0  ;;  %v1687_v50 = vsel %vm832_vm11, %v1657_v2, 0.0 }
 0x321   :  { %v910_v31 = vadd.f32 %v909_v63, %v908_v55  ;;  %v1684_v33 = vadd.f32 %v1683_v32, %v1682_v17  ;;  %v1689_v13 = vsel %vm832_vm11, %v1658_v25, 0.0  ;;  %v1691_v60 = vsel %vm832_vm11, %v1659_v57, 0.0 }
 0x322   :  { %v1656_v1 = vmul.f32 %v1592_v56, %v1568_v11  ;;  %v1750_v58 = vrot.slane %v1566_v43, 4  ;;  %v1752_v22 = vrot.slane %v1567_v35, 4  ;;  %v1754_v61 = vrot.slane %v1568_v11, 4 }
 0x323   :  { %v24856_v28 = vadd.f32 %v911_v34, %v910_v31  ;;  %v1756_v36 = vrot.slane %v1569_v16, 4  ;;  %v1758_v63 = vrot.slane %v1570_v38, 4  ;;  %v1760_v41 = vrot.slane %v1571_v20, 4 }
 0x324   :  { %v1685_v44 = vsel %vm832_vm11, %v1656_v1, 0.0  ;;  %v30983_v59 = vrot.slane %v24632_v0, 4  ;;  %v30984_v48 = vrot.slane %v24661_v40, 4  ;;  %v30985_v37 = vrot.slane %v24654_v19, 4 }
 0x325   :  { %v1686_v30 = vadd.f32 %v1685_v44, %v1684_v33  ;;  %v1762_v7 = vrot.slane %v1572_v47, 4  ;;  %v30986_v43 = vrot.slane %v24669_v10, 4  ;;  %v30987_v35 = vrot.slane %v24706_v39, 4 }
 0x326   :  { %v1751_v53 = vsel %vm832_vm11, %v30983_v59, %v1750_v58  ;;  %v1753_v8 = vsel %vm832_vm11, %v30984_v48, %v1752_v22  ;;  %v1755_v23 = vsel %vm832_vm11, %v30985_v37, %v1754_v61  ;;  %v30988_v16 = vrot.slane %v24708_v14, 4 }
 0x327   :  { %v1688_v9 = vadd.f32 %v1687_v50, %v1686_v30  ;;  %v1757_v62 = vsel %vm832_vm11, %v30986_v43, %v1756_v36  ;;  %v1759_v11 = vsel %vm832_vm11, %v30987_v35, %v1758_v63  ;;  %1807 = vst [vmem:[#allocation3 + $0x100] sm:$0xff] %v1751_v53  ;;  %1808 = vst [vmem:[#allocation3 + $0x108] sm:$0xff] %v1753_v8  ;;  %v30989_v20 = vrot.slane %v24720_v52, 4 }
 0x328   :  { %v1761_v38 = vsel %vm832_vm11, %v30988_v16, %v1760_v41  ;;  %1809 = vst [vmem:[#allocation3 + $0x110] sm:$0xff] %v1755_v23  ;;  %v1764_v12 = vrot.slane %v1573_v54, 4  ;;  %1810 = vst [vmem:[#allocation3 + $0x118] sm:$0xff] %v1757_v62  ;;  %v1618_v55 = vsel %vm832_vm11, %v1590_v24, 0.0  ;;  %v1619_v27 = vsel %vm832_vm11, %v1591_v29, 0.0 }
 0x329   :  { %v1763_v47 = vsel %vm832_vm11, %v30989_v20, %v1762_v7  ;;  %1811 = vst [vmem:[#allocation3 + $0x120] sm:$0xff] %v1759_v11  ;;  %1812 = vst [vmem:[#allocation3 + $0x128] sm:$0xff] %v1761_v38  ;;  %v1690_v21 = vadd.f32 %v1689_v13, %v1688_v9  ;;  %v1620_v1 = vadd.f32 %v1619_v27, %v1618_v55  ;;  %v1693_v2 = vsel %vm832_vm11, %v1660_v45, 0.0 }
 0x32a   :  { %1813 = vst [vmem:[#allocation3 + $0x130] sm:$0xff] %v1763_v47  ;;  %v1695_v25 = vsel %vm846_vm4, %v1661_v26, 0.0  ;;  %v30990_v57 = vrot.slane %v24724_v5, 4  ;;  %v1621_v54 = vsel %vm832_vm11, %v1592_v56, 0.0  ;;  %v1623_v24 = vsel %vm832_vm11, %v1593_v51, 0.0 }
 0x32b   :  { %v1692_v34 = vadd.f32 %v1691_v60, %v1690_v21  ;;  %v1622_v17 = vadd.f32 %v1621_v54, %v1620_v1  ;;  %v1625_v29 = vsel %vm832_vm11, %v1594_v42, 0.0  ;;  %v1627_v45 = vsel %vm832_vm11, %v1595_v15, 0.0 }
 0x32c   :  { %v1765_v31 = vsel %vm832_vm11, %v30990_v57, %v1764_v12  ;;  %v1629_v5 = vsel %vm832_vm11, %v24845_v3, 0.0  ;;  %v1631_v56 = vsel %vm846_vm4, %v24848_v6, 0.0 }
 0x32d   :  { %1814 = vst.msk [vmem:[#allocation3 + $0x138] sm:$0xff] %vm303_vm8, %v1765_v31  ;;  %v1694_v32 = vadd.f32 %v1693_v2, %v1692_v34  ;;  %v1624_v44 = vadd.f32 %v1623_v24, %v1622_v17 }
 0x32f   :  { %v24894_v33 = vadd.f32 %v1695_v25, %v1694_v32  ;;  %v1626_v26 = vadd.f32 %v1625_v29, %v1624_v44 }
 0x331   :  { %v1628_v50 = vadd.f32 %v1627_v45, %v1626_v26 }
 0x333   :  { %v1630_v13 = vadd.f32 %v1629_v5, %v1628_v50 }
 0x335   :  { %v24900_v60 = vadd.f32 %v1631_v56, %v1630_v13 }
 0x336   :  { %13 = vsyncpa [#allocation6], 0  ;;  %v1905_v51 = vpop.permute.xlu1 %1904  ;;  %v30890_v58 = vrot.slane %v24771_v46, 4  ;;  %v30991_v15 = vmov %v30983_v59  ;;  %v30992_v22 = vrot.slane %v24607_v49, 4  ;;  %v30993_v3 = vmov %v30985_v37  ;;  %v30996_v63 = vld [vmem:[#allocation31_spill] sm:$0xff]  ;;  %v31002_v37 = vld [vmem:[#allocation33_spill] sm:$0xff] }
 0x337   :  { %v2382_v42 = vrot.slane %v1905_v51, 4  ;;  %v30994_v30 = vrot.slane %v24612_v18, 4  ;;  %v30995_v36 = vmov %v30984_v48  ;;  %v30997_v41 = vrot.slane %v30996_v63, 4  ;;  %v30999_v48 = vld [vmem:[#allocation32_spill] sm:$0xff]  ;;  %v31011_v38 = vld [vmem:[#allocation22_spill] sm:$0xff]  ;;  %v31014_v27 = vld [vmem:[#allocation29_spill] sm:$0xff] }
 0x338   :  { %v1735_v61 = vsel %vm832_vm11, %v30992_v22, %v30991_v15  ;;  %v30998_v53 = vmov %v30986_v43  ;;  %v31000_v0 = vrot.slane %v30999_v48, 4  ;;  %v31001_v8 = vmov %v30987_v35  ;;  %v31007_v43 = vld [vmem:[#allocation34_spill] sm:$0xff]  ;;  %v31009_v35 = vld [vmem:[#allocation20_spill] sm:$0xff]  ;;  %v2359_v25 = vld [vmem:[#allocation3 + $0x88] sm:$0xf0]  ;;  %s23875_s25 = smov [#allocation5]  }
 0x339   :  { %v1739_v6 = vsel %vm832_vm11, %v30994_v30, %v30993_v3  ;;  %v1737_v59 = vsel %vm832_vm11, %v30997_v41, %v30995_v36  ;;  %v31003_v19 = vrot.slane %v31002_v37, 4  ;;  %v31004_v23 = vmov %v30989_v20  ;;  %v1893_v20 = vld [vmem:[#allocation3 + $0x78] sm:$0xff]  ;;  %v31012_v47 = vld [vmem:[#allocation24_spill] sm:$0xff]  ;;  %v31017_v29 = vld [vmem:[#allocation13_spill] sm:$0xff]  ;;  %s17708_s26 = sshll.u32 %s23875_s25, 4  ;;  %s17709_s26 = int_to_ptr.vmem [resolvable:$true] %s17708_s26 }
 0x33a   :  { %v1741_v49 = vsel %vm832_vm11, %v31000_v0, %v30998_v53  ;;  %v31005_v40 = vrot.slane %v24680_v4, 4  ;;  %v2384_v10 = vsel %vm832_vm11, %v2382_v42, %v30890_v58  ;;  %v31006_v9 = vmov %v30988_v16  ;;  %v31010_v16 = vld [vmem:[#allocation21_spill] sm:$0xff]  ;;  %v31013_v55 = vld [vmem:[#allocation28_spill] sm:$0xff]  ;;  %v31015_v1 = vld [vmem:[#allocation30_spill] sm:$0xff]  ;;  %s23819_s27 = scalar_lea.vmem %s17709_s26, 32  ;;  %p23824_p1 = scmp.lt.s32.totalorder %s17709_s26, %s17709_s26 }
 0x33b   :  { %v1743_v18 = vsel %vm832_vm11, %v31003_v19, %v31001_v8  ;;  %v31008_v62 = vrot.slane %v31007_v43, 4  ;;  %v1925_v11 = vmul.f32 %v24771_v46, %v31009_v35  ;;  %v1926_v52 = vmul.f32 %v24771_v46, %v31010_v16  ;;  %v31016_v31 = vld [vmem:[#allocation14_spill] sm:$0xff]  ;;  %v2358_v24 = vld [vmem:[#allocation3 + $0x80] sm:$0xf0]  ;;  %v31018_v26 = vld [vmem:[#allocation19_spill] sm:$0xff]  ;;  %p23820_p0 = scmp.ne.s32.totalorder %s17709_s26, %s23819_s27  ;;  %p23825_p2 = scmp.lt.s32.totalorder %s23819_s27, %s23819_s27 }
 0x33c   :  { %v1747_v7 = vsel %vm832_vm11, %v31005_v40, %v31004_v23  ;;  %v1927_v4 = vmul.f32 %v24771_v46, %v31011_v38  ;;  %v1928_v12 = vmul.f32 %v24771_v46, %v31012_v47  ;;  %v1929_v14 = vmul.f32 %v24771_v46, %v31013_v55  ;;  %v2361_v50 = vld [vmem:[#allocation3 + $0x98] sm:$0xf0]  ;;  %v2360_v56 = vld [vmem:[#allocation3 + $0x90] sm:$0xf0]  ;;  %v2363_v36 = vld [vmem:[#allocation3 + $0xa8] sm:$0xf0] }
 0x33d   :  { %v1745_v39 = vsel %vm832_vm11, %v31008_v62, %v31006_v9  ;;  %v1930_v21 = vmul.f32 %v24771_v46, %v31014_v27  ;;  %v1931_v2 = vmul.f32 %v24771_v46, %v31015_v1  ;;  %v1932_v57 = vmul.f32 %v24771_v46, %v1893_v20  ;;  %v31019_v22 = vld [vmem:[#allocation15_spill] sm:$0xff]  ;;  %v31020_v41 = vld [vmem:[#allocation26_spill] sm:$0xff]  ;;  %v31021_v37 = vld [vmem:[#allocation25_spill] sm:$0xff]  ;;  %p23826_p3 = por %p23825_p2, %p23824_p1 }
 0x33e   :  { %v1918_v54 = vmul.f32 %v1905_v51, %v31016_v31  ;;  %v2391_v34 = vmul.f32 %v2382_v42, %v2359_v25  ;;  %v24957_v17 = vmul.f32 %v2384_v10, %v1737_v59  ;;  %v1917_v32 = vmul.f32 %v1905_v51, %v31017_v29  ;;  %v1885_v0 = vld [vmem:[#allocation3 + $0x38] sm:$0xff]  ;;  %v2364_v38 = vld [vmem:[#allocation3 + $0xb0] sm:$0xf0] }
 0x33f   :  { %v2390_v44 = vmul.f32 %v2382_v42, %v2358_v24  ;;  %v24960_v45 = vmul.f32 %v2384_v10, %v1735_v61  ;;  %v1920_v5 = vmul.f32 %v1905_v51, %v31018_v26  ;;  %v2393_v13 = vmul.f32 %v2382_v42, %v2361_v50  ;;  %v2362_v61 = vld [vmem:[#allocation3 + $0xa0] sm:$0xf0]  ;;  %v2365_v9 = vld [vmem:[#allocation3 + $0xb8] sm:$0xf0]  ;;  %p23827_p4 = pnand %p23826_p3, %p23820_p0 }
 0x340   :  { %v24963_v15 = vmul.f32 %v2384_v10, %v1741_v49  ;;  %v1919_v3 = vmul.f32 %v1905_v51, %v31019_v22  ;;  %v2392_v30 = vmul.f32 %v2382_v42, %v2360_v56  ;;  %v24966_v63 = vmul.f32 %v2384_v10, %v1739_v6  ;;  %v2373_v35 = vld [vmem:[#allocation3 + $0xf8] sm:$0xff] }
 0x341   :  { %v1922_v59 = vmul.f32 %v1905_v51, %v31020_v41  ;;  %v2395_v53 = vmul.f32 %v2382_v42, %v2363_v36  ;;  %v24969_v48 = vmul.f32 %v2384_v10, %v1745_v39  ;;  %v1921_v19 = vmul.f32 %v1905_v51, %v31021_v37  ;;  %v31022_v47 = vld [vmem:[#allocation27_spill] sm:$0xff] }
 0x342   :  { %v2394_v23 = vmul.f32 %v2382_v42, %v2362_v61  ;;  %v24972_v40 = vmul.f32 %v2384_v10, %v1743_v18  ;;  %v1924_v49 = vmul.f32 %v1905_v51, %v1885_v0  ;;  %v2397_v16 = vmul.f32 %v2382_v42, %v2365_v9 }
 0x343   :  { %v2405_v20 = vmul.f32 %v2384_v10, %v2373_v35  ;;  %v1923_v55 = vmul.f32 %v1905_v51, %v31022_v47  ;;  %v2396_v27 = vmul.f32 %v2382_v42, %v2364_v38  ;;  %v2404_v25 = vmul.f32 %v2384_v10, %v1747_v7 }
 0x344   :  { %vm3653_vm1 = vcmask 1041408  }
 0x374   :  { %v1944_v8 = vpop.permute.xlu1 %1943 }
 0x375   :  { %v2414_v43 = vrot.slane %v1944_v8, 4  ;;  %v24974_v62 = vadd.f32 %v1944_v8, %v1918_v54  ;;  %v24976_v6 = vadd.f32 %v1944_v8, %v1917_v32  ;;  %v24978_v39 = vadd.f32 %v1944_v8, %v1924_v49 }
 0x376   :  { %v24985_v18 = vadd.f32 %v1944_v8, %v1920_v5  ;;  %v24987_v1 = vadd.f32 %v1944_v8, %v1919_v3  ;;  %v24995_v29 = vadd.f32 %v1944_v8, %v1922_v59  ;;  %v25054_v22 = vadd.f32 %v1944_v8, %v1923_v55 }
 0x377   :  { %2054 = vrot.lane.b32.xlu1 %v24974_v62, %s23844_s30  ;;  %2052 = vrot.lane.b32.xlu0 %v24976_v6, %s23844_s30  ;;  %v24989_v31 = vadd.f32 %v2414_v43, %v2391_v34  ;;  %v24991_v54 = vadd.f32 %v2414_v43, %v2390_v44  ;;  %v24993_v24 = vadd.f32 %v2414_v43, %v2393_v13 }
 0x378   :  { %1987 = vst.msk [vmem:[#allocation4 + $0x38] sm:$0xff] %vm303_vm8, %v24978_v39  ;;  %v24999_v51 = vpop.permute.xlu1 %1948  ;;  %v25001_v42 = vadd.f32 %v2414_v43, %v2392_v30  ;;  %v25003_v32 = vadd.f32 %v2414_v43, %v2395_v53  ;;  %v25005_v26 = vadd.f32 %v2414_v43, %v2394_v23  ;;  %v25007_v7 = vadd.f32 %v2414_v43, %v2397_v16 }
 0x379   :  { %v25010_v10 = vadd.f32 %v24999_v51, %v1925_v11  ;;  %v25013_v34 = vadd.f32 %v24999_v51, %v1926_v52  ;;  %v25016_v44 = vadd.f32 %v24999_v51, %v1927_v4  ;;  %v25019_v5 = vadd.f32 %v24999_v51, %v1928_v12 }
 0x37a   :  { %v25022_v50 = vadd.f32 %v24999_v51, %v1929_v14  ;;  %v25025_v56 = vadd.f32 %v24999_v51, %v1930_v21  ;;  %v25028_v13 = vadd.f32 %v24999_v51, %v1931_v2  ;;  %v25031_v11 = vadd.f32 %v24999_v51, %v1932_v57 }
 0x37b   :  { %31023 = vst [vmem:[#allocation31_spill] sm:$0xff] %v25010_v10  ;;  %31024 = vst [vmem:[#allocation32_spill] sm:$0xff] %v25013_v34  ;;  %2058 = vrot.lane.b32.xlu1 %v24985_v18, %s23844_s30  ;;  %v30889_v52 = vrot.slane %v24999_v51, 4  ;;  %v2473_v4 = vrot.slane %v24989_v31, 4  ;;  %v2470_v12 = vrot.slane %v24991_v54, 4  ;;  %2056 = vrot.lane.b32.xlu0 %v24987_v1, %s23844_s30  ;;  %v25044_v14 = vadd.f32 %v1944_v8, %v1921_v19 }
 0x37c   :  { %31025 = vst [vmem:[#allocation33_spill] sm:$0xff] %v25016_v44  ;;  %31026 = vst [vmem:[#allocation34_spill] sm:$0xff] %v25019_v5  ;;  %v2479_v21 = vrot.slane %v24993_v24, 4  ;;  %v2476_v2 = vrot.slane %v25001_v42, 4  ;;  %v2485_v57 = vrot.slane %v25003_v32, 4  ;;  %v2482_v30 = vrot.slane %v25005_v26, 4 }
 0x37d   :  { %31027 = vst [vmem:[#allocation20_spill] sm:$0xff] %v25022_v50  ;;  %31028 = vst [vmem:[#allocation21_spill] sm:$0xff] %v25025_v56  ;;  %v2416_v3 = vsel %vm832_vm11, %v2414_v43, %v30889_v52  ;;  %v2491_v36 = vrot.slane %v25007_v7, 4  ;;  %v25061_v41 = vadd.f32 %v2414_v43, %v2396_v27 }
 0x37e   :  { %31029 = vst [vmem:[#allocation22_spill] sm:$0xff] %v25028_v13  ;;  %31030 = vst [vmem:[#allocation24_spill] sm:$0xff] %v25031_v11  ;;  %v25064_v59 = vadd.f32 %v2416_v3, %v24957_v17  ;;  %v25067_v53 = vadd.f32 %v2416_v3, %v24960_v45  ;;  %v25070_v61 = vadd.f32 %v2416_v3, %v24963_v15 }
 0x37f   :  { %1988 = vst [vmem:[#allocation4 + $0x40] sm:$0xff] %v25010_v10  ;;  %1989 = vst [vmem:[#allocation4 + $0x48] sm:$0xff] %v25013_v34  ;;  %v25073_v0 = vadd.f32 %v2416_v3, %v24966_v63  ;;  %2062 = vrot.lane.b32.xlu1 %v24995_v29, %s23844_s30  ;;  %v25078_v8 = vadd.f32 %v2416_v3, %v24969_v48  ;;  %2060 = vrot.lane.b32.xlu0 %v25044_v14, %s23844_s30  ;;  %v25095_v9 = vld [vmem:[#allocation4 + $0x38] sm:$0xff]  ;;  %v2488_v43 = vrot.slane %v25061_v41, 4 }
 0x380   :  { %1990 = vst [vmem:[#allocation4 + $0x50] sm:$0xff] %v25016_v44  ;;  %1991 = vst [vmem:[#allocation4 + $0x58] sm:$0xff] %v25019_v5  ;;  %v25083_v17 = vadd.f32 %v2416_v3, %v24972_v40  ;;  %v25085_v45 = vadd.f32 %v2416_v3, %v2405_v20  ;;  %v25087_v37 = vadd.f32 %v2416_v3, %v2404_v25  ;;  %v30886_v15 = vrot.slane %v25064_v59, 4 }
 0x381   :  { %1992 = vst [vmem:[#allocation4 + $0x60] sm:$0xff] %v25022_v50  ;;  %1993 = vst [vmem:[#allocation4 + $0x68] sm:$0xff] %v25025_v56  ;;  %v30887_v63 = vrot.slane %v25067_v53, 4  ;;  %v30885_v19 = vrot.slane %v25070_v61, 4  ;;  %v30888_v23 = vrot.slane %v25073_v0, 4  ;;  %v30882_v48 = vrot.slane %v25078_v8, 4 }
 0x382   :  { %1994 = vst [vmem:[#allocation4 + $0x70] sm:$0xff] %v25028_v13  ;;  %1995 = vst.msk [vmem:[#allocation4 + $0x78] sm:$0xff] %vm303_vm8, %v25031_v11  ;;  %v30884_v49 = vrot.slane %v25083_v17, 4  ;;  %v30881_v40 = vrot.slane %v25085_v45, 4  ;;  %v25102_v35 = vsel %vm832_vm11, %v2473_v4, %v30886_v15  ;;  %v30883_v25 = vrot.slane %v25087_v37, 4  ;;  %v22674_v15 = vld [vmem:[%s30809_s4 + $0xc8] sm:$0xff]  }
 0x383   :  { %v25107_v16 = vsel %vm832_vm11, %v2470_v12, %v30887_v63  ;;  %v25112_v38 = vsel %vm832_vm11, %v2479_v21, %v30885_v19  ;;  %v25117_v20 = vsel %vm832_vm11, %v2476_v2, %v30888_v23  ;;  %2066 = vrot.lane.b32.xlu1 %v25095_v9, %s23844_s30  ;;  %v25124_v47 = vsel %vm832_vm11, %v2485_v57, %v30882_v48  ;;  %v22675_v23 = vld [vmem:[%s30809_s4 + $0x8] sm:$0xff]  }
 0x384   :  { %v25129_v55 = vsel %vm832_vm11, %v2482_v30, %v30884_v49  ;;  %v2493_v27 = vsel %vm832_vm11, %v2491_v36, %v30881_v40  ;;  %2064 = vrot.lane.b32.xlu0 %v25054_v22, %s23844_s30  ;;  %v25141_v4 = vsel %vm832_vm11, %v2488_v43, %v30883_v25  ;;  %v30875_v21 = vrot.slane %v25102_v35, 4 }
 0x385   :  { %2541 = vst.msk [vmem:[#allocation4 + $0x38] sm:$0xff] %vm303_vm8, %v2493_v27  ;;  %v30880_v2 = vrot.slane %v25107_v16, 4  ;;  %v30877_v57 = vrot.slane %v25129_v55, 4  ;;  %v30876_v3 = vrot.slane %v25124_v47, 4 }
 0x387   :  { %2763 = vrot.lane.b32.xlu1 %v25107_v16, %s23844_s30 }
 0x388   :  { %2767 = vrot.lane.b32.xlu0 %v25117_v20, %s23844_s30 }
 0x38b   :  { %2765 = vrot.lane.b32.xlu1 %v25102_v35, %s23844_s30 }
 0x38c   :  { %2771 = vrot.lane.b32.xlu0 %v25129_v55, %s23844_s30  ;;  %v25157_v12 = vld [vmem:[#allocation4 + $0x38] sm:$0xff] }
 0x38d   :  { %v30879_v30 = vrot.slane %v25157_v12, 4 }
 0x38f   :  { %2769 = vrot.lane.b32.xlu1 %v25112_v38, %s23844_s30 }
 0x390   :  { %2775 = vrot.lane.b32.xlu0 %v25141_v4, %s23844_s30 }
 0x393   :  { %2773 = vrot.lane.b32.xlu1 %v25124_v47, %s23844_s30 }
 0x397   :  { %2777 = vrot.lane.b32.xlu1 %v25157_v12, %s23844_s30 }
 0x3ab   :  { %v25196_v36 = vpop.xlane.xlu0 %849 }
 0x3af   :  { %913 = vadd.xlane.f32.xlu0 %v24856_v28  ;;  %v30878_v28 = vrot.slane %v25117_v20, 4 }
 0x3b3   :  { %1697 = vadd.xlane.f32.xlu0 %v24894_v33  ;;  %v30873_v33 = vrot.slane %v25141_v4, 4 }
 0x3bb   :  { %1633 = vadd.xlane.f32.xlu1 %v24900_v60  ;;  %v30874_v60 = vrot.slane %v25112_v38, 4 }
 0x3c9   :  { %2648 = vrot.lane.b32.xlu0 %v30875_v21, %s23844_s30 }
 0x3cc   :  { %2646 = vrot.lane.b32.xlu1 %v30880_v2, %s23844_s30 }
 0x3cd   :  { %2654 = vrot.lane.b32.xlu0 %v30877_v57, %s23844_s30 }
 0x3d0   :  { %2650 = vrot.lane.b32.xlu1 %v30878_v28, %s23844_s30 }
 0x3d1   :  { %2658 = vrot.lane.b32.xlu0 %v30873_v33, %s23844_s30 }
 0x3d4   :  { %2652 = vrot.lane.b32.xlu1 %v30874_v60, %s23844_s30 }
 0x3d8   :  { %2656 = vrot.lane.b32.xlu1 %v30876_v3, %s23844_s30 }
 0x3dc   :  { %2660 = vrot.lane.b32.xlu1 %v30879_v30, %s23844_s30 }
 0x3e9   :  { %v2053_v43 = vpop.permute.xlu0 %2052  ;;  %v2055_v27 = vpop.permute.xlu1 %2054 }
 0x3ea   :  { %v2100_v33 = vsel %vm50_vm2, %v2053_v43, %v2055_v27 }
 0x3eb   :  { %v25200_v60 = vmax.f32 %v24976_v6, %v2100_v33 }
 0x3ed   :  { %2217 = vrot.lane.b32.xlu0 %v25200_v60, %s23848_s12  ;;  %v2059_v21 = vpop.permute.xlu1 %2058  ;;  %v2057_v3 = vpop.permute.xlu0 %2056 }
 0x3ee   :  { %v2102_v57 = vsel %vm50_vm2, %v2057_v3, %v2059_v21 }
 0x3ef   :  { %v25206_v28 = vmax.f32 %v24987_v1, %v2102_v57  ;;  %v2101_v57 = vsel %vm50_vm2, %v2055_v27, %v2057_v3 }
 0x3f1   :  { %v2063_v30 = vpop.permute.xlu1 %2062  ;;  %v2061_v2 = vpop.permute.xlu0 %2060  ;;  %2221 = vrot.lane.b32.xlu0 %v25206_v28, %s23848_s12 }
 0x3f2   :  { %v2104_v43 = vsel %vm50_vm2, %v2061_v2, %v2063_v30 }
 0x3f3   :  { %v25212_v6 = vmax.f32 %v25044_v14, %v2104_v43  ;;  %v25228_v43 = vmax.f32 %v24974_v62, %v2101_v57 }
 0x3f5   :  { %v25214_v33 = vpop.permute.xlu1 %2066  ;;  %2225 = vrot.lane.b32.xlu0 %v25212_v6, %s23848_s12 }
 0x3f6   :  { %v2065_v40 = vpop.permute.xlu0 %2064  ;;  %v2176_v1 = vmax.f32 %v25095_v9, %v25214_v33  ;;  %v2103_v9 = vsel %vm50_vm2, %v2059_v21, %v2061_v2 }
 0x3f7   :  { %v2106_v48 = vsel %vm50_vm2, %v2065_v40, %v25214_v33  ;;  %v25236_v27 = vmax.f32 %v24985_v18, %v2103_v9 }
 0x3f8   :  { %2231 = vrot.lane.b32.xlu1 %v2176_v1, %s23848_s12  ;;  %v25225_v25 = vmax.f32 %v25054_v22, %v2106_v48  ;;  %v2105_v48 = vsel %vm50_vm2, %v2063_v30, %v2065_v40 }
 0x3f9   :  { %v2764_v14 = vpop.permute.xlu1 %2763  ;;  %v25247_v19 = vmax.f32 %v24995_v29, %v2105_v48  ;;  %v22669_v29 = vld [vmem:[%s30809_s4 + $0x40] sm:$0xff]  }
 0x3fa   :  { %v2768_v49 = vpop.permute.xlu0 %2767  ;;  %2229 = vrot.lane.b32.xlu0 %v25225_v25, %s23848_s12  ;;  %21091 = vmatprep.subr.bf16.mxu0 %v22669_v29 }
 0x3fc   :  { %2219 = vrot.lane.b32.xlu1 %v25228_v43, %s23848_s12 }
 0x3fd   :  { %v2766_v3 = vpop.permute.xlu1 %2765 }
 0x3fe   :  { %v2811_v22 = vsel %vm50_vm2, %v2764_v14, %v2766_v3  ;;  %v2812_v62 = vsel %vm50_vm2, %v2766_v3, %v2768_v49  ;;  %v2772_v57 = vpop.permute.xlu0 %2771 }
 0x3ff   :  { %v2856_v1 = vmax.f32 %v25107_v16, %v2811_v22  ;;  %v2857_v18 = vmax.f32 %v25102_v35, %v2812_v62  ;;  %v22671_v22 = vld [vmem:[%s30809_s4] sm:$0xff]  }
 0x400   :  { %2223 = vrot.lane.b32.xlu1 %v25236_v27, %s23848_s12  ;;  %21092 = vmatpush3.bf16.msra.mxu0 %v22671_v22 }
 0x401   :  { %v25244_v21 = vrot.slane %v2856_v1, 4  ;;  %v2770_v2 = vpop.permute.xlu1 %2769  ;;  %v25268_v48 = vrot.slane %v2857_v18, 4 }
 0x402   :  { %v2813_v14 = vsel %vm50_vm2, %v2768_v49, %v2770_v2  ;;  %v2814_v40 = vsel %vm50_vm2, %v2770_v2, %v2772_v57  ;;  %v22670_v49 = vld [vmem:[%s30809_s4 + $0xc0] sm:$0xff]   ;;  %v2776_v62 = vpop.permute.xlu0 %2775 }
 0x403   :  { %v2858_v30 = vmax.f32 %v25117_v20, %v2813_v14  ;;  %2944 = vrot.lane.b32.xlu0 %v25244_v21, %s23848_s12  ;;  %v2859_v1 = vmax.f32 %v25112_v38, %v2814_v40  ;;  %v22672_v14 = vld [vmem:[%s30809_s4 + $0x80] sm:$0xff]   ;;  %21113 = vmatprep.subr.bf16.mxu1 %v22670_v49  ;;  %v22678_v49 = vld [vmem:[%s30809_s4 + $0xd0] sm:$0xff]  }
 0x404   :  { %2227 = vrot.lane.b32.xlu1 %v25247_v19, %s23848_s12  ;;  %21114 = vmatpush3.bf16.msra.mxu1 %v22672_v14 }
 0x405   :  { %v25257_v9 = vrot.slane %v2858_v30, 4  ;;  %v2774_v3 = vpop.permute.xlu1 %2773  ;;  %v22673_v30 = vld [vmem:[%s30809_s4 + $0x48] sm:$0xff]   ;;  %21115 = vmatprep.subr.bf16.mxu1 %v22674_v15  ;;  %v22679_v15 = vld [vmem:[%s30809_s4 + $0x10] sm:$0xff]  }
 0x406   :  { %v2815_v2 = vsel %vm50_vm2, %v2772_v57, %v2774_v3  ;;  %v2816_v18 = vsel %vm50_vm2, %v2774_v3, %v2776_v62  ;;  %v22676_v3 = vld [vmem:[%s30809_s4 + $0x88] sm:$0xff]   ;;  %21093 = vmatprep.subr.bf16.mxu0 %v22673_v30  ;;  %v22681_v30 = vld [vmem:[%s30809_s4 + $0x58] sm:$0xff]  }
 0x407   :  { %v2860_v63 = vmax.f32 %v25129_v55, %v2815_v2  ;;  %2948 = vrot.lane.b32.xlu0 %v25257_v9, %s23848_s12  ;;  %v25295_v2 = vrot.slane %v2859_v1, 4  ;;  %v2861_v29 = vmax.f32 %v25124_v47, %v2816_v18  ;;  %21094 = vmatpush3.bf16.msra.mxu0 %v22675_v23  ;;  %v22682_v23 = vld [vmem:[%s30809_s4 + $0xd8] sm:$0xff]  }
 0x408   :  { %2946 = vrot.lane.b32.xlu1 %v25268_v48, %s23848_s12  ;;  %21116 = vmatpush3.bf16.msra.mxu1 %v22676_v3  ;;  %v22683_v18 = vld [vmem:[%s30809_s4 + $0x18] sm:$0xff]  }
 0x409   :  { %v25287_v57 = vrot.slane %v2860_v63, 4  ;;  %v2778_v40 = vpop.permute.xlu1 %2777  ;;  %v22677_v63 = vld [vmem:[%s30809_s4 + $0x50] sm:$0xff]   ;;  %v25318_v14 = vrot.slane %v2861_v29, 4  ;;  %21117 = vmatprep.subr.bf16.mxu1 %v22678_v49  ;;  %v22685_v29 = vld [vmem:[%s30809_s4 + $0x60] sm:$0xff]  }
 0x40a   :  { %v2817_v52 = vsel %vm50_vm2, %v2776_v62, %v2778_v40  ;;  %v22680_v62 = vld [vmem:[%s30809_s4 + $0x90] sm:$0xff]   ;;  %21095 = vmatprep.subr.bf16.mxu0 %v22677_v63  ;;  %v22686_v63 = vld [vmem:[%s30809_s4 + $0xe0] sm:$0xff]  }
 0x40b   :  { %31031 = vst [vmem:[#allocation28_spill] sm:$0xff] %v25287_v57  ;;  %v2862_v22 = vmax.f32 %v25141_v4, %v2817_v52  ;;  %2952 = vrot.lane.b32.xlu0 %v25287_v57, %s23848_s12  ;;  %v2863_v52 = vmax.f32 %v25157_v12, %v2778_v40  ;;  %21096 = vmatpush3.bf16.msra.mxu0 %v22679_v15  ;;  %v22684_v40 = vld [vmem:[%s30809_s4 + $0x98] sm:$0xff]   ;;  %v22687_v49 = vld [vmem:[%s30809_s4 + $0x20] sm:$0xff]   ;;  %v22689_v15 = vld [vmem:[%s30809_s4 + $0x68] sm:$0xff]  }
 0x40c   :  { %2950 = vrot.lane.b32.xlu1 %v25295_v2, %s23848_s12  ;;  %21118 = vmatpush3.bf16.msra.mxu1 %v22680_v62  ;;  %v22690_v62 = vld [vmem:[%s30809_s4 + $0xe8] sm:$0xff]  }
 0x40d   :  { %v25310_v1 = vrot.slane %v2862_v22, 4  ;;  %v25337_v3 = vrot.slane %v2863_v52, 4  ;;  %21097 = vmatprep.subr.bf16.mxu0 %v22681_v30  ;;  %21119 = vmatprep.subr.bf16.mxu1 %v22682_v23  ;;  %v22688_v22 = vld [vmem:[%s30809_s4 + $0xa0] sm:$0xff]   ;;  %v22691_v52 = vld [vmem:[%s30809_s4 + $0x28] sm:$0xff]   ;;  %v22693_v23 = vld [vmem:[%s30809_s4 + $0x70] sm:$0xff]  }
 0x40e   :  { %v22692_v30 = vld [vmem:[%s30809_s4 + $0xa8] sm:$0xff]  }
 0x40f   :  { %31032 = vst [vmem:[#allocation29_spill] sm:$0xff] %v25310_v1  ;;  %2956 = vrot.lane.b32.xlu0 %v25310_v1, %s23848_s12  ;;  %31033 = vst [vmem:[#allocation30_spill] sm:$0xff] %v25337_v3  ;;  %21098 = vmatpush3.bf16.msra.mxu0 %v22683_v18  ;;  %v22694_v18 = vld [vmem:[%s30809_s4 + $0xf0] sm:$0xff]  }
 0x410   :  { %2954 = vrot.lane.b32.xlu1 %v25318_v14, %s23848_s12  ;;  %21120 = vmatpush3.bf16.msra.mxu1 %v22684_v40  ;;  %v22695_v40 = vld [vmem:[%s30809_s4 + $0x30] sm:$0xff]  }
 0x411   :  { %21099 = vmatprep.subr.bf16.mxu0 %v22685_v29  ;;  %21121 = vmatprep.subr.bf16.mxu1 %v22686_v63  ;;  %v22696_v29 = vld [vmem:[%s30809_s4 + $0xb0] sm:$0xff]   ;;  %v22697_v63 = vld [vmem:[%s30809_s4 + $0x78] sm:$0xff]  }
 0x413   :  { %21100 = vmatpush3.bf16.msra.mxu0 %v22687_v49  ;;  %v22698_v49 = vld [vmem:[%s30809_s4 + $0xf8] sm:$0xff]  }
 0x414   :  { %2958 = vrot.lane.b32.xlu1 %v25337_v3, %s23848_s12  ;;  %21122 = vmatpush3.bf16.msra.mxu1 %v22688_v22  ;;  %v22699_v22 = vld [vmem:[%s30809_s4 + $0x38] sm:$0xff]  }
 0x415   :  { %21101 = vmatprep.subr.bf16.mxu0 %v22689_v15  ;;  %21123 = vmatprep.subr.bf16.mxu1 %v22690_v62  ;;  %v22700_v15 = vld [vmem:[%s30809_s4 + $0xb8] sm:$0xff]   ;;  %v22701_v62 = vld [vmem:[%s30809_s4 + $0x140] sm:$0xff]  }
 0x417   :  { %21102 = vmatpush3.bf16.msra.mxu0 %v22691_v52  ;;  %v31034_v52 = vmov 0  }
 0x418   :  { %21124 = vmatpush3.bf16.msra.mxu1 %v22692_v30  ;;  %21103 = vmatprep.subr.bf16.mxu0 %v22693_v23 }
 0x419   :  { %21125 = vmatprep.subr.bf16.mxu1 %v22694_v18 }
 0x41b   :  { %21104 = vmatpush3.bf16.msra.mxu0 %v22695_v40 }
 0x41c   :  { %21126 = vmatpush3.bf16.msra.mxu1 %v22696_v29  ;;  %21105 = vmatprep.subr.bf16.mxu0 %v22697_v63 }
 0x41d   :  { %21127 = vmatprep.subr.bf16.mxu1 %v22698_v49 }
 0x41f   :  { %21106 = vmatpush3.bf16.msra.mxu0 %v22699_v22 }
 0x420   :  { %21128 = vmatpush3.bf16.msra.mxu1 %v22700_v15  ;;  %21135 = vmatprep.subr.bf16.mxu0 %v22701_v62 }
 0x421   :  { %3777 = vmatprep.subr.bf16.mxu1 %v31034_v52 }
 0x43c   :  { %v914_v30 = vpop.xlane.xlu0 %913 }
 0x440   :  { %v1698_v23 = vpop.xlane.xlu0 %1697 }
 0x441   :  { %v1701_v40 = vadd.f32 %v1698_v23, %v914_v30  ;;  %v25401_v30 = vld [vmem:[%s30807_s2 + $0x10] sm:$0xf] }
 0x443   :  { %v1820_v13 = vmul.f32 0.000739645, %v1701_v40 }
 0x444   :  { %v2649_v49 = vpop.permute.xlu0 %2648 }
 0x448   :  { %v1634_v18 = vpop.xlane.xlu1 %1633  ;;  %v25394_v22 = vpop.permute.xlu0 %2654 }
 0x449   :  { %v1637_v29 = vadd.f32 %v1634_v18, %v25196_v36 }
 0x44b   :  { %v1817_v58 = vmul.f32 0.000739645, %v1637_v29 }
 0x44c   :  { %v2647_v63 = vpop.permute.xlu1 %2646  ;;  %v25396_v62 = vpop.permute.xlu0 %2658 }
 0x44d   :  { %v1823_v11 = vmul.f32 %v1817_v58, %v1817_v58 }
 0x44f   :  { %v1826_v56 = vsub.f32 %v1820_v13, %v1823_v11  ;;  %v2152_v11 = vmax.f32 %v24978_v39, %v25214_v33 }
 0x450   :  { %v2651_v5 = vpop.permute.xlu1 %2650 }
 0x451   :  { %v1829_v50 = vadd.f32 1e-05, %v1826_v56 }
 0x453   :  { %23813 = vrsqrt.f32 %v1829_v50 }
 0x454   :  { %v2653_v15 = vpop.permute.xlu1 %2652 }
 0x458   :  { %v2657_v40 = vpop.permute.xlu1 %2656 }
 0x45c   :  { %v25405_v56 = vpop.permute.xlu1 %2660 }
 0x45d   :  { %v23814_v44 = vpop.eup %23813 }
 0x45e   :  { %v1835_v36 = vmul.f32 %v25401_v30, %v23814_v44 }
 0x45f   :  { %v2218_v23 = vpop.permute.xlu0 %2217 }
 0x460   :  { %v1838_v18 = vmul.f32 %v1835_v36, %v1817_v58  ;;  %1914 = vperm.xlu1 %22667, %v1835_v36  }
 0x462   :  { %1846 = vrot.lane.b32.xlu0 %v1838_v18, %s23871_s24 }
 0x463   :  { %v2222_v50 = vpop.permute.xlu0 %2221 }
 0x467   :  { %v2226_v13 = vpop.permute.xlu0 %2225 }
 0x46a   :  { %v2232_v29 = vpop.permute.xlu1 %2231 }
 0x46b   :  { %v2317_v34 = vmax.f32 %v2152_v11, %v2232_v29 }
 0x46c   :  { %v2230_v10 = vpop.permute.xlu0 %2229 }
 0x46d   :  { %2341 = vst.msk [vmem:[#allocation3 + $0x38] sm:$0xff] %vm303_vm8, %v2317_v34  ;;  %v2271_v44 = vsel %vm94_vm6, %v2230_v10, %v2232_v29 }
 0x46e   :  { %v2316_v58 = vmax.f32 %v25225_v25, %v2271_v44  ;;  %v2220_v1 = vpop.permute.xlu1 %2219 }
 0x46f   :  { %v2265_v36 = vsel %vm94_vm6, %v2218_v23, %v2220_v1  ;;  %v2266_v18 = vsel %vm94_vm6, %v2220_v1, %v2222_v50  ;;  %v2694_v23 = vsel %vm50_vm2, %v2647_v63, %v2649_v49  ;;  %v2696_v63 = vsel %vm50_vm2, %v2651_v5, %v2653_v15 }
 0x470   :  { %2340 = vst [vmem:[#allocation3 + $0x30] sm:$0xff] %v2316_v58  ;;  %v2310_v3 = vmax.f32 %v25200_v60, %v2265_v36  ;;  %v2311_v57 = vmax.f32 %v25228_v43, %v2266_v18  ;;  %v2695_v60 = vsel %vm50_vm2, %v2649_v49, %v2651_v5  ;;  %v2697_v49 = vsel %vm50_vm2, %v2653_v15, %v25394_v22 }
 0x471   :  { %v2741_v18 = vmax.f32 %v25001_v42, %v2696_v63  ;;  %v2698_v5 = vsel %vm50_vm2, %v25394_v22, %v2657_v40  ;;  %v2699_v15 = vsel %vm50_vm2, %v2657_v40, %v25396_v62  ;;  %v2700_v22 = vsel %vm50_vm2, %v25396_v62, %v25405_v56 }
 0x472   :  { %2334 = vst [vmem:[#allocation3] sm:$0xff] %v2310_v3  ;;  %2335 = vst [vmem:[#allocation3 + $0x8] sm:$0xff] %v2311_v57  ;;  %v2224_v39 = vpop.permute.xlu1 %2223  ;;  %v2743_v42 = vmax.f32 %v25005_v26, %v2698_v5  ;;  %v2745_v26 = vmax.f32 %v25061_v41, %v2700_v22  ;;  %v31039_v5 = vld [vmem:[#allocation17_spill] sm:$0xff] }
 0x473   :  { %v2267_v33 = vsel %vm94_vm6, %v2222_v50, %v2224_v39  ;;  %v2268_v34 = vsel %vm94_vm6, %v2224_v39, %v2226_v13 }
 0x474   :  { %v2312_v11 = vmax.f32 %v25206_v28, %v2267_v33  ;;  %v2313_v25 = vmax.f32 %v25236_v27, %v2268_v34  ;;  %v2739_v28 = vmax.f32 %v24991_v54, %v2694_v23  ;;  %v2740_v27 = vmax.f32 %v24989_v31, %v2695_v60 }
 0x475   :  { %v2945_v29 = vpop.permute.xlu0 %2944  ;;  %v2742_v54 = vmax.f32 %v24993_v24, %v2697_v49  ;;  %v2744_v24 = vmax.f32 %v25003_v32, %v2699_v15 }
 0x476   :  { %2336 = vst [vmem:[#allocation3 + $0x10] sm:$0xff] %v2312_v11  ;;  %2337 = vst [vmem:[#allocation3 + $0x18] sm:$0xff] %v2313_v25  ;;  %v2228_v1 = vpop.permute.xlu1 %2227 }
 0x477   :  { %v2269_v43 = vsel %vm94_vm6, %v2226_v13, %v2228_v1  ;;  %v2270_v57 = vsel %vm94_vm6, %v2228_v1, %v2230_v10 }
 0x478   :  { %v2314_v3 = vmax.f32 %v25212_v6, %v2269_v43  ;;  %v2315_v50 = vmax.f32 %v25247_v19, %v2270_v57  ;;  %v2746_v43 = vmax.f32 %v25007_v7, %v25405_v56  ;;  %v31035_v7 = vld [vmem:[#allocation10_spill] sm:$0xff]  ;;  %v31036_v56 = vld [vmem:[#allocation12_spill] sm:$0xff] }
 0x479   :  { %v2949_v44 = vpop.permute.xlu0 %2948 }
 0x47a   :  { %2338 = vst [vmem:[#allocation3 + $0x20] sm:$0xff] %v2314_v3  ;;  %2339 = vst [vmem:[#allocation3 + $0x28] sm:$0xff] %v2315_v50  ;;  %v2947_v58 = vpop.permute.xlu1 %2946 }
 0x47b   :  { %v2992_v13 = vsel %vm94_vm6, %v2945_v29, %v2947_v58  ;;  %v2993_v10 = vsel %vm94_vm6, %v2947_v58, %v2949_v44 }
 0x47c   :  { %v3037_v6 = vmax.f32 %v2739_v28, %v2992_v13  ;;  %v3038_v36 = vmax.f32 %v2740_v27, %v2993_v10  ;;  %v31037_v13 = vld [vmem:[#allocation9_spill] sm:$0xff] }
 0x47d   :  { %v2953_v19 = vpop.permute.xlu0 %2952 }
 0x47e   :  { %3061 = vst [vmem:[#allocation3 + $0x80] sm:$0xf0] %v3037_v6  ;;  %3062 = vst [vmem:[#allocation3 + $0x88] sm:$0xf0] %v3038_v36  ;;  %v2951_v31 = vpop.permute.xlu1 %2950  ;;  %v31038_v6 = vld [vmem:[#allocation11_spill] sm:$0xff] }
 0x47f   :  { %v2994_v39 = vsel %vm94_vm6, %v2949_v44, %v2951_v31  ;;  %v2995_v33 = vsel %vm94_vm6, %v2951_v31, %v2953_v19  ;;  %v3093_v44 = vld [vmem:[#allocation3] ss:$8 sm:$0xf] }
 0x480   :  { %v3039_v34 = vmax.f32 %v2741_v18, %v2994_v39  ;;  %v3040_v11 = vmax.f32 %v2742_v54, %v2995_v33  ;;  %v31040_v33 = vld [vmem:[#allocation23_spill] sm:$0xff] }
 0x481   :  { %v2957_v25 = vpop.permute.xlu0 %2956  ;;  %v3094_v62 = vld [vmem:[#allocation3] ss:$8 sm:$0xf0] }
 0x482   :  { %3063 = vst [vmem:[#allocation3 + $0x90] sm:$0xf0] %v3039_v34  ;;  %3064 = vst [vmem:[#allocation3 + $0x98] sm:$0xf0] %v3040_v11  ;;  %v2955_v29 = vpop.permute.xlu1 %2954  ;;  %v25453_v28 = vor.u32 %v3094_v62, %v3093_v44 }
 0x483   :  { %v2996_v40 = vsel %vm94_vm6, %v2953_v19, %v2955_v29  ;;  %v2997_v1 = vsel %vm94_vm6, %v2955_v29, %v2957_v25 }
 0x484   :  { %v3041_v23 = vmax.f32 %v2743_v42, %v2996_v40  ;;  %v3042_v60 = vmax.f32 %v2744_v24, %v2997_v1  ;;  %v3108_v41 = vrot.slane %v25453_v28, %v31035_v7  ;;  %v3116_v49 = vrot.slane %v25453_v28, %v31036_v56 }
 0x485   :  { %v3104_v10 = vrot.slane %v25453_v28, %v31037_v13  ;;  %v3112_v36 = vrot.slane %v25453_v28, %v31038_v6  ;;  %v3124_v15 = vrot.slane %v25453_v28, %v31039_v5  ;;  %v3132_v34 = vrot.slane %v25453_v28, %v31040_v33 }
 0x486   :  { %3065 = vst [vmem:[#allocation3 + $0xa0] sm:$0xf0] %v3041_v23  ;;  %3066 = vst [vmem:[#allocation3 + $0xa8] sm:$0xf0] %v3042_v60  ;;  %v2959_v32 = vpop.permute.xlu1 %2958  ;;  %v22702_v60 = vld [vmem:[%s30809_s4 + $0x100] sm:$0xff]  }
 0x487   :  { %v2998_v57 = vsel %vm94_vm6, %v2957_v25, %v2959_v32  ;;  %v3044_v3 = vmax.f32 %v2746_v43, %v2959_v32  ;;  %v22703_v43 = vld [vmem:[%s30809_s4 + $0x180] sm:$0xff]  }
 0x488   :  { %v3043_v50 = vmax.f32 %v2745_v26, %v2998_v57  ;;  %v22704_v57 = vld [vmem:[%s30809_s4 + $0x148] sm:$0xff]  }
 0x489   :  { %3068 = vst.msk [vmem:[#allocation3 + $0xb8] sm:$0xf0] %vm1797_vm0, %v3044_v3  ;;  %v3097_v27 = vld [vmem:[#allocation3 + $0x84] ss:$8 sm:$0xf] }
 0x48a   :  { %3067 = vst [vmem:[#allocation3 + $0xb0] sm:$0xf0] %v3043_v50  ;;  %v3820_v3 = vld [vmem:[#allocation3 + $0x1] ss:$8 sm:$0xf0] }
 0x491   :  { %v3098_v58 = vld [vmem:[#allocation3 + $0x84] ss:$8 sm:$0xf0]  ;;  %v3824_v50 = vld [vmem:[#allocation3 + $0x85] ss:$8 sm:$0xf0] }
 0x492   :  { %v25455_v63 = vor.u32 %v3098_v58, %v3097_v27  ;;  %v22705_v27 = vld [vmem:[%s30809_s4 + $0x108] sm:$0xff]  }
 0x493   :  { %v22706_v58 = vld [vmem:[%s30809_s4 + $0x188] sm:$0xff]  }
 0x494   :  { %v3149_v19 = vrot.slane %v25455_v63, %v31035_v7  ;;  %v3157_v18 = vrot.slane %v25455_v63, %v31036_v56  ;;  %v3145_v54 = vrot.slane %v25455_v63, %v31037_v13  ;;  %v3153_v31 = vrot.slane %v25455_v63, %v31038_v6 }
 0x495   :  { %v3165_v39 = vrot.slane %v25455_v63, %v31039_v5  ;;  %v3173_v11 = vrot.slane %v25455_v63, %v31040_v33 }
 0x496   :  { %v3183_v25 = vsel %vm366_vm12, %v3108_v41, %v3149_v19  ;;  %v3185_v42 = vsel %vm366_vm12, %v3116_v49, %v3157_v18  ;;  %v3182_v24 = vsel %vm366_vm12, %v3104_v10, %v3145_v54  ;;  %v3184_v29 = vsel %vm366_vm12, %v3112_v36, %v3153_v31  ;;  %v3819_v41 = vld [vmem:[#allocation3 + $0x1] ss:$8 sm:$0xf]  ;;  %v3823_v49 = vld [vmem:[#allocation3 + $0x85] ss:$8 sm:$0xf] }
 0x497   :  { %v3191_v22 = vpack.c.bf16 %v3183_v25, %v3183_v25  ;;  %v3193_v40 = vpack.c.bf16 %v3185_v42, %v3185_v42  ;;  %v3190_v1 = vpack.c.bf16 %v3182_v24, %v3182_v24  ;;  %v3192_v23 = vpack.c.bf16 %v3184_v29, %v3184_v29  ;;  %v22707_v19 = vld [vmem:[%s30809_s4 + $0x150] sm:$0xff]   ;;  %v22710_v31 = vld [vmem:[%s30809_s4 + $0x158] sm:$0xff]  }
 0x498   :  { %v3187_v26 = vsel %vm366_vm12, %v3124_v15, %v3165_v39  ;;  %v3189_v32 = vsel %vm366_vm12, %v3132_v34, %v3173_v11  ;;  %v25502_v10 = vor.u32 %v3820_v3, %v3819_v41  ;;  %v25504_v36 = vor.u32 %v3824_v50, %v3823_v49  ;;  %v22708_v18 = vld [vmem:[%s30809_s4 + $0x110] sm:$0xff]   ;;  %v22716_v41 = vld [vmem:[%s30809_s4 + $0x168] sm:$0xff]  }
 0x499   :  { %3689 = vmatprep.mubr.bf16.mxu0 %v3191_v22  ;;  %3729 = vmatprep.mubr.bf16.mxu1 %v3193_v40  ;;  %v3195_v62 = vpack.c.bf16 %v3187_v26, %v3187_v26  ;;  %v3197_v44 = vpack.c.bf16 %v3189_v32, %v3189_v32  ;;  %v22709_v54 = vld [vmem:[%s30809_s4 + $0x190] sm:$0xff]   ;;  %v22714_v32 = vld [vmem:[%s30809_s4 + $0x120] sm:$0xff]  }
 0x49a   :  { %3690 = vmatmul.mubr.bf16.vlgmr.msra.gmra.mrb[24].mxu0 %v3190_v1  ;;  %3730 = vmatmul.mubr.bf16.vlgmr.msra.gmra.mrb[24].mxu1 %v3192_v23  ;;  %v4546_v15 = vld [vmem:[#allocation3 + $0x2] ss:$8 sm:$0xf0]  ;;  %v4550_v39 = vld [vmem:[#allocation3 + $0x86] ss:$8 sm:$0xf0] }
 0x49b   :  { %21136 = vmatpush3.bf16.msra.mxu0 %v22702_v60  ;;  %3778 = vmatpush1.bf16.msra.mxu1 %v22703_v43  ;;  %v31041_v34 = vld [vmem:[#allocation18_spill] sm:$0xff]  ;;  %v22713_v60 = vld [vmem:[%s30809_s4 + $0x160] sm:$0xff]  }
 0x49c   :  { %3769 = vmatprep.mubr.bf16.mxu0 %v3195_v62  ;;  %17839 = vmatprep.mubr.msk.bf16.mxu1 %vm303_vm8, %v3197_v44  ;;  %v3854_v11 = vrot.slane %v25502_v10, %v31041_v34  ;;  %v3895_v25 = vrot.slane %v25504_v36, %v31041_v34  ;;  %v4545_v42 = vld [vmem:[#allocation3 + $0x2] ss:$8 sm:$0xf]  ;;  %v4549_v24 = vld [vmem:[#allocation3 + $0x86] ss:$8 sm:$0xf] }
 0x49d   :  { %21137 = vmatprep.subr.bf16.mxu0 %v22704_v57  ;;  %3779 = vmatprep.subr.bf16.mxu1 %v31034_v52  ;;  %v25528_v22 = vor.u32 %v4546_v15, %v4545_v42  ;;  %v25530_v40 = vor.u32 %v4550_v39, %v4549_v24  ;;  %v22711_v1 = vld [vmem:[%s30809_s4 + $0x118] sm:$0xff]   ;;  %v22715_v57 = vld [vmem:[%s30809_s4 + $0x1a0] sm:$0xff]  }
 0x49e   :  { %v25526_v29 = vsel %vm366_vm12, %v3854_v11, %v3895_v25  ;;  %v22712_v23 = vld [vmem:[%s30809_s4 + $0x198] sm:$0xff]   ;;  %v22720_v11 = vld [vmem:[%s30809_s4 + $0x130] sm:$0xff]   ;;  %v31042_v24 = vld [vmem:[#allocation16_spill] sm:$0xff] }
 0x49f   :  { %21138 = vmatpush3.bf16.msra.mxu0 %v22705_v27  ;;  %3780 = vmatpush1.bf16.msra.mxu1 %v22706_v58  ;;  %v5272_v43 = vld [vmem:[#allocation3 + $0x3] ss:$8 sm:$0xf0]  ;;  %v5276_v26 = vld [vmem:[#allocation3 + $0x87] ss:$8 sm:$0xf0]  ;;  %v4580_v62 = vrot.slane %v25528_v22, %v31041_v34  ;;  %v4621_v44 = vrot.slane %v25530_v40, %v31041_v34 }
 0x4a0   :  { %21139 = vmatprep.subr.bf16.mxu0 %v22707_v19  ;;  %3781 = vmatprep.subr.bf16.mxu1 %v31034_v52  ;;  %v5271_v3 = vld [vmem:[#allocation3 + $0x3] ss:$8 sm:$0xf]  ;;  %v5275_v50 = vld [vmem:[#allocation3 + $0x87] ss:$8 sm:$0xf] }
 0x4a1   :  { %v25552_v27 = vor.u32 %v5272_v43, %v5271_v3  ;;  %v25554_v58 = vor.u32 %v5276_v26, %v5275_v50  ;;  %v25561_v49 = vsel %vm366_vm12, %v4580_v62, %v4621_v44  ;;  %v22717_v19 = vld [vmem:[%s30809_s4 + $0x128] sm:$0xff]   ;;  %v22721_v25 = vld [vmem:[%s30809_s4 + $0x1b0] sm:$0xff]   ;;  %v22722_v42 = vld [vmem:[%s30809_s4 + $0x178] sm:$0xff]   ;;  %v3120_v43 = vrot.slane %v25453_v28, %v31042_v24 }
 0x4a2   :  { %v3875_v26 = vrot.slane %v25504_v36, %v31035_v7  ;;  %v3834_v50 = vrot.slane %v25502_v10, %v31035_v7  ;;  %v3169_v62 = vrot.slane %v25455_v63, %v31041_v34  ;;  %v22727_v44 = vld [vmem:[%s30809_s4 + $0x1c4] sm:$0xff]  }
 0x4a3   :  { %21140 = vmatpush3.bf16.msra.mxu0 %v22708_v18  ;;  %3782 = vmatpush1.bf16.msra.mxu1 %v22709_v54  ;;  %v22718_v18 = vld [vmem:[%s30809_s4 + $0x1a8] sm:$0xff]   ;;  %v22719_v54 = vld [vmem:[%s30809_s4 + $0x170] sm:$0xff]   ;;  %v5347_v15 = vrot.slane %v25554_v58, %v31041_v34 }
 0x4a4   :  { %21141 = vmatprep.subr.bf16.mxu0 %v22710_v31  ;;  %3783 = vmatprep.subr.bf16.mxu1 %v31034_v52  ;;  %v5306_v31 = vrot.slane %v25552_v27, %v31041_v34 }
 0x4a6   :  { %v25578_v39 = vsel %vm366_vm12, %v5306_v31, %v5347_v15  ;;  %v22728_v31 = vld [vmem:[%s30809_s4 + $0x20c] sm:$0xff]  }
 0x4a7   :  { %21142 = vmatpush3.bf16.msra.mxu0 %v22711_v1  ;;  %3784 = vmatpush1.bf16.msra.mxu1 %v22712_v23  ;;  %v3161_v1 = vrot.slane %v25455_v63, %v31042_v24  ;;  %v22723_v23 = vld [vmem:[%s30809_s4 + $0x138] sm:$0xff]  }
 0x4a8   :  { %21143 = vmatprep.subr.bf16.mxu0 %v22713_v60  ;;  %3785 = vmatprep.subr.bf16.mxu1 %v31034_v52  ;;  %v22724_v60 = vld [vmem:[%s30809_s4 + $0x1b8] sm:$0xff]  }
 0x4a9   :  { %v3186_v3 = vsel %vm366_vm12, %v3120_v43, %v3161_v1  ;;  %v22731_v1 = vld [vmem:[%s30809_s4 + $0x244] sm:$0xff]   ;;  %v22732_v43 = vld [vmem:[%s30809_s4 + $0x214] sm:$0xff]  }
 0x4ab   :  { %21144 = vmatpush3.bf16.msra.mxu0 %v22714_v32  ;;  %3786 = vmatpush1.bf16.msra.mxu1 %v22715_v57  ;;  %v22725_v32 = vld [vmem:[%s30809_s4 + $0x204] sm:$0xff]   ;;  %v22726_v57 = vld [vmem:[%s30809_s4 + $0x1c0] ss:$0 sps:$4 sm:$0x33]  }
 0x4ac   :  { %21145 = vmatprep.subr.bf16.mxu0 %v22716_v41  ;;  %3787 = vmatprep.subr.bf16.mxu1 %v31034_v52  ;;  %v3909_v41 = vsel %vm366_vm12, %v3834_v50, %v3875_v26  ;;  %v3655_v63 = vsel %vm3653_vm1, %v22726_v57, 0  ;;  %v22733_v26 = vld [vmem:[%s30809_s4 + $0x28c] sm:$0xff]   ;;  %v22734_v57 = vld [vmem:[%s30809_s4 + $0x1d4] sm:$0xff]   ;;  %v22736_v50 = vld [vmem:[%s30809_s4 + $0x21c] sm:$0xff]  }
 0x4af   :  { %21146 = vmatpush3.bf16.msra.mxu0 %v22717_v19  ;;  %3788 = vmatpush1.bf16.msra.mxu1 %v22718_v18  ;;  %v3128_v19 = vrot.slane %v25453_v28, %v31041_v34  ;;  %v3883_v18 = vrot.slane %v25504_v36, %v31036_v56  ;;  %v3842_v28 = vrot.slane %v25502_v10, %v31036_v56 }
 0x4b0   :  { %21147 = vmatprep.subr.bf16.mxu0 %v22719_v54  ;;  %3789 = vmatprep.subr.bf16.mxu1 %v31034_v52  ;;  %v3194_v54 = vpack.c.bf16 %v3186_v3, %v3186_v3  ;;  %v22735_v3 = vld [vmem:[%s30809_s4 + $0x24c] sm:$0xff]  }
 0x4b1   :  { %v3188_v15 = vsel %vm366_vm12, %v3128_v19, %v3169_v62  ;;  %v22737_v62 = vld [vmem:[%s30809_s4 + $0x294] sm:$0xff]   ;;  %v22740_v19 = vld [vmem:[%s30809_s4 + $0x224] sm:$0xff]  }
 0x4b3   :  { %21148 = vmatpush3.bf16.msra.mxu0 %v22720_v11  ;;  %3790 = vmatpush1.bf16.msra.mxu1 %v22721_v25  ;;  %v22729_v11 = vld [vmem:[%s30809_s4 + $0x284] sm:$0xff]   ;;  %v3917_v25 = vpack.c.bf16 %v3909_v41, %v3909_v41  ;;  %v22739_v41 = vld [vmem:[%s30809_s4 + $0x254] sm:$0xff]  }
 0x4b4   :  { %21149 = vmatprep.subr.bf16.mxu0 %v22722_v42  ;;  %3791 = vmatprep.subr.bf16.mxu1 %v31034_v52  ;;  %v22730_v42 = vld [vmem:[%s30809_s4 + $0x1cc] sm:$0xff]  }
 0x4b7   :  { %21150 = vmatpush3.bf16.msra.mxu0 %v22723_v23  ;;  %3792 = vmatpush1.bf16.msra.mxu1 %v22724_v60  ;;  %v3911_v23 = vsel %vm366_vm12, %v3842_v28, %v3883_v18  ;;  %v3196_v60 = vpack.c.bf16 %v3188_v15, %v3188_v15  ;;  %v22741_v18 = vld [vmem:[%s30809_s4 + $0x29c] sm:$0xff]   ;;  %v22745_v15 = vld [vmem:[%s30809_s4 + $0x2a4] sm:$0xff]  }
 0x4b8   :  { %3793 = vmatprep.subr.bf16.mxu1 %v31034_v52  ;;  %21157 = vmatprep.subr.bf16.mxu0 %v22725_v32  ;;  %v3919_v32 = vpack.c.bf16 %v3911_v23, %v3911_v23  ;;  %v22747_v28 = vld [vmem:[%s30809_s4 + $0x264] sm:$0xff]   ;;  %v22751_v23 = vld [vmem:[%s30809_s4 + $0x26c] sm:$0xff]  }
 0x4ba   :  { %3770 = vmatmul.mubr.bf16.vlgmr.msra.gmra.mrb[28].mxu0 %v3194_v54  ;;  %v22742_v54 = vld [vmem:[%s30809_s4 + $0x1e4] sm:$0xff]  }
 0x4bb   :  { %3794 = vmatpush1.bf16.msra.mxu1 %v3655_v63  ;;  %21158 = vmatpush3.bf16.msra.mxu0 %v22727_v44  ;;  %v22738_v44 = vld [vmem:[%s30809_s4 + $0x1dc] sm:$0xff]  }
 0x4bc   :  { %4415 = vmatprep.mubr.bf16.mxu0 %v3917_v25  ;;  %21159 = vmatprep.subr.bf16.mxu0 %v22728_v31  ;;  %v22743_v63 = vld [vmem:[%s30809_s4 + $0x25c] sm:$0xff]   ;;  %v22744_v31 = vld [vmem:[%s30809_s4 + $0x22c] sm:$0xff]   ;;  %v22748_v25 = vld [vmem:[%s30809_s4 + $0x234] sm:$0xff]  }
 0x4bd   :  { %21179 = vmatprep.subr.bf16.mxu1 %v22729_v11  ;;  %v22746_v11 = vld [vmem:[%s30809_s4 + $0x1ec] sm:$0xff]  }
 0x4be   :  { %3810 = vmatmul.mubr.bf16.vlgmr.msra.gmra.mrb[28].mxu1 %v3196_v60  ;;  %v22752_v60 = vld [vmem:[%s30809_s4 + $0x23c] sm:$0xff]  }
 0x4bf   :  { %21160 = vmatpush3.bf16.msra.mxu0 %v22730_v42  ;;  %21180 = vmatpush3.bf16.msra.mxu1 %v22731_v1  ;;  %v22749_v42 = vld [vmem:[%s30809_s4 + $0x2ac] sm:$0xff]   ;;  %v22750_v1 = vld [vmem:[%s30809_s4 + $0x1f4] sm:$0xff]  }
 0x4c0   :  { %4455 = vmatprep.mubr.bf16.mxu1 %v3919_v32  ;;  %21161 = vmatprep.subr.bf16.mxu0 %v22732_v43  ;;  %v22753_v43 = vld [vmem:[%s30809_s4 + $0x2b4] sm:$0xff]   ;;  %v22754_v32 = vld [vmem:[%s30809_s4 + $0x1fc] sm:$0xff]  }
 0x4c1   :  { %21181 = vmatprep.subr.bf16.mxu1 %v22733_v26  ;;  %v3871_v26 = vrot.slane %v25504_v36, %v31037_v13 }
 0x4c3   :  { %21162 = vmatpush3.bf16.msra.mxu0 %v22734_v57  ;;  %21182 = vmatpush3.bf16.msra.mxu1 %v22735_v3  ;;  %v22755_v57 = vld [vmem:[%s30809_s4 + $0x274] sm:$0xff]   ;;  %v3830_v3 = vrot.slane %v25502_v10, %v31037_v13 }
 0x4c4   :  { %21163 = vmatprep.subr.bf16.mxu0 %v22736_v50  ;;  %21183 = vmatprep.subr.bf16.mxu1 %v22737_v62  ;;  %v3891_v50 = vrot.slane %v25504_v36, %v31039_v5 }
 0x4c7   :  { %21164 = vmatpush3.bf16.msra.mxu0 %v22738_v44  ;;  %21184 = vmatpush3.bf16.msra.mxu1 %v22739_v41  ;;  %v22756_v44 = vld [vmem:[%s30809_s4 + $0x2bc] sm:$0xff]  }
 0x4c8   :  { %21165 = vmatprep.subr.bf16.mxu0 %v22740_v19  ;;  %21185 = vmatprep.subr.bf16.mxu1 %v22741_v18  ;;  %v3908_v19 = vsel %vm366_vm12, %v3830_v3, %v3871_v26  ;;  %v22757_v18 = vld [vmem:[%s30809_s4 + $0x304] sm:$0xff]   ;;  %v22763_v3 = vld [vmem:[%s30809_s4 + $0x314] sm:$0xff]  }
 0x4c9   :  { %v22762_v26 = vld [vmem:[%s30809_s4 + $0x344] sm:$0xff]  }
 0x4cb   :  { %21166 = vmatpush3.bf16.msra.mxu0 %v22742_v54  ;;  %21186 = vmatpush3.bf16.msra.mxu1 %v22743_v63  ;;  %v3850_v54 = vrot.slane %v25502_v10, %v31039_v5  ;;  %v3879_v63 = vrot.slane %v25504_v36, %v31038_v6 }
 0x4cc   :  { %21167 = vmatprep.subr.bf16.mxu0 %v22744_v31  ;;  %21187 = vmatprep.subr.bf16.mxu1 %v22745_v15  ;;  %v22758_v31 = vld [vmem:[%s30809_s4 + $0x27c] sm:$0xff]  }
 0x4cd   :  { %v3913_v15 = vsel %vm366_vm12, %v3850_v54, %v3891_v50  ;;  %v22769_v54 = vld [vmem:[%s30809_s4 + $0x324] sm:$0xff]  }
 0x4cf   :  { %21168 = vmatpush3.bf16.msra.mxu0 %v22746_v11  ;;  %21188 = vmatpush3.bf16.msra.mxu1 %v22747_v28  ;;  %v3838_v11 = vrot.slane %v25502_v10, %v31038_v6  ;;  %v3899_v28 = vrot.slane %v25504_v36, %v31040_v33 }
 0x4d0   :  { %21169 = vmatprep.subr.bf16.mxu0 %v22748_v25  ;;  %21189 = vmatprep.subr.bf16.mxu1 %v22749_v42  ;;  %v3916_v25 = vpack.c.bf16 %v3908_v19, %v3908_v19  ;;  %v22760_v42 = vld [vmem:[%s30809_s4 + $0x30c] sm:$0xff]   ;;  %v22767_v19 = vld [vmem:[%s30809_s4 + $0x2dc] sm:$0xff]  }
 0x4d3   :  { %21170 = vmatpush3.bf16.msra.mxu0 %v22750_v1  ;;  %21190 = vmatpush3.bf16.msra.mxu1 %v22751_v23  ;;  %v3910_v1 = vsel %vm366_vm12, %v3838_v11, %v3879_v63  ;;  %v3858_v23 = vrot.slane %v25502_v10, %v31040_v33  ;;  %v22770_v63 = vld [vmem:[%s30809_s4 + $0x2e4] sm:$0xff]  }
 0x4d4   :  { %v1847_v62 = vpop.permute.xlu0 %1846  ;;  %21171 = vmatprep.subr.bf16.mxu0 %v22752_v60  ;;  %21191 = vmatprep.subr.bf16.mxu1 %v22753_v43  ;;  %v3921_v60 = vpack.c.bf16 %v3913_v15, %v3913_v15  ;;  %v22761_v43 = vld [vmem:[%s30809_s4 + $0x2cc] sm:$0xff]   ;;  %v22774_v11 = vld [vmem:[%s30809_s4 + $0x364] sm:$0xff]  }
 0x4d5   :  { %v1853_v41 = vsub.f32 %v25401_v30, %v1847_v62  ;;  %v22759_v30 = vld [vmem:[%s30809_s4 + $0x2c4] sm:$0xff]   ;;  %v22764_v62 = vld [vmem:[%s30809_s4 + $0x2d4] sm:$0xff]   ;;  %v22773_v15 = vld [vmem:[%s30809_s4 + $0x2ec] sm:$0xff]  }
 0x4d7   :  { %21172 = vmatpush3.bf16.msra.mxu0 %v22754_v32  ;;  %21192 = vmatpush3.bf16.msra.mxu1 %v22755_v57  ;;  %v3915_v32 = vsel %vm366_vm12, %v3858_v23, %v3899_v28  ;;  %v3918_v57 = vpack.c.bf16 %v3910_v1, %v3910_v1  ;;  %v22775_v28 = vld [vmem:[%s30809_s4 + $0x334] sm:$0xff]   ;;  %v22778_v1 = vld [vmem:[%s30809_s4 + $0x33c] sm:$0xff]   ;;  %v3887_v23 = vrot.slane %v25504_v36, %v31042_v24  ;;  %v22781_v36 = vld [vmem:[%s30809_s4 + $0x3c8] sm:$0xff]  }
 0x4d8   :  { %1953 = vperm.xlu0 %22668, %v1853_v41   ;;  %21193 = vmatprep.subr.bf16.mxu1 %v22756_v44  ;;  %v3923_v50 = vpack.c.bf16 %v3915_v32, %v3915_v32  ;;  %v22765_v44 = vld [vmem:[%s30809_s4 + $0x34c] sm:$0xff]   ;;  %v22766_v41 = vld [vmem:[%s30809_s4 + $0x31c] sm:$0xff]   ;;  %v4601_v32 = vrot.slane %v25530_v40, %v31035_v7 }
 0x4d9   :  { %21201 = vmatprep.subr.bf16.mxu0 %v22757_v18  ;;  %v22768_v18 = vld [vmem:[%s30809_s4 + $0x354] sm:$0xff]  }
 0x4da   :  { %4416 = vmatmul.mubr.bf16.vlgmr.msra.gmra.mrb[32].mxu0 %v3916_v25  ;;  %v22776_v25 = vld [vmem:[%s30809_s4 + $0x2f4] sm:$0xff]  }
 0x4db   :  { %21194 = vmatpush3.bf16.msra.mxu1 %v22758_v31  ;;  %21202 = vmatpush3.bf16.msra.mxu0 %v22759_v30  ;;  %v22771_v31 = vld [vmem:[%s30809_s4 + $0x35c] sm:$0xff]   ;;  %v22772_v30 = vld [vmem:[%s30809_s4 + $0x32c] sm:$0xff]  }
 0x4dc   :  { %4495 = vmatprep.mubr.bf16.mxu0 %v3921_v60  ;;  %21203 = vmatprep.subr.bf16.mxu0 %v22760_v42  ;;  %v22777_v42 = vld [vmem:[%s30809_s4 + $0x36c] sm:$0xff]   ;;  %v22779_v60 = vld [vmem:[%s30809_s4 + $0x2fc] sm:$0xff]  }
 0x4dd   :  { %4503 = vmatprep.subr.bf16.mxu1 %v31034_v52 }
 0x4de   :  { %4456 = vmatmul.mubr.bf16.vlgmr.msra.gmra.mrb[32].mxu1 %v3918_v57 }
 0x4df   :  { %21204 = vmatpush3.bf16.msra.mxu0 %v22761_v43  ;;  %4504 = vmatpush1.bf16.msra.mxu1 %v22762_v26  ;;  %v22780_v43 = vld [vmem:[%s30809_s4 + $0x374] sm:$0xff]   ;;  %v3846_v26 = vrot.slane %v25502_v10, %v31042_v24  ;;  %v22782_v10 = vld [vmem:[%s30809_s4 + $0x37c] sm:$0xff]  }
 0x4e0   :  { %18010 = vmatprep.mubr.msk.bf16.mxu1 %vm303_vm8, %v3923_v50  ;;  %21205 = vmatprep.subr.bf16.mxu0 %v22763_v3  ;;  %v4560_v3 = vrot.slane %v25528_v22, %v31035_v7  ;;  %v22783_v50 = vld [vmem:[%s30809_s4 + $0x388] sm:$0xff]  }
 0x4e1   :  { %4505 = vmatprep.subr.bf16.mxu1 %v31034_v52  ;;  %v3912_v57 = vsel %vm366_vm12, %v3846_v26, %v3887_v23  ;;  %v22791_v23 = vld [vmem:[%s30809_s4 + $0x3e0] sm:$0xff]  }
 0x4e2   :  { %v22793_v26 = vld [vmem:[%s30809_s4 + $0x3a0] sm:$0xff]  }
 0x4e3   :  { %21206 = vmatpush3.bf16.msra.mxu0 %v22764_v62  ;;  %4506 = vmatpush1.bf16.msra.mxu1 %v22765_v44  ;;  %v4635_v62 = vsel %vm366_vm12, %v4560_v3, %v4601_v32  ;;  %v3920_v44 = vpack.c.bf16 %v3912_v57, %v3912_v57  ;;  %v22795_v32 = vld [vmem:[%s30809_s4 + $0x3e8] sm:$0xff]   ;;  %v22798_v3 = vld [vmem:[%s30809_s4 + $0x418] sm:$0xff]  }
 0x4e4   :  { %21207 = vmatprep.subr.bf16.mxu0 %v22766_v41  ;;  %4507 = vmatprep.subr.bf16.mxu1 %v31034_v52  ;;  %v22785_v41 = vld [vmem:[%s30809_s4 + $0x384] ss:$0 sps:$4 sm:$0x33]   ;;  %v22797_v57 = vld [vmem:[%s30809_s4 + $0x3a8] sm:$0xff]  }
 0x4e7   :  { %21208 = vmatpush3.bf16.msra.mxu0 %v22767_v19  ;;  %4508 = vmatpush1.bf16.msra.mxu1 %v22768_v18  ;;  %v22784_v19 = vld [vmem:[%s30809_s4 + $0x3d0] sm:$0xff]   ;;  %v4643_v18 = vpack.c.bf16 %v4635_v62, %v4635_v62 }
 0x4e8   :  { %21209 = vmatprep.subr.bf16.mxu0 %v22769_v54  ;;  %4509 = vmatprep.subr.bf16.mxu1 %v31034_v52  ;;  %v22786_v54 = vld [vmem:[%s30809_s4 + $0x390] sm:$0xff]  }
 0x4e9   :  { %v22801_v62 = vld [vmem:[%s30809_s4 + $0x3b0] sm:$0xff]  }
 0x4eb   :  { %21210 = vmatpush3.bf16.msra.mxu0 %v22770_v63  ;;  %4510 = vmatpush1.bf16.msra.mxu1 %v22771_v31  ;;  %v4609_v63 = vrot.slane %v25530_v40, %v31036_v56  ;;  %v4381_v31 = vsel %vm3653_vm1, %v22785_v41, 0  ;;  %v22803_v41 = vld [vmem:[%s30809_s4 + $0x3f8] sm:$0xff]  }
 0x4ec   :  { %21211 = vmatprep.subr.bf16.mxu0 %v22772_v30  ;;  %4511 = vmatprep.subr.bf16.mxu1 %v31034_v52  ;;  %v22787_v30 = vld [vmem:[%s30809_s4 + $0x3d8] sm:$0xff]  }
 0x4ef   :  { %21212 = vmatpush3.bf16.msra.mxu0 %v22773_v15  ;;  %4512 = vmatpush1.bf16.msra.mxu1 %v22774_v11  ;;  %v22788_v15 = vld [vmem:[%s30809_s4 + $0x448] sm:$0xff]   ;;  %v4568_v11 = vrot.slane %v25528_v22, %v31036_v56 }
 0x4f0   :  { %21213 = vmatprep.subr.bf16.mxu0 %v22775_v28  ;;  %4513 = vmatprep.subr.bf16.mxu1 %v31034_v52  ;;  %v22789_v28 = vld [vmem:[%s30809_s4 + $0x398] sm:$0xff]  }
 0x4f3   :  { %21214 = vmatpush3.bf16.msra.mxu0 %v22776_v25  ;;  %4514 = vmatpush1.bf16.msra.mxu1 %v22777_v42  ;;  %v22790_v25 = vld [vmem:[%s30809_s4 + $0x408] sm:$0xff]   ;;  %v4637_v42 = vsel %vm366_vm12, %v4568_v11, %v4609_v63  ;;  %v22807_v63 = vld [vmem:[%s30809_s4 + $0x400] sm:$0xff]   ;;  %v22810_v11 = vld [vmem:[%s30809_s4 + $0x430] sm:$0xff]  }
 0x4f4   :  { %21215 = vmatprep.subr.bf16.mxu0 %v22778_v1  ;;  %4515 = vmatprep.subr.bf16.mxu1 %v31034_v52  ;;  %v3922_v1 = vpack.c.bf16 %v25526_v29, %v25526_v29  ;;  %v22794_v29 = vld [vmem:[%s30809_s4 + $0x410] sm:$0xff]  }
 0x4f7   :  { %21216 = vmatpush3.bf16.msra.mxu0 %v22779_v60  ;;  %4516 = vmatpush1.bf16.msra.mxu1 %v22780_v43  ;;  %v22792_v60 = vld [vmem:[%s30809_s4 + $0x450] sm:$0xff]   ;;  %v4645_v43 = vpack.c.bf16 %v4637_v42, %v4637_v42  ;;  %v22811_v42 = vld [vmem:[%s30809_s4 + $0x478] sm:$0xff]  }
 0x4f8   :  { %4517 = vmatprep.subr.bf16.mxu1 %v31034_v52  ;;  %21223 = vmatprep.subr.bf16.mxu0 %v22781_v36  ;;  %v22796_v36 = vld [vmem:[%s30809_s4 + $0x458] sm:$0xff]  }
 0x4fa   :  { %4496 = vmatmul.mubr.bf16.vlgmr.msra.gmra.mrb[36].mxu0 %v3920_v44  ;;  %v22802_v44 = vld [vmem:[%s30809_s4 + $0x420] sm:$0xff]  }
 0x4fb   :  { %4518 = vmatpush1.bf16.msra.mxu1 %v22782_v10  ;;  %21224 = vmatpush3.bf16.msra.mxu0 %v22783_v50  ;;  %v22799_v10 = vld [vmem:[%s30809_s4 + $0x3f0] sm:$0xff]   ;;  %v22800_v50 = vld [vmem:[%s30809_s4 + $0x460] sm:$0xff]  }
 0x4fc   :  { %5141 = vmatprep.mubr.bf16.mxu0 %v4643_v18  ;;  %4519 = vmatprep.subr.bf16.mxu1 %v31034_v52  ;;  %v22805_v18 = vld [vmem:[%s30809_s4 + $0x3b8] sm:$0xff]  }
 0x4fd   :  { %21225 = vmatprep.subr.bf16.mxu0 %v22784_v19  ;;  %v22804_v19 = vld [vmem:[%s30809_s4 + $0x468] sm:$0xff]  }
 0x4ff   :  { %4520 = vmatpush1.bf16.msra.mxu1 %v4381_v31  ;;  %21226 = vmatpush3.bf16.msra.mxu0 %v22786_v54  ;;  %v22806_v54 = vld [vmem:[%s30809_s4 + $0x428] sm:$0xff]   ;;  %v22808_v31 = vld [vmem:[%s30809_s4 + $0x470] sm:$0xff]  }
 0x500   :  { %21227 = vmatprep.subr.bf16.mxu0 %v22787_v30  ;;  %21245 = vmatprep.subr.bf16.mxu1 %v22788_v15  ;;  %v4597_v30 = vrot.slane %v25530_v40, %v31037_v13  ;;  %v22809_v15 = vld [vmem:[%s30809_s4 + $0x3c0] sm:$0xff]  }
 0x502   :  { %4536 = vmatmul.mubr.bf16.vlgmr.msra.gmra.mrb[28].mxu1 %v3922_v1  ;;  %v22812_v1 = vld [vmem:[%s30809_s4 + $0x4c8] sm:$0xff]  }
 0x503   :  { %21228 = vmatpush3.bf16.msra.mxu0 %v22789_v28  ;;  %21246 = vmatpush3.bf16.msra.mxu1 %v22790_v25  ;;  %v4556_v28 = vrot.slane %v25528_v22, %v31037_v13  ;;  %v4617_v25 = vrot.slane %v25530_v40, %v31039_v5 }
 0x504   :  { %5181 = vmatprep.mubr.bf16.mxu1 %v4645_v43  ;;  %21229 = vmatprep.subr.bf16.mxu0 %v22791_v23  ;;  %v22813_v43 = vld [vmem:[%s30809_s4 + $0x438] sm:$0xff]  }
 0x505   :  { %21247 = vmatprep.subr.bf16.mxu1 %v22792_v60  ;;  %v4634_v23 = vsel %vm366_vm12, %v4556_v28, %v4597_v30  ;;  %v4576_v60 = vrot.slane %v25528_v22, %v31039_v5 }
 0x507   :  { %21230 = vmatpush3.bf16.msra.mxu0 %v22793_v26  ;;  %21248 = vmatpush3.bf16.msra.mxu1 %v22794_v29  ;;  %v22814_v26 = vld [vmem:[%s30809_s4 + $0x488] sm:$0xff]   ;;  %v4639_v29 = vsel %vm366_vm12, %v4576_v60, %v4617_v25  ;;  %v22823_v25 = vld [vmem:[%s30809_s4 + $0x4a0] sm:$0xff]   ;;  %v22827_v60 = vld [vmem:[%s30809_s4 + $0x518] sm:$0xff]  }
 0x508   :  { %21231 = vmatprep.subr.bf16.mxu0 %v22795_v32  ;;  %21249 = vmatprep.subr.bf16.mxu1 %v22796_v36  ;;  %v4642_v32 = vpack.c.bf16 %v4634_v23, %v4634_v23  ;;  %v22815_v36 = vld [vmem:[%s30809_s4 + $0x480] sm:$0xff]   ;;  %v22826_v23 = vld [vmem:[%s30809_s4 + $0x4a8] sm:$0xff]  }
 0x50b   :  { %21232 = vmatpush3.bf16.msra.mxu0 %v22797_v57  ;;  %21250 = vmatpush3.bf16.msra.mxu1 %v22798_v3  ;;  %v22816_v57 = vld [vmem:[%s30809_s4 + $0x4d0] sm:$0xff]   ;;  %v4605_v3 = vrot.slane %v25530_v40, %v31038_v6 }
 0x50c   :  { %21233 = vmatprep.subr.bf16.mxu0 %v22799_v10  ;;  %21251 = vmatprep.subr.bf16.mxu1 %v22800_v50  ;;  %v4647_v10 = vpack.c.bf16 %v4639_v29, %v4639_v29  ;;  %v22817_v50 = vld [vmem:[%s30809_s4 + $0x440] sm:$0xff]  }
 0x50d   :  { %v22830_v29 = vld [vmem:[%s30809_s4 + $0x520] sm:$0xff]  }
 0x50f   :  { %21234 = vmatpush3.bf16.msra.mxu0 %v22801_v62  ;;  %21252 = vmatpush3.bf16.msra.mxu1 %v22802_v44  ;;  %v22818_v62 = vld [vmem:[%s30809_s4 + $0x490] sm:$0xff]   ;;  %v4564_v44 = vrot.slane %v25528_v22, %v31038_v6 }
 0x510   :  { %21235 = vmatprep.subr.bf16.mxu0 %v22803_v41  ;;  %21253 = vmatprep.subr.bf16.mxu1 %v22804_v19  ;;  %v4625_v41 = vrot.slane %v25530_v40, %v31040_v33  ;;  %v22819_v19 = vld [vmem:[%s30809_s4 + $0x4d8] sm:$0xff]  }
 0x513   :  { %21236 = vmatpush3.bf16.msra.mxu0 %v22805_v18  ;;  %21254 = vmatpush3.bf16.msra.mxu1 %v22806_v54  ;;  %v4636_v18 = vsel %vm366_vm12, %v4564_v44, %v4605_v3  ;;  %v4584_v54 = vrot.slane %v25528_v22, %v31040_v33  ;;  %v22834_v3 = vld [vmem:[%s30809_s4 + $0x500] sm:$0xff]   ;;  %v4572_v44 = vrot.slane %v25528_v22, %v31042_v24  ;;  %v22838_v22 = vld [vmem:[%s30809_s4 + $0x538] sm:$0xff]  }
 0x514   :  { %21237 = vmatprep.subr.bf16.mxu0 %v22807_v63  ;;  %21255 = vmatprep.subr.bf16.mxu1 %v22808_v31  ;;  %v22820_v63 = vld [vmem:[%s30809_s4 + $0x498] sm:$0xff]   ;;  %v22821_v31 = vld [vmem:[%s30809_s4 + $0x508] sm:$0xff]  }
 0x515   :  { %v4641_v30 = vsel %vm366_vm12, %v4584_v54, %v4625_v41  ;;  %v5327_v41 = vrot.slane %v25554_v58, %v31035_v7  ;;  %v22839_v54 = vld [vmem:[%s30809_s4 + $0x54c] sm:$0xff]  }
 0x516   :  { %v4649_v28 = vpack.c.bf16 %v4641_v30, %v4641_v30  ;;  %v22840_v30 = vld [vmem:[%s30809_s4 + $0x594] sm:$0xff]  }
 0x517   :  { %21238 = vmatpush3.bf16.msra.mxu0 %v22809_v15  ;;  %21256 = vmatpush3.bf16.msra.mxu1 %v22810_v11  ;;  %v4644_v15 = vpack.c.bf16 %v4636_v18, %v4636_v18  ;;  %v22822_v11 = vld [vmem:[%s30809_s4 + $0x4e0] sm:$0xff]   ;;  %v5286_v18 = vrot.slane %v25552_v27, %v31035_v7 }
 0x518   :  { %21257 = vmatprep.subr.bf16.mxu1 %v22811_v42  ;;  %21267 = vmatprep.subr.bf16.mxu0 %v22812_v1  ;;  %v22824_v42 = vld [vmem:[%s30809_s4 + $0x510] sm:$0xff]   ;;  %v22825_v1 = vld [vmem:[%s30809_s4 + $0x4e8] sm:$0xff]  }
 0x51a   :  { %5142 = vmatmul.mubr.bf16.vlgmr.msra.gmra.mrb[40].mxu0 %v4642_v32  ;;  %v22831_v32 = vld [vmem:[%s30809_s4 + $0x4f8] sm:$0xff]  }
 0x51b   :  { %21258 = vmatpush3.bf16.msra.mxu1 %v22813_v43  ;;  %21268 = vmatpush3.bf16.msra.mxu0 %v22814_v26  ;;  %v22828_v43 = vld [vmem:[%s30809_s4 + $0x4f0] sm:$0xff]  }
 0x51c   :  { %5221 = vmatprep.mubr.bf16.mxu0 %v4647_v10  ;;  %21259 = vmatprep.subr.bf16.mxu1 %v22815_v36  ;;  %v22829_v26 = vld [vmem:[%s30809_s4 + $0x4b0] sm:$0xff]   ;;  %v22832_v36 = vld [vmem:[%s30809_s4 + $0x4b8] sm:$0xff]   ;;  %v4613_v10 = vrot.slane %v25530_v40, %v31042_v24 }
 0x51d   :  { %21269 = vmatprep.subr.bf16.mxu0 %v22816_v57  ;;  %v22833_v57 = vld [vmem:[%s30809_s4 + $0x528] sm:$0xff]  }
 0x51e   :  { %v22837_v40 = vld [vmem:[%s30809_s4 + $0x58c] sm:$0xff]  }
 0x51f   :  { %21260 = vmatpush3.bf16.msra.mxu1 %v22817_v50  ;;  %21270 = vmatpush3.bf16.msra.mxu0 %v22818_v62  ;;  %v22835_v50 = vld [vmem:[%s30809_s4 + $0x4c0] sm:$0xff]   ;;  %v22836_v62 = vld [vmem:[%s30809_s4 + $0x530] sm:$0xff]  }
 0x520   :  { %21271 = vmatprep.subr.bf16.mxu0 %v22819_v19  ;;  %5229 = vmatprep.subr.bf16.mxu1 %v31034_v52  ;;  %v4638_v19 = vsel %vm366_vm12, %v4572_v44, %v4613_v10  ;;  %v22850_v10 = vld [vmem:[%s30809_s4 + $0x5ac] sm:$0xff]  }
 0x521   :  { %v22852_v44 = vld [vmem:[%s30809_s4 + $0x56c] sm:$0xff]  }
 0x522   :  { %5182 = vmatmul.mubr.bf16.vlgmr.msra.gmra.mrb[36].mxu1 %v4644_v15 }
 0x523   :  { %21272 = vmatpush3.bf16.msra.mxu0 %v22820_v63  ;;  %5230 = vmatpush1.bf16.msra.mxu1 %v22821_v31  ;;  %v5361_v63 = vsel %vm366_vm12, %v5286_v18, %v5327_v41  ;;  %v4646_v31 = vpack.c.bf16 %v4638_v19, %v4638_v19  ;;  %v22854_v41 = vld [vmem:[%s30809_s4 + $0x5b4] sm:$0xff]   ;;  %v22857_v18 = vld [vmem:[%s30809_s4 + $0x5dc] sm:$0xff]  }
 0x524   :  { %18181 = vmatprep.mubr.msk.bf16.mxu1 %vm303_vm8, %v4649_v28  ;;  %21273 = vmatprep.subr.bf16.mxu0 %v22822_v11  ;;  %v5369_v15 = vpack.c.bf16 %v5361_v63, %v5361_v63  ;;  %v22841_v11 = vld [vmem:[%s30809_s4 + $0x540] sm:$0xff]   ;;  %v22842_v28 = vld [vmem:[%s30809_s4 + $0x554] sm:$0xff]   ;;  %v5323_v63 = vrot.slane %v25554_v58, %v31037_v13 }
 0x525   :  { %5231 = vmatprep.subr.bf16.mxu1 %v31034_v52  ;;  %v22856_v19 = vld [vmem:[%s30809_s4 + $0x574] sm:$0xff]  }
 0x527   :  { %21274 = vmatpush3.bf16.msra.mxu0 %v22823_v25  ;;  %5232 = vmatpush1.bf16.msra.mxu1 %v22824_v42  ;;  %v22843_v25 = vld [vmem:[%s30809_s4 + $0x59c] sm:$0xff]   ;;  %v22844_v42 = vld [vmem:[%s30809_s4 + $0x548] ss:$0 sps:$4 sm:$0x33]  }
 0x528   :  { %21275 = vmatprep.subr.bf16.mxu0 %v22825_v1  ;;  %5233 = vmatprep.subr.bf16.mxu1 %v31034_v52  ;;  %v22845_v1 = vld [vmem:[%s30809_s4 + $0x55c] sm:$0xff]  }
 0x52b   :  { %21276 = vmatpush3.bf16.msra.mxu0 %v22826_v23  ;;  %5234 = vmatpush1.bf16.msra.mxu1 %v22827_v60  ;;  %v5335_v23 = vrot.slane %v25554_v58, %v31036_v56  ;;  %v5107_v60 = vsel %vm3653_vm1, %v22844_v42, 0  ;;  %v22863_v42 = vld [vmem:[%s30809_s4 + $0x62c] sm:$0xff]  }
 0x52c   :  { %21277 = vmatprep.subr.bf16.mxu0 %v22828_v43  ;;  %5235 = vmatprep.subr.bf16.mxu1 %v31034_v52  ;;  %v22846_v43 = vld [vmem:[%s30809_s4 + $0x5a4] sm:$0xff]  }
 0x52f   :  { %21278 = vmatpush3.bf16.msra.mxu0 %v22829_v26  ;;  %5236 = vmatpush1.bf16.msra.mxu1 %v22830_v29  ;;  %v22847_v26 = vld [vmem:[%s30809_s4 + $0x60c] sm:$0xff]   ;;  %v5294_v29 = vrot.slane %v25552_v27, %v31036_v56 }
 0x530   :  { %21279 = vmatprep.subr.bf16.mxu0 %v22831_v32  ;;  %5237 = vmatprep.subr.bf16.mxu1 %v31034_v52  ;;  %v22848_v32 = vld [vmem:[%s30809_s4 + $0x564] sm:$0xff]  }
 0x533   :  { %21280 = vmatpush3.bf16.msra.mxu0 %v22832_v36  ;;  %5238 = vmatpush1.bf16.msra.mxu1 %v22833_v57  ;;  %v22849_v36 = vld [vmem:[%s30809_s4 + $0x5cc] sm:$0xff]   ;;  %v5363_v57 = vsel %vm366_vm12, %v5294_v29, %v5335_v23  ;;  %v1895_v29 = vld [vmem:[#allocation3 + $0x88] sm:$0xf] }
 0x534   :  { %21281 = vmatprep.subr.bf16.mxu0 %v22834_v3  ;;  %5239 = vmatprep.subr.bf16.mxu1 %v31034_v52  ;;  %v4648_v3 = vpack.c.bf16 %v25561_v49, %v25561_v49  ;;  %v22853_v49 = vld [vmem:[%s30809_s4 + $0x5d4] sm:$0xff]  }
 0x537   :  { %21282 = vmatpush3.bf16.msra.mxu0 %v22835_v50  ;;  %5240 = vmatpush1.bf16.msra.mxu1 %v22836_v62  ;;  %v22851_v50 = vld [vmem:[%s30809_s4 + $0x614] sm:$0xff]   ;;  %v5371_v62 = vpack.c.bf16 %v5363_v57, %v5363_v57  ;;  %v22865_v57 = vld [vmem:[%s30809_s4 + $0x5ec] sm:$0xff]  }
 0x538   :  { %5241 = vmatprep.subr.bf16.mxu1 %v31034_v52  ;;  %21289 = vmatprep.subr.bf16.mxu0 %v22837_v40  ;;  %v22855_v40 = vld [vmem:[%s30809_s4 + $0x61c] sm:$0xff]  }
 0x53a   :  { %5222 = vmatmul.mubr.bf16.vlgmr.msra.gmra.mrb[44].mxu0 %v4646_v31  ;;  %v5343_v31 = vrot.slane %v25554_v58, %v31039_v5 }
 0x53b   :  { %5242 = vmatpush1.bf16.msra.mxu1 %v22838_v22  ;;  %21290 = vmatpush3.bf16.msra.mxu0 %v22839_v54  ;;  %v22858_v22 = vld [vmem:[%s30809_s4 + $0x5bc] sm:$0xff]   ;;  %v22859_v54 = vld [vmem:[%s30809_s4 + $0x624] sm:$0xff]  }
 0x53c   :  { %5867 = vmatprep.mubr.bf16.mxu0 %v5369_v15  ;;  %5243 = vmatprep.subr.bf16.mxu1 %v31034_v52  ;;  %v22861_v15 = vld [vmem:[%s30809_s4 + $0x5e4] sm:$0xff]  }
 0x53d   :  { %21291 = vmatprep.subr.bf16.mxu0 %v22840_v30  ;;  %v22860_v30 = vld [vmem:[%s30809_s4 + $0x57c] sm:$0xff]  }
 0x53f   :  { %5244 = vmatpush1.bf16.msra.mxu1 %v22841_v11  ;;  %21292 = vmatpush3.bf16.msra.mxu0 %v22842_v28  ;;  %v5282_v11 = vrot.slane %v25552_v27, %v31037_v13  ;;  %v1915_v28 = vpop.permute.xlu1 %1914 }
 0x540   :  { %5245 = vmatprep.subr.bf16.mxu1 %v31034_v52  ;;  %21293 = vmatprep.subr.bf16.mxu0 %v22843_v25  ;;  %v22862_v25 = vld [vmem:[%s30809_s4 + $0x5c4] sm:$0xff]  }
 0x541   :  { %v26142_v23 = vsel %vm366_vm12, %v5282_v11, %v5323_v63 }
 0x543   :  { %5246 = vmatpush1.bf16.msra.mxu1 %v5107_v60  ;;  %21294 = vmatpush3.bf16.msra.mxu0 %v22845_v1  ;;  %v5302_v1 = vrot.slane %v25552_v27, %v31039_v5  ;;  %v5331_v60 = vrot.slane %v25554_v58, %v31038_v6 }
 0x544   :  { %21295 = vmatprep.subr.bf16.mxu0 %v22846_v43  ;;  %21311 = vmatprep.subr.bf16.mxu1 %v22847_v26  ;;  %v1894_v43 = vld [vmem:[#allocation3 + $0x80] sm:$0xf] }
 0x545   :  { %v26147_v26 = vsel %vm366_vm12, %v5302_v1, %v5343_v31 }
 0x546   :  { %5262 = vmatmul.mubr.bf16.vlgmr.msra.gmra.mrb[28].mxu1 %v4648_v3  ;;  %v5290_v3 = vrot.slane %v25552_v27, %v31038_v6  ;;  %v5373_v63 = vpack.c.bf16 %v26147_v26, %v26147_v26  ;;  %v22869_v26 = vld [vmem:[%s30809_s4 + $0x64c] sm:$0xff]  }
 0x547   :  { %21296 = vmatpush3.bf16.msra.mxu0 %v22848_v32  ;;  %21312 = vmatpush3.bf16.msra.mxu1 %v22849_v36  ;;  %v2385_v32 = vrot.slane %v1915_v28, 4  ;;  %v22864_v36 = vld [vmem:[%s30809_s4 + $0x584] sm:$0xff]  }
 0x548   :  { %5907 = vmatprep.mubr.bf16.mxu1 %v5371_v62  ;;  %21297 = vmatprep.subr.bf16.mxu0 %v22850_v10  ;;  %v1896_v10 = vld [vmem:[#allocation3 + $0x90] sm:$0xf]  ;;  %v5368_v62 = vpack.c.bf16 %v26142_v23, %v26142_v23  ;;  %v26172_v31 = vsel %vm366_vm12, %v5290_v3, %v5331_v60  ;;  %v22868_v60 = vld [vmem:[%s30809_s4 + $0x5f4] sm:$0xff]   ;;  %v2374_v3 = vld [vmem:[#allocation3 + $0x100] sm:$0xff] }
 0x549   :  { %21313 = vmatprep.subr.bf16.mxu1 %v22851_v50  ;;  %v1897_v50 = vld [vmem:[#allocation3 + $0x98] sm:$0xf]  ;;  %v1935_v11 = vmul.f32 %v1915_v28, %v1896_v10  ;;  %v2375_v10 = vld [vmem:[#allocation3 + $0x108] sm:$0xff] }
 0x54b   :  { %21298 = vmatpush3.bf16.msra.mxu0 %v22852_v44  ;;  %21314 = vmatpush3.bf16.msra.mxu1 %v22853_v49  ;;  %v22866_v44 = vld [vmem:[%s30809_s4 + $0x634] sm:$0xff]  }
 0x54c   :  { %21299 = vmatprep.subr.bf16.mxu0 %v22854_v41  ;;  %21315 = vmatprep.subr.bf16.mxu1 %v22855_v40  ;;  %v1898_v40 = vld [vmem:[#allocation3 + $0xa0] sm:$0xf] }
 0x54f   :  { %21300 = vmatpush3.bf16.msra.mxu0 %v22856_v19  ;;  %21316 = vmatpush3.bf16.msra.mxu1 %v22857_v18  ;;  %v1899_v19 = vld [vmem:[#allocation3 + $0xa8] sm:$0xf]  ;;  %v1933_v18 = vmul.f32 %v1915_v28, %v1894_v43  ;;  %v31043_v43 = vrot.slane %v24771_v46, 4 }
 0x550   :  { %21301 = vmatprep.subr.bf16.mxu0 %v22858_v22  ;;  %21317 = vmatprep.subr.bf16.mxu1 %v22859_v54  ;;  %v1934_v22 = vmul.f32 %v1915_v28, %v1895_v29  ;;  %v22867_v54 = vld [vmem:[%s30809_s4 + $0x68c] sm:$0xff]   ;;  %v1938_v1 = vmul.f32 %v1915_v28, %v1899_v19 }
 0x551   :  { %v2386_v29 = vsel %vm832_vm11, %v31043_v43, %v2385_v32 }
 0x553   :  { %21302 = vmatpush3.bf16.msra.mxu0 %v22860_v30  ;;  %21318 = vmatpush3.bf16.msra.mxu1 %v22861_v15  ;;  %v1900_v30 = vld [vmem:[#allocation3 + $0xb0] sm:$0xf]  ;;  %v1901_v15 = vld [vmem:[#allocation3 + $0xb8] sm:$0xf] }
 0x554   :  { %21303 = vmatprep.subr.bf16.mxu0 %v22862_v25  ;;  %21319 = vmatprep.subr.bf16.mxu1 %v22863_v42  ;;  %v1936_v25 = vmul.f32 %v1915_v28, %v1897_v50  ;;  %v1937_v42 = vmul.f32 %v1915_v28, %v1898_v40  ;;  %v1939_v23 = vmul.f32 %v1915_v28, %v1900_v30  ;;  %v2377_v40 = vld [vmem:[#allocation3 + $0x118] sm:$0xff] }
 0x555   :  { %v1940_v49 = vmul.f32 %v1915_v28, %v1901_v15  ;;  %v2409_v43 = vmul.f32 %v2386_v29, %v2377_v40 }
 0x557   :  { %v1954_v41 = vpop.permute.xlu0 %1953  ;;  %21304 = vmatpush3.bf16.msra.mxu0 %v22864_v36  ;;  %21320 = vmatpush3.bf16.msra.mxu1 %v22865_v57  ;;  %v22870_v36 = vld [vmem:[%s30809_s4 + $0x63c] sm:$0xff]   ;;  %v2376_v57 = vld [vmem:[#allocation3 + $0x110] sm:$0xff] }
 0x558   :  { %v26183_v50 = vadd.f32 %v1954_v41, %v1933_v18  ;;  %v26185_v28 = vadd.f32 %v1954_v41, %v1934_v22  ;;  %v26187_v46 = vadd.f32 %v1954_v41, %v1935_v11  ;;  %v26189_v32 = vadd.f32 %v1954_v41, %v1936_v25  ;;  %21321 = vmatprep.subr.bf16.mxu1 %v22866_v44  ;;  %v22871_v22 = vld [vmem:[%s30809_s4 + $0x694] sm:$0xff]   ;;  %v2378_v44 = vld [vmem:[#allocation3 + $0x120] sm:$0xff]  ;;  %v2379_v11 = vld [vmem:[#allocation3 + $0x128] sm:$0xff] }
 0x559   :  { %v26194_v19 = vadd.f32 %v1954_v41, %v1937_v42  ;;  %v26196_v30 = vadd.f32 %v1954_v41, %v1938_v1  ;;  %v26198_v15 = vadd.f32 %v1954_v41, %v1939_v23  ;;  %v26200_v18 = vadd.f32 %v1954_v41, %v1940_v49  ;;  %21333 = vmatprep.subr.bf16.mxu0 %v22867_v54  ;;  %v2380_v25 = vld [vmem:[#allocation3 + $0x130] sm:$0xff]  ;;  %v2381_v54 = vld [vmem:[#allocation3 + $0x138] sm:$0xff] }
 0x55a   :  { %31044 = vst [vmem:[#allocation14_spill] sm:$0xff] %v26183_v50  ;;  %31045 = vst [vmem:[#allocation13_spill] sm:$0xff] %v26185_v28  ;;  %v2406_v42 = vmul.f32 %v2386_v29, %v2374_v3  ;;  %v2407_v1 = vmul.f32 %v2386_v29, %v2375_v10  ;;  %v2408_v49 = vmul.f32 %v2386_v29, %v2376_v57  ;;  %v2417_v23 = vrot.slane %v1954_v41, 4  ;;  %v22872_v41 = vld [vmem:[%s30809_s4 + $0x5fc] sm:$0xff]  }
 0x55b   :  { %31046 = vst [vmem:[#allocation19_spill] sm:$0xff] %v26187_v46  ;;  %31047 = vst [vmem:[#allocation15_spill] sm:$0xff] %v26189_v32  ;;  %5868 = vmatmul.mubr.bf16.vlgmr.msra.gmra.mrb[48].mxu0 %v5368_v62  ;;  %21322 = vmatpush3.bf16.msra.mxu1 %v22868_v60  ;;  %v22873_v62 = vld [vmem:[%s30809_s4 + $0x654] sm:$0xff]   ;;  %v2412_v3 = vmul.f32 %v2386_v29, %v2380_v25  ;;  %v2413_v10 = vmul.f32 %v2386_v29, %v2381_v54  ;;  %v31052_v57 = vrot.slane %v24999_v51, 4  ;;  %v22874_v60 = vld [vmem:[%s30809_s4 + $0x644] sm:$0xff]  }
 0x55c   :  { %31048 = vst [vmem:[#allocation26_spill] sm:$0xff] %v26194_v19  ;;  %31049 = vst [vmem:[#allocation25_spill] sm:$0xff] %v26196_v30  ;;  %21334 = vmatpush3.bf16.msra.mxu0 %v22869_v26  ;;  %5947 = vmatprep.mubr.bf16.mxu0 %v5373_v63  ;;  %v22875_v26 = vld [vmem:[%s30809_s4 + $0x69c] sm:$0xff]   ;;  %v26259_v54 = vld [vmem:[#allocation4 + $0x48] sm:$0xff] }
 0x55d   :  { %31050 = vst [vmem:[#allocation27_spill] sm:$0xff] %v26198_v15  ;;  %31051 = vst [vmem:[#allocation10_spill] sm:$0xff] %v26200_v18  ;;  %21323 = vmatprep.subr.bf16.mxu1 %v22870_v36  ;;  %21335 = vmatprep.subr.bf16.mxu0 %v22871_v22  ;;  %v26257_v22 = vld [vmem:[#allocation4 + $0x40] sm:$0xff] }
 0x55e   :  { %1996 = vst [vmem:[#allocation4 + $0x80] sm:$0xf] %v26183_v50  ;;  %1997 = vst [vmem:[#allocation4 + $0x88] sm:$0xf] %v26185_v28  ;;  %v2410_v28 = vmul.f32 %v2386_v29, %v2378_v44 }
 0x55f   :  { %1998 = vst [vmem:[#allocation4 + $0x90] sm:$0xf] %v26187_v46  ;;  %1999 = vst [vmem:[#allocation4 + $0x98] sm:$0xf] %v26189_v32  ;;  %v2411_v46 = vmul.f32 %v2386_v29, %v2379_v11  ;;  %21324 = vmatpush3.bf16.msra.mxu1 %v22872_v41 }
 0x560   :  { %2000 = vst [vmem:[#allocation4 + $0xa0] sm:$0xf] %v26194_v19  ;;  %2001 = vst [vmem:[#allocation4 + $0xa8] sm:$0xf] %v26196_v30  ;;  %21336 = vmatpush3.bf16.msra.mxu0 %v22873_v62  ;;  %21325 = vmatprep.subr.bf16.mxu1 %v22874_v60  ;;  %v26272_v30 = vld [vmem:[#allocation4 + $0x70] sm:$0xff]  ;;  %v26274_v19 = vld [vmem:[#allocation4 + $0x68] sm:$0xff] }
 0x561   :  { %2002 = vst [vmem:[#allocation4 + $0xb0] sm:$0xf] %v26198_v15  ;;  %2003 = vst.msk [vmem:[#allocation4 + $0xb8] sm:$0xf] %vm846_vm4, %v26200_v18  ;;  %v2418_v15 = vsel %vm832_vm11, %v31052_v57, %v2417_v23  ;;  %21337 = vmatprep.subr.bf16.mxu0 %v22875_v26  ;;  %v22878_v57 = vld [vmem:[%s30809_s4 + $0x6a4] sm:$0xff]   ;;  %v31064_v26 = vrot.slane %v25073_v0, 4 }
 0x562   :  { %v26229_v40 = vadd.f32 %v2418_v15, %v2406_v42  ;;  %v26231_v44 = vadd.f32 %v2418_v15, %v2407_v1  ;;  %v26233_v11 = vadd.f32 %v2418_v15, %v2408_v49  ;;  %v26235_v29 = vadd.f32 %v2418_v15, %v2409_v43  ;;  %v26261_v43 = vld [vmem:[#allocation4 + $0x58] sm:$0xff]  ;;  %v26270_v18 = vld [vmem:[#allocation4 + $0x60] sm:$0xff] }
 0x563   :  { %v26237_v51 = vadd.f32 %v2418_v15, %v2410_v28  ;;  %v26239_v63 = vadd.f32 %v2418_v15, %v2411_v46  ;;  %v26241_v36 = vadd.f32 %v2418_v15, %v2412_v3  ;;  %v26243_v25 = vadd.f32 %v2418_v15, %v2413_v10  ;;  %v22876_v28 = vld [vmem:[%s30809_s4 + $0x604] sm:$0xff]   ;;  %v22877_v46 = vld [vmem:[%s30809_s4 + $0x65c] sm:$0xff]   ;;  %v26255_v15 = vld [vmem:[#allocation4 + $0x50] sm:$0xff] }
 0x564   :  { %31053 = vst [vmem:[#allocation12_spill] sm:$0xff] %v26229_v40  ;;  %31054 = vst [vmem:[#allocation9_spill] sm:$0xff] %v26231_v44  ;;  %v2494_v23 = vrot.slane %v26229_v40, 4  ;;  %v2496_v42 = vrot.slane %v26231_v44, 4  ;;  %v2498_v1 = vrot.slane %v26233_v11, 4  ;;  %v2500_v49 = vrot.slane %v26235_v29, 4  ;;  %21326 = vmatpush3.bf16.msra.mxu1 %v22876_v28  ;;  %21338 = vmatpush3.bf16.msra.mxu0 %v22877_v46 }
 0x565   :  { %31055 = vst [vmem:[#allocation11_spill] sm:$0xff] %v26233_v11  ;;  %31056 = vst [vmem:[#allocation17_spill] sm:$0xff] %v26235_v29  ;;  %v2502_v3 = vrot.slane %v26237_v51, 4  ;;  %v2504_v41 = vrot.slane %v26239_v63, 4  ;;  %v2506_v62 = vrot.slane %v26241_v36, 4  ;;  %v2508_v10 = vrot.slane %v26243_v25, 4  ;;  %21339 = vmatprep.subr.bf16.mxu0 %v22878_v57  ;;  %5955 = vmatprep.subr.bf16.mxu1 %v31034_v52 }
 0x566   :  { %31057 = vst [vmem:[#allocation23_spill] sm:$0xff] %v26237_v51  ;;  %31058 = vst [vmem:[#allocation18_spill] sm:$0xff] %v26239_v63  ;;  %v26276_v32 = vld [vmem:[#allocation4 + $0x80] sm:$0xf]  ;;  %v26278_v50 = vld [vmem:[#allocation4 + $0x88] sm:$0xf]  ;;  %v5370_v46 = vpack.c.bf16 %v26172_v31, %v26172_v31 }
 0x567   :  { %31059 = vst [vmem:[#allocation16_spill] sm:$0xff] %v26241_v36  ;;  %31060 = vst [vmem:[#allocation35_spill] sm:$0xff] %v26243_v25  ;;  %v26280_v63 = vld [vmem:[#allocation4 + $0x90] sm:$0xf]  ;;  %v22879_v60 = vld [vmem:[%s30809_s4 + $0x664] sm:$0xff]   ;;  %v26288_v36 = vsel %vm832_vm11, %v31064_v26, %v2498_v1  ;;  %v31065_v25 = vrot.slane %v25067_v53, 4 }
 0x568   :  { %31061 = vst [vmem:[#allocation36_spill] sm:$0xff] %v26276_v32  ;;  %31062 = vst [vmem:[#allocation37_spill] sm:$0xff] %v26278_v50  ;;  %v31066_v29 = vrot.slane %v25064_v59, 4  ;;  %v31067_v44 = vrot.slane %v25070_v61, 4  ;;  %v26307_v50 = vld [vmem:[#allocation4 + $0x98] sm:$0xf]  ;;  %2783 = vrot.lane.b32.xlu0 %v26288_v36, %s23844_s30  ;;  %5908 = vmatmul.mubr.bf16.vlgmr.msra.gmra.mrb[40].mxu1 %v5370_v46 }
 0x569   :  { %31063 = vst [vmem:[#allocation38_spill] sm:$0xff] %v26280_v63  ;;  %v26293_v51 = vsel %vm832_vm11, %v31065_v25, %v2494_v23  ;;  %v26305_v63 = vld [vmem:[#allocation4 + $0x78] sm:$0xff]  ;;  %31068 = vst [vmem:[#allocation39_spill] sm:$0xff] %v26307_v50  ;;  %v26309_v26 = vld [vmem:[#allocation4 + $0xa0] sm:$0xf]  ;;  %v31072_v25 = vrot.slane %v25087_v37, 4  ;;  %21340 = vmatpush3.bf16.msra.mxu0 %v22879_v60 }
 0x56a   :  { %v26298_v11 = vsel %vm832_vm11, %v31066_v29, %v2496_v42  ;;  %v26303_v40 = vsel %vm832_vm11, %v31067_v44, %v2500_v49  ;;  %31069 = vst [vmem:[#allocation40_spill] sm:$0xff] %v26309_v26  ;;  %v26311_v32 = vld [vmem:[#allocation4 + $0xa8] sm:$0xf]  ;;  %2550 = vst [vmem:[#allocation4 + $0x80] sm:$0xf] %v2494_v23  ;;  %2779 = vrot.lane.b32.xlu1 %v26293_v51, %s23844_s30  ;;  %v31071_v44 = vrot.slane %v25083_v17, 4 }
 0x56b   :  { %31070 = vst [vmem:[#allocation41_spill] sm:$0xff] %v26311_v32  ;;  %2551 = vst [vmem:[#allocation4 + $0x88] sm:$0xf] %v2496_v42  ;;  %v26328_v23 = vsel %vm832_vm11, %v31072_v25, %v2506_v62  ;;  %v31073_v42 = vrot.slane %v25078_v8, 4  ;;  %v26336_v32 = vld [vmem:[#allocation4 + $0xb0] sm:$0xf]  ;;  %v31076_v25 = vrot.slane %v25554_v58, %v31040_v33 }
 0x56c   :  { %2552 = vst [vmem:[#allocation4 + $0x90] sm:$0xf] %v2498_v1  ;;  %2544 = vst [vmem:[#allocation4 + $0x50] sm:$0xff] %v26288_v36  ;;  %v26322_v29 = vsel %vm832_vm11, %v31071_v44, %v2502_v3  ;;  %v26338_v26 = vld [vmem:[#allocation4 + $0xb8] sm:$0xf]  ;;  %v22880_v44 = vld [vmem:[%s30809_s4 + $0x6cc] sm:$0xff]  }
 0x56d   :  { %2542 = vst [vmem:[#allocation4 + $0x40] sm:$0xff] %v26293_v51  ;;  %2543 = vst [vmem:[#allocation4 + $0x48] sm:$0xff] %v26298_v11  ;;  %v26334_v1 = vsel %vm832_vm11, %v31073_v42, %v2504_v41  ;;  %v31077_v42 = vrot.slane %v25552_v27, %v31040_v33  ;;  %2787 = vrot.lane.b32.xlu0 %v26322_v29, %s23844_s30  ;;  %5956 = vmatpush1.bf16.msra.mxu1 %v22880_v44  ;;  %v22882_v31 = vld [vmem:[%s30809_s4 + $0x66c] sm:$0xff]   ;;  %v22885_v57 = vld [vmem:[%s30809_s4 + $0x674] sm:$0xff]  }
 0x56e   :  { %2545 = vst [vmem:[#allocation4 + $0x58] sm:$0xff] %v26303_v40  ;;  %31074 = vst [vmem:[#allocation42_spill] sm:$0xff] %v26336_v32  ;;  %5957 = vmatprep.subr.bf16.mxu1 %v31034_v52  ;;  %2781 = vrot.lane.b32.xlu1 %v26298_v11, %s23844_s30  ;;  %v22886_v60 = vld [vmem:[%s30809_s4 + $0x6dc] sm:$0xff]  }
 0x56f   :  { %31075 = vst [vmem:[#allocation43_spill] sm:$0xff] %v26338_v26  ;;  %2553 = vst [vmem:[#allocation4 + $0x98] sm:$0xf] %v2500_v49  ;;  %v5367_v50 = vsel %vm366_vm12, %v31077_v42, %v31076_v25  ;;  %v31078_v49 = vrot.slane %v25085_v45, 4  ;;  %v22887_v44 = vld [vmem:[%s30809_s4 + $0x6bc] sm:$0xff]   ;;  %v21107_v42 = vpop.f32.mrb[24].mxu0 }
 0x570   :  { %2554 = vst [vmem:[#allocation4 + $0xa0] sm:$0xf] %v2502_v3  ;;  %2555 = vst [vmem:[#allocation4 + $0xa8] sm:$0xf] %v2504_v41  ;;  %v22881_v3 = vld [vmem:[%s30809_s4 + $0x6ac] sm:$0xff]   ;;  %v5375_v41 = vpack.c.bf16 %v5367_v50, %v5367_v50  ;;  %v22884_v50 = vld [vmem:[%s30809_s4 + $0x6b4] sm:$0xff]  }
 0x571   :  { %2546 = vst [vmem:[#allocation4 + $0x60] sm:$0xff] %v26322_v29  ;;  %2548 = vst [vmem:[#allocation4 + $0x70] sm:$0xff] %v26328_v23  ;;  %v2509_v28 = vsel %vm832_vm11, %v31078_v49, %v2508_v10  ;;  %21341 = vmatprep.subr.bf16.mxu0 %v22881_v3  ;;  %2791 = vrot.lane.b32.xlu0 %v26328_v23, %s23844_s30  ;;  %v21129_v49 = vpop.f32.mrb[24].mxu1  ;;  %v21108_v3 = vpop.f32.mrb[25].mxu0  ;;  %v22888_v26 = vld [vmem:[%s30809_s4 + $0x67c] sm:$0xff]  }
 0x572   :  { %2547 = vst [vmem:[#allocation4 + $0x68] sm:$0xff] %v26334_v1  ;;  %2556 = vst [vmem:[#allocation4 + $0xb0] sm:$0xf] %v2506_v62  ;;  %v22883_v62 = vld [vmem:[%s30809_s4 + $0x6d4] sm:$0xff]   ;;  %18352 = vmatprep.mubr.msk.bf16.mxu1 %vm303_vm8, %v5375_v41  ;;  %21342 = vmatpush3.bf16.msra.mxu0 %v22882_v31  ;;  %v21130_v41 = vpop.f32.mrb[25].mxu1  ;;  %v21109_v31 = vadd.f32 %v21108_v3, %v21107_v42  ;;  %v31080_v42 = vrot.slane %v26288_v36, 4 }
 0x573   :  { %2557 = vst.msk [vmem:[#allocation4 + $0xb8] sm:$0xf] %vm846_vm4, %v2508_v10  ;;  %v30932_v10 = vrot.slane %v26293_v51, 4  ;;  %5958 = vmatpush1.bf16.msra.mxu1 %v22883_v62  ;;  %21343 = vmatprep.subr.bf16.mxu0 %v22884_v50  ;;  %v21131_v62 = vadd.f32 %v21130_v41, %v21129_v49  ;;  %v21110_v50 = vpop.f32.mrb[26].mxu0  ;;  %v21132_v25 = vpop.f32.mrb[26].mxu1  ;;  %v31081_v49 = vrot.slane %v25117_v20, 4  ;;  %v5298_v20 = vrot.slane %v25552_v27, %v31042_v24 }
 0x574   :  { %2549 = vst.msk [vmem:[#allocation4 + $0x78] sm:$0xff] %vm303_vm8, %v2509_v28  ;;  %5959 = vmatprep.subr.bf16.mxu1 %v31034_v52  ;;  %2785 = vrot.lane.b32.xlu1 %v26303_v40, %s23844_s30  ;;  %v31079_v28 = vrot.slane %v25107_v16, 4  ;;  %v22889_v16 = vld [vmem:[%s30809_s4 + $0x6e4] sm:$0xff]   ;;  %v21111_v32 = vpop.f32.mrb[27].mxu0  ;;  %v22892_v3 = vld [vmem:[%s30809_s4 + $0x6ec] sm:$0xff]   ;;  %v30931_v41 = vrot.slane %v26298_v11, 4 }
 0x575   :  { %v3732_v25 = vadd.f32 %v21131_v62, %v21109_v31  ;;  %v2619_v32 = vsel %vm832_vm11, %v31081_v49, %v31080_v42  ;;  %v31082_v62 = vrot.slane %v25129_v55, 4  ;;  %v22893_v50 = vld [vmem:[%s30809_s4 + $0x6f4] sm:$0xff]   ;;  %v31084_v42 = vrot.slane %v25141_v4, 4 }
 0x576   :  { %v2615_v46 = vsel %vm832_vm11, %v31079_v28, %v30932_v10  ;;  %21344 = vmatpush3.bf16.msra.mxu0 %v22885_v57  ;;  %v21133_v28 = vpop.f32.mrb[27].mxu1  ;;  %v22890_v57 = vld [vmem:[%s30809_s4 + $0x6c4] sm:$0xff]  }
 0x577   :  { %2662 = vrot.lane.b32.xlu0 %v2615_v46, %s23844_s30  ;;  %5960 = vmatpush1.bf16.msra.mxu1 %v22886_v60  ;;  %v30930_v60 = vrot.slane %v26322_v29, 4  ;;  %v22891_v46 = vld [vmem:[%s30809_s4 + $0x684] sm:$0xff]  }
 0x578   :  { %21345 = vmatprep.subr.bf16.mxu0 %v22887_v44  ;;  %5961 = vmatprep.subr.bf16.mxu1 %v31034_v52  ;;  %v5339_v44 = vrot.slane %v25554_v58, %v31042_v24 }
 0x579   :  { %2789 = vrot.lane.b32.xlu1 %v26334_v1, %s23844_s30  ;;  %v2623_v27 = vsel %vm832_vm11, %v31082_v62, %v30930_v60 }
 0x57a   :  { %21346 = vmatpush3.bf16.msra.mxu0 %v22888_v26  ;;  %v30928_v26 = vrot.slane %v26328_v23, 4  ;;  %v5364_v31 = vsel %vm366_vm12, %v5298_v20, %v5339_v44  ;;  %v31085_v44 = vrot.slane %v25112_v38, 4  ;;  %v31086_v20 = vrot.slane %v25124_v47, 4  ;;  %v22896_v38 = vld [vmem:[%s30809_s4 + $0x70c] ss:$0 sps:$4 sm:$0x33]  }
 0x57b   :  { %2666 = vrot.lane.b32.xlu0 %v2619_v32, %s23844_s30  ;;  %5962 = vmatpush1.bf16.msra.mxu1 %v22889_v16  ;;  %v26432_v58 = vld [vmem:[#allocation4 + $0x78] sm:$0xff]  ;;  %v30929_v16 = vrot.slane %v26303_v40, 4  ;;  %v5372_v28 = vpack.c.bf16 %v5364_v31, %v5364_v31  ;;  %v5833_v62 = vsel %vm3653_vm1, %v22896_v38, 0  ;;  %v5374_v47 = vpack.c.bf16 %v25578_v39, %v25578_v39  ;;  %v17781_v39 = vld [vmem:[%s30810_s5] ss:$0 sm:$0xff] }
 0x57c   :  { %21347 = vmatprep.subr.bf16.mxu0 %v22890_v57  ;;  %5963 = vmatprep.subr.bf16.mxu1 %v31034_v52  ;;  %v31083_v57 = vrot.slane %v25102_v35, 4  ;;  %v2627_v49 = vsel %vm832_vm11, %v31084_v42, %v30928_v26  ;;  %v22894_v32 = vld [vmem:[%s30809_s4 + $0x6fc] sm:$0xff]   ;;  %v30927_v35 = vrot.slane %v26334_v1, 4 }
 0x57d   :  { %2793 = vrot.lane.b32.xlu1 %v26432_v58, %s23844_s30  ;;  %v2621_v4 = vsel %vm832_vm11, %v31085_v44, %v30929_v16 }
 0x57e   :  { %21348 = vmatpush3.bf16.msra.mxu0 %v22891_v46  ;;  %v2617_v55 = vsel %vm832_vm11, %v31083_v57, %v30931_v41  ;;  %v22895_v46 = vld [vmem:[%s30809_s4 + $0x704] sm:$0xff]   ;;  %v2625_v31 = vsel %vm832_vm11, %v31086_v20, %v30927_v35 }
 0x57f   :  { %2670 = vrot.lane.b32.xlu0 %v2623_v27, %s23844_s30  ;;  %5964 = vmatpush1.bf16.msra.mxu1 %v22892_v3  ;;  %v30926_v3 = vrot.slane %v26432_v58, 4  ;;  %v31087_v27 = vrot.slane %v25157_v12, 4 }
 0x580   :  { %5965 = vmatprep.subr.bf16.mxu1 %v31034_v52 }
 0x581   :  { %2664 = vrot.lane.b32.xlu1 %v2617_v55, %s23844_s30  ;;  %5948 = vmatmul.mubr.bf16.vlgmr.msra.gmra.mrb[52].mxu0 %v5372_v28 }
 0x583   :  { %2674 = vrot.lane.b32.xlu0 %v2627_v49, %s23844_s30  ;;  %5966 = vmatpush1.bf16.msra.mxu1 %v22893_v50  ;;  %v2629_v50 = vsel %vm832_vm11, %v31087_v27, %v30926_v3 }
 0x584   :  { %5967 = vmatprep.subr.bf16.mxu1 %v31034_v52 }
 0x585   :  { %2668 = vrot.lane.b32.xlu1 %v2621_v4, %s23844_s30 }
 0x587   :  { %5968 = vmatpush1.bf16.msra.mxu1 %v22894_v32 }
 0x588   :  { %5969 = vmatprep.subr.bf16.mxu1 %v31034_v52 }
 0x589   :  { %2672 = vrot.lane.b32.xlu1 %v2625_v31, %s23844_s30 }
 0x58b   :  { %5970 = vmatpush1.bf16.msra.mxu1 %v22895_v46 }
 0x58c   :  { %5971 = vmatprep.subr.bf16.mxu1 %v31034_v52 }
 0x58d   :  { %2676 = vrot.lane.b32.xlu1 %v2629_v50, %s23844_s30  ;;  %v21151_v28 = vpop.f32.mrb[28].mxu0 }
 0x58e   :  { %v21152_v57 = vpop.f32.mrb[29].mxu0 }
 0x58f   :  { %5972 = vmatpush1.bf16.msra.mxu1 %v5833_v62  ;;  %v21153_v55 = vadd.f32 %v21152_v57, %v21151_v28  ;;  %v21154_v42 = vpop.f32.mrb[30].mxu0 }
 0x590   :  { %v21155_v49 = vpop.f32.mrb[31].mxu0 }
 0x591   :  { %v3772_v32 = vadd.f32 %v21153_v55, %v3732_v25 }
 0x592   :  { %5988 = vmatmul.mubr.bf16.vlgmr.msra.gmra.mrb[28].mxu1 %v5374_v47 }
 0x593   :  { %v22531_v55 = vadd.f32 %v17781_v39, %v3772_v32  ;;  %v22905_v39 = vld [vmem:[%s30809_s4 + $0x760] sm:$0xff]  }
 0x5ad   :  { %v21173_v44 = vpop.f32.mrb[32].mxu0 }
 0x5ae   :  { %v21174_v4 = vpop.f32.mrb[33].mxu0 }
 0x5af   :  { %v21175_v46 = vadd.f32 %v21174_v4, %v21173_v44  ;;  %v21176_v20 = vpop.f32.mrb[34].mxu0  ;;  %v22897_v44 = vld [vmem:[%s30809_s4 + $0x750] sm:$0xff]  }
 0x5b0   :  { %v21177_v12 = vpop.f32.mrb[35].mxu0  ;;  %v22898_v4 = vld [vmem:[%s30809_s4 + $0x7d0] sm:$0xff]   ;;  %21355 = vmatprep.subr.bf16.mxu0 %v22897_v44  ;;  %v22901_v20 = vld [vmem:[%s30809_s4 + $0x758] sm:$0xff]  }
 0x5b1   :  { %v21195_v31 = vpop.f32.mrb[32].mxu1  ;;  %21377 = vmatprep.subr.bf16.mxu1 %v22898_v4  ;;  %v22902_v12 = vld [vmem:[%s30809_s4 + $0x7d8] sm:$0xff]  }
 0x5b2   :  { %v21196_v38 = vpop.f32.mrb[33].mxu1 }
 0x5b3   :  { %v21197_v27 = vadd.f32 %v21196_v38, %v21195_v31  ;;  %v21198_v50 = vpop.f32.mrb[34].mxu1  ;;  %v22903_v31 = vld [vmem:[%s30809_s4 + $0x718] sm:$0xff]  }
 0x5b4   :  { %v21199_v62 = vpop.f32.mrb[35].mxu1  ;;  %v22904_v38 = vld [vmem:[%s30809_s4 + $0x798] sm:$0xff]  }
 0x5b5   :  { %v4458_v3 = vadd.f32 %v21197_v27, %v21175_v46  ;;  %v22899_v46 = vld [vmem:[%s30809_s4 + $0x710] sm:$0xff]  }
 0x5b6   :  { %21356 = vmatpush3.bf16.msra.mxu0 %v22899_v46 }
 0x5b7   :  { %21357 = vmatprep.subr.bf16.mxu0 %v22901_v20 }
 0x5ba   :  { %21358 = vmatpush3.bf16.msra.mxu0 %v22903_v31 }
 0x5bb   :  { %21359 = vmatprep.subr.bf16.mxu0 %v22905_v39 }
 0x5cd   :  { %v21217_v35 = vpop.f32.mrb[36].mxu0 }
 0x5ce   :  { %v21218_v47 = vpop.f32.mrb[37].mxu0 }
 0x5cf   :  { %v21219_v28 = vadd.f32 %v21218_v47, %v21217_v35  ;;  %v21220_v57 = vpop.f32.mrb[38].mxu0  ;;  %v22900_v35 = vld [vmem:[%s30809_s4 + $0x790] sm:$0xff]   ;;  %v22906_v47 = vld [vmem:[%s30809_s4 + $0x7e0] sm:$0xff]  }
 0x5d0   :  { %v21221_v25 = vpop.f32.mrb[39].mxu0  ;;  %21378 = vmatpush3.bf16.msra.mxu1 %v22900_v35 }
 0x5d1   :  { %v4498_v42 = vadd.f32 %v21219_v28, %v4458_v3  ;;  %21379 = vmatprep.subr.bf16.mxu1 %v22902_v12  ;;  %v22907_v28 = vld [vmem:[%s30809_s4 + $0x720] sm:$0xff]  }
 0x5d2   :  { %21360 = vmatpush3.bf16.msra.mxu0 %v22907_v28 }
 0x5d3   :  { %v26499_v49 = vadd.f32 %v22531_v55, %v4498_v42  ;;  %v22908_v42 = vld [vmem:[%s30809_s4 + $0x7a0] sm:$0xff]  }
 0x5d4   :  { %21380 = vmatpush3.bf16.msra.mxu1 %v22904_v38 }
 0x5d5   :  { %21381 = vmatprep.subr.bf16.mxu1 %v22906_v47 }
 0x5d8   :  { %21382 = vmatpush3.bf16.msra.mxu1 %v22908_v42 }
 0x5da   :  { %v2784_v3 = vpop.permute.xlu0 %2783 }
 0x5dc   :  { %v2780_v32 = vpop.permute.xlu1 %2779 }
 0x5df   :  { %v2788_v57 = vpop.permute.xlu0 %2787 }
 0x5e0   :  { %v2782_v27 = vpop.permute.xlu1 %2781 }
 0x5e1   :  { %v2818_v50 = vsel %vm50_vm2, %v2780_v32, %v2782_v27  ;;  %v2819_v62 = vsel %vm50_vm2, %v2782_v27, %v2784_v3 }
 0x5e2   :  { %v2864_v25 = vmax.f32 %v26293_v51, %v2818_v50  ;;  %v2865_v55 = vmax.f32 %v26298_v11, %v2819_v62 }
 0x5e3   :  { %v2792_v27 = vpop.permute.xlu0 %2791 }
 0x5e4   :  { %v26541_v44 = vrot.slane %v2864_v25, 4  ;;  %v26543_v4 = vrot.slane %v2865_v55, 4 }
 0x5e6   :  { %v2786_v46 = vpop.permute.xlu1 %2785  ;;  %v2915_v31 = vsel %vm832_vm11, %v25268_v48, %v26543_v4  ;;  %v2913_v38 = vsel %vm832_vm11, %v25244_v21, %v26541_v44 }
 0x5e7   :  { %v2820_v35 = vsel %vm50_vm2, %v2784_v3, %v2786_v46  ;;  %v2821_v32 = vsel %vm50_vm2, %v2786_v46, %v2788_v57  ;;  %2962 = vrot.lane.b32.xlu1 %v2915_v31, %s23848_s12  ;;  %2960 = vrot.lane.b32.xlu0 %v2913_v38, %s23848_s12  ;;  %v22909_v31 = vld [vmem:[%s30809_s4 + $0x768] sm:$0xff]  }
 0x5e8   :  { %v2866_v20 = vmax.f32 %v26288_v36, %v2820_v35  ;;  %v2867_v12 = vmax.f32 %v26303_v40, %v2821_v32  ;;  %v22910_v38 = vld [vmem:[%s30809_s4 + $0x7e8] sm:$0xff]   ;;  %21361 = vmatprep.subr.bf16.mxu0 %v22909_v31  ;;  %v22917_v31 = vld [vmem:[%s30809_s4 + $0x778] sm:$0xff]  }
 0x5e9   :  { %21383 = vmatprep.subr.bf16.mxu1 %v22910_v38  ;;  %v22918_v38 = vld [vmem:[%s30809_s4 + $0x7f8] sm:$0xff]   ;;  %v2663_v16 = vpop.permute.xlu0 %2662 }
 0x5ea   :  { %v26557_v3 = vrot.slane %v2866_v20, 4  ;;  %v26559_v50 = vrot.slane %v2867_v12, 4 }
 0x5eb   :  { %v2790_v62 = vpop.permute.xlu1 %2789 }
 0x5ec   :  { %v2822_v39 = vsel %vm50_vm2, %v2788_v57, %v2790_v62  ;;  %v2823_v47 = vsel %vm50_vm2, %v2790_v62, %v2792_v27  ;;  %v2919_v21 = vsel %vm832_vm11, %v25295_v2, %v26559_v50  ;;  %v2917_v25 = vsel %vm832_vm11, %v25257_v9, %v26557_v3  ;;  %v31088_v9 = vld [vmem:[#allocation28_spill] sm:$0xff] }
 0x5ed   :  { %v2868_v48 = vmax.f32 %v26322_v29, %v2822_v39  ;;  %v2869_v28 = vmax.f32 %v26334_v1, %v2823_v47  ;;  %2966 = vrot.lane.b32.xlu1 %v2919_v21, %s23848_s12  ;;  %2964 = vrot.lane.b32.xlu0 %v2917_v25, %s23848_s12  ;;  %v22912_v62 = vld [vmem:[%s30809_s4 + $0x7a8] sm:$0xff]   ;;  %v31091_v39 = vld [vmem:[#allocation30_spill] sm:$0xff]  ;;  %v2667_v10 = vpop.permute.xlu0 %2666 }
 0x5ee   :  { %21384 = vmatpush3.bf16.msra.mxu1 %v22912_v62  ;;  %v22920_v62 = vld [vmem:[%s30809_s4 + $0x7b8] sm:$0xff]  }
 0x5ef   :  { %v26573_v55 = vrot.slane %v2868_v48, 4  ;;  %v26575_v57 = vrot.slane %v2869_v28, 4  ;;  %v2794_v42 = vpop.permute.xlu1 %2793  ;;  %v21239_v48 = vpop.f32.mrb[40].mxu0  ;;  %v31092_v28 = vld [vmem:[#allocation29_spill] sm:$0xff] }
 0x5f0   :  { %v2824_v46 = vsel %vm50_vm2, %v2792_v27, %v2794_v42  ;;  %v2871_v35 = vmax.f32 %v26432_v58, %v2794_v42  ;;  %v21240_v25 = vpop.f32.mrb[41].mxu0 }
 0x5f1   :  { %v2870_v32 = vmax.f32 %v26328_v23, %v2824_v46  ;;  %v2923_v2 = vsel %vm832_vm11, %v25318_v14, %v26575_v57  ;;  %v2921_v20 = vsel %vm832_vm11, %v31088_v9, %v26573_v55  ;;  %v22911_v14 = vld [vmem:[%s30809_s4 + $0x728] sm:$0xff]   ;;  %v21241_v42 = vadd.f32 %v21240_v25, %v21239_v48  ;;  %v21242_v46 = vpop.f32.mrb[42].mxu0 }
 0x5f2   :  { %v26586_v12 = vrot.slane %v2871_v35, 4  ;;  %2970 = vrot.lane.b32.xlu1 %v2923_v2, %s23848_s12  ;;  %2968 = vrot.lane.b32.xlu0 %v2921_v20, %s23848_s12  ;;  %v22913_v35 = vld [vmem:[%s30809_s4 + $0x770] sm:$0xff]   ;;  %v21243_v9 = vpop.f32.mrb[43].mxu0  ;;  %v22923_v46 = vld [vmem:[%s30809_s4 + $0x740] sm:$0xff]  }
 0x5f3   :  { %v26596_v27 = vrot.slane %v2870_v32, 4  ;;  %21362 = vmatpush3.bf16.msra.mxu0 %v22911_v14  ;;  %v22914_v32 = vld [vmem:[%s30809_s4 + $0x7f0] sm:$0xff]   ;;  %v22919_v14 = vld [vmem:[%s30809_s4 + $0x738] sm:$0xff]   ;;  %v22926_v9 = vld [vmem:[%s30809_s4 + $0x808] sm:$0xff]   ;;  %v2665_v41 = vpop.permute.xlu1 %2664 }
 0x5f4   :  { %31089 = vst [vmem:[#allocation28_spill] sm:$0xff] %v26586_v12  ;;  %v2927_v47 = vsel %vm832_vm11, %v31091_v39, %v26586_v12  ;;  %v22915_v2 = vld [vmem:[%s30809_s4 + $0x730] sm:$0xff]   ;;  %21363 = vmatprep.subr.bf16.mxu0 %v22913_v35  ;;  %21385 = vmatprep.subr.bf16.mxu1 %v22914_v32  ;;  %v22921_v39 = vld [vmem:[%s30809_s4 + $0x780] sm:$0xff]  }
 0x5f5   :  { %31090 = vst [vmem:[#allocation44_spill] sm:$0xff] %v26596_v27  ;;  %v2925_v21 = vsel %vm832_vm11, %v31092_v28, %v26596_v27  ;;  %v22916_v20 = vld [vmem:[%s30809_s4 + $0x7b0] sm:$0xff]   ;;  %v21261_v48 = vpop.f32.mrb[36].mxu1  ;;  %v22924_v35 = vld [vmem:[%s30809_s4 + $0x7c0] sm:$0xff]  }
 0x5f6   :  { %2974 = vrot.lane.b32.xlu1 %v2927_v47, %s23848_s12  ;;  %2972 = vrot.lane.b32.xlu0 %v2925_v21, %s23848_s12  ;;  %v22922_v47 = vld [vmem:[%s30809_s4 + $0x800] sm:$0xff]   ;;  %v21262_v28 = vpop.f32.mrb[37].mxu1 }
 0x5f7   :  { %21364 = vmatpush3.bf16.msra.mxu0 %v22915_v2  ;;  %21386 = vmatpush3.bf16.msra.mxu1 %v22916_v20  ;;  %v21263_v21 = vadd.f32 %v21262_v28, %v21261_v48  ;;  %v21264_v25 = vpop.f32.mrb[38].mxu1  ;;  %v22925_v2 = vld [vmem:[%s30809_s4 + $0x788] sm:$0xff]  }
 0x5f8   :  { %21365 = vmatprep.subr.bf16.mxu0 %v22917_v31  ;;  %21387 = vmatprep.subr.bf16.mxu1 %v22918_v38  ;;  %v21265_v32 = vpop.f32.mrb[39].mxu1  ;;  %v22927_v31 = vld [vmem:[%s30809_s4 + $0x748] sm:$0xff]  }
 0x5f9   :  { %v5184_v20 = vadd.f32 %v21263_v21, %v21241_v42  ;;  %v22928_v38 = vld [vmem:[%s30809_s4 + $0x7c8] sm:$0xff]   ;;  %v22929_v42 = vld [vmem:[%s30809_s4 + $0x850] sm:$0xff]  }
 0x5fa   :  { %2070 = vrot.lane.b32.xlu1 %v26259_v54, %s23844_s30  ;;  %2068 = vrot.lane.b32.xlu0 %v26257_v22, %s23844_s30 }
 0x5fb   :  { %21366 = vmatpush3.bf16.msra.mxu0 %v22919_v14  ;;  %21388 = vmatpush3.bf16.msra.mxu1 %v22920_v62 }
 0x5fc   :  { %21367 = vmatprep.subr.bf16.mxu0 %v22921_v39  ;;  %21389 = vmatprep.subr.bf16.mxu1 %v22922_v47 }
 0x5fe   :  { %2074 = vrot.lane.b32.xlu1 %v26261_v43, %s23844_s30  ;;  %2072 = vrot.lane.b32.xlu0 %v26255_v15, %s23844_s30 }
 0x5ff   :  { %21368 = vmatpush3.bf16.msra.mxu0 %v22923_v46  ;;  %21390 = vmatpush3.bf16.msra.mxu1 %v22924_v35 }
 0x600   :  { %21369 = vmatprep.subr.bf16.mxu0 %v22925_v2  ;;  %21391 = vmatprep.subr.bf16.mxu1 %v22926_v9 }
 0x602   :  { %2078 = vrot.lane.b32.xlu1 %v26274_v19, %s23844_s30  ;;  %2076 = vrot.lane.b32.xlu0 %v26270_v18, %s23844_s30 }
 0x603   :  { %21370 = vmatpush3.bf16.msra.mxu0 %v22927_v31  ;;  %21392 = vmatpush3.bf16.msra.mxu1 %v22928_v38 }
 0x604   :  { %21399 = vmatprep.subr.bf16.mxu0 %v22929_v42  ;;  %6681 = vmatprep.subr.bf16.mxu1 %v31034_v52 }
 0x606   :  { %2082 = vrot.lane.b32.xlu1 %v26305_v63, %s23844_s30  ;;  %2080 = vrot.lane.b32.xlu0 %v26272_v30, %s23844_s30 }
 0x60d   :  { %v21283_v14 = vpop.f32.mrb[44].mxu0 }
 0x60e   :  { %v21284_v62 = vpop.f32.mrb[45].mxu0 }
 0x60f   :  { %v21285_v39 = vadd.f32 %v21284_v62, %v21283_v14  ;;  %v21286_v47 = vpop.f32.mrb[46].mxu0  ;;  %v2669_v14 = vpop.permute.xlu1 %2668 }
 0x610   :  { %v21287_v48 = vpop.f32.mrb[47].mxu0  ;;  %v2671_v62 = vpop.permute.xlu0 %2670 }
 0x611   :  { %v5224_v28 = vadd.f32 %v21285_v39, %v5184_v20 }
 0x613   :  { %v22533_v21 = vadd.f32 %v26499_v49, %v5224_v28  ;;  %v2673_v47 = vpop.permute.xlu1 %2672 }
 0x614   :  { %v2675_v49 = vpop.permute.xlu0 %2674 }
 0x62e   :  { %v21305_v25 = vpop.f32.mrb[48].mxu0 }
 0x62f   :  { %v21306_v46 = vpop.f32.mrb[49].mxu0 }
 0x630   :  { %v21307_v35 = vadd.f32 %v21306_v46, %v21305_v25  ;;  %v21308_v32 = vpop.f32.mrb[50].mxu0  ;;  %v2677_v25 = vpop.permute.xlu1 %2676 }
 0x631   :  { %v21309_v2 = vpop.f32.mrb[51].mxu0  ;;  %v2701_v32 = vsel %vm50_vm2, %v2663_v16, %v2665_v41 }
 0x63b   :  { %v21327_v9 = vpop.f32.mrb[40].mxu1 }
 0x63c   :  { %v21328_v26 = vpop.f32.mrb[41].mxu1 }
 0x63d   :  { %v21329_v31 = vadd.f32 %v21328_v26, %v21327_v9  ;;  %v21330_v38 = vpop.f32.mrb[42].mxu1  ;;  %v2747_v9 = vmax.f32 %v25067_v53, %v2701_v32  ;;  %v2705_v53 = vsel %vm50_vm2, %v2671_v62, %v2673_v47 }
 0x63e   :  { %v21331_v42 = vpop.f32.mrb[43].mxu1  ;;  %v2702_v38 = vsel %vm50_vm2, %v2665_v41, %v2667_v10 }
 0x63f   :  { %v5910_v60 = vadd.f32 %v21329_v31, %v21307_v35  ;;  %v2703_v42 = vsel %vm50_vm2, %v2667_v10, %v2669_v14 }
 0x654   :  { %v21349_v20 = vpop.f32.mrb[52].mxu0 }
 0x655   :  { %v21350_v39 = vpop.f32.mrb[53].mxu0 }
 0x656   :  { %v21351_v48 = vadd.f32 %v21350_v39, %v21349_v20  ;;  %v21352_v28 = vpop.f32.mrb[54].mxu0  ;;  %v2748_v20 = vmax.f32 %v25064_v59, %v2702_v38  ;;  %v2749_v39 = vmax.f32 %v25073_v0, %v2703_v42 }
 0x657   :  { %v21353_v46 = vpop.f32.mrb[55].mxu0 }
 0x658   :  { %v5950_v2 = vadd.f32 %v21351_v48, %v5910_v60 }
 0x659   :  { %v2963_v35 = vpop.permute.xlu1 %2962  ;;  %v2961_v31 = vpop.permute.xlu0 %2960 }
 0x65a   :  { %v26682_v26 = vadd.f32 %v22533_v21, %v5950_v2  ;;  %v2999_v12 = vsel %vm94_vm6, %v2961_v31, %v2963_v35  ;;  %v2704_v21 = vsel %vm50_vm2, %v2669_v14, %v2671_v62  ;;  %v2707_v14 = vsel %vm50_vm2, %v2675_v49, %v2677_v25 }
 0x65b   :  { %v3045_v27 = vmax.f32 %v2747_v9, %v2999_v12  ;;  %v2750_v46 = vmax.f32 %v25070_v61, %v2704_v21  ;;  %v2751_v12 = vmax.f32 %v25083_v17, %v2705_v53  ;;  %v2753_v17 = vmax.f32 %v25087_v37, %v2707_v14 }
 0x65c   :  { %31093 = vst [vmem:[#allocation30_spill] sm:$0xff] %v26682_v26 }
 0x65d   :  { %3069 = vst [vmem:[#allocation3 + $0xc0] sm:$0xff] %v3045_v27  ;;  %v2706_v27 = vsel %vm50_vm2, %v2673_v47, %v2675_v49 }
 0x65e   :  { %v2752_v61 = vmax.f32 %v25078_v8, %v2706_v27 }
 0x65f   :  { %v2967_v16 = vpop.permute.xlu1 %2966  ;;  %v2965_v60 = vpop.permute.xlu0 %2964 }
 0x660   :  { %v3000_v48 = vsel %vm94_vm6, %v2963_v35, %v2965_v60  ;;  %v3001_v41 = vsel %vm94_vm6, %v2965_v60, %v2967_v16  ;;  %v2754_v35 = vmax.f32 %v25085_v45, %v2677_v25 }
 0x661   :  { %v3046_v28 = vmax.f32 %v2748_v20, %v3000_v48  ;;  %v3047_v10 = vmax.f32 %v2749_v39, %v3001_v41  ;;  %v5997_v41 = vld [vmem:[#allocation3 + $0x4] ss:$8 sm:$0xf] }
 0x663   :  { %3070 = vst [vmem:[#allocation3 + $0xc8] sm:$0xff] %v3046_v28  ;;  %3071 = vst [vmem:[#allocation3 + $0xd0] sm:$0xff] %v3047_v10 }
 0x664   :  { %v2971_v59 = vpop.permute.xlu1 %2970  ;;  %v2969_v0 = vpop.permute.xlu0 %2968 }
 0x665   :  { %v3002_v62 = vsel %vm94_vm6, %v2967_v16, %v2969_v0  ;;  %v3003_v32 = vsel %vm94_vm6, %v2969_v0, %v2971_v59  ;;  %v5998_v16 = vld [vmem:[#allocation3 + $0x4] ss:$8 sm:$0xf0] }
 0x666   :  { %v3048_v2 = vmax.f32 %v2750_v46, %v3002_v62  ;;  %v3049_v9 = vmax.f32 %v2751_v12, %v3003_v32  ;;  %v26722_v46 = vor.u32 %v5998_v16, %v5997_v41 }
 0x668   :  { %3072 = vst [vmem:[#allocation3 + $0xd8] sm:$0xff] %v3048_v2  ;;  %3073 = vst [vmem:[#allocation3 + $0xe0] sm:$0xff] %v3049_v9  ;;  %v2975_v31 = vpop.permute.xlu1 %2974  ;;  %v2973_v38 = vpop.permute.xlu0 %2972  ;;  %v6012_v32 = vrot.slane %v26722_v46, %v31035_v7  ;;  %v6020_v2 = vrot.slane %v26722_v46, %v31036_v56  ;;  %v6036_v16 = vrot.slane %v26722_v46, %v31040_v33 }
 0x669   :  { %v3052_v42 = vmax.f32 %v2754_v35, %v2975_v31  ;;  %v3004_v47 = vsel %vm94_vm6, %v2971_v59, %v2973_v38  ;;  %v3005_v49 = vsel %vm94_vm6, %v2973_v38, %v2975_v31  ;;  %v6008_v38 = vrot.slane %v26722_v46, %v31037_v13 }
 0x66a   :  { %v3050_v20 = vmax.f32 %v2752_v61, %v3004_v47  ;;  %v3051_v39 = vmax.f32 %v2753_v17, %v3005_v49 }
 0x66b   :  { %3076 = vst.msk [vmem:[#allocation3 + $0xf8] sm:$0xff] %vm303_vm8, %v3052_v42  ;;  %v6016_v42 = vrot.slane %v26722_v46, %v31038_v6 }
 0x66c   :  { %3074 = vst [vmem:[#allocation3 + $0xe8] sm:$0xff] %v3050_v20  ;;  %3075 = vst [vmem:[#allocation3 + $0xf0] sm:$0xff] %v3051_v39  ;;  %v2071_v45 = vpop.permute.xlu1 %2070  ;;  %v2069_v25 = vpop.permute.xlu0 %2068  ;;  %v6028_v39 = vrot.slane %v26722_v46, %v31039_v5 }
 0x66d   :  { %v26707_v8 = vsel %vm50_vm2, %v2069_v25, %v2071_v45 }
 0x66e   :  { %v2177_v37 = vmax.f32 %v26257_v22, %v26707_v8 }
 0x66f   :  { %v6001_v22 = vld [vmem:[#allocation3 + $0xc0] ss:$8 sm:$0xf] }
 0x670   :  { %v2075_v60 = vpop.permute.xlu1 %2074  ;;  %2233 = vrot.lane.b32.xlu0 %v2177_v37, %s23848_s12  ;;  %v2073_v21 = vpop.permute.xlu0 %2072 }
 0x671   :  { %v26713_v53 = vsel %vm50_vm2, %v2071_v45, %v2073_v21  ;;  %v26716_v48 = vsel %vm50_vm2, %v2073_v21, %v2075_v60 }
 0x672   :  { %v2178_v28 = vmax.f32 %v26259_v54, %v26713_v53  ;;  %v2179_v10 = vmax.f32 %v26255_v15, %v26716_v48 }
 0x673   :  { %v6002_v12 = vld [vmem:[#allocation3 + $0xc0] ss:$8 sm:$0xf0] }
 0x674   :  { %v26724_v59 = vor.u32 %v6002_v12, %v6001_v22  ;;  %v2079_v0 = vpop.permute.xlu1 %2078  ;;  %2237 = vrot.lane.b32.xlu0 %v2179_v10, %s23848_s12  ;;  %2235 = vrot.lane.b32.xlu1 %v2178_v28, %s23848_s12  ;;  %v2077_v27 = vpop.permute.xlu0 %2076  ;;  %v22931_v28 = vld [vmem:[%s30809_s4 + $0x890] sm:$0xff]  }
 0x675   :  { %v26729_v14 = vsel %vm50_vm2, %v2075_v60, %v2077_v27  ;;  %v26732_v54 = vsel %vm50_vm2, %v2077_v27, %v2079_v0 }
 0x676   :  { %v2180_v15 = vmax.f32 %v26261_v43, %v26729_v14  ;;  %v2181_v62 = vmax.f32 %v26270_v18, %v26732_v54  ;;  %v6053_v61 = vrot.slane %v26724_v59, %v31035_v7  ;;  %v6061_v17 = vrot.slane %v26724_v59, %v31036_v56 }
 0x677   :  { %v6049_v43 = vrot.slane %v26724_v59, %v31037_v13  ;;  %v6057_v18 = vrot.slane %v26724_v59, %v31038_v6  ;;  %v6077_v12 = vrot.slane %v26724_v59, %v31040_v33 }
 0x678   :  { %v26742_v9 = vpop.permute.xlu1 %2082  ;;  %v2081_v35 = vpop.permute.xlu0 %2080  ;;  %2241 = vrot.lane.b32.xlu0 %v2181_v62, %s23848_s12  ;;  %2239 = vrot.lane.b32.xlu1 %v2180_v15, %s23848_s12  ;;  %v6087_v20 = vsel %vm366_vm12, %v6012_v32, %v6053_v61  ;;  %v6089_v37 = vsel %vm366_vm12, %v6020_v2, %v6061_v17  ;;  %v6724_v32 = vld [vmem:[#allocation3 + $0x5] ss:$8 sm:$0xf0]  ;;  %v6728_v17 = vld [vmem:[#allocation3 + $0xc1] ss:$8 sm:$0xf0] }
 0x679   :  { %v26755_v31 = vsel %vm50_vm2, %v2079_v0, %v2081_v35  ;;  %v26763_v47 = vsel %vm50_vm2, %v2081_v35, %v26742_v9  ;;  %v6095_v25 = vpack.c.bf16 %v6087_v20, %v6087_v20  ;;  %v6097_v60 = vpack.c.bf16 %v6089_v37, %v6089_v37  ;;  %v22932_v0 = vld [vmem:[%s30809_s4 + $0x858] sm:$0xff]   ;;  %v22938_v37 = vld [vmem:[%s30809_s4 + $0x868] sm:$0xff]  }
 0x67a   :  { %v2182_v49 = vmax.f32 %v26274_v19, %v26755_v31  ;;  %v2183_v45 = vmax.f32 %v26272_v30, %v26763_v47  ;;  %v6086_v21 = vsel %vm366_vm12, %v6008_v38, %v6049_v43  ;;  %v6088_v41 = vsel %vm366_vm12, %v6016_v42, %v6057_v18  ;;  %v22930_v19 = vld [vmem:[%s30809_s4 + $0x810] sm:$0xff]   ;;  %v22933_v35 = vld [vmem:[%s30809_s4 + $0x818] sm:$0xff]   ;;  %v22935_v18 = vld [vmem:[%s30809_s4 + $0x860] sm:$0xff]  }
 0x67b   :  { %v6069_v30 = vrot.slane %v26724_v59, %v31039_v5  ;;  %6593 = vmatprep.mubr.bf16.mxu0 %v6095_v25  ;;  %v6094_v10 = vpack.c.bf16 %v6086_v21, %v6086_v21  ;;  %v6096_v22 = vpack.c.bf16 %v6088_v41, %v6088_v41  ;;  %6633 = vmatprep.mubr.bf16.mxu1 %v6097_v60  ;;  %v22934_v61 = vld [vmem:[%s30809_s4 + $0x898] sm:$0xff]   ;;  %v26807_v38 = vld [vmem:[#allocation4 + $0x80] sm:$0xf]  ;;  %v26828_v60 = vld [vmem:[#allocation4 + $0x88] sm:$0xf] }
 0x67c   :  { %2245 = vrot.lane.b32.xlu0 %v2183_v45, %s23848_s12  ;;  %2243 = vrot.lane.b32.xlu1 %v2182_v49, %s23848_s12  ;;  %v6093_v62 = vsel %vm366_vm12, %v6036_v16, %v6077_v12  ;;  %v2184_v43 = vmax.f32 %v26305_v63, %v26742_v9  ;;  %v6723_v42 = vld [vmem:[#allocation3 + $0x5] ss:$8 sm:$0xf]  ;;  %v6727_v49 = vld [vmem:[#allocation3 + $0xc1] ss:$8 sm:$0xf] }
 0x67d   :  { %v6091_v27 = vsel %vm366_vm12, %v6028_v39, %v6069_v30  ;;  %6594 = vmatmul.mubr.bf16.vlgmr.msra.gmra.mrb[56].mxu0 %v6094_v10  ;;  %6634 = vmatmul.mubr.bf16.vlgmr.msra.gmra.mrb[44].mxu1 %v6096_v22  ;;  %v6101_v2 = vpack.c.bf16 %v6093_v62, %v6093_v62  ;;  %v26812_v63 = vor.u32 %v6724_v32, %v6723_v42  ;;  %v22936_v39 = vld [vmem:[%s30809_s4 + $0x820] sm:$0xff]   ;;  %v26826_v16 = vld [vmem:[#allocation4 + $0x90] sm:$0xf]  ;;  %v26854_v62 = vld [vmem:[#allocation4 + $0x98] sm:$0xf] }
 0x67e   :  { %v6099_v15 = vpack.c.bf16 %v6091_v27, %v6091_v27  ;;  %21400 = vmatpush3.bf16.msra.mxu0 %v22930_v19  ;;  %6682 = vmatpush1.bf16.msra.mxu1 %v22931_v28  ;;  %v26814_v20 = vor.u32 %v6728_v17, %v6727_v49  ;;  %v22937_v45 = vld [vmem:[%s30809_s4 + $0x8a0] sm:$0xff]   ;;  %v22939_v19 = vld [vmem:[%s30809_s4 + $0x828] sm:$0xff]   ;;  %v22944_v17 = vld [vmem:[%s30809_s4 + $0x878] sm:$0xff]  }
 0x67f   :  { %21401 = vmatprep.subr.bf16.mxu0 %v22932_v0  ;;  %18523 = vmatprep.mubr.msk.bf16.mxu1 %vm303_vm8, %v6101_v2  ;;  %v7450_v25 = vld [vmem:[#allocation3 + $0x6] ss:$8 sm:$0xf0]  ;;  %v7454_v21 = vld [vmem:[#allocation3 + $0xc2] ss:$8 sm:$0xf0]  ;;  %v6758_v30 = vrot.slane %v26812_v63, %v31041_v34 }
 0x680   :  { %6673 = vmatprep.mubr.bf16.mxu0 %v6099_v15  ;;  %6683 = vmatprep.subr.bf16.mxu1 %v31034_v52  ;;  %v7449_v41 = vld [vmem:[#allocation3 + $0x6] ss:$8 sm:$0xf]  ;;  %v6799_v10 = vrot.slane %v26814_v20, %v31041_v34  ;;  %v7453_v12 = vld [vmem:[#allocation3 + $0xc2] ss:$8 sm:$0xf] }
 0x681   :  { %2795 = vrot.lane.b32.xlu0 %v26807_v38, %s23844_s30  ;;  %2247 = vrot.lane.b32.xlu1 %v2184_v43, %s23848_s12  ;;  %v22940_v28 = vld [vmem:[%s30809_s4 + $0x8a8] sm:$0xff]   ;;  %v26844_v22 = vor.u32 %v7450_v25, %v7449_v41  ;;  %v22941_v0 = vld [vmem:[%s30809_s4 + $0x870] sm:$0xff]   ;;  %v26850_v27 = vor.u32 %v7454_v21, %v7453_v12  ;;  %v26852_v15 = vld [vmem:[#allocation4 + $0xa0] sm:$0xf] }
 0x682   :  { %21402 = vmatpush3.bf16.msra.mxu0 %v22933_v35  ;;  %6684 = vmatpush1.bf16.msra.mxu1 %v22934_v61  ;;  %v26857_v32 = vsel %vm366_vm12, %v6758_v30, %v6799_v10  ;;  %v22942_v2 = vld [vmem:[%s30809_s4 + $0x830] sm:$0xff]   ;;  %v26878_v49 = vld [vmem:[#allocation4 + $0xa8] sm:$0xf]  ;;  %v22945_v41 = vld [vmem:[%s30809_s4 + $0x838] sm:$0xff]  }
 0x683   :  { %21403 = vmatprep.subr.bf16.mxu0 %v22935_v18  ;;  %6685 = vmatprep.subr.bf16.mxu1 %v31034_v52  ;;  %v22943_v35 = vld [vmem:[%s30809_s4 + $0x8b0] sm:$0xff]   ;;  %v7476_v43 = vrot.slane %v26844_v22, %v31042_v24  ;;  %v2630_v18 = vrot.slane %v26807_v38, 4  ;;  %v7525_v25 = vrot.slane %v26850_v27, %v31041_v34 }
 0x684   :  { %v8176_v61 = vld [vmem:[#allocation3 + $0x7] ss:$8 sm:$0xf0]  ;;  %v26876_v42 = vld [vmem:[#allocation4 + $0xb0] sm:$0xf] }
 0x685   :  { %2799 = vrot.lane.b32.xlu0 %v26826_v16, %s23844_s30  ;;  %2797 = vrot.lane.b32.xlu1 %v26828_v60, %s23844_s30  ;;  %v8175_v21 = vld [vmem:[#allocation3 + $0x7] ss:$8 sm:$0xf]  ;;  %v8179_v12 = vld [vmem:[#allocation3 + $0xc3] ss:$8 sm:$0xf] }
 0x686   :  { %21404 = vmatpush3.bf16.msra.mxu0 %v22936_v39  ;;  %6686 = vmatpush1.bf16.msra.mxu1 %v22937_v45  ;;  %v7517_v39 = vrot.slane %v26850_v27, %v31042_v24  ;;  %v7484_v45 = vrot.slane %v26844_v22, %v31041_v34  ;;  %v26902_v10 = vor.u32 %v8176_v61, %v8175_v21  ;;  %v26915_v61 = vld [vmem:[#allocation4 + $0xb8] sm:$0xf] }
 0x687   :  { %21405 = vmatprep.subr.bf16.mxu0 %v22938_v37  ;;  %6687 = vmatprep.subr.bf16.mxu1 %v31034_v52  ;;  %v8180_v37 = vld [vmem:[#allocation3 + $0xc3] ss:$8 sm:$0xf0] }
 0x688   :  { %v26900_v30 = vsel %vm366_vm12, %v7484_v45, %v7525_v25  ;;  %v22949_v25 = vld [vmem:[%s30809_s4 + $0x8c0] sm:$0xff]   ;;  %v8210_v21 = vrot.slane %v26902_v10, %v31041_v34 }
 0x689   :  { %2803 = vrot.lane.b32.xlu0 %v26852_v15, %s23844_s30  ;;  %2801 = vrot.lane.b32.xlu1 %v26854_v62, %s23844_s30  ;;  %31094 = vst [vmem:[#allocation29_spill] sm:$0xff] %v26900_v30  ;;  %v2640_v30 = vrot.slane %v26878_v49, 4 }
 0x68a   :  { %21406 = vmatpush3.bf16.msra.mxu0 %v22939_v19  ;;  %6688 = vmatpush1.bf16.msra.mxu1 %v22940_v28  ;;  %v22946_v19 = vld [vmem:[%s30809_s4 + $0x8b8] sm:$0xff]   ;;  %v26897_v28 = vsel %vm366_vm12, %v7476_v43, %v7517_v39  ;;  %v2632_v43 = vrot.slane %v26828_v60, 4  ;;  %v31095_v39 = vrot.slane %v26293_v51, 4  ;;  %v2638_v51 = vrot.slane %v26852_v15, 4 }
 0x68b   :  { %21407 = vmatprep.subr.bf16.mxu0 %v22941_v0  ;;  %6689 = vmatprep.subr.bf16.mxu1 %v31034_v52  ;;  %v22947_v0 = vld [vmem:[%s30809_s4 + $0x880] sm:$0xff]  }
 0x68c   :  { %v2631_v45 = vsel %vm832_vm11, %v31095_v39, %v2630_v18  ;;  %v2636_v18 = vrot.slane %v26854_v62, 4 }
 0x68d   :  { %2807 = vrot.lane.b32.xlu0 %v26876_v42, %s23844_s30  ;;  %2805 = vrot.lane.b32.xlu1 %v26878_v49, %s23844_s30 }
 0x68e   :  { %21408 = vmatpush3.bf16.msra.mxu0 %v22942_v2  ;;  %6690 = vmatpush1.bf16.msra.mxu1 %v22943_v35  ;;  %v26908_v2 = vor.u32 %v8180_v37, %v8179_v12  ;;  %v2634_v35 = vrot.slane %v26826_v16, 4  ;;  %v22950_v37 = vld [vmem:[%s30809_s4 + $0x888] sm:$0xff]   ;;  %v31097_v12 = vrot.slane %v26298_v11, 4 }
 0x68f   :  { %21409 = vmatprep.subr.bf16.mxu0 %v22944_v17  ;;  %6691 = vmatprep.subr.bf16.mxu1 %v31034_v52  ;;  %v22948_v17 = vld [vmem:[%s30809_s4 + $0x840] sm:$0xff]   ;;  %v22952_v11 = vld [vmem:[%s30809_s4 + $0x8c8] sm:$0xff]  }
 0x690   :  { %v2633_v39 = vsel %vm832_vm11, %v31097_v12, %v2632_v43  ;;  %v6779_v43 = vrot.slane %v26814_v20, %v31035_v7  ;;  %v6738_v12 = vrot.slane %v26812_v63, %v31035_v7 }
 0x691   :  { %2678 = vrot.lane.b32.xlu0 %v2631_v45, %s23844_s30  ;;  %2809 = vrot.lane.b32.xlu1 %v26915_v61, %s23844_s30  ;;  %v8251_v45 = vrot.slane %v26908_v2, %v31041_v34 }
 0x692   :  { %21410 = vmatpush3.bf16.msra.mxu0 %v22945_v41  ;;  %6692 = vmatpush1.bf16.msra.mxu1 %v22946_v19  ;;  %v31096_v41 = vrot.slane %v26288_v36, 4  ;;  %v22951_v36 = vld [vmem:[%s30809_s4 + $0x848] sm:$0xff]  }
 0x693   :  { %21411 = vmatprep.subr.bf16.mxu0 %v22947_v0  ;;  %6693 = vmatprep.subr.bf16.mxu1 %v31034_v52  ;;  %v6065_v0 = vrot.slane %v26724_v59, %v31042_v24 }
 0x694   :  { %v2635_v19 = vsel %vm832_vm11, %v31096_v41, %v2634_v35  ;;  %v6024_v35 = vrot.slane %v26722_v46, %v31042_v24  ;;  %v26957_v41 = vsel %vm366_vm12, %v8210_v21, %v8251_v45  ;;  %v31100_v45 = vrot.slane %v26303_v40, 4 }
 0x695   :  { %2682 = vrot.lane.b32.xlu0 %v2635_v19, %s23844_s30  ;;  %2680 = vrot.lane.b32.xlu1 %v2633_v39, %s23844_s30  ;;  %31098 = vst [vmem:[#allocation45_spill] sm:$0xff] %v26957_v41  ;;  %v22954_v19 = vld [vmem:[%s30809_s4 + $0x8d0] ss:$0 sps:$4 sm:$0x33]   ;;  %v31099_v39 = vrot.slane %v26322_v29, 4  ;;  %v6073_v41 = vrot.slane %v26724_v59, %v31041_v34  ;;  %v22955_v29 = vld [vmem:[%s30809_s4 + $0x8d4] sm:$0xff]   ;;  %v6813_v40 = vsel %vm366_vm12, %v6738_v12, %v6779_v43 }
 0x696   :  { %21412 = vmatpush3.bf16.msra.mxu0 %v22948_v17  ;;  %6694 = vmatpush1.bf16.msra.mxu1 %v22949_v25  ;;  %v2642_v17 = vrot.slane %v26876_v42, 4  ;;  %v22953_v25 = vld [vmem:[%s30809_s4 + $0x914] sm:$0xff]   ;;  %v6090_v26 = vsel %vm366_vm12, %v6024_v35, %v6065_v0  ;;  %v6787_v59 = vrot.slane %v26814_v20, %v31036_v56  ;;  %v6559_v0 = vsel %vm3653_vm1, %v22954_v19, 0  ;;  %v22956_v43 = vld [vmem:[%s30809_s4 + $0x91c] sm:$0xff]  }
 0x697   :  { %21413 = vmatprep.subr.bf16.mxu0 %v22950_v37  ;;  %6695 = vmatprep.subr.bf16.mxu1 %v31034_v52  ;;  %v2639_v21 = vsel %vm832_vm11, %v31099_v39, %v2638_v51  ;;  %v2637_v37 = vsel %vm832_vm11, %v31100_v45, %v2636_v18  ;;  %v6032_v51 = vrot.slane %v26722_v46, %v31041_v34  ;;  %v22957_v46 = vld [vmem:[%s30809_s4 + $0x994] sm:$0xff]   ;;  %v22958_v19 = vld [vmem:[%s30809_s4 + $0x8dc] sm:$0xff]  }
 0x698   :  { %v6098_v18 = vpack.c.bf16 %v6090_v26, %v6090_v26  ;;  %v6746_v26 = vrot.slane %v26812_v63, %v31036_v56  ;;  %v22959_v12 = vld [vmem:[%s30809_s4 + $0x954] sm:$0xff]  }
 0x699   :  { %2686 = vrot.lane.b32.xlu0 %v2639_v21, %s23844_s30  ;;  %2684 = vrot.lane.b32.xlu1 %v2637_v37, %s23844_s30  ;;  %v6092_v35 = vsel %vm366_vm12, %v6032_v51, %v6073_v41  ;;  %v31102_v41 = vrot.slane %v26334_v1, 4  ;;  %v22960_v1 = vld [vmem:[%s30809_s4 + $0x924] sm:$0xff]   ;;  %v31103_v37 = vrot.slane %v26432_v58, 4  ;;  %v22963_v51 = vld [vmem:[%s30809_s4 + $0x95c] sm:$0xff]  }
 0x69a   :  { %21414 = vmatpush3.bf16.msra.mxu0 %v22951_v36  ;;  %6696 = vmatpush1.bf16.msra.mxu1 %v22952_v11  ;;  %v31101_v36 = vrot.slane %v26328_v23, 4  ;;  %v2644_v23 = vrot.slane %v26915_v61, 4  ;;  %v6815_v39 = vsel %vm366_vm12, %v6746_v26, %v6787_v59  ;;  %v6100_v21 = vpack.c.bf16 %v6092_v35, %v6092_v35  ;;  %v22964_v59 = vld [vmem:[%s30809_s4 + $0x92c] sm:$0xff]   ;;  %v22965_v58 = vld [vmem:[%s30809_s4 + $0x9a4] sm:$0xff]   ;;  %v22970_v35 = vld [vmem:[%s30809_s4 + $0x8f4] sm:$0xff]  }
 0x69b   :  { %6697 = vmatprep.subr.bf16.mxu1 %v31034_v52  ;;  %21421 = vmatprep.subr.bf16.mxu0 %v22953_v25  ;;  %v6821_v25 = vpack.c.bf16 %v6813_v40, %v6813_v40  ;;  %v6823_v45 = vpack.c.bf16 %v6815_v39, %v6815_v39  ;;  %v22962_v40 = vld [vmem:[%s30809_s4 + $0x8e4] sm:$0xff]   ;;  %v22973_v26 = vld [vmem:[%s30809_s4 + $0x9b4] sm:$0xff]   ;;  %v22980_v39 = vld [vmem:[%s30809_s4 + $0x94c] sm:$0xff]  }
 0x69c   :  { %v2643_v11 = vsel %vm832_vm11, %v31101_v36, %v2642_v17  ;;  %v2641_v17 = vsel %vm832_vm11, %v31102_v41, %v2640_v30  ;;  %v22961_v30 = vld [vmem:[%s30809_s4 + $0x99c] sm:$0xff]   ;;  %v22968_v36 = vld [vmem:[%s30809_s4 + $0x934] sm:$0xff]   ;;  %v22976_v41 = vld [vmem:[%s30809_s4 + $0x944] sm:$0xff]  }
 0x69d   :  { %6674 = vmatmul.mubr.bf16.vlgmr.msra.gmra.mrb[60].mxu0 %v6098_v18  ;;  %2690 = vrot.lane.b32.xlu0 %v2643_v11, %s23844_s30  ;;  %v22966_v18 = vld [vmem:[%s30809_s4 + $0x8ec] sm:$0xff]  }
 0x69e   :  { %6698 = vmatpush1.bf16.msra.mxu1 %v6559_v0  ;;  %21422 = vmatpush3.bf16.msra.mxu0 %v22955_v29  ;;  %v2645_v29 = vsel %vm832_vm11, %v31103_v37, %v2644_v23  ;;  %v22967_v0 = vld [vmem:[%s30809_s4 + $0x964] sm:$0xff]   ;;  %v22969_v11 = vld [vmem:[%s30809_s4 + $0x9ac] sm:$0xff]   ;;  %v22975_v23 = vld [vmem:[%s30809_s4 + $0x974] sm:$0xff]   ;;  %v6734_v37 = vrot.slane %v26812_v63, %v31037_v13 }
 0x69f   :  { %7319 = vmatprep.mubr.bf16.mxu0 %v6821_v25  ;;  %2688 = vrot.lane.b32.xlu1 %v2641_v17, %s23844_s30  ;;  %v22974_v25 = vld [vmem:[%s30809_s4 + $0x8fc] sm:$0xff]  }
 0x6a0   :  { %21423 = vmatprep.subr.bf16.mxu0 %v22956_v43  ;;  %21443 = vmatprep.subr.bf16.mxu1 %v22957_v46  ;;  %v22971_v43 = vld [vmem:[%s30809_s4 + $0x96c] sm:$0xff]   ;;  %v22972_v46 = vld [vmem:[%s30809_s4 + $0x93c] sm:$0xff]  }
 0x6a1   :  { %6714 = vmatmul.mubr.bf16.vlgmr.msra.gmra.mrb[28].mxu1 %v6100_v21  ;;  %v22977_v17 = vld [vmem:[%s30809_s4 + $0x9bc] sm:$0xff]   ;;  %v22981_v21 = vld [vmem:[%s30809_s4 + $0x9c4] sm:$0xff]  }
 0x6a2   :  { %21424 = vmatpush3.bf16.msra.mxu0 %v22958_v19  ;;  %21444 = vmatpush3.bf16.msra.mxu1 %v22959_v12  ;;  %v22978_v19 = vld [vmem:[%s30809_s4 + $0x904] sm:$0xff]   ;;  %v22979_v12 = vld [vmem:[%s30809_s4 + $0x97c] sm:$0xff]  }
 0x6a3   :  { %7359 = vmatprep.mubr.bf16.mxu1 %v6823_v45  ;;  %2692 = vrot.lane.b32.xlu1 %v2645_v29, %s23844_s30  ;;  %v22983_v45 = vld [vmem:[%s30809_s4 + $0x984] sm:$0xff]   ;;  %v6795_v29 = vrot.slane %v26814_v20, %v31039_v5 }
 0x6a4   :  { %21425 = vmatprep.subr.bf16.mxu0 %v22960_v1  ;;  %21445 = vmatprep.subr.bf16.mxu1 %v22961_v30  ;;  %v6775_v1 = vrot.slane %v26814_v20, %v31037_v13  ;;  %v22982_v30 = vld [vmem:[%s30809_s4 + $0x90c] sm:$0xff]  }
 0x6a6   :  { %21426 = vmatpush3.bf16.msra.mxu0 %v22962_v40  ;;  %21446 = vmatpush3.bf16.msra.mxu1 %v22963_v51  ;;  %v22984_v40 = vld [vmem:[%s30809_s4 + $0x9cc] sm:$0xff]   ;;  %v22985_v51 = vld [vmem:[%s30809_s4 + $0xa14] sm:$0xff]  }
 0x6a7   :  { %21427 = vmatprep.subr.bf16.mxu0 %v22964_v59  ;;  %21447 = vmatprep.subr.bf16.mxu1 %v22965_v58  ;;  %v6812_v59 = vsel %vm366_vm12, %v6734_v37, %v6775_v1  ;;  %v6754_v58 = vrot.slane %v26812_v63, %v31039_v5  ;;  %v22994_v37 = vld [vmem:[%s30809_s4 + $0xa2c] sm:$0xff]  }
 0x6aa   :  { %21428 = vmatpush3.bf16.msra.mxu0 %v22966_v18  ;;  %21448 = vmatpush3.bf16.msra.mxu1 %v22967_v0  ;;  %v6783_v18 = vrot.slane %v26814_v20, %v31038_v6  ;;  %v22986_v0 = vld [vmem:[%s30809_s4 + $0x98c] sm:$0xff]  }
 0x6ab   :  { %21429 = vmatprep.subr.bf16.mxu0 %v22968_v36  ;;  %21449 = vmatprep.subr.bf16.mxu1 %v22969_v11  ;;  %v22987_v36 = vld [vmem:[%s30809_s4 + $0x9d4] sm:$0xff]   ;;  %v6817_v11 = vsel %vm366_vm12, %v6754_v58, %v6795_v29  ;;  %v22995_v29 = vld [vmem:[%s30809_s4 + $0x9ec] sm:$0xff]  }
 0x6ac   :  { %v22999_v58 = vld [vmem:[%s30809_s4 + $0xa6c] sm:$0xff]  }
 0x6ae   :  { %21430 = vmatpush3.bf16.msra.mxu0 %v22970_v35  ;;  %21450 = vmatpush3.bf16.msra.mxu1 %v22971_v43  ;;  %v6742_v35 = vrot.slane %v26812_v63, %v31038_v6  ;;  %v6803_v43 = vrot.slane %v26814_v20, %v31040_v33 }
 0x6af   :  { %21431 = vmatprep.subr.bf16.mxu0 %v22972_v46  ;;  %21451 = vmatprep.subr.bf16.mxu1 %v22973_v26  ;;  %v6820_v46 = vpack.c.bf16 %v6812_v59, %v6812_v59  ;;  %v22988_v26 = vld [vmem:[%s30809_s4 + $0xa1c] sm:$0xff]   ;;  %v22998_v59 = vld [vmem:[%s30809_s4 + $0x9f4] sm:$0xff]  }
 0x6b2   :  { %21432 = vmatpush3.bf16.msra.mxu0 %v22974_v25  ;;  %21452 = vmatpush3.bf16.msra.mxu1 %v22975_v23  ;;  %v6814_v25 = vsel %vm366_vm12, %v6742_v35, %v6783_v18  ;;  %v6762_v23 = vrot.slane %v26812_v63, %v31040_v33  ;;  %v23000_v18 = vld [vmem:[%s30809_s4 + $0xa3c] sm:$0xff]   ;;  %v23004_v35 = vld [vmem:[%s30809_s4 + $0xa04] sm:$0xff]  }
 0x6b3   :  { %21433 = vmatprep.subr.bf16.mxu0 %v22976_v41  ;;  %21453 = vmatprep.subr.bf16.mxu1 %v22977_v17  ;;  %v6825_v41 = vpack.c.bf16 %v6817_v11, %v6817_v11  ;;  %v22989_v17 = vld [vmem:[%s30809_s4 + $0x9dc] sm:$0xff]   ;;  %v23003_v11 = vld [vmem:[%s30809_s4 + $0xa44] sm:$0xff]  }
 0x6b6   :  { %21434 = vmatpush3.bf16.msra.mxu0 %v22978_v19  ;;  %21454 = vmatpush3.bf16.msra.mxu1 %v22979_v12  ;;  %v22990_v19 = vld [vmem:[%s30809_s4 + $0xa54] sm:$0xff]   ;;  %v6819_v12 = vsel %vm366_vm12, %v6762_v23, %v6803_v43  ;;  %v23005_v43 = vld [vmem:[%s30809_s4 + $0xa7c] sm:$0xff]   ;;  %v23008_v23 = vld [vmem:[%s30809_s4 + $0xa84] sm:$0xff]  }
 0x6b7   :  { %21435 = vmatprep.subr.bf16.mxu0 %v22980_v39  ;;  %21455 = vmatprep.subr.bf16.mxu1 %v22981_v21  ;;  %v6822_v39 = vpack.c.bf16 %v6814_v25, %v6814_v25  ;;  %v22991_v21 = vld [vmem:[%s30809_s4 + $0xa24] sm:$0xff]   ;;  %v6827_v1 = vpack.c.bf16 %v6819_v12, %v6819_v12  ;;  %v23007_v25 = vld [vmem:[%s30809_s4 + $0xa0c] sm:$0xff]   ;;  %v7464_v12 = vrot.slane %v26844_v22, %v31035_v7 }
 0x6ba   :  { %21436 = vmatpush3.bf16.msra.mxu0 %v22982_v30  ;;  %21456 = vmatpush3.bf16.msra.mxu1 %v22983_v45  ;;  %v22992_v30 = vld [vmem:[%s30809_s4 + $0x9e4] sm:$0xff]   ;;  %v22993_v45 = vld [vmem:[%s30809_s4 + $0xa5c] sm:$0xff]  }
 0x6bb   :  { %21457 = vmatprep.subr.bf16.mxu1 %v22984_v40  ;;  %21465 = vmatprep.subr.bf16.mxu0 %v22985_v51  ;;  %v22996_v40 = vld [vmem:[%s30809_s4 + $0xa64] sm:$0xff]   ;;  %v22997_v51 = vld [vmem:[%s30809_s4 + $0xa34] sm:$0xff]  }
 0x6bd   :  { %7320 = vmatmul.mubr.bf16.vlgmr.msra.gmra.mrb[64].mxu0 %v6820_v46  ;;  %v23006_v46 = vld [vmem:[%s30809_s4 + $0xa4c] sm:$0xff]  }
 0x6be   :  { %21458 = vmatpush3.bf16.msra.mxu1 %v22986_v0  ;;  %21466 = vmatpush3.bf16.msra.mxu0 %v22987_v36  ;;  %v23001_v0 = vld [vmem:[%s30809_s4 + $0x9fc] sm:$0xff]   ;;  %v23002_v36 = vld [vmem:[%s30809_s4 + $0xa74] sm:$0xff]  }
 0x6bf   :  { %7399 = vmatprep.mubr.bf16.mxu0 %v6825_v41  ;;  %21467 = vmatprep.subr.bf16.mxu0 %v22988_v26  ;;  %v6791_v26 = vrot.slane %v26814_v20, %v31042_v24  ;;  %v6750_v41 = vrot.slane %v26812_v63, %v31042_v24  ;;  %v23009_v20 = vld [vmem:[%s30809_s4 + $0xad8] sm:$0xff]   ;;  %v23010_v63 = vld [vmem:[%s30809_s4 + $0xa8c] sm:$0xff]  }
 0x6c0   :  { %7407 = vmatprep.subr.bf16.mxu1 %v31034_v52 }
 0x6c1   :  { %7360 = vmatmul.mubr.bf16.vlgmr.msra.gmra.mrb[48].mxu1 %v6822_v39  ;;  %v23011_v39 = vld [vmem:[%s30809_s4 + $0xa98] sm:$0xff]  }
 0x6c2   :  { %21468 = vmatpush3.bf16.msra.mxu0 %v22989_v17  ;;  %7408 = vmatpush1.bf16.msra.mxu1 %v22990_v19  ;;  %v7505_v17 = vrot.slane %v26850_v27, %v31035_v7  ;;  %v6816_v19 = vsel %vm366_vm12, %v6750_v41, %v6791_v26  ;;  %v31104_v26 = vld [vmem:[#allocation31_spill] sm:$0xff] }
 0x6c3   :  { %18694 = vmatprep.mubr.msk.bf16.mxu1 %vm303_vm8, %v6827_v1  ;;  %21469 = vmatprep.subr.bf16.mxu0 %v22991_v21  ;;  %v6824_v1 = vpack.c.bf16 %v6816_v19, %v6816_v19  ;;  %v23020_v19 = vld [vmem:[%s30809_s4 + $0xb60] sm:$0xff]  }
 0x6c4   :  { %7409 = vmatprep.subr.bf16.mxu1 %v31034_v52  ;;  %v7539_v21 = vsel %vm366_vm12, %v7464_v12, %v7505_v17 }
 0x6c6   :  { %21470 = vmatpush3.bf16.msra.mxu0 %v22992_v30  ;;  %7410 = vmatpush1.bf16.msra.mxu1 %v22993_v45  ;;  %v23013_v30 = vld [vmem:[%s30809_s4 + $0xa94] ss:$0 sps:$4 sm:$0x33]   ;;  %v23012_v45 = vld [vmem:[%s30809_s4 + $0xae0] sm:$0xff]  }
 0x6c7   :  { %21471 = vmatprep.subr.bf16.mxu0 %v22994_v37  ;;  %7411 = vmatprep.subr.bf16.mxu1 %v31034_v52  ;;  %v7547_v37 = vpack.c.bf16 %v7539_v21, %v7539_v21 }
 0x6ca   :  { %21472 = vmatpush3.bf16.msra.mxu0 %v22995_v29  ;;  %7412 = vmatpush1.bf16.msra.mxu1 %v22996_v40  ;;  %v23014_v29 = vld [vmem:[%s30809_s4 + $0xaa0] sm:$0xff]   ;;  %v7513_v40 = vrot.slane %v26850_v27, %v31036_v56 }
 0x6cb   :  { %21473 = vmatprep.subr.bf16.mxu0 %v22997_v51  ;;  %7413 = vmatprep.subr.bf16.mxu1 %v31034_v52  ;;  %v7285_v51 = vsel %vm3653_vm1, %v23013_v30, 0  ;;  %v23024_v30 = vld [vmem:[%s30809_s4 + $0xb68] sm:$0xff]  }
 0x6ce   :  { %21474 = vmatpush3.bf16.msra.mxu0 %v22998_v59  ;;  %7414 = vmatpush1.bf16.msra.mxu1 %v22999_v58  ;;  %v23015_v59 = vld [vmem:[%s30809_s4 + $0xae8] sm:$0xff]   ;;  %v23016_v58 = vld [vmem:[%s30809_s4 + $0xb58] sm:$0xff]  }
 0x6cf   :  { %21475 = vmatprep.subr.bf16.mxu0 %v23000_v18  ;;  %7415 = vmatprep.subr.bf16.mxu1 %v31034_v52 }
 0x6d2   :  { %21476 = vmatpush3.bf16.msra.mxu0 %v23001_v0  ;;  %7416 = vmatpush1.bf16.msra.mxu1 %v23002_v36  ;;  %v7472_v0 = vrot.slane %v26844_v22, %v31036_v56  ;;  %v23017_v36 = vld [vmem:[%s30809_s4 + $0xaa8] sm:$0xff]  }
 0x6d3   :  { %21477 = vmatprep.subr.bf16.mxu0 %v23003_v11  ;;  %7417 = vmatprep.subr.bf16.mxu1 %v31034_v52  ;;  %v23018_v11 = vld [vmem:[%s30809_s4 + $0xb18] sm:$0xff]  }
 0x6d6   :  { %21478 = vmatpush3.bf16.msra.mxu0 %v23004_v35  ;;  %7418 = vmatpush1.bf16.msra.mxu1 %v23005_v43  ;;  %v7541_v35 = vsel %vm366_vm12, %v7472_v0, %v7513_v40  ;;  %v6826_v43 = vpack.c.bf16 %v26857_v32, %v26857_v32  ;;  %v23025_v0 = vld [vmem:[%s30809_s4 + $0xab8] sm:$0xff]  }
 0x6d7   :  { %21479 = vmatprep.subr.bf16.mxu0 %v23006_v46  ;;  %7419 = vmatprep.subr.bf16.mxu1 %v31034_v52  ;;  %v23019_v46 = vld [vmem:[%s30809_s4 + $0xaf0] sm:$0xff]   ;;  %v7549_v32 = vpack.c.bf16 %v7541_v35, %v7541_v35 }
 0x6d8   :  { %v23028_v35 = vld [vmem:[%s30809_s4 + $0xb70] sm:$0xff]  }
 0x6da   :  { %21480 = vmatpush3.bf16.msra.mxu0 %v23007_v25  ;;  %7420 = vmatpush1.bf16.msra.mxu1 %v23008_v23  ;;  %v2153_v25 = vmax.f32 %v31104_v26, %v26707_v8  ;;  %v31105_v23 = vld [vmem:[#allocation32_spill] sm:$0xff]  ;;  %v23021_v8 = vld [vmem:[%s30809_s4 + $0xab0] sm:$0xff]  }
 0x6db   :  { %7421 = vmatprep.subr.bf16.mxu1 %v31034_v52  ;;  %21487 = vmatprep.subr.bf16.mxu0 %v23009_v20  ;;  %v2154_v41 = vmax.f32 %v31105_v23, %v26713_v53  ;;  %v23022_v53 = vld [vmem:[%s30809_s4 + $0xb20] sm:$0xff]  }
 0x6dd   :  { %7400 = vmatmul.mubr.bf16.vlgmr.msra.gmra.mrb[68].mxu0 %v6824_v1  ;;  %v23023_v1 = vld [vmem:[%s30809_s4 + $0xaf8] sm:$0xff]  }
 0x6de   :  { %7422 = vmatpush1.bf16.msra.mxu1 %v23010_v63  ;;  %21488 = vmatpush3.bf16.msra.mxu0 %v23011_v39 }
 0x6df   :  { %8045 = vmatprep.mubr.bf16.mxu0 %v7547_v37  ;;  %7423 = vmatprep.subr.bf16.mxu1 %v31034_v52 }
 0x6e0   :  { %21489 = vmatprep.subr.bf16.mxu0 %v23012_v45  ;;  %v31106_v45 = vld [vmem:[#allocation33_spill] sm:$0xff] }
 0x6e1   :  { %v2155_v37 = vmax.f32 %v31106_v45, %v26716_v48 }
 0x6e2   :  { %v2234_v18 = vpop.permute.xlu0 %2233  ;;  %7424 = vmatpush1.bf16.msra.mxu1 %v7285_v51  ;;  %21490 = vmatpush3.bf16.msra.mxu0 %v23014_v29  ;;  %v31107_v29 = vld [vmem:[#allocation34_spill] sm:$0xff] }
 0x6e3   :  { %21491 = vmatprep.subr.bf16.mxu0 %v23015_v59  ;;  %21509 = vmatprep.subr.bf16.mxu1 %v23016_v58  ;;  %v2156_v40 = vmax.f32 %v31107_v29, %v26729_v14  ;;  %v23027_v14 = vld [vmem:[%s30809_s4 + $0xb00] sm:$0xff]  }
 0x6e4   :  { %v23036_v29 = vld [vmem:[%s30809_s4 + $0xb80] sm:$0xff]  }
 0x6e5   :  { %7440 = vmatmul.mubr.bf16.vlgmr.msra.gmra.mrb[28].mxu1 %v6826_v43 }
 0x6e6   :  { %v2236_v17 = vpop.permute.xlu1 %2235  ;;  %v2238_v20 = vpop.permute.xlu0 %2237  ;;  %21492 = vmatpush3.bf16.msra.mxu0 %v23017_v36  ;;  %21510 = vmatpush3.bf16.msra.mxu1 %v23018_v11  ;;  %v23026_v36 = vld [vmem:[%s30809_s4 + $0xb28] sm:$0xff]  }
 0x6e7   :  { %v2272_v12 = vsel %vm94_vm6, %v2234_v18, %v2236_v17  ;;  %v2273_v63 = vsel %vm94_vm6, %v2236_v17, %v2238_v20  ;;  %8085 = vmatprep.mubr.bf16.mxu1 %v7549_v32  ;;  %21493 = vmatprep.subr.bf16.mxu0 %v23019_v46  ;;  %v31108_v46 = vld [vmem:[#allocation20_spill] sm:$0xff] }
 0x6e8   :  { %v2318_v39 = vmax.f32 %v2153_v25, %v2272_v12  ;;  %v2319_v21 = vmax.f32 %v2154_v41, %v2273_v63  ;;  %21511 = vmatprep.subr.bf16.mxu1 %v23020_v19  ;;  %v2157_v26 = vmax.f32 %v31108_v46, %v26732_v54  ;;  %v31109_v25 = vld [vmem:[#allocation21_spill] sm:$0xff]  ;;  %v23029_v17 = vld [vmem:[%s30809_s4 + $0xac0] sm:$0xff]  }
 0x6e9   :  { %v2158_v23 = vmax.f32 %v31109_v25, %v26755_v31  ;;  %v23031_v54 = vld [vmem:[%s30809_s4 + $0xb08] sm:$0xff]   ;;  %v23032_v31 = vld [vmem:[%s30809_s4 + $0xb78] sm:$0xff]   ;;  %v7480_v25 = vrot.slane %v26844_v22, %v31039_v5 }
 0x6ea   :  { %2342 = vst [vmem:[#allocation3 + $0x40] sm:$0xff] %v2318_v39  ;;  %2343 = vst [vmem:[#allocation3 + $0x48] sm:$0xff] %v2319_v21  ;;  %v2240_v51 = vpop.permute.xlu1 %2239  ;;  %v2242_v59 = vpop.permute.xlu0 %2241  ;;  %21494 = vmatpush3.bf16.msra.mxu0 %v23021_v8  ;;  %21512 = vmatpush3.bf16.msra.mxu1 %v23022_v53  ;;  %v31110_v39 = vld [vmem:[#allocation24_spill] sm:$0xff]  ;;  %v23034_v53 = vld [vmem:[%s30809_s4 + $0xb38] sm:$0xff]  }
 0x6eb   :  { %v2274_v58 = vsel %vm94_vm6, %v2238_v20, %v2240_v51  ;;  %v2275_v18 = vsel %vm94_vm6, %v2240_v51, %v2242_v59  ;;  %21495 = vmatprep.subr.bf16.mxu0 %v23023_v1  ;;  %21513 = vmatprep.subr.bf16.mxu1 %v23024_v30  ;;  %v23030_v20 = vld [vmem:[%s30809_s4 + $0xb30] sm:$0xff]   ;;  %v2160_v21 = vmax.f32 %v31110_v39, %v26742_v9  ;;  %v23033_v8 = vld [vmem:[%s30809_s4 + $0xac8] sm:$0xff]  }
 0x6ec   :  { %v2320_v48 = vmax.f32 %v2155_v37, %v2274_v58  ;;  %v2321_v11 = vmax.f32 %v2156_v40, %v2275_v18  ;;  %v31111_v1 = vld [vmem:[#allocation22_spill] sm:$0xff]  ;;  %v23038_v18 = vld [vmem:[%s30809_s4 + $0xb40] sm:$0xff]   ;;  %v7509_v39 = vrot.slane %v26850_v27, %v31038_v6 }
 0x6ed   :  { %v2159_v30 = vmax.f32 %v31111_v1, %v26763_v47  ;;  %v23035_v9 = vld [vmem:[%s30809_s4 + $0xb10] sm:$0xff]  }
 0x6ee   :  { %2344 = vst [vmem:[#allocation3 + $0x50] sm:$0xff] %v2320_v48  ;;  %2345 = vst [vmem:[#allocation3 + $0x58] sm:$0xff] %v2321_v11  ;;  %v2246_v43 = vpop.permute.xlu0 %2245  ;;  %21496 = vmatpush3.bf16.msra.mxu0 %v23025_v0  ;;  %21514 = vmatpush3.bf16.msra.mxu1 %v23026_v36  ;;  %v2244_v41 = vpop.permute.xlu1 %2243  ;;  %v23037_v47 = vld [vmem:[%s30809_s4 + $0xad0] sm:$0xff]   ;;  %v7460_v0 = vrot.slane %v26844_v22, %v31037_v13  ;;  %v7521_v36 = vrot.slane %v26850_v27, %v31039_v5 }
 0x6ef   :  { %v2276_v19 = vsel %vm94_vm6, %v2242_v59, %v2244_v41  ;;  %v2277_v32 = vsel %vm94_vm6, %v2244_v41, %v2246_v43  ;;  %21497 = vmatprep.subr.bf16.mxu0 %v23027_v14  ;;  %21515 = vmatprep.subr.bf16.mxu1 %v23028_v35  ;;  %v7501_v59 = vrot.slane %v26850_v27, %v31037_v13  ;;  %v23039_v14 = vld [vmem:[%s30809_s4 + $0xb88] sm:$0xff]   ;;  %v23040_v35 = vld [vmem:[%s30809_s4 + $0xbd8] sm:$0xff]   ;;  %v23043_v1 = vld [vmem:[%s30809_s4 + $0xb90] sm:$0xff]  }
 0x6f0   :  { %v2322_v12 = vmax.f32 %v2157_v26, %v2276_v19  ;;  %v2323_v63 = vmax.f32 %v2158_v23, %v2277_v32  ;;  %v7543_v19 = vsel %vm366_vm12, %v7480_v25, %v7521_v36 }
 0x6f1   :  { %v7538_v26 = vsel %vm366_vm12, %v7460_v0, %v7501_v59 }
 0x6f2   :  { %2346 = vst [vmem:[#allocation3 + $0x60] sm:$0xff] %v2322_v12  ;;  %2347 = vst [vmem:[#allocation3 + $0x68] sm:$0xff] %v2323_v63  ;;  %21498 = vmatpush3.bf16.msra.mxu0 %v23029_v17  ;;  %21516 = vmatpush3.bf16.msra.mxu1 %v23030_v20  ;;  %v23041_v17 = vld [vmem:[%s30809_s4 + $0xb48] sm:$0xff]   ;;  %v23042_v20 = vld [vmem:[%s30809_s4 + $0xb98] sm:$0xff]   ;;  %v7546_v63 = vpack.c.bf16 %v7538_v26, %v7538_v26 }
 0x6f3   :  { %v2248_v45 = vpop.permute.xlu1 %2247  ;;  %v2796_v37 = vpop.permute.xlu0 %2795  ;;  %21499 = vmatprep.subr.bf16.mxu0 %v23031_v54  ;;  %21517 = vmatprep.subr.bf16.mxu1 %v23032_v31 }
 0x6f4   :  { %v2278_v40 = vsel %vm94_vm6, %v2246_v43, %v2248_v45  ;;  %v2325_v51 = vmax.f32 %v2160_v21, %v2248_v45  ;;  %v7551_v21 = vpack.c.bf16 %v7543_v19, %v7543_v19 }
 0x6f5   :  { %v2324_v58 = vmax.f32 %v2159_v30, %v2278_v40 }
 0x6f6   :  { %2349 = vst.msk [vmem:[#allocation3 + $0x78] sm:$0xff] %vm303_vm8, %v2325_v51  ;;  %21500 = vmatpush3.bf16.msra.mxu0 %v23033_v8  ;;  %21518 = vmatpush3.bf16.msra.mxu1 %v23034_v53 }
 0x6f7   :  { %2348 = vst [vmem:[#allocation3 + $0x70] sm:$0xff] %v2324_v58  ;;  %v2798_v48 = vpop.permute.xlu1 %2797  ;;  %v2800_v11 = vpop.permute.xlu0 %2799  ;;  %21501 = vmatprep.subr.bf16.mxu0 %v23035_v9  ;;  %21519 = vmatprep.subr.bf16.mxu1 %v23036_v29  ;;  %v7529_v29 = vrot.slane %v26850_v27, %v31040_v33  ;;  %v23047_v58 = vld [vmem:[%s30809_s4 + $0xbe8] sm:$0xff]   ;;  %v7488_v27 = vrot.slane %v26844_v22, %v31040_v33 }
 0x6f8   :  { %v2825_v43 = vsel %vm50_vm2, %v2796_v37, %v2798_v48  ;;  %v2826_v46 = vsel %vm50_vm2, %v2798_v48, %v2800_v11  ;;  %v23044_v37 = vld [vmem:[%s30809_s4 + $0xbe0] sm:$0xff]  }
 0x6f9   :  { %v2872_v23 = vmax.f32 %v26807_v38, %v2825_v43  ;;  %v2873_v41 = vmax.f32 %v26828_v60, %v2826_v46 }
 0x6fa   :  { %21502 = vmatpush3.bf16.msra.mxu0 %v23037_v47  ;;  %21520 = vmatpush3.bf16.msra.mxu1 %v23038_v18 }
 0x6fb   :  { %v2928_v32 = vrot.slane %v2872_v23, 4  ;;  %v2930_v54 = vrot.slane %v2873_v41, 4  ;;  %v2802_v31 = vpop.permute.xlu1 %2801  ;;  %v2804_v12 = vpop.permute.xlu0 %2803  ;;  %21521 = vmatprep.subr.bf16.mxu1 %v23039_v14  ;;  %21531 = vmatprep.subr.bf16.mxu0 %v23040_v35  ;;  %v23050_v41 = vld [vmem:[%s30809_s4 + $0xbf0] sm:$0xff]  }
 0x6fc   :  { %v2827_v38 = vsel %vm50_vm2, %v2800_v11, %v2802_v31  ;;  %v2828_v60 = vsel %vm50_vm2, %v2802_v31, %v2804_v12 }
 0x6fd   :  { %8046 = vmatmul.mubr.bf16.vlgmr.msra.gmra.mrb[72].mxu0 %v7546_v63  ;;  %v2929_v8 = vsel %vm832_vm11, %v26541_v44, %v2928_v32  ;;  %v2931_v53 = vsel %vm832_vm11, %v26543_v4, %v2930_v54  ;;  %v2874_v30 = vmax.f32 %v26826_v16, %v2827_v38  ;;  %v2875_v45 = vmax.f32 %v26854_v62, %v2828_v60  ;;  %v23045_v44 = vld [vmem:[%s30809_s4 + $0xb50] sm:$0xff]   ;;  %v23046_v62 = vld [vmem:[%s30809_s4 + $0xba0] sm:$0xff]  }
 0x6fe   :  { %21522 = vmatpush3.bf16.msra.mxu1 %v23041_v17  ;;  %21532 = vmatpush3.bf16.msra.mxu0 %v23042_v20  ;;  %v7468_v4 = vrot.slane %v26844_v22, %v31038_v6  ;;  %v7545_v22 = vsel %vm366_vm12, %v7488_v27, %v7529_v29  ;;  %v8902_v43 = vld [vmem:[#allocation3 + $0x40] ss:$8 sm:$0xf0]  ;;  %v8906_v17 = vld [vmem:[#allocation3 + $0xc4] ss:$8 sm:$0xf0] }
 0x6ff   :  { %8125 = vmatprep.mubr.bf16.mxu0 %v7551_v21  ;;  %2976 = vrot.lane.b32.xlu0 %v2929_v8, %s23848_s12  ;;  %v2806_v9 = vpop.permute.xlu1 %2805  ;;  %v2808_v16 = vpop.permute.xlu0 %2807  ;;  %v2932_v0 = vrot.slane %v2874_v30, 4  ;;  %v2934_v36 = vrot.slane %v2875_v45, 4  ;;  %v8905_v54 = vld [vmem:[#allocation3 + $0xc4] ss:$8 sm:$0xf] }
 0x700   :  { %2978 = vrot.lane.b32.xlu1 %v2931_v53, %s23848_s12  ;;  %v2829_v40 = vsel %vm50_vm2, %v2804_v12, %v2806_v9  ;;  %v2830_v51 = vsel %vm50_vm2, %v2806_v9, %v2808_v16  ;;  %v7540_v59 = vsel %vm366_vm12, %v7468_v4, %v7509_v39  ;;  %21523 = vmatprep.subr.bf16.mxu1 %v23043_v1  ;;  %v23052_v63 = vld [vmem:[%s30809_s4 + $0xc20] sm:$0xff]   ;;  %v23054_v8 = vld [vmem:[%s30809_s4 + $0xbb8] sm:$0xff]   ;;  %v23055_v53 = vld [vmem:[%s30809_s4 + $0xc28] sm:$0xff]  }
 0x701   :  { %v2876_v47 = vmax.f32 %v26852_v15, %v2829_v40  ;;  %v2877_v18 = vmax.f32 %v26878_v49, %v2830_v51  ;;  %21533 = vmatprep.subr.bf16.mxu0 %v23044_v37  ;;  %v7548_v35 = vpack.c.bf16 %v7540_v59, %v7540_v59  ;;  %v23048_v15 = vld [vmem:[%s30809_s4 + $0xba8] sm:$0xff]   ;;  %v23049_v49 = vld [vmem:[%s30809_s4 + $0xc18] sm:$0xff]   ;;  %v2933_v46 = vsel %vm832_vm11, %v26557_v3, %v2932_v0  ;;  %v23056_v30 = vld [vmem:[%s30809_s4 + $0xc00] sm:$0xff]  }
 0x702   :  { %21524 = vmatpush3.bf16.msra.mxu1 %v23045_v44  ;;  %21534 = vmatpush3.bf16.msra.mxu0 %v23046_v62  ;;  %v2935_v26 = vsel %vm832_vm11, %v26559_v50, %v2934_v36  ;;  %v8901_v3 = vld [vmem:[#allocation3 + $0x40] ss:$8 sm:$0xf]  ;;  %v7553_v50 = vpack.c.bf16 %v7545_v22, %v7545_v22  ;;  %v27425_v38 = vor.u32 %v8906_v17, %v8905_v54  ;;  %v9628_v9 = vld [vmem:[#allocation3 + $0x41] ss:$8 sm:$0xf0] }
 0x703   :  { %v2936_v48 = vrot.slane %v2876_v47, 4  ;;  %v2938_v11 = vrot.slane %v2877_v18, 4  ;;  %v2810_v14 = vpop.permute.xlu1 %2809  ;;  %8133 = vmatprep.subr.bf16.mxu1 %v31034_v52  ;;  %21535 = vmatprep.subr.bf16.mxu0 %v23047_v58  ;;  %v27417_v31 = vor.u32 %v8902_v43, %v8901_v3  ;;  %v31113_v39 = vld [vmem:[#allocation28_spill] sm:$0xff]  ;;  %v23058_v62 = vld [vmem:[%s30809_s4 + $0xc30] sm:$0xff]   ;;  %v23061_v36 = vld [vmem:[%s30809_s4 + $0xc38] sm:$0xff]  }
 0x704   :  { %v2831_v25 = vsel %vm50_vm2, %v2808_v16, %v2810_v14  ;;  %v2879_v23 = vmax.f32 %v26915_v61, %v2810_v14  ;;  %2980 = vrot.lane.b32.xlu0 %v2933_v46, %s23848_s12  ;;  %2982 = vrot.lane.b32.xlu1 %v2935_v26, %s23848_s12  ;;  %v8961_v45 = vrot.slane %v27425_v38, %v31038_v6  ;;  %v23057_v16 = vld [vmem:[%s30809_s4 + $0xbc0] sm:$0xff]   ;;  %v23059_v29 = vld [vmem:[%s30809_s4 + $0xc08] sm:$0xff]   ;;  %v31116_v14 = vld [vmem:[#allocation38_spill] sm:$0xff] }
 0x705   :  { %v2878_v20 = vmax.f32 %v26876_v42, %v2831_v25  ;;  %8086 = vmatmul.mubr.bf16.vlgmr.msra.gmra.mrb[52].mxu1 %v7548_v35  ;;  %v2937_v32 = vsel %vm832_vm11, %v26573_v55, %v2936_v48  ;;  %v2939_v61 = vsel %vm832_vm11, %v26575_v57, %v2938_v11  ;;  %v23051_v42 = vld [vmem:[%s30809_s4 + $0xbb0] sm:$0xff]   ;;  %v23053_v55 = vld [vmem:[%s30809_s4 + $0xbf8] sm:$0xff]   ;;  %v31112_v57 = vld [vmem:[#allocation44_spill] sm:$0xff]  ;;  %v8920_v1 = vrot.slane %v27417_v31, %v31038_v6 }
 0x706   :  { %v2942_v19 = vrot.slane %v2879_v23, 4  ;;  %21536 = vmatpush3.bf16.msra.mxu0 %v23048_v15  ;;  %8134 = vmatpush1.bf16.msra.mxu1 %v23049_v49  ;;  %v8936_v44 = vrot.slane %v27417_v31, %v31041_v34  ;;  %v8977_v4 = vrot.slane %v27425_v38, %v31041_v34  ;;  %v9632_v51 = vld [vmem:[#allocation3 + $0xc5] ss:$8 sm:$0xf0]  ;;  %v8231_v26 = vrot.slane %v26908_v2, %v31035_v7 }
 0x707   :  { %v2940_v12 = vrot.slane %v2878_v20, 4  ;;  %18865 = vmatprep.mubr.msk.bf16.mxu1 %vm303_vm8, %v7553_v50  ;;  %21537 = vmatprep.subr.bf16.mxu0 %v23050_v41  ;;  %v27455_v37 = vsel %vm366_vm12, %v8920_v1, %v8961_v45  ;;  %v9627_v59 = vld [vmem:[#allocation3 + $0x41] ss:$8 sm:$0xf] }
 0x708   :  { %2984 = vrot.lane.b32.xlu0 %v2937_v32, %s23848_s12  ;;  %2986 = vrot.lane.b32.xlu1 %v2939_v61, %s23848_s12  ;;  %v2943_v21 = vsel %vm832_vm11, %v31113_v39, %v2942_v19  ;;  %v27472_v40 = vsel %vm366_vm12, %v8936_v44, %v8977_v4  ;;  %v31114_v58 = vld [vmem:[#allocation36_spill] sm:$0xff]  ;;  %v31115_v47 = vld [vmem:[#allocation37_spill] sm:$0xff]  ;;  %v27478_v18 = vor.u32 %v9628_v9, %v9627_v59  ;;  %v31117_v35 = vld [vmem:[#allocation39_spill] sm:$0xff] }
 0x709   :  { %8135 = vmatprep.subr.bf16.mxu1 %v31034_v52  ;;  %v2941_v60 = vsel %vm832_vm11, %v31112_v57, %v2940_v12  ;;  %v9631_v27 = vld [vmem:[#allocation3 + $0xc5] ss:$8 sm:$0xf]  ;;  %v10358_v15 = vld [vmem:[#allocation3 + $0xc6] ss:$8 sm:$0xf0]  ;;  %v8190_v19 = vrot.slane %v26902_v10, %v31035_v7 }
 0x70a   :  { %21538 = vmatpush3.bf16.msra.mxu0 %v23051_v42  ;;  %8136 = vmatpush1.bf16.msra.mxu1 %v23052_v63  ;;  %v23060_v0 = vld [vmem:[%s30809_s4 + $0xbc8] sm:$0xff]   ;;  %v27486_v48 = vor.u32 %v9632_v51, %v9631_v27  ;;  %v23062_v11 = vld [vmem:[%s30809_s4 + $0xc10] sm:$0xff]   ;;  %v9662_v49 = vrot.slane %v27478_v18, %v31041_v34  ;;  %v23064_v46 = vld [vmem:[%s30809_s4 + $0xc40] sm:$0xff]   ;;  %v7550_v63 = vpack.c.bf16 %v26897_v28, %v26897_v28 }
 0x70b   :  { %21539 = vmatprep.subr.bf16.mxu0 %v23053_v55  ;;  %8137 = vmatprep.subr.bf16.mxu1 %v31034_v52  ;;  %v10354_v22 = vld [vmem:[#allocation3 + $0x42] ss:$8 sm:$0xf0]  ;;  %v10357_v41 = vld [vmem:[#allocation3 + $0xc6] ss:$8 sm:$0xf]  ;;  %v8265_v42 = vsel %vm366_vm12, %v8190_v19, %v8231_v26 }
 0x70c   :  { %2988 = vrot.lane.b32.xlu0 %v2941_v60, %s23848_s12  ;;  %2990 = vrot.lane.b32.xlu1 %v2943_v21, %s23848_s12  ;;  %v23063_v43 = vld [vmem:[%s30809_s4 + $0xbd0] sm:$0xff]   ;;  %v23065_v25 = vld [vmem:[%s30809_s4 + $0xc9c] sm:$0xff]   ;;  %v9703_v23 = vrot.slane %v27486_v48, %v31041_v34  ;;  %v27518_v50 = vor.u32 %v10358_v15, %v10357_v41 }
 0x70d   :  { %v10353_v17 = vld [vmem:[#allocation3 + $0x42] ss:$8 sm:$0xf]  ;;  %v11083_v39 = vld [vmem:[#allocation3 + $0xc7] ss:$8 sm:$0xf] }
 0x70e   :  { %21540 = vmatpush3.bf16.msra.mxu0 %v23054_v8  ;;  %8138 = vmatpush1.bf16.msra.mxu1 %v23055_v53  ;;  %v31118_v20 = vld [vmem:[#allocation40_spill] sm:$0xff]  ;;  %v31119_v3 = vld [vmem:[#allocation41_spill] sm:$0xff]  ;;  %v27520_v32 = vor.u32 %v10354_v22, %v10353_v17  ;;  %v27523_v61 = vsel %vm366_vm12, %v9662_v49, %v9703_v23  ;;  %v31120_v55 = vld [vmem:[#allocation42_spill] sm:$0xff]  ;;  %v8273_v53 = vpack.c.bf16 %v8265_v42, %v8265_v42 }
 0x70f   :  { %21541 = vmatprep.subr.bf16.mxu0 %v23056_v30  ;;  %8139 = vmatprep.subr.bf16.mxu1 %v31034_v52  ;;  %v23066_v54 = vld [vmem:[%s30809_s4 + $0xc48] sm:$0xff]   ;;  %v23067_v12 = vld [vmem:[%s30809_s4 + $0xc5c] sm:$0xff]   ;;  %v10413_v1 = vrot.slane %v27518_v50, %v31038_v6  ;;  %v23069_v30 = vld [vmem:[%s30809_s4 + $0xc50] sm:$0xff]   ;;  %v10429_v9 = vrot.slane %v27518_v50, %v31041_v34  ;;  %v8198_v22 = vrot.slane %v26902_v10, %v31036_v56 }
 0x710   :  { %2084 = vrot.lane.b32.xlu0 %v31114_v58, %s23844_s30  ;;  %2086 = vrot.lane.b32.xlu1 %v31115_v47, %s23844_s30  ;;  %v31121_v57 = vld [vmem:[#allocation43_spill] sm:$0xff]  ;;  %v23068_v60 = vld [vmem:[%s30809_s4 + $0xca4] sm:$0xff]   ;;  %v10372_v28 = vrot.slane %v27520_v32, %v31038_v6  ;;  %v23071_v44 = vld [vmem:[%s30809_s4 + $0xcac] sm:$0xff]   ;;  %v10388_v4 = vrot.slane %v27520_v32, %v31041_v34 }
 0x711   :  { %v11084_v21 = vld [vmem:[#allocation3 + $0xc7] ss:$8 sm:$0xf0]  ;;  %v11080_v8 = vld [vmem:[#allocation3 + $0x43] ss:$8 sm:$0xf0] }
 0x712   :  { %21542 = vmatpush3.bf16.msra.mxu0 %v23057_v16  ;;  %8140 = vmatpush1.bf16.msra.mxu1 %v23058_v62  ;;  %v23070_v45 = vld [vmem:[%s30809_s4 + $0xc64] sm:$0xff]   ;;  %v23072_v62 = vld [vmem:[%s30809_s4 + $0xc58] ss:$0 sps:$4 sm:$0x33]   ;;  %v27566_v51 = vor.u32 %v11084_v21, %v11083_v39  ;;  %v27571_v27 = vsel %vm366_vm12, %v10388_v4, %v10429_v9  ;;  %v23075_v49 = vld [vmem:[%s30809_s4 + $0xd1c] sm:$0xff]  }
 0x713   :  { %21543 = vmatprep.subr.bf16.mxu0 %v23059_v29  ;;  %8141 = vmatprep.subr.bf16.mxu1 %v31034_v52  ;;  %v11079_v16 = vld [vmem:[#allocation3 + $0x43] ss:$8 sm:$0xf]  ;;  %v27564_v29 = vsel %vm366_vm12, %v10372_v28, %v10413_v1 }
 0x714   :  { %2088 = vrot.lane.b32.xlu0 %v31116_v14, %s23844_s30  ;;  %2090 = vrot.lane.b32.xlu1 %v31117_v35, %s23844_s30  ;;  %v27568_v59 = vor.u32 %v11080_v8, %v11079_v16  ;;  %v23074_v15 = vld [vmem:[%s30809_s4 + $0xcb4] sm:$0xff]   ;;  %v23077_v41 = vld [vmem:[%s30809_s4 + $0xcdc] sm:$0xff]  }
 0x715   :  { %v23076_v23 = vld [vmem:[%s30809_s4 + $0xc74] sm:$0xff]   ;;  %v23078_v42 = vld [vmem:[%s30809_s4 + $0xcbc] sm:$0xff]   ;;  %v23081_v8 = vld [vmem:[%s30809_s4 + $0xce4] sm:$0xff]  }
 0x716   :  { %21544 = vmatpush3.bf16.msra.mxu0 %v23060_v0  ;;  %8142 = vmatpush1.bf16.msra.mxu1 %v23061_v36  ;;  %v23073_v0 = vld [vmem:[%s30809_s4 + $0xc6c] sm:$0xff]   ;;  %v8239_v36 = vrot.slane %v26908_v2, %v31036_v56  ;;  %v11114_v26 = vrot.slane %v27568_v59, %v31041_v34  ;;  %v23080_v21 = vld [vmem:[%s30809_s4 + $0xc7c] sm:$0xff]   ;;  %v23084_v1 = vld [vmem:[%s30809_s4 + $0xc84] sm:$0xff]  }
 0x717   :  { %21545 = vmatprep.subr.bf16.mxu0 %v23062_v11  ;;  %8143 = vmatprep.subr.bf16.mxu1 %v31034_v52  ;;  %v8011_v11 = vsel %vm3653_vm1, %v23072_v62, 0  ;;  %v23083_v28 = vld [vmem:[%s30809_s4 + $0xd2c] sm:$0xff]   ;;  %v23089_v9 = vld [vmem:[%s30809_s4 + $0xcf4] sm:$0xff]   ;;  %v23091_v62 = vld [vmem:[%s30809_s4 + $0xd3c] sm:$0xff]  }
 0x718   :  { %2092 = vrot.lane.b32.xlu0 %v31118_v20, %s23844_s30  ;;  %2094 = vrot.lane.b32.xlu1 %v31119_v3, %s23844_s30  ;;  %v8267_v17 = vsel %vm366_vm12, %v8198_v22, %v8239_v36  ;;  %v23088_v4 = vld [vmem:[%s30809_s4 + $0xc8c] sm:$0xff]   ;;  %v23090_v16 = vld [vmem:[%s30809_s4 + $0xcd4] sm:$0xff]  }
 0x719   :  { %v8275_v39 = vpack.c.bf16 %v8267_v17, %v8267_v17  ;;  %v23092_v36 = vld [vmem:[%s30809_s4 + $0xc94] sm:$0xff]   ;;  %v23094_v22 = vld [vmem:[%s30809_s4 + $0xd44] sm:$0xff]  }
 0x71a   :  { %21546 = vmatpush3.bf16.msra.mxu0 %v23063_v43  ;;  %8144 = vmatpush1.bf16.msra.mxu1 %v23064_v46  ;;  %v11098_v43 = vrot.slane %v27568_v59, %v31038_v6  ;;  %v11139_v46 = vrot.slane %v27566_v51, %v31038_v6 }
 0x71b   :  { %8145 = vmatprep.subr.bf16.mxu1 %v31034_v52  ;;  %21553 = vmatprep.subr.bf16.mxu0 %v23065_v25  ;;  %v11155_v25 = vrot.slane %v27566_v51, %v31041_v34 }
 0x71c   :  { %2096 = vrot.lane.b32.xlu0 %v31120_v55, %s23844_s30  ;;  %2098 = vrot.lane.b32.xlu1 %v31121_v57, %s23844_s30  ;;  %v27604_v19 = vsel %vm366_vm12, %v11098_v43, %v11139_v46  ;;  %v23095_v43 = vld [vmem:[%s30809_s4 + $0xd9c] sm:$0xff]  }
 0x71d   :  { %8126 = vmatmul.mubr.bf16.vlgmr.msra.gmra.mrb[76].mxu0 %v7550_v63  ;;  %v27612_v63 = vsel %vm366_vm12, %v11114_v26, %v11155_v25  ;;  %v8206_v26 = vrot.slane %v26902_v10, %v31039_v5  ;;  %v23096_v25 = vld [vmem:[%s30809_s4 + $0xd04] sm:$0xff]  }
 0x71e   :  { %8146 = vmatpush1.bf16.msra.mxu1 %v23066_v54  ;;  %21554 = vmatpush3.bf16.msra.mxu0 %v23067_v12  ;;  %v31122_v54 = vld [vmem:[#allocation29_spill] sm:$0xff] }
 0x71f   :  { %8771 = vmatprep.mubr.bf16.mxu0 %v8273_v53  ;;  %8147 = vmatprep.subr.bf16.mxu1 %v31034_v52  ;;  %v7552_v12 = vpack.c.bf16 %v31122_v54, %v31122_v54  ;;  %v23082_v53 = vld [vmem:[%s30809_s4 + $0xcc4] sm:$0xff]   ;;  %v23098_v54 = vld [vmem:[%s30809_s4 + $0xd4c] sm:$0xff]  }
 0x720   :  { %21555 = vmatprep.subr.bf16.mxu0 %v23068_v60  ;;  %v23079_v60 = vld [vmem:[%s30809_s4 + $0xd24] sm:$0xff]  }
 0x722   :  { %8148 = vmatpush1.bf16.msra.mxu1 %v23069_v30  ;;  %21556 = vmatpush3.bf16.msra.mxu0 %v23070_v45  ;;  %v23085_v30 = vld [vmem:[%s30809_s4 + $0xcec] sm:$0xff]  }
 0x723   :  { %8149 = vmatprep.subr.bf16.mxu1 %v31034_v52  ;;  %21557 = vmatprep.subr.bf16.mxu0 %v23071_v44  ;;  %v23086_v45 = vld [vmem:[%s30809_s4 + $0xccc] sm:$0xff]   ;;  %v23087_v44 = vld [vmem:[%s30809_s4 + $0xd34] sm:$0xff]  }
 0x726   :  { %8150 = vmatpush1.bf16.msra.mxu1 %v8011_v11  ;;  %21558 = vmatpush3.bf16.msra.mxu0 %v23073_v0  ;;  %v8227_v0 = vrot.slane %v26908_v2, %v31037_v13  ;;  %v23093_v11 = vld [vmem:[%s30809_s4 + $0xcfc] sm:$0xff]  }
 0x727   :  { %21559 = vmatprep.subr.bf16.mxu0 %v23074_v15  ;;  %21575 = vmatprep.subr.bf16.mxu1 %v23075_v49  ;;  %v8186_v15 = vrot.slane %v26902_v10, %v31037_v13  ;;  %v8247_v49 = vrot.slane %v26908_v2, %v31039_v5 }
 0x729   :  { %8166 = vmatmul.mubr.bf16.vlgmr.msra.gmra.mrb[28].mxu1 %v7552_v12  ;;  %v8264_v46 = vsel %vm366_vm12, %v8186_v15, %v8227_v0  ;;  %v23099_v12 = vld [vmem:[%s30809_s4 + $0xda4] sm:$0xff]  }
 0x72a   :  { %21560 = vmatpush3.bf16.msra.mxu0 %v23076_v23  ;;  %21576 = vmatpush3.bf16.msra.mxu1 %v23077_v41  ;;  %v23097_v23 = vld [vmem:[%s30809_s4 + $0xd5c] sm:$0xff]   ;;  %v8269_v41 = vsel %vm366_vm12, %v8206_v26, %v8247_v49  ;;  %v8272_v17 = vpack.c.bf16 %v8264_v46, %v8264_v46  ;;  %v23113_v46 = vld [vmem:[%s30809_s4 + $0xd84] sm:$0xff]   ;;  %v23114_v26 = vld [vmem:[%s30809_s4 + $0xdec] sm:$0xff]  }
 0x72b   :  { %8811 = vmatprep.mubr.bf16.mxu1 %v8275_v39  ;;  %21561 = vmatprep.subr.bf16.mxu0 %v23078_v42  ;;  %v8277_v42 = vpack.c.bf16 %v8269_v41, %v8269_v41  ;;  %v23101_v39 = vld [vmem:[%s30809_s4 + $0xd64] sm:$0xff]   ;;  %v23110_v49 = vld [vmem:[%s30809_s4 + $0xd7c] sm:$0xff]   ;;  %v23115_v41 = vld [vmem:[%s30809_s4 + $0xdcc] sm:$0xff]  }
 0x72c   :  { %21577 = vmatprep.subr.bf16.mxu1 %v23079_v60  ;;  %v23100_v60 = vld [vmem:[%s30809_s4 + $0xd0c] sm:$0xff]  }
 0x72e   :  { %21562 = vmatpush3.bf16.msra.mxu0 %v23080_v21  ;;  %21578 = vmatpush3.bf16.msra.mxu1 %v23081_v8  ;;  %v23102_v21 = vld [vmem:[%s30809_s4 + $0xd54] sm:$0xff]   ;;  %v23103_v8 = vld [vmem:[%s30809_s4 + $0xdac] sm:$0xff]  }
 0x72f   :  { %21563 = vmatprep.subr.bf16.mxu0 %v23082_v53  ;;  %21579 = vmatprep.subr.bf16.mxu1 %v23083_v28  ;;  %v8235_v53 = vrot.slane %v26908_v2, %v31038_v6  ;;  %v23104_v28 = vld [vmem:[%s30809_s4 + $0xd14] sm:$0xff]  }
 0x732   :  { %21564 = vmatpush3.bf16.msra.mxu0 %v23084_v1  ;;  %21580 = vmatpush3.bf16.msra.mxu1 %v23085_v30  ;;  %v23105_v1 = vld [vmem:[%s30809_s4 + $0xd6c] sm:$0xff]   ;;  %v8194_v30 = vrot.slane %v26902_v10, %v31038_v6 }
 0x733   :  { %21565 = vmatprep.subr.bf16.mxu0 %v23086_v45  ;;  %21581 = vmatprep.subr.bf16.mxu1 %v23087_v44  ;;  %v8255_v45 = vrot.slane %v26908_v2, %v31040_v33  ;;  %v23106_v44 = vld [vmem:[%s30809_s4 + $0xdb4] sm:$0xff]  }
 0x736   :  { %21566 = vmatpush3.bf16.msra.mxu0 %v23088_v4  ;;  %21582 = vmatpush3.bf16.msra.mxu1 %v23089_v9  ;;  %v8266_v4 = vsel %vm366_vm12, %v8194_v30, %v8235_v53  ;;  %v8214_v9 = vrot.slane %v26902_v10, %v31040_v33  ;;  %v23116_v53 = vld [vmem:[%s30809_s4 + $0xd8c] sm:$0xff]   ;;  %v23118_v30 = vld [vmem:[%s30809_s4 + $0xdd4] sm:$0xff]  }
 0x737   :  { %21567 = vmatprep.subr.bf16.mxu0 %v23090_v16  ;;  %21583 = vmatprep.subr.bf16.mxu1 %v23091_v62  ;;  %v23107_v16 = vld [vmem:[%s30809_s4 + $0xd74] sm:$0xff]   ;;  %v23108_v62 = vld [vmem:[%s30809_s4 + $0xddc] sm:$0xff]  }
 0x738   :  { %v8271_v0 = vsel %vm366_vm12, %v8214_v9, %v8255_v45  ;;  %v8243_v45 = vrot.slane %v26908_v2, %v31042_v24  ;;  %v8202_v9 = vrot.slane %v26902_v10, %v31042_v24  ;;  %v23121_v2 = vld [vmem:[%s30809_s4 + $0xe60] sm:$0xff]  }
 0x739   :  { %v8279_v15 = vpack.c.bf16 %v8271_v0, %v8271_v0  ;;  %v8957_v0 = vrot.slane %v27425_v38, %v31035_v7  ;;  %v23122_v10 = vld [vmem:[%s30809_s4 + $0xe04] sm:$0xff]  }
 0x73a   :  { %21568 = vmatpush3.bf16.msra.mxu0 %v23092_v36  ;;  %21584 = vmatpush3.bf16.msra.mxu1 %v23093_v11  ;;  %v8274_v36 = vpack.c.bf16 %v8266_v4, %v8266_v4  ;;  %v23109_v11 = vld [vmem:[%s30809_s4 + $0xdbc] sm:$0xff]  }
 0x73b   :  { %21585 = vmatprep.subr.bf16.mxu1 %v23094_v22  ;;  %21597 = vmatprep.subr.bf16.mxu0 %v23095_v43  ;;  %v23111_v22 = vld [vmem:[%s30809_s4 + $0xde4] sm:$0xff]   ;;  %v23120_v4 = vld [vmem:[%s30809_s4 + $0xdfc] sm:$0xff]  }
 0x73c   :  { %v23112_v43 = vld [vmem:[%s30809_s4 + $0xdc4] sm:$0xff]  }
 0x73d   :  { %8772 = vmatmul.mubr.bf16.vlgmr.msra.gmra.mrb[80].mxu0 %v8272_v17 }
 0x73e   :  { %21586 = vmatpush3.bf16.msra.mxu1 %v23096_v25  ;;  %21598 = vmatpush3.bf16.msra.mxu0 %v23097_v23 }
 0x73f   :  { %8851 = vmatprep.mubr.bf16.mxu0 %v8277_v42  ;;  %21587 = vmatprep.subr.bf16.mxu1 %v23098_v54 }
 0x740   :  { %21599 = vmatprep.subr.bf16.mxu0 %v23099_v12 }
 0x742   :  { %21588 = vmatpush3.bf16.msra.mxu1 %v23100_v60  ;;  %21600 = vmatpush3.bf16.msra.mxu0 %v23101_v39 }
 0x743   :  { %21589 = vmatprep.subr.bf16.mxu1 %v23102_v21  ;;  %21601 = vmatprep.subr.bf16.mxu0 %v23103_v8 }
 0x746   :  { %21590 = vmatpush3.bf16.msra.mxu1 %v23104_v28  ;;  %21602 = vmatpush3.bf16.msra.mxu0 %v23105_v1  ;;  %v23117_v28 = vld [vmem:[%s30809_s4 + $0xdf4] sm:$0xff]  }
 0x747   :  { %21603 = vmatprep.subr.bf16.mxu0 %v23106_v44  ;;  %8859 = vmatprep.subr.bf16.mxu1 %v31034_v52  ;;  %v23119_v44 = vld [vmem:[%s30809_s4 + $0xd94] sm:$0xff]  }
 0x749   :  { %8812 = vmatmul.mubr.bf16.vlgmr.msra.gmra.mrb[56].mxu1 %v8274_v36  ;;  %v2679_v36 = vpop.permute.xlu0 %2678 }
 0x74a   :  { %21604 = vmatpush3.bf16.msra.mxu0 %v23107_v16  ;;  %8860 = vmatpush1.bf16.msra.mxu1 %v23108_v62  ;;  %v8916_v16 = vrot.slane %v27417_v31, %v31035_v7  ;;  %v8268_v62 = vsel %vm366_vm12, %v8202_v9, %v8243_v45  ;;  %v23134_v45 = vld [vmem:[%s30809_s4 + $0xf60] sm:$0xff]  }
 0x74b   :  { %19036 = vmatprep.mubr.msk.bf16.mxu1 %vm303_vm8, %v8279_v15  ;;  %21605 = vmatprep.subr.bf16.mxu0 %v23109_v11  ;;  %v23123_v11 = vld [vmem:[%s30809_s4 + $0xe20] sm:$0xff]  }
 0x74c   :  { %8861 = vmatprep.subr.bf16.mxu1 %v31034_v52  ;;  %v8991_v15 = vsel %vm366_vm12, %v8916_v16, %v8957_v0  ;;  %v23136_v9 = vld [vmem:[%s30809_s4 + $0xf20] sm:$0xff]   ;;  %v23137_v0 = vld [vmem:[%s30809_s4 + $0xe88] sm:$0xff]  }
 0x74e   :  { %21606 = vmatpush3.bf16.msra.mxu0 %v23110_v49  ;;  %8862 = vmatpush1.bf16.msra.mxu1 %v23111_v22  ;;  %v27787_v49 = vpop.permute.xlu1 %2680  ;;  %v8276_v22 = vpack.c.bf16 %v8268_v62, %v8268_v62 }
 0x74f   :  { %21607 = vmatprep.subr.bf16.mxu0 %v23112_v43  ;;  %8863 = vmatprep.subr.bf16.mxu1 %v31034_v52  ;;  %v23124_v43 = vld [vmem:[%s30809_s4 + $0xe68] sm:$0xff]  }
 0x750   :  { %v21371_v25 = vpop.f32.mrb[56].mxu0  ;;  %v21393_v23 = vpop.f32.mrb[44].mxu1 }
 0x751   :  { %v21372_v17 = vpop.f32.mrb[57].mxu0  ;;  %v21394_v54 = vpop.f32.mrb[45].mxu1 }
 0x752   :  { %v21373_v12 = vadd.f32 %v21372_v17, %v21371_v25  ;;  %v21395_v42 = vadd.f32 %v21394_v54, %v21393_v23  ;;  %v21374_v60 = vpop.f32.mrb[58].mxu0  ;;  %v21396_v39 = vpop.f32.mrb[46].mxu1  ;;  %21608 = vmatpush3.bf16.msra.mxu0 %v23113_v46  ;;  %8864 = vmatpush1.bf16.msra.mxu1 %v23114_v26  ;;  %v8999_v46 = vpack.c.bf16 %v8991_v15, %v8991_v15  ;;  %v23125_v26 = vld [vmem:[%s30809_s4 + $0xe0c] sm:$0xff]   ;;  %v23128_v54 = vld [vmem:[%s30809_s4 + $0xe14] sm:$0xff]  }
 0x753   :  { %v21375_v21 = vpop.f32.mrb[59].mxu0  ;;  %v21397_v8 = vpop.f32.mrb[47].mxu1  ;;  %21609 = vmatprep.subr.bf16.mxu0 %v23115_v41  ;;  %8865 = vmatprep.subr.bf16.mxu1 %v31034_v52  ;;  %v23126_v25 = vld [vmem:[%s30809_s4 + $0xe28] sm:$0xff]   ;;  %v23127_v23 = vld [vmem:[%s30809_s4 + $0xe70] sm:$0xff]  }
 0x754   :  { %v27755_v1 = vadd.f32 %v21395_v42, %v21373_v12  ;;  %v27803_v41 = vpop.permute.xlu0 %2682  ;;  %v27805_v17 = vpop.permute.xlu1 %2684  ;;  %v23129_v12 = vld [vmem:[%s30809_s4 + $0xe30] sm:$0xff]   ;;  %v23130_v42 = vld [vmem:[%s30809_s4 + $0xe78] sm:$0xff]   ;;  %v8932_v8 = vrot.slane %v27417_v31, %v31039_v5 }
 0x755   :  { %v23131_v60 = vld [vmem:[%s30809_s4 + $0xe1c] ss:$0 sps:$4 sm:$0x33]  }
 0x756   :  { %21610 = vmatpush3.bf16.msra.mxu0 %v23116_v53  ;;  %8866 = vmatpush1.bf16.msra.mxu1 %v23117_v28  ;;  %v23132_v21 = vld [vmem:[%s30809_s4 + $0xe38] sm:$0xff]   ;;  %v8737_v28 = vsel %vm3653_vm1, %v23131_v60, 0 }
 0x757   :  { %21611 = vmatprep.subr.bf16.mxu0 %v23118_v30  ;;  %8867 = vmatprep.subr.bf16.mxu1 %v31034_v52  ;;  %v23133_v30 = vld [vmem:[%s30809_s4 + $0xe80] sm:$0xff]  }
 0x758   :  { %v27820_v39 = vpop.permute.xlu0 %2686  ;;  %v27827_v53 = vpop.permute.xlu1 %2688 }
 0x75a   :  { %21612 = vmatpush3.bf16.msra.mxu0 %v23119_v44  ;;  %8868 = vmatpush1.bf16.msra.mxu1 %v23120_v4  ;;  %v8973_v44 = vrot.slane %v27425_v38, %v31039_v5  ;;  %v23135_v4 = vld [vmem:[%s30809_s4 + $0xe40] sm:$0xff]  }
 0x75b   :  { %8869 = vmatprep.subr.bf16.mxu1 %v31034_v52  ;;  %21619 = vmatprep.subr.bf16.mxu0 %v23121_v2  ;;  %v31123_v2 = vld [vmem:[#allocation45_spill] sm:$0xff] }
 0x75c   :  { %v8995_v16 = vsel %vm366_vm12, %v8932_v8, %v8973_v44  ;;  %v8278_v62 = vpack.c.bf16 %v31123_v2, %v31123_v2  ;;  %v27856_v15 = vpop.permute.xlu1 %2692 }
 0x75d   :  { %8852 = vmatmul.mubr.bf16.vlgmr.msra.gmra.mrb[84].mxu0 %v8276_v22  ;;  %v9003_v22 = vpack.c.bf16 %v8995_v16, %v8995_v16  ;;  %v8912_v16 = vrot.slane %v27417_v31, %v31037_v13 }
 0x75e   :  { %8870 = vmatpush1.bf16.msra.mxu1 %v23122_v10  ;;  %21620 = vmatpush3.bf16.msra.mxu0 %v23123_v11  ;;  %v27851_v10 = vpop.permute.xlu0 %2690  ;;  %v23138_v11 = vld [vmem:[%s30809_s4 + $0xf68] sm:$0xff]  }
 0x75f   :  { %9497 = vmatprep.mubr.bf16.mxu0 %v8999_v46  ;;  %8871 = vmatprep.subr.bf16.mxu1 %v31034_v52  ;;  %v23139_v46 = vld [vmem:[%s30809_s4 + $0xe48] sm:$0xff]  }
 0x760   :  { %21621 = vmatprep.subr.bf16.mxu0 %v23124_v43  ;;  %v2708_v43 = vsel %vm50_vm2, %v2679_v36, %v27787_v49  ;;  %v23142_v36 = vld [vmem:[%s30809_s4 + $0xf70] sm:$0xff]  }
 0x762   :  { %8872 = vmatpush1.bf16.msra.mxu1 %v23125_v26  ;;  %21622 = vmatpush3.bf16.msra.mxu0 %v23126_v25  ;;  %v23140_v26 = vld [vmem:[%s30809_s4 + $0xf28] sm:$0xff]  }
 0x763   :  { %8873 = vmatprep.subr.bf16.mxu1 %v31034_v52  ;;  %21623 = vmatprep.subr.bf16.mxu0 %v23127_v23  ;;  %v23141_v23 = vld [vmem:[%s30809_s4 + $0xe90] sm:$0xff]  }
 0x766   :  { %8874 = vmatpush1.bf16.msra.mxu1 %v23128_v54  ;;  %21624 = vmatpush3.bf16.msra.mxu0 %v23129_v12 }
 0x767   :  { %8875 = vmatprep.subr.bf16.mxu1 %v31034_v52  ;;  %21625 = vmatprep.subr.bf16.mxu0 %v23130_v42  ;;  %v31124_v42 = vld [vmem:[#allocation12_spill] sm:$0xff] }
 0x768   :  { %v2755_v60 = vmax.f32 %v31124_v42, %v2708_v43  ;;  %v31125_v43 = vld [vmem:[#allocation9_spill] sm:$0xff] }
 0x76a   :  { %8876 = vmatpush1.bf16.msra.mxu1 %v8737_v28  ;;  %21626 = vmatpush3.bf16.msra.mxu0 %v23132_v21 }
 0x76b   :  { %21627 = vmatprep.subr.bf16.mxu0 %v23133_v30  ;;  %21663 = vmatprep.subr.bf16.mxu1 %v23134_v45  ;;  %v2709_v30 = vsel %vm50_vm2, %v27787_v49, %v27803_v41  ;;  %v2710_v49 = vsel %vm50_vm2, %v27803_v41, %v27805_v17 }
 0x76d   :  { %8892 = vmatmul.mubr.bf16.vlgmr.msra.gmra.mrb[28].mxu1 %v8278_v62 }
 0x76e   :  { %21628 = vmatpush3.bf16.msra.mxu0 %v23135_v4  ;;  %21664 = vmatpush3.bf16.msra.mxu1 %v23136_v9  ;;  %v23143_v4 = vld [vmem:[%s30809_s4 + $0xe50] sm:$0xff]  }
 0x76f   :  { %9577 = vmatprep.mubr.bf16.mxu1 %v9003_v22  ;;  %21629 = vmatprep.subr.bf16.mxu0 %v23137_v0  ;;  %v23144_v9 = vld [vmem:[%s30809_s4 + $0xf30] sm:$0xff]   ;;  %v23145_v0 = vld [vmem:[%s30809_s4 + $0xe98] sm:$0xff]   ;;  %v8953_v22 = vrot.slane %v27425_v38, %v31037_v13 }
 0x770   :  { %v21415_v25 = vpop.f32.mrb[60].mxu0  ;;  %21665 = vmatprep.subr.bf16.mxu1 %v23138_v11  ;;  %v23146_v11 = vld [vmem:[%s30809_s4 + $0xf78] sm:$0xff]  }
 0x771   :  { %v21416_v54 = vpop.f32.mrb[61].mxu0  ;;  %v2977_v12 = vpop.permute.xlu0 %2976 }
 0x772   :  { %v21417_v21 = vadd.f32 %v21416_v54, %v21415_v25  ;;  %v2979_v8 = vpop.permute.xlu1 %2978  ;;  %v21418_v28 = vpop.f32.mrb[62].mxu0  ;;  %21630 = vmatpush3.bf16.msra.mxu0 %v23139_v46  ;;  %21666 = vmatpush3.bf16.msra.mxu1 %v23140_v26  ;;  %v2756_v46 = vmax.f32 %v31125_v43, %v2709_v30  ;;  %v31126_v26 = vld [vmem:[#allocation30_spill] sm:$0xff]  ;;  %v8965_v25 = vrot.slane %v27425_v38, %v31036_v56 }
 0x773   :  { %v3006_v45 = vsel %vm94_vm6, %v2977_v12, %v2979_v8  ;;  %v21419_v44 = vpop.f32.mrb[63].mxu0  ;;  %21631 = vmatprep.subr.bf16.mxu0 %v23141_v23  ;;  %21667 = vmatprep.subr.bf16.mxu1 %v23142_v36  ;;  %v31127_v23 = vld [vmem:[#allocation11_spill] sm:$0xff]  ;;  %v2711_v54 = vsel %vm50_vm2, %v27805_v17, %v27820_v39  ;;  %v8990_v28 = vsel %vm366_vm12, %v8912_v16, %v8953_v22 }
 0x774   :  { %v6676_v2 = vadd.f32 %v21417_v21, %v27755_v1  ;;  %v3053_v62 = vmax.f32 %v2755_v60, %v3006_v45  ;;  %v8924_v1 = vrot.slane %v27417_v31, %v31036_v56  ;;  %v2757_v36 = vmax.f32 %v31127_v23, %v2710_v49  ;;  %v23147_v60 = vld [vmem:[%s30809_s4 + $0xe58] sm:$0xff]   ;;  %v23149_v44 = vld [vmem:[%s30809_s4 + $0xee0] sm:$0xff]   ;;  %v23153_v23 = vld [vmem:[%s30809_s4 + $0xee8] sm:$0xff]  }
 0x775   :  { %v23148_v21 = vld [vmem:[%s30809_s4 + $0xf38] sm:$0xff]   ;;  %v2712_v30 = vsel %vm50_vm2, %v27820_v39, %v27827_v53  ;;  %v8998_v49 = vpack.c.bf16 %v8990_v28, %v8990_v28  ;;  %v31128_v39 = vld [vmem:[#allocation17_spill] sm:$0xff] }
 0x776   :  { %v27899_v41 = vadd.f32 %v31126_v26, %v6676_v2  ;;  %3077 = vst [vmem:[#allocation3 + $0x100] sm:$0xff] %v3053_v62  ;;  %v2983_v12 = vpop.permute.xlu1 %2982  ;;  %v2981_v42 = vpop.permute.xlu0 %2980  ;;  %21632 = vmatpush3.bf16.msra.mxu0 %v23143_v4  ;;  %21668 = vmatpush3.bf16.msra.mxu1 %v23144_v9  ;;  %v23150_v4 = vld [vmem:[%s30809_s4 + $0xf80] sm:$0xff]   ;;  %v8993_v2 = vsel %vm366_vm12, %v8924_v1, %v8965_v25 }
 0x777   :  { %v3007_v17 = vsel %vm94_vm6, %v2979_v8, %v2981_v42  ;;  %v3008_v45 = vsel %vm94_vm6, %v2981_v42, %v2983_v12  ;;  %21633 = vmatprep.subr.bf16.mxu0 %v23145_v0  ;;  %21669 = vmatprep.subr.bf16.mxu1 %v23146_v11  ;;  %v2758_v62 = vmax.f32 %v31128_v39, %v2711_v54  ;;  %v31129_v8 = vld [vmem:[#allocation23_spill] sm:$0xff] }
 0x778   :  { %v3054_v9 = vmax.f32 %v2756_v46, %v3007_v17  ;;  %v3055_v16 = vmax.f32 %v2757_v36, %v3008_v45  ;;  %v2759_v22 = vmax.f32 %v31129_v8, %v2712_v30  ;;  %v2713_v0 = vsel %vm50_vm2, %v27827_v53, %v27851_v10  ;;  %v23151_v46 = vld [vmem:[%s30809_s4 + $0xea0] sm:$0xff]   ;;  %v23158_v8 = vld [vmem:[%s30809_s4 + $0xf90] sm:$0xff]  }
 0x779   :  { %v2714_v26 = vsel %vm50_vm2, %v27851_v10, %v27856_v15  ;;  %v23152_v53 = vld [vmem:[%s30809_s4 + $0xf40] sm:$0xff]   ;;  %v9001_v42 = vpack.c.bf16 %v8993_v2, %v8993_v2  ;;  %v23154_v10 = vld [vmem:[%s30809_s4 + $0xf88] sm:$0xff]   ;;  %v23157_v2 = vld [vmem:[%s30809_s4 + $0xef0] sm:$0xff]  }
 0x77a   :  { %3078 = vst [vmem:[#allocation3 + $0x108] sm:$0xff] %v3054_v9  ;;  %3079 = vst [vmem:[#allocation3 + $0x110] sm:$0xff] %v3055_v16  ;;  %v2987_v11 = vpop.permute.xlu1 %2986  ;;  %v2985_v43 = vpop.permute.xlu0 %2984  ;;  %21634 = vmatpush3.bf16.msra.mxu0 %v23147_v60  ;;  %21670 = vmatpush3.bf16.msra.mxu1 %v23148_v21  ;;  %v31131_v21 = vld [vmem:[#allocation18_spill] sm:$0xff]  ;;  %v31132_v30 = vld [vmem:[#allocation16_spill] sm:$0xff] }
 0x77b   :  { %v3009_v1 = vsel %vm94_vm6, %v2983_v12, %v2985_v43  ;;  %v3010_v25 = vsel %vm94_vm6, %v2985_v43, %v2987_v11  ;;  %21641 = vmatprep.subr.bf16.mxu0 %v23149_v44  ;;  %21671 = vmatprep.subr.bf16.mxu1 %v23150_v4  ;;  %v31130_v12 = vld [vmem:[#allocation35_spill] sm:$0xff]  ;;  %v2760_v28 = vmax.f32 %v31131_v21, %v2713_v0  ;;  %v23155_v4 = vld [vmem:[%s30809_s4 + $0xea8] sm:$0xff]  }
 0x77c   :  { %v3056_v36 = vmax.f32 %v2758_v62, %v3009_v1  ;;  %v3057_v54 = vmax.f32 %v2759_v22, %v3010_v25  ;;  %v2762_v60 = vmax.f32 %v31130_v12, %v27856_v15  ;;  %v2761_v17 = vmax.f32 %v31132_v30, %v2714_v26  ;;  %v23161_v26 = vld [vmem:[%s30809_s4 + $0xef8] sm:$0xff]  }
 0x77d   :  { %9498 = vmatmul.mubr.bf16.vlgmr.msra.gmra.mrb[88].mxu0 %v8998_v49  ;;  %v23156_v49 = vld [vmem:[%s30809_s4 + $0xf48] sm:$0xff]   ;;  %v23162_v25 = vld [vmem:[%s30809_s4 + $0xf98] sm:$0xff]   ;;  %v8969_v21 = vrot.slane %v27425_v38, %v31042_v24  ;;  %v8940_v30 = vrot.slane %v27417_v31, %v31040_v33 }
 0x77e   :  { %3080 = vst [vmem:[#allocation3 + $0x118] sm:$0xff] %v3056_v36  ;;  %3081 = vst [vmem:[#allocation3 + $0x120] sm:$0xff] %v3057_v54  ;;  %v2991_v45 = vpop.permute.xlu1 %2990  ;;  %v2989_v44 = vpop.permute.xlu0 %2988  ;;  %21642 = vmatpush3.bf16.msra.mxu0 %v23151_v46  ;;  %9537 = vmatprep.mubr.bf16.mxu0 %v9001_v42  ;;  %v23160_v46 = vld [vmem:[%s30809_s4 + $0xf50] sm:$0xff]   ;;  %v8928_v36 = vrot.slane %v27417_v31, %v31042_v24 }
 0x77f   :  { %v3060_v9 = vmax.f32 %v2762_v60, %v2991_v45  ;;  %v3011_v16 = vsel %vm94_vm6, %v2987_v11, %v2989_v44  ;;  %v3012_v15 = vsel %vm94_vm6, %v2989_v44, %v2991_v45  ;;  %21672 = vmatpush3.bf16.msra.mxu1 %v23152_v53  ;;  %21643 = vmatprep.subr.bf16.mxu0 %v23153_v23  ;;  %v23159_v11 = vld [vmem:[%s30809_s4 + $0xeb0] sm:$0xff]   ;;  %v23164_v60 = vld [vmem:[%s30809_s4 + $0xf58] sm:$0xff]  }
 0x780   :  { %v3058_v39 = vmax.f32 %v2760_v28, %v3011_v16  ;;  %v3059_v62 = vmax.f32 %v2761_v17, %v3012_v15  ;;  %21673 = vmatprep.subr.bf16.mxu1 %v23154_v10  ;;  %v23165_v28 = vld [vmem:[%s30809_s4 + $0xf00] sm:$0xff]  }
 0x781   :  { %3084 = vst.msk [vmem:[#allocation3 + $0x138] sm:$0xff] %vm303_vm8, %v3060_v9  ;;  %v11806_v9 = vld [vmem:[#allocation3 + $0x44] ss:$8 sm:$0xf0] }
 0x782   :  { %3082 = vst [vmem:[#allocation3 + $0x128] sm:$0xff] %v3058_v39  ;;  %3083 = vst [vmem:[#allocation3 + $0x130] sm:$0xff] %v3059_v62  ;;  %v2087_v22 = vpop.permute.xlu1 %2086  ;;  %v2085_v0 = vpop.permute.xlu0 %2084  ;;  %21644 = vmatpush3.bf16.msra.mxu0 %v23155_v4  ;;  %v8981_v4 = vrot.slane %v27425_v38, %v31040_v33  ;;  %v23167_v39 = vld [vmem:[%s30809_s4 + $0xfa0] sm:$0xff]  }
 0x783   :  { %v27973_v43 = vsel %vm50_vm2, %v2085_v0, %v2087_v22  ;;  %21674 = vmatpush3.bf16.msra.mxu1 %v23156_v49  ;;  %21645 = vmatprep.subr.bf16.mxu0 %v23157_v2  ;;  %v23166_v2 = vld [vmem:[%s30809_s4 + $0xec0] sm:$0xff]  }
 0x784   :  { %v2185_v1 = vmax.f32 %v31114_v58, %v27973_v43  ;;  %21675 = vmatprep.subr.bf16.mxu1 %v23158_v8  ;;  %v23163_v58 = vld [vmem:[%s30809_s4 + $0xeb8] sm:$0xff]   ;;  %v8997_v38 = vsel %vm366_vm12, %v8940_v30, %v8981_v4 }
 0x785   :  { %v11805_v62 = vld [vmem:[#allocation3 + $0x44] ss:$8 sm:$0xf]  ;;  %v11809_v0 = vld [vmem:[#allocation3 + $0x100] ss:$8 sm:$0xf] }
 0x786   :  { %v2091_v53 = vpop.permute.xlu1 %2090  ;;  %2249 = vrot.lane.b32.xlu0 %v2185_v1, %s23848_s12  ;;  %v2089_v23 = vpop.permute.xlu0 %2088  ;;  %21646 = vmatpush3.bf16.msra.mxu0 %v23159_v11 }
 0x787   :  { %v27990_v54 = vsel %vm50_vm2, %v2087_v22, %v2089_v23  ;;  %v27993_v42 = vsel %vm50_vm2, %v2089_v23, %v2091_v53  ;;  %21676 = vmatpush3.bf16.msra.mxu1 %v23160_v46  ;;  %21647 = vmatprep.subr.bf16.mxu0 %v23161_v26  ;;  %v28040_v22 = vor.u32 %v11806_v9, %v11805_v62  ;;  %v12531_v62 = vld [vmem:[#allocation3 + $0x45] ss:$8 sm:$0xf] }
 0x788   :  { %v2186_v10 = vmax.f32 %v31115_v47, %v27990_v54  ;;  %v2187_v12 = vmax.f32 %v31116_v14, %v27993_v42  ;;  %21677 = vmatprep.subr.bf16.mxu1 %v23162_v25  ;;  %v8994_v14 = vsel %vm366_vm12, %v8928_v36, %v8969_v21  ;;  %v9005_v23 = vpack.c.bf16 %v8997_v38, %v8997_v38  ;;  %v23173_v38 = vld [vmem:[%s30809_s4 + $0xfb0] sm:$0xff]  }
 0x789   :  { %v11810_v31 = vld [vmem:[#allocation3 + $0x100] ss:$8 sm:$0xf0]  ;;  %v9002_v49 = vpack.c.bf16 %v8994_v14, %v8994_v14  ;;  %v11832_v30 = vrot.slane %v28040_v22, %v31042_v24  ;;  %v11844_v9 = vrot.slane %v28040_v22, %v31040_v33 }
 0x78a   :  { %v2095_v17 = vpop.permute.xlu1 %2094  ;;  %2253 = vrot.lane.b32.xlu0 %v2187_v12, %s23848_s12  ;;  %2251 = vrot.lane.b32.xlu1 %v2186_v10, %s23848_s12  ;;  %v2093_v47 = vpop.permute.xlu0 %2092  ;;  %v28050_v1 = vor.u32 %v11810_v31, %v11809_v0  ;;  %v23169_v12 = vld [vmem:[%s30809_s4 + $0xec8] sm:$0xff]  }
 0x78b   :  { %v28016_v45 = vsel %vm50_vm2, %v2091_v53, %v2093_v47  ;;  %v28019_v44 = vsel %vm50_vm2, %v2093_v47, %v2095_v17  ;;  %21648 = vmatpush3.bf16.msra.mxu0 %v23163_v58  ;;  %21678 = vmatpush3.bf16.msra.mxu1 %v23164_v60  ;;  %v23170_v60 = vld [vmem:[%s30809_s4 + $0xfa8] sm:$0xff]  }
 0x78c   :  { %v2188_v16 = vmax.f32 %v31117_v35, %v28016_v45  ;;  %v2189_v15 = vmax.f32 %v31118_v20, %v28019_v44  ;;  %21649 = vmatprep.subr.bf16.mxu0 %v23165_v28  ;;  %9585 = vmatprep.subr.bf16.mxu1 %v31034_v52  ;;  %v23168_v20 = vld [vmem:[%s30809_s4 + $0xf08] sm:$0xff]   ;;  %v11824_v28 = vrot.slane %v28040_v22, %v31038_v6 }
 0x78d   :  { %v11865_v14 = vrot.slane %v28050_v1, %v31038_v6  ;;  %v11873_v4 = vrot.slane %v28050_v1, %v31042_v24  ;;  %v11885_v31 = vrot.slane %v28050_v1, %v31040_v33 }
 0x78e   :  { %v28035_v8 = vpop.permute.xlu1 %2098  ;;  %v2097_v35 = vpop.permute.xlu0 %2096  ;;  %9578 = vmatmul.mubr.bf16.vlgmr.msra.gmra.mrb[60].mxu1 %v9002_v49  ;;  %2257 = vrot.lane.b32.xlu0 %v2189_v15, %s23848_s12 }
 0x78f   :  { %v28044_v11 = vsel %vm50_vm2, %v2095_v17, %v2097_v35  ;;  %v28048_v46 = vsel %vm50_vm2, %v2097_v35, %v28035_v8  ;;  %2255 = vrot.lane.b32.xlu1 %v2188_v16, %s23848_s12  ;;  %21650 = vmatpush3.bf16.msra.mxu0 %v23166_v2  ;;  %v12532_v17 = vld [vmem:[#allocation3 + $0x45] ss:$8 sm:$0xf0]  ;;  %v12536_v16 = vld [vmem:[#allocation3 + $0x101] ss:$8 sm:$0xf0]  ;;  %v2192_v15 = vmax.f32 %v31121_v57, %v28035_v8 }
 0x790   :  { %v21437_v26 = vpop.f32.mrb[64].mxu0  ;;  %v2190_v25 = vmax.f32 %v31119_v3, %v28044_v11  ;;  %v2191_v53 = vmax.f32 %v31120_v55, %v28048_v46  ;;  %9586 = vmatpush1.bf16.msra.mxu1 %v23167_v39  ;;  %19207 = vmatprep.mubr.msk.bf16.mxu1 %vm303_vm8, %v9005_v23  ;;  %v23171_v55 = vld [vmem:[%s30809_s4 + $0xf10] sm:$0xff]   ;;  %v23174_v57 = vld [vmem:[%s30809_s4 + $0xf18] sm:$0xff]   ;;  %v28098_v0 = vsel %vm366_vm12, %v11832_v30, %v11873_v4  ;;  %vm23874_vm2 = vmmov 0  }
 0x791   :  { %v21438_v36 = vpop.f32.mrb[65].mxu0  ;;  %21651 = vmatprep.subr.bf16.mxu0 %v23168_v20  ;;  %9587 = vmatprep.subr.bf16.mxu1 %v31034_v52  ;;  %v23172_v39 = vld [vmem:[%s30809_s4 + $0xed0] sm:$0xff]   ;;  %v28095_v20 = vsel %vm366_vm12, %v11824_v28, %v11865_v14  ;;  %v23177_v28 = vld [vmem:[%s30809_s4 + $0x1024] sm:$0xff]  }
 0x792   :  { %v21439_v58 = vadd.f32 %v21438_v36, %v21437_v26  ;;  %v21440_v10 = vpop.f32.mrb[66].mxu0  ;;  %2261 = vrot.lane.b32.xlu0 %v2191_v53, %s23848_s12  ;;  %v28101_v26 = vsel %vm366_vm12, %v11844_v9, %v11885_v31  ;;  %v12535_v53 = vld [vmem:[#allocation3 + $0x101] ss:$8 sm:$0xf] }
 0x793   :  { %v21441_v3 = vpop.f32.mrb[67].mxu0  ;;  %2259 = vrot.lane.b32.xlu1 %v2190_v25, %s23848_s12  ;;  %21652 = vmatpush3.bf16.msra.mxu0 %v23169_v12  ;;  %v28103_v25 = vor.u32 %v12532_v17, %v12531_v62  ;;  %v28107_v36 = vor.u32 %v12536_v16, %v12535_v53  ;;  %v11840_v10 = vrot.slane %v28040_v22, %v31041_v34  ;;  %v13261_v17 = vld [vmem:[#allocation3 + $0x102] ss:$8 sm:$0xf] }
 0x794   :  { %v21459_v21 = vpop.f32.mrb[48].mxu1  ;;  %9588 = vmatpush1.bf16.msra.mxu1 %v23170_v60  ;;  %21653 = vmatprep.subr.bf16.mxu0 %v23171_v55  ;;  %v11881_v12 = vrot.slane %v28050_v1, %v31041_v34  ;;  %v13262_v60 = vld [vmem:[#allocation3 + $0x102] ss:$8 sm:$0xf0]  ;;  %v9642_v55 = vrot.slane %v27478_v18, %v31035_v7  ;;  %v9000_v62 = vpack.c.bf16 %v27455_v37, %v27455_v37 }
 0x795   :  { %v21460_v47 = vpop.f32.mrb[49].mxu1  ;;  %9589 = vmatprep.subr.bf16.mxu1 %v31034_v52  ;;  %v23175_v3 = vld [vmem:[%s30809_s4 + $0xed8] sm:$0xff]   ;;  %v12558_v14 = vrot.slane %v28103_v25, %v31042_v24  ;;  %v28133_v9 = vor.u32 %v13262_v60, %v13261_v17  ;;  %v12599_v31 = vrot.slane %v28107_v36, %v31042_v24  ;;  %v12570_v16 = vrot.slane %v28103_v25, %v31040_v33  ;;  %v23180_v53 = vld [vmem:[%s30809_s4 + $0x102c] sm:$0xff]  }
 0x796   :  { %v21461_v49 = vadd.f32 %v21460_v47, %v21459_v21  ;;  %v21462_v2 = vpop.f32.mrb[50].mxu1  ;;  %v13258_v21 = vld [vmem:[#allocation3 + $0x46] ss:$8 sm:$0xf0]  ;;  %v28127_v30 = vsel %vm366_vm12, %v11840_v10, %v11881_v12  ;;  %v9683_v47 = vrot.slane %v27486_v48, %v31035_v7  ;;  %v12566_v37 = vrot.slane %v28103_v25, %v31041_v34 }
 0x797   :  { %v21463_v35 = vpop.f32.mrb[51].mxu1  ;;  %2263 = vrot.lane.b32.xlu1 %v2192_v15, %s23848_s12  ;;  %21654 = vmatpush3.bf16.msra.mxu0 %v23172_v39  ;;  %v13257_v4 = vld [vmem:[#allocation3 + $0x46] ss:$8 sm:$0xf]  ;;  %v12611_v15 = vrot.slane %v28107_v36, %v31040_v33 }
 0x798   :  { %v28105_v23 = vadd.f32 %v21461_v49, %v21439_v58  ;;  %9590 = vmatpush1.bf16.msra.mxu1 %v23173_v38  ;;  %v23176_v58 = vld [vmem:[%s30809_s4 + $0xfb8] sm:$0xff]   ;;  %21655 = vmatprep.subr.bf16.mxu0 %v23174_v57  ;;  %v28141_v49 = vor.u32 %v13258_v21, %v13257_v4  ;;  %v23178_v2 = vld [vmem:[%s30809_s4 + $0xfc0] sm:$0xff]   ;;  %v9717_v38 = vsel %vm366_vm12, %v9642_v55, %v9683_v47  ;;  %v23181_v21 = vld [vmem:[%s30809_s4 + $0xfc8] sm:$0xff]  }
 0x799   :  { %9591 = vmatprep.subr.bf16.mxu1 %v31034_v52  ;;  %v23179_v39 = vld [vmem:[%s30809_s4 + $0xfe4] sm:$0xff]   ;;  %v28154_v35 = vsel %vm366_vm12, %v12558_v14, %v12599_v31  ;;  %v28157_v57 = vsel %vm366_vm12, %v12570_v16, %v12611_v15  ;;  %v9725_v60 = vpack.c.bf16 %v9717_v38, %v9717_v38  ;;  %v13325_v47 = vrot.slane %v28133_v9, %v31042_v24  ;;  %v23183_v4 = vld [vmem:[%s30809_s4 + $0x1034] sm:$0xff]  }
 0x79a   :  { %v13984_v10 = vld [vmem:[#allocation3 + $0x47] ss:$8 sm:$0xf0]  ;;  %v13988_v12 = vld [vmem:[#allocation3 + $0x103] ss:$8 sm:$0xf0]  ;;  %v13276_v17 = vrot.slane %v28141_v49, %v31038_v6  ;;  %v13284_v16 = vrot.slane %v28141_v49, %v31042_v24 }
 0x79b   :  { %21656 = vmatpush3.bf16.msra.mxu0 %v23175_v3  ;;  %v12607_v3 = vrot.slane %v28107_v36, %v31041_v34  ;;  %v13983_v55 = vld [vmem:[#allocation3 + $0x47] ss:$8 sm:$0xf]  ;;  %v13987_v14 = vld [vmem:[#allocation3 + $0x103] ss:$8 sm:$0xf] }
 0x79c   :  { %9592 = vmatpush1.bf16.msra.mxu1 %v23176_v58  ;;  %21685 = vmatprep.subr.bf16.mxu0 %v23177_v28  ;;  %v13317_v58 = vrot.slane %v28133_v9, %v31038_v6  ;;  %v23182_v28 = vld [vmem:[%s30809_s4 + $0xfec] sm:$0xff]   ;;  %v28187_v15 = vor.u32 %v13984_v10, %v13983_v55  ;;  %v28195_v38 = vsel %vm366_vm12, %v13284_v16, %v13325_v47  ;;  %v23188_v47 = vld [vmem:[%s30809_s4 + $0xffc] sm:$0xff]  }
 0x79d   :  { %9593 = vmatprep.subr.bf16.mxu1 %v31034_v52  ;;  %v28183_v31 = vsel %vm366_vm12, %v12566_v37, %v12607_v3  ;;  %v23184_v10 = vld [vmem:[%s30809_s4 + $0xfd0] sm:$0xff]   ;;  %v13292_v3 = vrot.slane %v28141_v49, %v31041_v34  ;;  %v23190_v16 = vld [vmem:[%s30809_s4 + $0xfe0] ss:$0 sps:$4 sm:$0x33]  }
 0x79e   :  { %9538 = vmatmul.mubr.bf16.vlgmr.msra.gmra.mrb[92].mxu0 %v9000_v62  ;;  %v13296_v62 = vrot.slane %v28141_v49, %v31040_v33  ;;  %v14002_v55 = vrot.slane %v28187_v15, %v31038_v6 }
 0x79f   :  { %21686 = vmatpush3.bf16.msra.mxu0 %v23179_v39  ;;  %10223 = vmatprep.mubr.bf16.mxu0 %v9725_v60  ;;  %v28192_v39 = vsel %vm366_vm12, %v13276_v17, %v13317_v58  ;;  %v13337_v60 = vrot.slane %v28133_v9, %v31040_v33  ;;  %v13333_v58 = vrot.slane %v28133_v9, %v31041_v34  ;;  %v23187_v17 = vld [vmem:[%s30809_s4 + $0xfd8] sm:$0xff]  }
 0x7a0   :  { %9594 = vmatpush1.bf16.msra.mxu1 %v23178_v2  ;;  %v28189_v2 = vor.u32 %v13988_v12, %v13987_v14  ;;  %21687 = vmatprep.subr.bf16.mxu0 %v23180_v53  ;;  %v23185_v53 = vld [vmem:[%s30809_s4 + $0xff4] sm:$0xff]   ;;  %v23186_v12 = vld [vmem:[%s30809_s4 + $0x103c] sm:$0xff]  }
 0x7a1   :  { %9595 = vmatprep.subr.bf16.mxu1 %v31034_v52  ;;  %v28212_v37 = vsel %vm366_vm12, %v13296_v62, %v13337_v60  ;;  %v14010_v62 = vrot.slane %v28187_v15, %v31042_v24 }
 0x7a2   :  { %v14051_v60 = vrot.slane %v28189_v2, %v31042_v24 }
 0x7a3   :  { %21688 = vmatpush3.bf16.msra.mxu0 %v23182_v28  ;;  %v28223_v28 = vsel %vm366_vm12, %v13292_v3, %v13333_v58  ;;  %v14059_v3 = vrot.slane %v28189_v2, %v31041_v34 }
 0x7a4   :  { %9596 = vmatpush1.bf16.msra.mxu1 %v23181_v21  ;;  %21689 = vmatprep.subr.bf16.mxu0 %v23183_v4  ;;  %v14043_v21 = vrot.slane %v28189_v2, %v31038_v6  ;;  %31133 = vst [vmem:[#allocation31_spill] sm:$0xff] %v28223_v28  ;;  %v23189_v4 = vld [vmem:[%s30809_s4 + $0x1044] sm:$0xff]   ;;  %v28254_v58 = vsel %vm366_vm12, %v14010_v62, %v14051_v60  ;;  %v9463_v62 = vsel %vm3653_vm1, %v23190_v16, 0 }
 0x7a5   :  { %9597 = vmatprep.subr.bf16.mxu1 %v31034_v52  ;;  %31135 = vst [vmem:[#allocation33_spill] sm:$0xff] %v28254_v58  ;;  %v23195_v16 = vld [vmem:[%s30809_s4 + $0x10e4] sm:$0xff]  }
 0x7a6   :  { %v28232_v14 = vsel %vm366_vm12, %v14002_v55, %v14043_v21  ;;  %v23191_v55 = vld [vmem:[%s30809_s4 + $0x1004] sm:$0xff]   ;;  %v9658_v21 = vrot.slane %v27478_v18, %v31039_v5 }
 0x7a7   :  { %21690 = vmatpush3.bf16.msra.mxu0 %v23185_v53  ;;  %31134 = vst [vmem:[#allocation32_spill] sm:$0xff] %v28232_v14  ;;  %v14063_v53 = vrot.slane %v28189_v2, %v31040_v33 }
 0x7a8   :  { %9598 = vmatpush1.bf16.msra.mxu1 %v23184_v10  ;;  %21691 = vmatprep.subr.bf16.mxu0 %v23186_v12  ;;  %v14022_v10 = vrot.slane %v28187_v15, %v31040_v33  ;;  %v14018_v12 = vrot.slane %v28187_v15, %v31041_v34 }
 0x7a9   :  { %9599 = vmatprep.subr.bf16.mxu1 %v31034_v52 }
 0x7aa   :  { %v28262_v14 = vsel %vm366_vm12, %v14022_v10, %v14063_v53  ;;  %v28265_v28 = vsel %vm366_vm12, %v14018_v12, %v14059_v3  ;;  %v9699_v10 = vrot.slane %v27486_v48, %v31039_v5 }
 0x7ab   :  { %21692 = vmatpush3.bf16.msra.mxu0 %v23188_v47  ;;  %31136 = vst [vmem:[#allocation34_spill] sm:$0xff] %v28262_v14  ;;  %31137 = vst [vmem:[#allocation20_spill] sm:$0xff] %v28265_v28  ;;  %v23193_v47 = vld [vmem:[%s30809_s4 + $0x1124] sm:$0xff]   ;;  %v9004_v14 = vpack.c.bf16 %v27472_v40, %v27472_v40  ;;  %v23198_v40 = vld [vmem:[%s30809_s4 + $0x1014] sm:$0xff]  }
 0x7ac   :  { %9600 = vmatpush1.bf16.msra.mxu1 %v23187_v17  ;;  %21693 = vmatprep.subr.bf16.mxu0 %v23189_v4  ;;  %v23192_v17 = vld [vmem:[%s30809_s4 + $0x104c] sm:$0xff]   ;;  %v9721_v28 = vsel %vm366_vm12, %v9658_v21, %v9699_v10  ;;  %v9679_v10 = vrot.slane %v27486_v48, %v31037_v13 }
 0x7ad   :  { %9601 = vmatprep.subr.bf16.mxu1 %v31034_v52  ;;  %v23194_v4 = vld [vmem:[%s30809_s4 + $0x100c] sm:$0xff]  }
 0x7af   :  { %21694 = vmatpush3.bf16.msra.mxu0 %v23191_v55  ;;  %v23196_v55 = vld [vmem:[%s30809_s4 + $0x1054] sm:$0xff]  }
 0x7b0   :  { %v21481_v60 = vpop.f32.mrb[68].mxu0  ;;  %9602 = vmatpush1.bf16.msra.mxu1 %v9463_v62  ;;  %21695 = vmatprep.subr.bf16.mxu0 %v23192_v17  ;;  %v23202_v17 = vld [vmem:[%s30809_s4 + $0x101c] sm:$0xff]  }
 0x7b1   :  { %v21482_v53 = vpop.f32.mrb[69].mxu0  ;;  %21729 = vmatprep.subr.bf16.mxu1 %v23193_v47  ;;  %v23203_v47 = vld [vmem:[%s30809_s4 + $0x10f4] sm:$0xff]  }
 0x7b2   :  { %v21483_v12 = vadd.f32 %v21482_v53, %v21481_v60  ;;  %v21484_v3 = vpop.f32.mrb[70].mxu0  ;;  %v23197_v60 = vld [vmem:[%s30809_s4 + $0x112c] sm:$0xff]   ;;  %v9729_v53 = vpack.c.bf16 %v9721_v28, %v9721_v28  ;;  %v9638_v28 = vrot.slane %v27478_v18, %v31037_v13 }
 0x7b3   :  { %v21485_v58 = vpop.f32.mrb[71].mxu0  ;;  %9618 = vmatmul.mubr.bf16.vlgmr.msra.gmra.mrb[28].mxu1 %v9004_v14  ;;  %21696 = vmatpush3.bf16.msra.mxu0 %v23194_v4  ;;  %v9650_v14 = vrot.slane %v27478_v18, %v31036_v56  ;;  %v23205_v3 = vld [vmem:[%s30809_s4 + $0x113c] sm:$0xff]   ;;  %v9691_v4 = vrot.slane %v27486_v48, %v31036_v56 }
 0x7b4   :  { %v7402_v62 = vadd.f32 %v21483_v12, %v28105_v23  ;;  %21730 = vmatpush3.bf16.msra.mxu1 %v23195_v16  ;;  %v23199_v58 = vld [vmem:[%s30809_s4 + $0x10ec] sm:$0xff]   ;;  %10303 = vmatprep.mubr.bf16.mxu1 %v9729_v53  ;;  %v23200_v23 = vld [vmem:[%s30809_s4 + $0x105c] sm:$0xff]   ;;  %v23204_v12 = vld [vmem:[%s30809_s4 + $0x10a4] sm:$0xff]   ;;  %v9716_v16 = vsel %vm366_vm12, %v9638_v28, %v9679_v10 }
 0x7b5   :  { %21697 = vmatprep.subr.bf16.mxu0 %v23196_v55  ;;  %21731 = vmatprep.subr.bf16.mxu1 %v23197_v60  ;;  %v9719_v55 = vsel %vm366_vm12, %v9650_v14, %v9691_v4  ;;  %v9724_v60 = vpack.c.bf16 %v9716_v16, %v9716_v16  ;;  %v23207_v53 = vld [vmem:[%s30809_s4 + $0x10fc] sm:$0xff]   ;;  %v23211_v28 = vld [vmem:[%s30809_s4 + $0x1104] sm:$0xff]   ;;  %v23212_v14 = vld [vmem:[%s30809_s4 + $0x10b4] sm:$0xff]  }
 0x7b6   :  { %v28294_v21 = vadd.f32 %v27899_v41, %v7402_v62  ;;  %v23201_v41 = vld [vmem:[%s30809_s4 + $0x1134] sm:$0xff]   ;;  %v23206_v62 = vld [vmem:[%s30809_s4 + $0x1064] sm:$0xff]   ;;  %v23215_v10 = vld [vmem:[%s30809_s4 + $0x110c] sm:$0xff]  }
 0x7b7   :  { %21698 = vmatpush3.bf16.msra.mxu0 %v23198_v40  ;;  %v23208_v40 = vld [vmem:[%s30809_s4 + $0x10ac] sm:$0xff]   ;;  %v23218_v4 = vld [vmem:[%s30809_s4 + $0x107c] sm:$0xff]   ;;  %v23219_v16 = vld [vmem:[%s30809_s4 + $0x1114] sm:$0xff]  }
 0x7b8   :  { %21732 = vmatpush3.bf16.msra.mxu1 %v23199_v58  ;;  %21699 = vmatprep.subr.bf16.mxu0 %v23200_v23  ;;  %v9727_v58 = vpack.c.bf16 %v9719_v55, %v9719_v55  ;;  %v23209_v23 = vld [vmem:[%s30809_s4 + $0x1144] sm:$0xff]  }
 0x7b9   :  { %21733 = vmatprep.subr.bf16.mxu1 %v23201_v41  ;;  %v23210_v41 = vld [vmem:[%s30809_s4 + $0x106c] sm:$0xff]   ;;  %v23220_v55 = vld [vmem:[%s30809_s4 + $0x10c4] sm:$0xff]  }
 0x7bb   :  { %21700 = vmatpush3.bf16.msra.mxu0 %v23202_v17  ;;  %v23213_v17 = vld [vmem:[%s30809_s4 + $0x114c] sm:$0xff]  }
 0x7bc   :  { %21734 = vmatpush3.bf16.msra.mxu1 %v23203_v47  ;;  %21707 = vmatprep.subr.bf16.mxu0 %v23204_v12  ;;  %v23214_v47 = vld [vmem:[%s30809_s4 + $0x1074] sm:$0xff]   ;;  %v23216_v12 = vld [vmem:[%s30809_s4 + $0x10bc] sm:$0xff]  }
 0x7bd   :  { %21735 = vmatprep.subr.bf16.mxu1 %v23205_v3  ;;  %v23217_v3 = vld [vmem:[%s30809_s4 + $0x1154] sm:$0xff]  }
 0x7be   :  { %10224 = vmatmul.mubr.bf16.vlgmr.msra.gmra.mrb[96].mxu0 %v9724_v60  ;;  %v9654_v60 = vrot.slane %v27478_v18, %v31042_v24 }
 0x7bf   :  { %21708 = vmatpush3.bf16.msra.mxu0 %v23206_v62  ;;  %10263 = vmatprep.mubr.bf16.mxu0 %v9727_v58  ;;  %v23221_v62 = vld [vmem:[%s30809_s4 + $0x115c] sm:$0xff]  }
 0x7c0   :  { %21736 = vmatpush3.bf16.msra.mxu1 %v23207_v53  ;;  %21709 = vmatprep.subr.bf16.mxu0 %v23208_v40  ;;  %v23222_v53 = vld [vmem:[%s30809_s4 + $0x1084] sm:$0xff]   ;;  %v9666_v40 = vrot.slane %v27478_v18, %v31040_v33  ;;  %v23223_v58 = vld [vmem:[%s30809_s4 + $0x111c] sm:$0xff]  }
 0x7c1   :  { %21737 = vmatprep.subr.bf16.mxu1 %v23209_v23  ;;  %v23224_v23 = vld [vmem:[%s30809_s4 + $0x10cc] sm:$0xff]  }
 0x7c3   :  { %21710 = vmatpush3.bf16.msra.mxu0 %v23210_v41  ;;  %v9695_v41 = vrot.slane %v27486_v48, %v31042_v24 }
 0x7c4   :  { %21738 = vmatpush3.bf16.msra.mxu1 %v23211_v28  ;;  %21711 = vmatprep.subr.bf16.mxu0 %v23212_v14  ;;  %v9707_v14 = vrot.slane %v27486_v48, %v31040_v33 }
 0x7c5   :  { %21739 = vmatprep.subr.bf16.mxu1 %v23213_v17 }
 0x7c7   :  { %21712 = vmatpush3.bf16.msra.mxu0 %v23214_v47  ;;  %v9720_v47 = vsel %vm366_vm12, %v9654_v60, %v9695_v41  ;;  %v23227_v60 = vld [vmem:[%s30809_s4 + $0x10d4] sm:$0xff]   ;;  %v9646_v41 = vrot.slane %v27478_v18, %v31038_v6 }
 0x7c8   :  { %21740 = vmatpush3.bf16.msra.mxu1 %v23215_v10  ;;  %21713 = vmatprep.subr.bf16.mxu0 %v23216_v12  ;;  %v23232_v18 = vld [vmem:[%s30809_s4 + $0x1174] sm:$0xff]  }
 0x7c9   :  { %21741 = vmatprep.subr.bf16.mxu1 %v23217_v3  ;;  %v23225_v3 = vld [vmem:[%s30809_s4 + $0x108c] sm:$0xff]  }
 0x7cb   :  { %21714 = vmatpush3.bf16.msra.mxu0 %v23218_v4  ;;  %v9723_v4 = vsel %vm366_vm12, %v9666_v40, %v9707_v14  ;;  %v23228_v40 = vld [vmem:[%s30809_s4 + $0x1094] sm:$0xff]   ;;  %v10368_v14 = vrot.slane %v27520_v32, %v31035_v7 }
 0x7cc   :  { %21742 = vmatpush3.bf16.msra.mxu1 %v23219_v16  ;;  %21715 = vmatprep.subr.bf16.mxu0 %v23220_v55  ;;  %v23226_v16 = vld [vmem:[%s30809_s4 + $0x1164] sm:$0xff]  }
 0x7cd   :  { %21743 = vmatprep.subr.bf16.mxu1 %v23221_v62  ;;  %v9728_v62 = vpack.c.bf16 %v9720_v47, %v9720_v47  ;;  %v23231_v47 = vld [vmem:[%s30809_s4 + $0x109c] sm:$0xff]  }
 0x7cf   :  { %21716 = vmatpush3.bf16.msra.mxu0 %v23222_v53  ;;  %v9731_v53 = vpack.c.bf16 %v9723_v4, %v9723_v4 }
 0x7d0   :  { %v21503_v28 = vpop.f32.mrb[72].mxu0  ;;  %21744 = vmatpush3.bf16.msra.mxu1 %v23223_v58  ;;  %21717 = vmatprep.subr.bf16.mxu0 %v23224_v23  ;;  %v23229_v58 = vld [vmem:[%s30809_s4 + $0x116c] sm:$0xff]   ;;  %v23230_v23 = vld [vmem:[%s30809_s4 + $0x10dc] sm:$0xff]  }
 0x7d1   :  { %v21504_v17 = vpop.f32.mrb[73].mxu0  ;;  %10311 = vmatprep.subr.bf16.mxu1 %v31034_v52 }
 0x7d2   :  { %v21505_v10 = vadd.f32 %v21504_v17, %v21503_v28  ;;  %v21506_v12 = vpop.f32.mrb[74].mxu0 }
 0x7d3   :  { %v21507_v55 = vpop.f32.mrb[75].mxu0  ;;  %10304 = vmatmul.mubr.bf16.vlgmr.msra.gmra.mrb[64].mxu1 %v9728_v62  ;;  %21718 = vmatpush3.bf16.msra.mxu0 %v23225_v3  ;;  %v9687_v12 = vrot.slane %v27486_v48, %v31038_v6 }
 0x7d4   :  { %10312 = vmatpush1.bf16.msra.mxu1 %v23226_v16  ;;  %19378 = vmatprep.mubr.msk.bf16.mxu1 %vm303_vm8, %v9731_v53  ;;  %v23233_v16 = vld [vmem:[%s30809_s4 + $0x11e8] sm:$0xff]   ;;  %v10409_v55 = vrot.slane %v27518_v50, %v31035_v7 }
 0x7d5   :  { %21719 = vmatprep.subr.bf16.mxu0 %v23227_v60  ;;  %10313 = vmatprep.subr.bf16.mxu1 %v31034_v52  ;;  %v9718_v48 = vsel %vm366_vm12, %v9646_v41, %v9687_v12  ;;  %v23238_v41 = vld [vmem:[%s30809_s4 + $0x11b0] sm:$0xff]  }
 0x7d6   :  { %v10443_v53 = vsel %vm366_vm12, %v10368_v14, %v10409_v55  ;;  %v23237_v14 = vld [vmem:[%s30809_s4 + $0x1184] sm:$0xff]   ;;  %v23240_v12 = vld [vmem:[%s30809_s4 + $0x118c] sm:$0xff]  }
 0x7d7   :  { %21720 = vmatpush3.bf16.msra.mxu0 %v23228_v40  ;;  %v23235_v40 = vld [vmem:[%s30809_s4 + $0x11a8] sm:$0xff]  }
 0x7d8   :  { %v21525_v28 = vpop.f32.mrb[52].mxu1  ;;  %10314 = vmatpush1.bf16.msra.mxu1 %v23229_v58  ;;  %21721 = vmatprep.subr.bf16.mxu0 %v23230_v23  ;;  %v9726_v58 = vpack.c.bf16 %v9718_v48, %v9718_v48  ;;  %v23234_v23 = vld [vmem:[%s30809_s4 + $0x117c] sm:$0xff]   ;;  %v23247_v55 = vld [vmem:[%s30809_s4 + $0x11c8] sm:$0xff]   ;;  %v23248_v48 = vld [vmem:[%s30809_s4 + $0x1210] sm:$0xff]  }
 0x7d9   :  { %v21526_v17 = vpop.f32.mrb[53].mxu1  ;;  %10315 = vmatprep.subr.bf16.mxu1 %v31034_v52 }
 0x7da   :  { %v21527_v3 = vadd.f32 %v21526_v17, %v21525_v28  ;;  %v21528_v4 = vpop.f32.mrb[54].mxu1  ;;  %v23236_v28 = vld [vmem:[%s30809_s4 + $0x11f0] sm:$0xff]   ;;  %v23239_v17 = vld [vmem:[%s30809_s4 + $0x11f8] sm:$0xff]  }
 0x7db   :  { %v21529_v62 = vpop.f32.mrb[55].mxu1  ;;  %21722 = vmatpush3.bf16.msra.mxu0 %v23231_v47  ;;  %v23241_v47 = vld [vmem:[%s30809_s4 + $0x11b8] sm:$0xff]   ;;  %v23244_v4 = vld [vmem:[%s30809_s4 + $0x11c0] sm:$0xff]  }
 0x7dc   :  { %v8088_v60 = vadd.f32 %v21527_v3, %v21505_v10  ;;  %10316 = vmatpush1.bf16.msra.mxu1 %v23232_v18  ;;  %21751 = vmatprep.subr.bf16.mxu0 %v23233_v16  ;;  %v10451_v10 = vpack.c.bf16 %v10443_v53, %v10443_v53  ;;  %v23242_v3 = vld [vmem:[%s30809_s4 + $0x1200] sm:$0xff]   ;;  %v23243_v18 = vld [vmem:[%s30809_s4 + $0x1194] sm:$0xff]   ;;  %v23245_v16 = vld [vmem:[%s30809_s4 + $0x1208] sm:$0xff]  }
 0x7dd   :  { %10317 = vmatprep.subr.bf16.mxu1 %v31034_v52  ;;  %v23246_v62 = vld [vmem:[%s30809_s4 + $0x119c] sm:$0xff]   ;;  %v23249_v53 = vld [vmem:[%s30809_s4 + $0x11a4] ss:$0 sps:$4 sm:$0x33]  }
 0x7de   :  { %10264 = vmatmul.mubr.bf16.vlgmr.msra.gmra.mrb[100].mxu0 %v9726_v58 }
 0x7df   :  { %21752 = vmatpush3.bf16.msra.mxu0 %v23235_v40  ;;  %10949 = vmatprep.mubr.bf16.mxu0 %v10451_v10 }
 0x7e0   :  { %10318 = vmatpush1.bf16.msra.mxu1 %v23234_v23  ;;  %21753 = vmatprep.subr.bf16.mxu0 %v23236_v28  ;;  %v23250_v23 = vld [vmem:[%s30809_s4 + $0x11d0] sm:$0xff]   ;;  %v10384_v28 = vrot.slane %v27520_v32, %v31039_v5 }
 0x7e1   :  { %10319 = vmatprep.subr.bf16.mxu1 %v31034_v52 }
 0x7e3   :  { %21754 = vmatpush3.bf16.msra.mxu0 %v23238_v41 }
 0x7e4   :  { %10320 = vmatpush1.bf16.msra.mxu1 %v23237_v14  ;;  %21755 = vmatprep.subr.bf16.mxu0 %v23239_v17  ;;  %v23251_v14 = vld [vmem:[%s30809_s4 + $0x1218] sm:$0xff]   ;;  %v10189_v17 = vsel %vm3653_vm1, %v23249_v53, 0  ;;  %v23256_v53 = vld [vmem:[%s30809_s4 + $0x12f0] sm:$0xff]  }
 0x7e5   :  { %10321 = vmatprep.subr.bf16.mxu1 %v31034_v52 }
 0x7e7   :  { %21756 = vmatpush3.bf16.msra.mxu0 %v23241_v47 }
 0x7e8   :  { %10322 = vmatpush1.bf16.msra.mxu1 %v23240_v12  ;;  %21757 = vmatprep.subr.bf16.mxu0 %v23242_v3  ;;  %v23252_v12 = vld [vmem:[%s30809_s4 + $0x12e8] sm:$0xff]   ;;  %v10425_v3 = vrot.slane %v27518_v50, %v31039_v5 }
 0x7e9   :  { %10323 = vmatprep.subr.bf16.mxu1 %v31034_v52 }
 0x7eb   :  { %21758 = vmatpush3.bf16.msra.mxu0 %v23244_v4 }
 0x7ec   :  { %10324 = vmatpush1.bf16.msra.mxu1 %v23243_v18  ;;  %21759 = vmatprep.subr.bf16.mxu0 %v23245_v16  ;;  %v23253_v18 = vld [vmem:[%s30809_s4 + $0x11d8] sm:$0xff]   ;;  %v10447_v16 = vsel %vm366_vm12, %v10384_v28, %v10425_v3  ;;  %v10405_v28 = vrot.slane %v27518_v50, %v31037_v13 }
 0x7ed   :  { %10325 = vmatprep.subr.bf16.mxu1 %v31034_v52 }
 0x7ef   :  { %21760 = vmatpush3.bf16.msra.mxu0 %v23247_v55 }
 0x7f0   :  { %v21547_v40 = vpop.f32.mrb[76].mxu0  ;;  %10326 = vmatpush1.bf16.msra.mxu1 %v23246_v62  ;;  %21761 = vmatprep.subr.bf16.mxu0 %v23248_v48  ;;  %v23254_v62 = vld [vmem:[%s30809_s4 + $0x12a8] sm:$0xff]   ;;  %v9730_v48 = vpack.c.bf16 %v27523_v61, %v27523_v61  ;;  %v23257_v61 = vld [vmem:[%s30809_s4 + $0x11e0] sm:$0xff]  }
 0x7f1   :  { %v21548_v58 = vpop.f32.mrb[77].mxu0  ;;  %10327 = vmatprep.subr.bf16.mxu1 %v31034_v52 }
 0x7f2   :  { %v21549_v10 = vadd.f32 %v21548_v58, %v21547_v40  ;;  %v21550_v41 = vpop.f32.mrb[78].mxu0  ;;  %v10455_v40 = vpack.c.bf16 %v10447_v16, %v10447_v16 }
 0x7f3   :  { %v21551_v47 = vpop.f32.mrb[79].mxu0  ;;  %21762 = vmatpush3.bf16.msra.mxu0 %v23250_v23  ;;  %v10376_v23 = vrot.slane %v27520_v32, %v31036_v56  ;;  %v23259_v41 = vld [vmem:[%s30809_s4 + $0x1268] sm:$0xff]  }
 0x7f4   :  { %v8128_v4 = vadd.f32 %v21549_v10, %v8088_v60  ;;  %10328 = vmatpush1.bf16.msra.mxu1 %v10189_v17  ;;  %21763 = vmatprep.subr.bf16.mxu0 %v23251_v14  ;;  %v23255_v60 = vld [vmem:[%s30809_s4 + $0x1220] sm:$0xff]   ;;  %v23258_v10 = vld [vmem:[%s30809_s4 + $0x12b0] sm:$0xff]   ;;  %v10417_v14 = vrot.slane %v27518_v50, %v31036_v56  ;;  %v23260_v47 = vld [vmem:[%s30809_s4 + $0x12f8] sm:$0xff]  }
 0x7f5   :  { %21795 = vmatprep.subr.bf16.mxu1 %v23252_v12  ;;  %v31138_v12 = vld [vmem:[#allocation14_spill] sm:$0xff] }
 0x7f6   :  { %v28511_v55 = vadd.f32 %v28294_v21, %v8128_v4  ;;  %v10364_v21 = vrot.slane %v27520_v32, %v31037_v13  ;;  %v2161_v3 = vmax.f32 %v31138_v12, %v27973_v43  ;;  %v31139_v4 = vld [vmem:[#allocation13_spill] sm:$0xff] }
 0x7f7   :  { %10344 = vmatmul.mubr.bf16.vlgmr.msra.gmra.mrb[28].mxu1 %v9730_v48  ;;  %21764 = vmatpush3.bf16.msra.mxu0 %v23253_v18  ;;  %v2162_v18 = vmax.f32 %v31139_v4, %v27990_v54  ;;  %v10445_v48 = vsel %vm366_vm12, %v10376_v23, %v10417_v14  ;;  %v23262_v54 = vld [vmem:[%s30809_s4 + $0x12b8] sm:$0xff]   ;;  %v23263_v23 = vld [vmem:[%s30809_s4 + $0x1270] sm:$0xff]   ;;  %v23266_v4 = vld [vmem:[%s30809_s4 + $0x12c0] sm:$0xff]  }
 0x7f8   :  { %v2250_v58 = vpop.permute.xlu0 %2249  ;;  %21796 = vmatpush3.bf16.msra.mxu1 %v23254_v62  ;;  %11029 = vmatprep.mubr.bf16.mxu1 %v10455_v40  ;;  %v10442_v17 = vsel %vm366_vm12, %v10364_v21, %v10405_v28  ;;  %v23261_v21 = vld [vmem:[%s30809_s4 + $0x1228] sm:$0xff]   ;;  %v31140_v14 = vld [vmem:[#allocation19_spill] sm:$0xff] }
 0x7f9   :  { %21765 = vmatprep.subr.bf16.mxu0 %v23255_v60  ;;  %21797 = vmatprep.subr.bf16.mxu1 %v23256_v53  ;;  %v10450_v43 = vpack.c.bf16 %v10442_v17, %v10442_v17  ;;  %v2163_v17 = vmax.f32 %v31140_v14, %v27993_v42  ;;  %v23268_v42 = vld [vmem:[%s30809_s4 + $0x1308] sm:$0xff]  }
 0x7fb   :  { %21766 = vmatpush3.bf16.msra.mxu0 %v23257_v61  ;;  %v23264_v61 = vld [vmem:[%s30809_s4 + $0x1300] sm:$0xff]  }
 0x7fc   :  { %v2252_v16 = vpop.permute.xlu1 %2251  ;;  %v2254_v62 = vpop.permute.xlu0 %2253  ;;  %21798 = vmatpush3.bf16.msra.mxu1 %v23258_v10  ;;  %21773 = vmatprep.subr.bf16.mxu0 %v23259_v41  ;;  %v23265_v41 = vld [vmem:[%s30809_s4 + $0x1230] sm:$0xff]  }
 0x7fd   :  { %v2279_v60 = vsel %vm94_vm6, %v2250_v58, %v2252_v16  ;;  %v2280_v53 = vsel %vm94_vm6, %v2252_v16, %v2254_v62  ;;  %21799 = vmatprep.subr.bf16.mxu1 %v23260_v47  ;;  %v10453_v58 = vpack.c.bf16 %v10445_v48, %v10445_v48  ;;  %v31141_v47 = vld [vmem:[#allocation15_spill] sm:$0xff] }
 0x7fe   :  { %v2326_v40 = vmax.f32 %v2161_v3, %v2279_v60  ;;  %v2327_v28 = vmax.f32 %v2162_v18, %v2280_v53  ;;  %10950 = vmatmul.mubr.bf16.vlgmr.msra.gmra.mrb[104].mxu0 %v10450_v43  ;;  %v2164_v12 = vmax.f32 %v31141_v47, %v28016_v45  ;;  %v23267_v18 = vld [vmem:[%s30809_s4 + $0x1278] sm:$0xff]  }
 0x7ff   :  { %21774 = vmatpush3.bf16.msra.mxu0 %v23261_v21  ;;  %10989 = vmatprep.mubr.bf16.mxu0 %v10453_v58  ;;  %v23269_v21 = vld [vmem:[%s30809_s4 + $0x1238] sm:$0xff]   ;;  %v23271_v58 = vld [vmem:[%s30809_s4 + $0x1280] sm:$0xff]  }
 0x800   :  { %2350 = vst [vmem:[#allocation3 + $0x80] sm:$0xf] %v2326_v40  ;;  %2351 = vst [vmem:[#allocation3 + $0x88] sm:$0xf] %v2327_v28  ;;  %v2258_v10 = vpop.permute.xlu0 %2257  ;;  %21800 = vmatpush3.bf16.msra.mxu1 %v23262_v54  ;;  %21775 = vmatprep.subr.bf16.mxu0 %v23263_v23  ;;  %v31142_v40 = vld [vmem:[#allocation26_spill] sm:$0xff]  ;;  %v23270_v23 = vld [vmem:[%s30809_s4 + $0x12c8] sm:$0xff]  }
 0x801   :  { %v2256_v3 = vpop.permute.xlu1 %2255  ;;  %21801 = vmatprep.subr.bf16.mxu1 %v23264_v61  ;;  %v2165_v28 = vmax.f32 %v31142_v40, %v28019_v44 }
 0x802   :  { %v2281_v16 = vsel %vm94_vm6, %v2254_v62, %v2256_v3  ;;  %v2282_v48 = vsel %vm94_vm6, %v2256_v3, %v2258_v10  ;;  %v31143_v62 = vld [vmem:[#allocation25_spill] sm:$0xff]  ;;  %v31145_v3 = vld [vmem:[#allocation27_spill] sm:$0xff] }
 0x803   :  { %v2328_v45 = vmax.f32 %v2163_v17, %v2281_v16  ;;  %v2329_v60 = vmax.f32 %v2164_v12, %v2282_v48  ;;  %21776 = vmatpush3.bf16.msra.mxu0 %v23265_v41  ;;  %v2166_v43 = vmax.f32 %v31143_v62, %v28044_v11  ;;  %v23272_v11 = vld [vmem:[%s30809_s4 + $0x1310] sm:$0xff]   ;;  %v23273_v12 = vld [vmem:[%s30809_s4 + $0x1240] sm:$0xff]  }
 0x804   :  { %v2262_v53 = vpop.permute.xlu0 %2261  ;;  %21802 = vmatpush3.bf16.msra.mxu1 %v23266_v4  ;;  %21777 = vmatprep.subr.bf16.mxu0 %v23267_v18  ;;  %v31144_v17 = vld [vmem:[#allocation10_spill] sm:$0xff] }
 0x805   :  { %2352 = vst [vmem:[#allocation3 + $0x90] sm:$0xf] %v2328_v45  ;;  %2353 = vst [vmem:[#allocation3 + $0x98] sm:$0xf] %v2329_v60  ;;  %v2260_v54 = vpop.permute.xlu1 %2259  ;;  %21803 = vmatprep.subr.bf16.mxu1 %v23268_v42  ;;  %v2168_v47 = vmax.f32 %v31144_v17, %v28035_v8  ;;  %v23274_v18 = vld [vmem:[%s30809_s4 + $0x12d0] sm:$0xff]   ;;  %v23275_v8 = vld [vmem:[%s30809_s4 + $0x1288] sm:$0xff]  }
 0x806   :  { %v2283_v61 = vsel %vm94_vm6, %v2258_v10, %v2260_v54  ;;  %v2284_v44 = vsel %vm94_vm6, %v2260_v54, %v2262_v53  ;;  %v2167_v10 = vmax.f32 %v31145_v3, %v28048_v46  ;;  %v23276_v46 = vld [vmem:[%s30809_s4 + $0x1318] sm:$0xff]   ;;  %v23277_v45 = vld [vmem:[%s30809_s4 + $0x1248] sm:$0xff]   ;;  %v10392_v54 = vrot.slane %v27520_v32, %v31040_v33 }
 0x807   :  { %v2330_v41 = vmax.f32 %v2165_v28, %v2283_v61  ;;  %v2331_v14 = vmax.f32 %v2166_v43, %v2284_v44  ;;  %21778 = vmatpush3.bf16.msra.mxu0 %v23269_v21  ;;  %v23278_v60 = vld [vmem:[%s30809_s4 + $0x12d8] sm:$0xff]   ;;  %v23280_v21 = vld [vmem:[%s30809_s4 + $0x1320] sm:$0xff]   ;;  %v10380_v28 = vrot.slane %v27520_v32, %v31042_v24  ;;  %v23281_v43 = vld [vmem:[%s30809_s4 + $0x1250] sm:$0xff]   ;;  %v10433_v32 = vrot.slane %v27518_v50, %v31040_v33 }
 0x808   :  { %21804 = vmatpush3.bf16.msra.mxu1 %v23270_v23  ;;  %21779 = vmatprep.subr.bf16.mxu0 %v23271_v58  ;;  %v23282_v61 = vld [vmem:[%s30809_s4 + $0x12e0] sm:$0xff]   ;;  %v23283_v44 = vld [vmem:[%s30809_s4 + $0x1298] sm:$0xff]  }
 0x809   :  { %2354 = vst [vmem:[#allocation3 + $0xa0] sm:$0xf] %v2330_v41  ;;  %2355 = vst [vmem:[#allocation3 + $0xa8] sm:$0xf] %v2331_v14  ;;  %v2264_v4 = vpop.permute.xlu1 %2263  ;;  %21805 = vmatprep.subr.bf16.mxu1 %v23272_v11  ;;  %v10421_v11 = vrot.slane %v27518_v50, %v31042_v24  ;;  %v23285_v50 = vld [vmem:[%s30809_s4 + $0x1328] sm:$0xff]  }
 0x80a   :  { %v2285_v16 = vsel %vm94_vm6, %v2262_v53, %v2264_v4  ;;  %v2333_v48 = vmax.f32 %v2168_v47, %v2264_v4  ;;  %v23279_v53 = vld [vmem:[%s30809_s4 + $0x1290] sm:$0xff]   ;;  %v10449_v4 = vsel %vm366_vm12, %v10392_v54, %v10433_v32  ;;  %vm17700_vm6 = vcmask 74752  }
 0x80b   :  { %v2332_v42 = vmax.f32 %v2167_v10, %v2285_v16  ;;  %21780 = vmatpush3.bf16.msra.mxu0 %v23273_v12  ;;  %v14714_v41 = vld [vmem:[#allocation3 + $0x104] ss:$8 sm:$0xf0]  ;;  %v10446_v47 = vsel %vm366_vm12, %v10380_v28, %v10421_v11 }
 0x80c   :  { %2357 = vst.msk [vmem:[#allocation3 + $0xb8] sm:$0xf] %vm846_vm4, %v2333_v48  ;;  %21806 = vmatpush3.bf16.msra.mxu1 %v23274_v18  ;;  %21781 = vmatprep.subr.bf16.mxu0 %v23275_v8  ;;  %v14713_v17 = vld [vmem:[#allocation3 + $0x104] ss:$8 sm:$0xf]  ;;  %v10454_v16 = vpack.c.bf16 %v10446_v47, %v10446_v47 }
 0x80d   :  { %2356 = vst [vmem:[#allocation3 + $0xb0] sm:$0xf] %v2332_v42  ;;  %21807 = vmatprep.subr.bf16.mxu1 %v23276_v46  ;;  %v23284_v12 = vld [vmem:[%s30809_s4 + $0x1258] sm:$0xff]   ;;  %v28654_v18 = vor.u32 %v14714_v41, %v14713_v17  ;;  %v23286_v48 = vld [vmem:[%s30809_s4 + $0x12a0] sm:$0xff]   ;;  %v10457_v46 = vpack.c.bf16 %v10449_v4, %v10449_v4  ;;  %v11094_v42 = vrot.slane %v27568_v59, %v31035_v7  ;;  %v23288_v28 = vld [vmem:[%s30809_s4 + $0x1330] sm:$0xff]  }
 0x80e   :  { %v14709_v3 = vld [vmem:[#allocation3 + $0x80] ss:$8 sm:$0xf] }
 0x80f   :  { %21782 = vmatpush3.bf16.msra.mxu0 %v23277_v45  ;;  %v11135_v45 = vrot.slane %v27566_v51, %v31035_v7  ;;  %v14781_v54 = vrot.slane %v28654_v18, %v31039_v5 }
 0x810   :  { %v21569_v40 = vpop.f32.mrb[80].mxu0  ;;  %21808 = vmatpush3.bf16.msra.mxu1 %v23278_v60  ;;  %21783 = vmatprep.subr.bf16.mxu0 %v23279_v53  ;;  %v23287_v60 = vld [vmem:[%s30809_s4 + $0x1260] sm:$0xff]  }
 0x811   :  { %v21570_v62 = vpop.f32.mrb[81].mxu0  ;;  %21809 = vmatprep.subr.bf16.mxu1 %v23280_v21  ;;  %v11169_v11 = vsel %vm366_vm12, %v11094_v42, %v11135_v45  ;;  %v15435_v42 = vld [vmem:[#allocation3 + $0x81] ss:$8 sm:$0xf] }
 0x812   :  { %v28637_v23 = vadd.f32 %v21570_v62, %v21569_v40  ;;  %v21572_v58 = vpop.f32.mrb[82].mxu0  ;;  %v23289_v62 = vld [vmem:[%s30809_s4 + $0x13ac] sm:$0xff]   ;;  %v11177_v45 = vpack.c.bf16 %v11169_v11, %v11169_v11 }
 0x813   :  { %v21573_v14 = vpop.f32.mrb[83].mxu0  ;;  %21784 = vmatpush3.bf16.msra.mxu0 %v23281_v43  ;;  %v14769_v43 = vrot.slane %v28654_v18, %v31038_v6  ;;  %v14785_v58 = vrot.slane %v28654_v18, %v31041_v34 }
 0x814   :  { %v14710_v10 = vld [vmem:[#allocation3 + $0x80] ss:$8 sm:$0xf0]  ;;  %21810 = vmatpush3.bf16.msra.mxu1 %v23282_v61  ;;  %21785 = vmatprep.subr.bf16.mxu0 %v23283_v44  ;;  %v15440_v61 = vld [vmem:[#allocation3 + $0x105] ss:$8 sm:$0xf0] }
 0x815   :  { %v28656_v8 = vor.u32 %v14710_v10, %v14709_v3  ;;  %11037 = vmatprep.subr.bf16.mxu1 %v31034_v52  ;;  %v15436_v17 = vld [vmem:[#allocation3 + $0x81] ss:$8 sm:$0xf0]  ;;  %v15439_v10 = vld [vmem:[#allocation3 + $0x105] ss:$8 sm:$0xf] }
 0x816   :  { %v23291_v3 = vld [vmem:[%s30809_s4 + $0x136c] sm:$0xff]  }
 0x817   :  { %11030 = vmatmul.mubr.bf16.vlgmr.msra.gmra.mrb[68].mxu1 %v10454_v16  ;;  %21786 = vmatpush3.bf16.msra.mxu0 %v23284_v12  ;;  %v14728_v53 = vrot.slane %v28656_v8, %v31038_v6  ;;  %v14740_v21 = vrot.slane %v28656_v8, %v31039_v5  ;;  %v14744_v40 = vrot.slane %v28656_v8, %v31041_v34  ;;  %v23290_v16 = vld [vmem:[%s30809_s4 + $0x1338] sm:$0xff]  }
 0x818   :  { %11038 = vmatpush1.bf16.msra.mxu1 %v23285_v50  ;;  %19549 = vmatprep.mubr.msk.bf16.mxu1 %vm303_vm8, %v10457_v46  ;;  %v10452_v12 = vpack.c.bf16 %v27564_v29, %v27564_v29  ;;  %v14736_v29 = vrot.slane %v28656_v8, %v31042_v24  ;;  %v14777_v46 = vrot.slane %v28654_v18, %v31042_v24 }
 0x819   :  { %21787 = vmatprep.subr.bf16.mxu0 %v23286_v48  ;;  %11039 = vmatprep.subr.bf16.mxu1 %v31034_v52  ;;  %v28694_v41 = vsel %vm366_vm12, %v14728_v53, %v14769_v43  ;;  %v28697_v14 = vsel %vm366_vm12, %v14740_v21, %v14781_v54  ;;  %v28700_v32 = vsel %vm366_vm12, %v14744_v40, %v14785_v58  ;;  %v23292_v48 = vld [vmem:[%s30809_s4 + $0x13b4] sm:$0xff]   ;;  %v23293_v43 = vld [vmem:[%s30809_s4 + $0x1340] sm:$0xff]  }
 0x81a   :  { %v28718_v53 = vor.u32 %v15440_v61, %v15439_v10  ;;  %v28720_v21 = vor.u32 %v15436_v17, %v15435_v42  ;;  %v16166_v54 = vld [vmem:[#allocation3 + $0x106] ss:$8 sm:$0xf0]  ;;  %v16162_v58 = vld [vmem:[#allocation3 + $0x82] ss:$8 sm:$0xf0] }
 0x81b   :  { %21788 = vmatpush3.bf16.msra.mxu0 %v23287_v60  ;;  %v16165_v61 = vld [vmem:[#allocation3 + $0x106] ss:$8 sm:$0xf]  ;;  %v16161_v17 = vld [vmem:[#allocation3 + $0x82] ss:$8 sm:$0xf] }
 0x81c   :  { %v21591_v44 = vpop.f32.mrb[56].mxu1  ;;  %11040 = vmatpush1.bf16.msra.mxu1 %v23288_v28  ;;  %21817 = vmatprep.subr.bf16.mxu0 %v23289_v62  ;;  %v28726_v28 = vsel %vm366_vm12, %v14736_v29, %v14777_v46  ;;  %v23294_v62 = vld [vmem:[%s30809_s4 + $0x1374] sm:$0xff]   ;;  %v15511_v11 = vrot.slane %v28718_v53, %v31041_v34  ;;  %v28749_v10 = vor.u32 %v16166_v54, %v16165_v61  ;;  %v23300_v42 = vld [vmem:[%s30809_s4 + $0x1384] sm:$0xff]  }
 0x81d   :  { %v21592_v47 = vpop.f32.mrb[57].mxu1  ;;  %11041 = vmatprep.subr.bf16.mxu1 %v31034_v52  ;;  %v16888_v46 = vld [vmem:[#allocation3 + $0x83] ss:$8 sm:$0xf0] }
 0x81e   :  { %v21593_v4 = vadd.f32 %v21592_v47, %v21591_v44  ;;  %v21594_v50 = vpop.f32.mrb[58].mxu1  ;;  %10990 = vmatmul.mubr.bf16.vlgmr.msra.gmra.mrb[108].mxu0 %v10452_v12  ;;  %v15470_v44 = vrot.slane %v28720_v21, %v31041_v34  ;;  %v23297_v47 = vld [vmem:[%s30809_s4 + $0x137c] sm:$0xff]   ;;  %v15462_v12 = vrot.slane %v28720_v21, %v31042_v24  ;;  %v16229_v61 = vrot.slane %v28749_v10, %v31042_v24 }
 0x81f   :  { %v21595_v60 = vpop.f32.mrb[59].mxu1  ;;  %21818 = vmatpush3.bf16.msra.mxu0 %v23291_v3  ;;  %11675 = vmatprep.mubr.bf16.mxu0 %v11177_v45  ;;  %v15503_v3 = vrot.slane %v28718_v53, %v31042_v24  ;;  %v23296_v50 = vld [vmem:[%s30809_s4 + $0x1348] sm:$0xff]  }
 0x820   :  { %v28723_v40 = vadd.f32 %v21593_v4, %v28637_v23  ;;  %11042 = vmatpush1.bf16.msra.mxu1 %v23290_v16  ;;  %21819 = vmatprep.subr.bf16.mxu0 %v23292_v48  ;;  %v23295_v23 = vld [vmem:[%s30809_s4 + $0x13bc] sm:$0xff]   ;;  %v28751_v4 = vor.u32 %v16162_v58, %v16161_v17  ;;  %v23298_v16 = vld [vmem:[%s30809_s4 + $0x13c4] sm:$0xff]   ;;  %v28760_v48 = vsel %vm366_vm12, %v15470_v44, %v15511_v11  ;;  %v23299_v60 = vld [vmem:[%s30809_s4 + $0x1350] sm:$0xff]  }
 0x821   :  { %11043 = vmatprep.subr.bf16.mxu1 %v31034_v52  ;;  %v28764_v29 = vsel %vm366_vm12, %v15462_v12, %v15503_v3  ;;  %v16892_v45 = vld [vmem:[#allocation3 + $0x107] ss:$8 sm:$0xf0]  ;;  %v16887_v54 = vld [vmem:[#allocation3 + $0x83] ss:$8 sm:$0xf] }
 0x822   :  { %v16188_v58 = vrot.slane %v28751_v4, %v31042_v24  ;;  %v16891_v44 = vld [vmem:[#allocation3 + $0x107] ss:$8 sm:$0xf]  ;;  %v28784_v11 = vor.u32 %v16888_v46, %v16887_v54 }
 0x823   :  { %21820 = vmatpush3.bf16.msra.mxu0 %v23294_v62  ;;  %v23301_v62 = vld [vmem:[%s30809_s4 + $0x13cc] sm:$0xff]  }
 0x824   :  { %11044 = vmatpush1.bf16.msra.mxu1 %v23293_v43  ;;  %21821 = vmatprep.subr.bf16.mxu0 %v23295_v23  ;;  %v16196_v43 = vrot.slane %v28751_v4, %v31041_v34  ;;  %v16237_v23 = vrot.slane %v28749_v10, %v31041_v34  ;;  %v23303_v12 = vld [vmem:[%s30809_s4 + $0x138c] sm:$0xff]   ;;  %v28795_v3 = vsel %vm366_vm12, %v16188_v58, %v16229_v61  ;;  %v23305_v61 = vld [vmem:[%s30809_s4 + $0x1360] sm:$0xff]  }
 0x825   :  { %11045 = vmatprep.subr.bf16.mxu1 %v31034_v52  ;;  %31146 = vst [vmem:[#allocation21_spill] sm:$0xff] %v28795_v3  ;;  %v23308_v3 = vld [vmem:[%s30809_s4 + $0x1368] ss:$0 sps:$4 sm:$0x33]  }
 0x826   :  { %v28787_v17 = vsel %vm366_vm12, %v16196_v43, %v16237_v23 }
 0x827   :  { %21822 = vmatpush3.bf16.msra.mxu0 %v23297_v47  ;;  %v28789_v47 = vor.u32 %v16892_v45, %v16891_v44  ;;  %v16922_v45 = vrot.slane %v28784_v11, %v31041_v34  ;;  %v23307_v44 = vld [vmem:[%s30809_s4 + $0x13dc] sm:$0xff]  }
 0x828   :  { %11046 = vmatpush1.bf16.msra.mxu1 %v23296_v50  ;;  %21823 = vmatprep.subr.bf16.mxu0 %v23298_v16  ;;  %v23302_v50 = vld [vmem:[%s30809_s4 + $0x1358] sm:$0xff]  }
 0x829   :  { %11047 = vmatprep.subr.bf16.mxu1 %v31034_v52  ;;  %v23304_v16 = vld [vmem:[%s30809_s4 + $0x13d4] sm:$0xff]   ;;  %v16955_v43 = vrot.slane %v28789_v47, %v31042_v24  ;;  %v16963_v23 = vrot.slane %v28789_v47, %v31041_v34 }
 0x82b   :  { %21824 = vmatpush3.bf16.msra.mxu0 %v23300_v42  ;;  %v16914_v42 = vrot.slane %v28784_v11, %v31042_v24 }
 0x82c   :  { %11048 = vmatpush1.bf16.msra.mxu1 %v23299_v60  ;;  %21825 = vmatprep.subr.bf16.mxu0 %v23301_v62  ;;  %v23306_v62 = vld [vmem:[%s30809_s4 + $0x1394] sm:$0xff]  }
 0x82d   :  { %11049 = vmatprep.subr.bf16.mxu1 %v31034_v52  ;;  %v28826_v34 = vsel %vm366_vm12, %v16914_v42, %v16955_v43  ;;  %v23310_v42 = vld [vmem:[%s30809_s4 + $0x13e4] sm:$0xff]   ;;  %v11102_v43 = vrot.slane %v27568_v59, %v31036_v56 }
 0x82f   :  { %21826 = vmatpush3.bf16.msra.mxu0 %v23303_v12 }
 0x830   :  { %v21613_v46 = vpop.f32.mrb[84].mxu0  ;;  %11050 = vmatpush1.bf16.msra.mxu1 %v23302_v50  ;;  %21827 = vmatprep.subr.bf16.mxu0 %v23304_v16  ;;  %v28829_v50 = vsel %vm366_vm12, %v16922_v45, %v16963_v23  ;;  %v23311_v45 = vld [vmem:[%s30809_s4 + $0x14ac] sm:$0xff]   ;;  %v23312_v23 = vld [vmem:[%s30809_s4 + $0x13a4] sm:$0xff]  }
 0x831   :  { %v21614_v60 = vpop.f32.mrb[85].mxu0  ;;  %11051 = vmatprep.subr.bf16.mxu1 %v31034_v52 }
 0x832   :  { %v21615_v54 = vadd.f32 %v21614_v60, %v21613_v46  ;;  %v21616_v58 = vpop.f32.mrb[86].mxu0  ;;  %v23309_v46 = vld [vmem:[%s30809_s4 + $0x139c] sm:$0xff]   ;;  %v11110_v60 = vrot.slane %v27568_v59, %v31039_v5 }
 0x833   :  { %v21617_v12 = vpop.f32.mrb[87].mxu0  ;;  %21828 = vmatpush3.bf16.msra.mxu0 %v23306_v62  ;;  %v11151_v62 = vrot.slane %v27566_v51, %v31039_v5 }
 0x834   :  { %v8854_v16 = vadd.f32 %v21615_v54, %v28723_v40  ;;  %11052 = vmatpush1.bf16.msra.mxu1 %v23305_v61  ;;  %21829 = vmatprep.subr.bf16.mxu0 %v23307_v44  ;;  %v10915_v40 = vsel %vm3653_vm1, %v23308_v3, 0  ;;  %v11131_v54 = vrot.slane %v27566_v51, %v31037_v13  ;;  %v23313_v61 = vld [vmem:[%s30809_s4 + $0x146c] sm:$0xff]   ;;  %v11143_v44 = vrot.slane %v27566_v51, %v31036_v56 }
 0x835   :  { %11053 = vmatprep.subr.bf16.mxu1 %v31034_v52  ;;  %v11173_v3 = vsel %vm366_vm12, %v11110_v60, %v11151_v62  ;;  %v10456_v12 = vpack.c.bf16 %v27571_v27, %v27571_v27  ;;  %v23315_v60 = vld [vmem:[%s30809_s4 + $0x14b4] sm:$0xff]   ;;  %v23316_v27 = vld [vmem:[%s30809_s4 + $0x13ec] sm:$0xff]  }
 0x836   :  { %v28838_v58 = vadd.f32 %v28511_v55, %v8854_v16  ;;  %v11090_v55 = vrot.slane %v27568_v59, %v31037_v13  ;;  %v23317_v62 = vld [vmem:[%s30809_s4 + $0x1474] sm:$0xff]  }
 0x837   :  { %21830 = vmatpush3.bf16.msra.mxu0 %v23309_v46  ;;  %v23314_v46 = vld [vmem:[%s30809_s4 + $0x142c] sm:$0xff]  }
 0x838   :  { %11054 = vmatpush1.bf16.msra.mxu1 %v10915_v40  ;;  %21831 = vmatprep.subr.bf16.mxu0 %v23310_v42  ;;  %v11168_v16 = vsel %vm366_vm12, %v11090_v55, %v11131_v54  ;;  %v11181_v42 = vpack.c.bf16 %v11173_v3, %v11173_v3  ;;  %v11171_v40 = vsel %vm366_vm12, %v11102_v43, %v11143_v44  ;;  %v23318_v55 = vld [vmem:[%s30809_s4 + $0x1434] sm:$0xff]   ;;  %v23321_v54 = vld [vmem:[%s30809_s4 + $0x147c] sm:$0xff]   ;;  %v23323_v44 = vld [vmem:[%s30809_s4 + $0x14c4] sm:$0xff]  }
 0x839   :  { %21861 = vmatprep.subr.bf16.mxu1 %v23311_v45  ;;  %v11176_v45 = vpack.c.bf16 %v11168_v16, %v11168_v16  ;;  %v11179_v43 = vpack.c.bf16 %v11171_v40, %v11171_v40  ;;  %v23320_v3 = vld [vmem:[%s30809_s4 + $0x13f4] sm:$0xff]   ;;  %v23325_v16 = vld [vmem:[%s30809_s4 + $0x1484] sm:$0xff]   ;;  %v23329_v40 = vld [vmem:[%s30809_s4 + $0x148c] sm:$0xff]  }
 0x83b   :  { %11070 = vmatmul.mubr.bf16.vlgmr.msra.gmra.mrb[28].mxu1 %v10456_v12  ;;  %21832 = vmatpush3.bf16.msra.mxu0 %v23312_v23  ;;  %v23319_v23 = vld [vmem:[%s30809_s4 + $0x14bc] sm:$0xff]  }
 0x83c   :  { %21862 = vmatpush3.bf16.msra.mxu1 %v23313_v61  ;;  %11755 = vmatprep.mubr.bf16.mxu1 %v11181_v42  ;;  %v23322_v61 = vld [vmem:[%s30809_s4 + $0x143c] sm:$0xff]   ;;  %v23328_v42 = vld [vmem:[%s30809_s4 + $0x1404] sm:$0xff]  }
 0x83d   :  { %21839 = vmatprep.subr.bf16.mxu0 %v23314_v46  ;;  %21863 = vmatprep.subr.bf16.mxu1 %v23315_v60  ;;  %v23324_v12 = vld [vmem:[%s30809_s4 + $0x13fc] sm:$0xff]   ;;  %v23326_v46 = vld [vmem:[%s30809_s4 + $0x1444] sm:$0xff]   ;;  %v23327_v60 = vld [vmem:[%s30809_s4 + $0x14cc] sm:$0xff]  }
 0x83e   :  { %11676 = vmatmul.mubr.bf16.vlgmr.msra.gmra.mrb[112].mxu0 %v11176_v45  ;;  %v23331_v45 = vld [vmem:[%s30809_s4 + $0x14d4] sm:$0xff]  }
 0x83f   :  { %21840 = vmatpush3.bf16.msra.mxu0 %v23316_v27  ;;  %11715 = vmatprep.mubr.bf16.mxu0 %v11179_v43  ;;  %v23330_v27 = vld [vmem:[%s30809_s4 + $0x144c] sm:$0xff]   ;;  %v23334_v43 = vld [vmem:[%s30809_s4 + $0x1454] sm:$0xff]  }
 0x840   :  { %21864 = vmatpush3.bf16.msra.mxu1 %v23317_v62  ;;  %21841 = vmatprep.subr.bf16.mxu0 %v23318_v55  ;;  %v23332_v62 = vld [vmem:[%s30809_s4 + $0x140c] sm:$0xff]   ;;  %v23333_v55 = vld [vmem:[%s30809_s4 + $0x1494] sm:$0xff]  }
 0x841   :  { %21865 = vmatprep.subr.bf16.mxu1 %v23319_v23  ;;  %v23335_v23 = vld [vmem:[%s30809_s4 + $0x14dc] sm:$0xff]  }
 0x843   :  { %21842 = vmatpush3.bf16.msra.mxu0 %v23320_v3 }
 0x844   :  { %21866 = vmatpush3.bf16.msra.mxu1 %v23321_v54  ;;  %21843 = vmatprep.subr.bf16.mxu0 %v23322_v61  ;;  %v23336_v61 = vld [vmem:[%s30809_s4 + $0x1414] sm:$0xff]  }
 0x845   :  { %21867 = vmatprep.subr.bf16.mxu1 %v23323_v44 }
 0x847   :  { %21844 = vmatpush3.bf16.msra.mxu0 %v23324_v12 }
 0x848   :  { %21868 = vmatpush3.bf16.msra.mxu1 %v23325_v16  ;;  %21845 = vmatprep.subr.bf16.mxu0 %v23326_v46  ;;  %v23337_v16 = vld [vmem:[%s30809_s4 + $0x149c] sm:$0xff]  }
 0x849   :  { %21869 = vmatprep.subr.bf16.mxu1 %v23327_v60  ;;  %v23338_v46 = vld [vmem:[%s30809_s4 + $0x145c] sm:$0xff]  }
 0x84b   :  { %21846 = vmatpush3.bf16.msra.mxu0 %v23328_v42  ;;  %v23339_v42 = vld [vmem:[%s30809_s4 + $0x14e4] sm:$0xff]  }
 0x84c   :  { %21870 = vmatpush3.bf16.msra.mxu1 %v23329_v40  ;;  %21847 = vmatprep.subr.bf16.mxu0 %v23330_v27  ;;  %v11106_v40 = vrot.slane %v27568_v59, %v31042_v24  ;;  %v23340_v27 = vld [vmem:[%s30809_s4 + $0x141c] sm:$0xff]  }
 0x84d   :  { %21871 = vmatprep.subr.bf16.mxu1 %v23331_v45  ;;  %v11118_v45 = vrot.slane %v27568_v59, %v31040_v33  ;;  %v11861_v59 = vrot.slane %v28050_v1, %v31035_v7 }
 0x84f   :  { %21848 = vmatpush3.bf16.msra.mxu0 %v23332_v62  ;;  %v23341_v62 = vld [vmem:[%s30809_s4 + $0x14a4] sm:$0xff]  }
 0x850   :  { %v21635_v3 = vpop.f32.mrb[88].mxu0  ;;  %21872 = vmatpush3.bf16.msra.mxu1 %v23333_v55  ;;  %21849 = vmatprep.subr.bf16.mxu0 %v23334_v43  ;;  %v23342_v55 = vld [vmem:[%s30809_s4 + $0x1464] sm:$0xff]   ;;  %v11147_v43 = vrot.slane %v27566_v51, %v31042_v24  ;;  %v23344_v24 = vld [vmem:[%s30809_s4 + $0x14ec] sm:$0xff]  }
 0x851   :  { %v21636_v54 = vpop.f32.mrb[89].mxu0  ;;  %21873 = vmatprep.subr.bf16.mxu1 %v23335_v23  ;;  %v11159_v23 = vrot.slane %v27566_v51, %v31040_v33  ;;  %v11820_v51 = vrot.slane %v28040_v22, %v31035_v7 }
 0x852   :  { %v28938_v44 = vadd.f32 %v21636_v54, %v21635_v3  ;;  %v21638_v12 = vpop.f32.mrb[90].mxu0  ;;  %v11172_v3 = vsel %vm366_vm12, %v11106_v40, %v11147_v43  ;;  %v23343_v54 = vld [vmem:[%s30809_s4 + $0x1424] sm:$0xff]   ;;  %v11178_v40 = vpack.c.bf16 %v27604_v19, %v27604_v19  ;;  %v23349_v43 = vld [vmem:[%s30809_s4 + $0x14fc] sm:$0xff]  }
 0x853   :  { %v21639_v60 = vpop.f32.mrb[91].mxu0  ;;  %21850 = vmatpush3.bf16.msra.mxu0 %v23336_v61  ;;  %v11175_v61 = vsel %vm366_vm12, %v11118_v45, %v11159_v23  ;;  %v11180_v12 = vpack.c.bf16 %v11172_v3, %v11172_v3  ;;  %v23348_v45 = vld [vmem:[%s30809_s4 + $0x1578] sm:$0xff]   ;;  %v23351_v23 = vld [vmem:[%s30809_s4 + $0x1580] sm:$0xff]  }
 0x854   :  { %21874 = vmatpush3.bf16.msra.mxu1 %v23337_v16  ;;  %21851 = vmatprep.subr.bf16.mxu0 %v23338_v46  ;;  %v23345_v16 = vld [vmem:[%s30809_s4 + $0x1570] sm:$0xff]   ;;  %v11183_v46 = vpack.c.bf16 %v11175_v61, %v11175_v61  ;;  %v11895_v60 = vsel %vm366_vm12, %v11820_v51, %v11861_v59  ;;  %v23352_v51 = vld [vmem:[%s30809_s4 + $0x1504] sm:$0xff]  }
 0x855   :  { %21875 = vmatprep.subr.bf16.mxu1 %v23339_v42  ;;  %v23347_v42 = vld [vmem:[%s30809_s4 + $0x1530] sm:$0xff]  }
 0x857   :  { %21852 = vmatpush3.bf16.msra.mxu0 %v23340_v27  ;;  %v23346_v27 = vld [vmem:[%s30809_s4 + $0x14f4] sm:$0xff]  }
 0x858   :  { %21876 = vmatpush3.bf16.msra.mxu1 %v23341_v62  ;;  %21853 = vmatprep.subr.bf16.mxu0 %v23342_v55  ;;  %v11903_v62 = vpack.c.bf16 %v11895_v60, %v11895_v60  ;;  %v23350_v55 = vld [vmem:[%s30809_s4 + $0x1538] sm:$0xff]   ;;  %v23357_v60 = vld [vmem:[%s30809_s4 + $0x1590] sm:$0xff]  }
 0x859   :  { %11763 = vmatprep.subr.bf16.mxu1 %v31034_v52 }
 0x85b   :  { %11756 = vmatmul.mubr.bf16.vlgmr.msra.gmra.mrb[72].mxu1 %v11180_v12  ;;  %21854 = vmatpush3.bf16.msra.mxu0 %v23343_v54  ;;  %v23354_v12 = vld [vmem:[%s30809_s4 + $0x1588] sm:$0xff]  }
 0x85c   :  { %11764 = vmatpush1.bf16.msra.mxu1 %v23344_v24  ;;  %19720 = vmatprep.mubr.msk.bf16.mxu1 %vm303_vm8, %v11183_v46  ;;  %v23353_v24 = vld [vmem:[%s30809_s4 + $0x1540] sm:$0xff]   ;;  %v23355_v46 = vld [vmem:[%s30809_s4 + $0x150c] sm:$0xff]  }
 0x85d   :  { %11765 = vmatprep.subr.bf16.mxu1 %v31034_v52  ;;  %21883 = vmatprep.subr.bf16.mxu0 %v23345_v16  ;;  %v23356_v16 = vld [vmem:[%s30809_s4 + $0x1548] sm:$0xff]  }
 0x85e   :  { %11716 = vmatmul.mubr.bf16.vlgmr.msra.gmra.mrb[116].mxu0 %v11178_v40  ;;  %v23358_v40 = vld [vmem:[%s30809_s4 + $0x1514] sm:$0xff]  }
 0x85f   :  { %21884 = vmatpush3.bf16.msra.mxu0 %v23347_v42  ;;  %12401 = vmatprep.mubr.bf16.mxu0 %v11903_v62  ;;  %v23359_v42 = vld [vmem:[%s30809_s4 + $0x1550] sm:$0xff]   ;;  %v23361_v62 = vld [vmem:[%s30809_s4 + $0x151c] sm:$0xff]  }
 0x860   :  { %11766 = vmatpush1.bf16.msra.mxu1 %v23346_v27  ;;  %21885 = vmatprep.subr.bf16.mxu0 %v23348_v45  ;;  %v23360_v27 = vld [vmem:[%s30809_s4 + $0x1598] sm:$0xff]  }
 0x861   :  { %v21679_v19 = vpop.f32.mrb[60].mxu1  ;;  %11767 = vmatprep.subr.bf16.mxu1 %v31034_v52  ;;  %v23362_v45 = vld [vmem:[%s30809_s4 + $0x1558] sm:$0xff]  }
 0x862   :  { %v21680_v3 = vpop.f32.mrb[61].mxu1 }
 0x863   :  { %v21681_v59 = vadd.f32 %v21680_v3, %v21679_v19  ;;  %v21682_v54 = vpop.f32.mrb[62].mxu1  ;;  %21886 = vmatpush3.bf16.msra.mxu0 %v23350_v55  ;;  %v23363_v55 = vld [vmem:[%s30809_s4 + $0x15a0] sm:$0xff]  }
 0x864   :  { %v21683_v61 = vpop.f32.mrb[63].mxu1  ;;  %11768 = vmatpush1.bf16.msra.mxu1 %v23349_v43  ;;  %21887 = vmatprep.subr.bf16.mxu0 %v23351_v23  ;;  %v23365_v54 = vld [vmem:[%s30809_s4 + $0x1560] sm:$0xff]  }
 0x865   :  { %11769 = vmatprep.subr.bf16.mxu1 %v31034_v52 }
 0x867   :  { %21888 = vmatpush3.bf16.msra.mxu0 %v23353_v24  ;;  %v23364_v24 = vld [vmem:[%s30809_s4 + $0x1524] sm:$0xff]  }
 0x868   :  { %11770 = vmatpush1.bf16.msra.mxu1 %v23352_v51  ;;  %21889 = vmatprep.subr.bf16.mxu0 %v23354_v12  ;;  %v23366_v51 = vld [vmem:[%s30809_s4 + $0x15a8] sm:$0xff]  }
 0x869   :  { %11771 = vmatprep.subr.bf16.mxu1 %v31034_v52 }
 0x86b   :  { %21890 = vmatpush3.bf16.msra.mxu0 %v23356_v16  ;;  %v23367_v16 = vld [vmem:[%s30809_s4 + $0x152c] ss:$0 sps:$4 sm:$0x33]  }
 0x86c   :  { %11772 = vmatpush1.bf16.msra.mxu1 %v23355_v46  ;;  %21891 = vmatprep.subr.bf16.mxu0 %v23357_v60  ;;  %v11857_v46 = vrot.slane %v28050_v1, %v31037_v13 }
 0x86d   :  { %11773 = vmatprep.subr.bf16.mxu1 %v31034_v52 }
 0x86f   :  { %21892 = vmatpush3.bf16.msra.mxu0 %v23359_v42  ;;  %v23368_v42 = vld [vmem:[%s30809_s4 + $0x1568] sm:$0xff]  }
 0x870   :  { %11774 = vmatpush1.bf16.msra.mxu1 %v23358_v40  ;;  %21893 = vmatprep.subr.bf16.mxu0 %v23360_v27  ;;  %v11816_v40 = vrot.slane %v28040_v22, %v31037_v13  ;;  %v23369_v27 = vld [vmem:[%s30809_s4 + $0x15f0] sm:$0xff]  }
 0x871   :  { %v21657_v19 = vpop.f32.mrb[92].mxu0  ;;  %11775 = vmatprep.subr.bf16.mxu1 %v31034_v52 }
 0x872   :  { %v21658_v43 = vpop.f32.mrb[93].mxu0 }
 0x873   :  { %v21659_v23 = vadd.f32 %v21658_v43, %v21657_v19  ;;  %v21660_v3 = vpop.f32.mrb[94].mxu0  ;;  %21894 = vmatpush3.bf16.msra.mxu0 %v23362_v45  ;;  %v23370_v19 = vld [vmem:[%s30809_s4 + $0x1670] sm:$0xff]   ;;  %v11828_v43 = vrot.slane %v28040_v22, %v31036_v56 }
 0x874   :  { %11776 = vmatpush1.bf16.msra.mxu1 %v23361_v62  ;;  %v21661_v61 = vpop.f32.mrb[95].mxu0  ;;  %21895 = vmatprep.subr.bf16.mxu0 %v23363_v55  ;;  %v11641_v62 = vsel %vm3653_vm1, %v23367_v16, 0  ;;  %v11894_v55 = vsel %vm366_vm12, %v11816_v40, %v11857_v46  ;;  %v23375_v46 = vld [vmem:[%s30809_s4 + $0x15b8] sm:$0xff]   ;;  %v23379_v40 = vld [vmem:[%s30809_s4 + $0x15c0] sm:$0xff]  }
 0x875   :  { %v9540_v12 = vadd.f32 %v21659_v23, %v28938_v44  ;;  %11777 = vmatprep.subr.bf16.mxu1 %v31034_v52  ;;  %v11869_v44 = vrot.slane %v28050_v1, %v31036_v56  ;;  %v11836_v23 = vrot.slane %v28040_v22, %v31039_v5  ;;  %v11902_v3 = vpack.c.bf16 %v11894_v55, %v11894_v55  ;;  %v23373_v22 = vld [vmem:[%s30809_s4 + $0x15f8] sm:$0xff]   ;;  %v23384_v55 = vld [vmem:[%s30809_s4 + $0x1648] sm:$0xff]  }
 0x877   :  { %v9580_v60 = vadd.f32 %v21681_v59, %v9540_v12  ;;  %21896 = vmatpush3.bf16.msra.mxu0 %v23365_v54  ;;  %v11877_v59 = vrot.slane %v28050_v1, %v31039_v5  ;;  %v23371_v1 = vld [vmem:[%s30809_s4 + $0x15b0] sm:$0xff]   ;;  %v23374_v12 = vld [vmem:[%s30809_s4 + $0x1678] sm:$0xff]  }
 0x878   :  { %11778 = vmatpush1.bf16.msra.mxu1 %v23364_v24  ;;  %21897 = vmatprep.subr.bf16.mxu0 %v23366_v51  ;;  %v23372_v54 = vld [vmem:[%s30809_s4 + $0x1630] sm:$0xff]   ;;  %v11182_v24 = vpack.c.bf16 %v27612_v63, %v27612_v63  ;;  %v23376_v63 = vld [vmem:[%s30809_s4 + $0x1638] sm:$0xff]  }
 0x879   :  { %v29075_v45 = vadd.f32 %v28838_v58, %v9580_v60  ;;  %11779 = vmatprep.subr.bf16.mxu1 %v31034_v52  ;;  %v11897_v58 = vsel %vm366_vm12, %v11828_v43, %v11869_v44  ;;  %v11899_v61 = vsel %vm366_vm12, %v11836_v23, %v11877_v59  ;;  %v23377_v60 = vld [vmem:[%s30809_s4 + $0x1600] sm:$0xff]   ;;  %v23382_v59 = vld [vmem:[%s30809_s4 + $0x1688] sm:$0xff]   ;;  %v23386_v43 = vld [vmem:[%s30809_s4 + $0x1690] sm:$0xff]  }
 0x87a   :  { %v11905_v51 = vpack.c.bf16 %v11897_v58, %v11897_v58  ;;  %v11907_v16 = vpack.c.bf16 %v11899_v61, %v11899_v61  ;;  %v23380_v44 = vld [vmem:[%s30809_s4 + $0x1640] sm:$0xff]   ;;  %v23387_v23 = vld [vmem:[%s30809_s4 + $0x15d0] sm:$0xff]   ;;  %v23389_v58 = vld [vmem:[%s30809_s4 + $0x1618] sm:$0xff]  }
 0x87b   :  { %21898 = vmatpush3.bf16.msra.mxu0 %v23368_v42  ;;  %v23378_v42 = vld [vmem:[%s30809_s4 + $0x1680] sm:$0xff]   ;;  %v23392_v61 = vld [vmem:[%s30809_s4 + $0x1658] sm:$0xff]  }
 0x87c   :  { %11780 = vmatpush1.bf16.msra.mxu1 %v11641_v62  ;;  %21905 = vmatprep.subr.bf16.mxu0 %v23369_v27  ;;  %v23381_v27 = vld [vmem:[%s30809_s4 + $0x1608] sm:$0xff]  }
 0x87d   :  { %21927 = vmatprep.subr.bf16.mxu1 %v23370_v19  ;;  %v23383_v62 = vld [vmem:[%s30809_s4 + $0x15c8] sm:$0xff]   ;;  %v23385_v19 = vld [vmem:[%s30809_s4 + $0x1610] sm:$0xff]  }
 0x87e   :  { %12402 = vmatmul.mubr.bf16.vlgmr.msra.gmra.mrb[120].mxu0 %v11902_v3  ;;  %v23390_v3 = vld [vmem:[%s30809_s4 + $0x1698] sm:$0xff]  }
 0x87f   :  { %11796 = vmatmul.mubr.bf16.vlgmr.msra.gmra.mrb[28].mxu1 %v11182_v24  ;;  %21906 = vmatpush3.bf16.msra.mxu0 %v23371_v1  ;;  %v23388_v1 = vld [vmem:[%s30809_s4 + $0x1650] sm:$0xff]   ;;  %v23393_v24 = vld [vmem:[%s30809_s4 + $0x1620] sm:$0xff]  }
 0x880   :  { %12441 = vmatprep.mubr.bf16.mxu0 %v11905_v51  ;;  %21928 = vmatpush3.bf16.msra.mxu1 %v23372_v54  ;;  %v23391_v54 = vld [vmem:[%s30809_s4 + $0x15d8] sm:$0xff]   ;;  %v23394_v51 = vld [vmem:[%s30809_s4 + $0x16a0] sm:$0xff]  }
 0x881   :  { %12481 = vmatprep.mubr.bf16.mxu1 %v11907_v16  ;;  %21907 = vmatprep.subr.bf16.mxu0 %v23373_v22 }
 0x882   :  { %21929 = vmatprep.subr.bf16.mxu1 %v23374_v12 }
 0x883   :  { %21908 = vmatpush3.bf16.msra.mxu0 %v23375_v46 }
 0x884   :  { %21930 = vmatpush3.bf16.msra.mxu1 %v23376_v63  ;;  %21909 = vmatprep.subr.bf16.mxu0 %v23377_v60  ;;  %v23395_v63 = vld [vmem:[%s30809_s4 + $0x15e0] sm:$0xff]  }
 0x885   :  { %21931 = vmatprep.subr.bf16.mxu1 %v23378_v42  ;;  %v23396_v42 = vld [vmem:[%s30809_s4 + $0x1660] sm:$0xff]  }
 0x887   :  { %21910 = vmatpush3.bf16.msra.mxu0 %v23379_v40  ;;  %v23397_v40 = vld [vmem:[%s30809_s4 + $0x1628] sm:$0xff]  }
 0x888   :  { %21932 = vmatpush3.bf16.msra.mxu1 %v23380_v44  ;;  %21911 = vmatprep.subr.bf16.mxu0 %v23381_v27  ;;  %v23398_v44 = vld [vmem:[%s30809_s4 + $0x16a8] sm:$0xff]  }
 0x889   :  { %21933 = vmatprep.subr.bf16.mxu1 %v23382_v59  ;;  %v23399_v27 = vld [vmem:[%s30809_s4 + $0x15e8] sm:$0xff]  }
 0x88a   :  { %v23400_v59 = vld [vmem:[%s30809_s4 + $0x1668] sm:$0xff]  }
 0x88b   :  { %21912 = vmatpush3.bf16.msra.mxu0 %v23383_v62  ;;  %v23401_v62 = vld [vmem:[%s30809_s4 + $0x1734] sm:$0xff]  }
 0x88c   :  { %21934 = vmatpush3.bf16.msra.mxu1 %v23384_v55  ;;  %21913 = vmatprep.subr.bf16.mxu0 %v23385_v19  ;;  %v12587_v55 = vrot.slane %v28107_v36, %v31035_v7  ;;  %v12546_v19 = vrot.slane %v28103_v25, %v31035_v7 }
 0x88d   :  { %21935 = vmatprep.subr.bf16.mxu1 %v23386_v43  ;;  %v23403_v43 = vld [vmem:[%s30809_s4 + $0x16f4] sm:$0xff]  }
 0x88f   :  { %21914 = vmatpush3.bf16.msra.mxu0 %v23387_v23  ;;  %v11904_v23 = vpack.c.bf16 %v28095_v20, %v28095_v20  ;;  %v23404_v20 = vld [vmem:[%s30809_s4 + $0x173c] sm:$0xff]  }
 0x890   :  { %21936 = vmatpush3.bf16.msra.mxu1 %v23388_v1  ;;  %21915 = vmatprep.subr.bf16.mxu0 %v23389_v58  ;;  %v23402_v1 = vld [vmem:[%s30809_s4 + $0x16b0] sm:$0xff]   ;;  %v12621_v58 = vsel %vm366_vm12, %v12546_v19, %v12587_v55  ;;  %v23416_v19 = vld [vmem:[%s30809_s4 + $0x175c] sm:$0xff]  }
 0x891   :  { %v21701_v22 = vpop.f32.mrb[96].mxu0  ;;  %21937 = vmatprep.subr.bf16.mxu1 %v23390_v3  ;;  %v11906_v3 = vpack.c.bf16 %v28098_v0, %v28098_v0  ;;  %v23405_v0 = vld [vmem:[%s30809_s4 + $0x16b8] sm:$0xff]   ;;  %v23414_v55 = vld [vmem:[%s30809_s4 + $0x16d0] sm:$0xff]  }
 0x892   :  { %v21702_v12 = vpop.f32.mrb[97].mxu0 }
 0x893   :  { %v29163_v16 = vadd.f32 %v21702_v12, %v21701_v22  ;;  %v21704_v46 = vpop.f32.mrb[98].mxu0  ;;  %21916 = vmatpush3.bf16.msra.mxu0 %v23391_v54  ;;  %v11909_v54 = vpack.c.bf16 %v28101_v26, %v28101_v26  ;;  %v23407_v26 = vld [vmem:[%s30809_s4 + $0x1744] sm:$0xff]   ;;  %v23410_v12 = vld [vmem:[%s30809_s4 + $0x174c] sm:$0xff]  }
 0x894   :  { %21938 = vmatpush3.bf16.msra.mxu1 %v23392_v61  ;;  %v21705_v60 = vpop.f32.mrb[99].mxu0  ;;  %21917 = vmatprep.subr.bf16.mxu0 %v23393_v24  ;;  %v12629_v61 = vpack.c.bf16 %v12621_v58, %v12621_v58  ;;  %v23406_v24 = vld [vmem:[%s30809_s4 + $0x16fc] sm:$0xff]   ;;  %v23409_v22 = vld [vmem:[%s30809_s4 + $0x1704] sm:$0xff]  }
 0x895   :  { %21939 = vmatprep.subr.bf16.mxu1 %v23394_v51  ;;  %v23408_v51 = vld [vmem:[%s30809_s4 + $0x16c0] sm:$0xff]   ;;  %v23412_v60 = vld [vmem:[%s30809_s4 + $0x170c] sm:$0xff]  }
 0x897   :  { %21918 = vmatpush3.bf16.msra.mxu0 %v23395_v63 }
 0x898   :  { %21940 = vmatpush3.bf16.msra.mxu1 %v23396_v42  ;;  %21919 = vmatprep.subr.bf16.mxu0 %v23397_v40 }
 0x899   :  { %21941 = vmatprep.subr.bf16.mxu1 %v23398_v44  ;;  %v23411_v44 = vld [vmem:[%s30809_s4 + $0x16c8] sm:$0xff]  }
 0x89b   :  { %21920 = vmatpush3.bf16.msra.mxu0 %v23399_v27  ;;  %v23413_v27 = vld [vmem:[%s30809_s4 + $0x1754] sm:$0xff]  }
 0x89c   :  { %21942 = vmatpush3.bf16.msra.mxu1 %v23400_v59  ;;  %21949 = vmatprep.subr.bf16.mxu0 %v23401_v62  ;;  %v23415_v62 = vld [vmem:[%s30809_s4 + $0x1714] sm:$0xff]  }
 0x89d   :  { %12489 = vmatprep.subr.bf16.mxu1 %v31034_v52 }
 0x89e   :  { %12442 = vmatmul.mubr.bf16.vlgmr.msra.gmra.mrb[124].mxu0 %v11904_v23  ;;  %v23417_v23 = vld [vmem:[%s30809_s4 + $0x16d8] sm:$0xff]  }
 0x89f   :  { %12482 = vmatmul.mubr.bf16.vlgmr.msra.gmra.mrb[76].mxu1 %v11906_v3  ;;  %21950 = vmatpush3.bf16.msra.mxu0 %v23403_v43  ;;  %v23418_v43 = vld [vmem:[%s30809_s4 + $0x171c] sm:$0xff]  }
 0x8a0   :  { %12490 = vmatpush1.bf16.msra.mxu1 %v23402_v1  ;;  %19891 = vmatprep.mubr.msk.bf16.mxu1 %vm303_vm8, %v11909_v54  ;;  %v23419_v1 = vld [vmem:[%s30809_s4 + $0x1764] sm:$0xff]  }
 0x8a1   :  { %13127 = vmatprep.mubr.bf16.mxu0 %v12629_v61  ;;  %12491 = vmatprep.subr.bf16.mxu1 %v31034_v52  ;;  %v23421_v61 = vld [vmem:[%s30809_s4 + $0x1724] sm:$0xff]  }
 0x8a2   :  { %21951 = vmatprep.subr.bf16.mxu0 %v23404_v20 }
 0x8a3   :  { %21952 = vmatpush3.bf16.msra.mxu0 %v23406_v24 }
 0x8a4   :  { %12492 = vmatpush1.bf16.msra.mxu1 %v23405_v0  ;;  %21953 = vmatprep.subr.bf16.mxu0 %v23407_v26  ;;  %v23420_v0 = vld [vmem:[%s30809_s4 + $0x16e0] sm:$0xff]   ;;  %v23422_v26 = vld [vmem:[%s30809_s4 + $0x176c] sm:$0xff]  }
 0x8a5   :  { %12493 = vmatprep.subr.bf16.mxu1 %v31034_v52 }
 0x8a6   :  { %v21745_v46 = vpop.f32.mrb[64].mxu1 }
 0x8a7   :  { %v21746_v63 = vpop.f32.mrb[65].mxu1  ;;  %21954 = vmatpush3.bf16.msra.mxu0 %v23409_v22 }
 0x8a8   :  { %v21747_v42 = vadd.f32 %v21746_v63, %v21745_v46  ;;  %v21748_v40 = vpop.f32.mrb[66].mxu1  ;;  %12494 = vmatpush1.bf16.msra.mxu1 %v23408_v51  ;;  %21955 = vmatprep.subr.bf16.mxu0 %v23410_v12  ;;  %v12583_v51 = vrot.slane %v28107_v36, %v31037_v13  ;;  %v12595_v12 = vrot.slane %v28107_v36, %v31036_v56  ;;  %v23424_v63 = vld [vmem:[%s30809_s4 + $0x172c] sm:$0xff]  }
 0x8a9   :  { %v21749_v59 = vpop.f32.mrb[67].mxu1  ;;  %12495 = vmatprep.subr.bf16.mxu1 %v31034_v52  ;;  %v23425_v40 = vld [vmem:[%s30809_s4 + $0x17b4] sm:$0xff]  }
 0x8aa   :  { %v23426_v59 = vld [vmem:[%s30809_s4 + $0x16f0] ss:$0 sps:$4 sm:$0x33]  }
 0x8ab   :  { %21956 = vmatpush3.bf16.msra.mxu0 %v23412_v60  ;;  %v12542_v60 = vrot.slane %v28103_v25, %v31037_v13 }
 0x8ac   :  { %12496 = vmatpush1.bf16.msra.mxu1 %v23411_v44  ;;  %21957 = vmatprep.subr.bf16.mxu0 %v23413_v27 }
 0x8ad   :  { %12497 = vmatprep.subr.bf16.mxu1 %v31034_v52  ;;  %v12620_v27 = vsel %vm366_vm12, %v12542_v60, %v12583_v51  ;;  %v23434_v51 = vld [vmem:[%s30809_s4 + $0x1784] sm:$0xff]  }
 0x8ae   :  { %v23439_v60 = vld [vmem:[%s30809_s4 + $0x1804] sm:$0xff]  }
 0x8af   :  { %21958 = vmatpush3.bf16.msra.mxu0 %v23415_v62 }
 0x8b0   :  { %12498 = vmatpush1.bf16.msra.mxu1 %v23414_v55  ;;  %21959 = vmatprep.subr.bf16.mxu0 %v23416_v19  ;;  %v23427_v55 = vld [vmem:[%s30809_s4 + $0x1774] sm:$0xff]   ;;  %v12603_v19 = vrot.slane %v28107_v36, %v31039_v5 }
 0x8b1   :  { %v21723_v58 = vpop.f32.mrb[100].mxu0  ;;  %12499 = vmatprep.subr.bf16.mxu1 %v31034_v52 }
 0x8b2   :  { %v21724_v3 = vpop.f32.mrb[101].mxu0 }
 0x8b3   :  { %v21725_v54 = vadd.f32 %v21724_v3, %v21723_v58  ;;  %v21726_v20 = vpop.f32.mrb[102].mxu0  ;;  %21960 = vmatpush3.bf16.msra.mxu0 %v23418_v43  ;;  %v23428_v43 = vld [vmem:[%s30809_s4 + $0x17bc] sm:$0xff]   ;;  %v23429_v58 = vld [vmem:[%s30809_s4 + $0x1834] sm:$0xff]   ;;  %v12562_v3 = vrot.slane %v28103_v25, %v31039_v5 }
 0x8b4   :  { %12500 = vmatpush1.bf16.msra.mxu1 %v23417_v23  ;;  %v21727_v24 = vpop.f32.mrb[103].mxu0  ;;  %21961 = vmatprep.subr.bf16.mxu0 %v23419_v1  ;;  %v12367_v23 = vsel %vm3653_vm1, %v23426_v59, 0  ;;  %v23444_v59 = vld [vmem:[%s30809_s4 + $0x17dc] sm:$0xff]  }
 0x8b5   :  { %v10266_v22 = vadd.f32 %v21725_v54, %v29163_v16  ;;  %12501 = vmatprep.subr.bf16.mxu1 %v31034_v52  ;;  %v23423_v16 = vld [vmem:[%s30809_s4 + $0x16e8] sm:$0xff]   ;;  %v23430_v54 = vld [vmem:[%s30809_s4 + $0x177c] sm:$0xff]   ;;  %v12625_v20 = vsel %vm366_vm12, %v12562_v3, %v12603_v19  ;;  %v11908_v24 = vpack.c.bf16 %v28127_v30, %v28127_v30  ;;  %v23447_v19 = vld [vmem:[%s30809_s4 + $0x1814] sm:$0xff]  }
 0x8b6   :  { %v23435_v30 = vld [vmem:[%s30809_s4 + $0x17fc] sm:$0xff]  }
 0x8b7   :  { %v10306_v46 = vadd.f32 %v21747_v42, %v10266_v22  ;;  %21962 = vmatpush3.bf16.msra.mxu0 %v23421_v61  ;;  %v12554_v42 = vrot.slane %v28103_v25, %v31036_v56  ;;  %v23431_v61 = vld [vmem:[%s30809_s4 + $0x17f4] sm:$0xff]   ;;  %v12633_v22 = vpack.c.bf16 %v12625_v20, %v12625_v20 }
 0x8b8   :  { %12502 = vmatpush1.bf16.msra.mxu1 %v23420_v0  ;;  %21963 = vmatprep.subr.bf16.mxu0 %v23422_v26  ;;  %v23432_v0 = vld [vmem:[%s30809_s4 + $0x17c4] sm:$0xff]   ;;  %v23433_v26 = vld [vmem:[%s30809_s4 + $0x183c] sm:$0xff]  }
 0x8b9   :  { %v29287_v44 = vadd.f32 %v29075_v45, %v10306_v46  ;;  %12503 = vmatprep.subr.bf16.mxu1 %v31034_v52  ;;  %v12623_v62 = vsel %vm366_vm12, %v12554_v42, %v12595_v12  ;;  %v12628_v45 = vpack.c.bf16 %v12620_v27, %v12620_v27  ;;  %v23436_v12 = vld [vmem:[%s30809_s4 + $0x17cc] sm:$0xff]   ;;  %v23437_v46 = vld [vmem:[%s30809_s4 + $0x1844] sm:$0xff]   ;;  %v23442_v42 = vld [vmem:[%s30809_s4 + $0x1794] sm:$0xff]  }
 0x8ba   :  { %v12631_v1 = vpack.c.bf16 %v12623_v62, %v12623_v62  ;;  %v23443_v27 = vld [vmem:[%s30809_s4 + $0x180c] sm:$0xff]   ;;  %v23445_v62 = vld [vmem:[%s30809_s4 + $0x1854] sm:$0xff]  }
 0x8bb   :  { %21964 = vmatpush3.bf16.msra.mxu0 %v23424_v63  ;;  %v23438_v63 = vld [vmem:[%s30809_s4 + $0x178c] sm:$0xff]  }
 0x8bc   :  { %12504 = vmatpush1.bf16.msra.mxu1 %v23423_v16  ;;  %21971 = vmatprep.subr.bf16.mxu0 %v23425_v40  ;;  %v23440_v16 = vld [vmem:[%s30809_s4 + $0x17d4] sm:$0xff]   ;;  %v23441_v40 = vld [vmem:[%s30809_s4 + $0x184c] sm:$0xff]  }
 0x8bd   :  { %12505 = vmatprep.subr.bf16.mxu1 %v31034_v52 }
 0x8be   :  { %13128 = vmatmul.mubr.bf16.vlgmr.msra.gmra.mrb[128].mxu0 %v12628_v45  ;;  %v23448_v45 = vld [vmem:[%s30809_s4 + $0x17e4] sm:$0xff]  }
 0x8bf   :  { %21972 = vmatpush3.bf16.msra.mxu0 %v23427_v55  ;;  %13167 = vmatprep.mubr.bf16.mxu0 %v12631_v1  ;;  %v23446_v55 = vld [vmem:[%s30809_s4 + $0x179c] sm:$0xff]  }
 0x8c0   :  { %12506 = vmatpush1.bf16.msra.mxu1 %v12367_v23  ;;  %21973 = vmatprep.subr.bf16.mxu0 %v23428_v43  ;;  %v23449_v23 = vld [vmem:[%s30809_s4 + $0x185c] sm:$0xff]  }
 0x8c1   :  { %21993 = vmatprep.subr.bf16.mxu1 %v23429_v58 }
 0x8c3   :  { %12522 = vmatmul.mubr.bf16.vlgmr.msra.gmra.mrb[28].mxu1 %v11908_v24  ;;  %21974 = vmatpush3.bf16.msra.mxu0 %v23430_v54  ;;  %v23450_v54 = vld [vmem:[%s30809_s4 + $0x17a4] sm:$0xff]   ;;  %v23452_v24 = vld [vmem:[%s30809_s4 + $0x17ec] sm:$0xff]  }
 0x8c4   :  { %21994 = vmatpush3.bf16.msra.mxu1 %v23431_v61  ;;  %13207 = vmatprep.mubr.bf16.mxu1 %v12633_v22  ;;  %v23451_v61 = vld [vmem:[%s30809_s4 + $0x181c] sm:$0xff]   ;;  %v13313_v22 = vrot.slane %v28133_v9, %v31035_v7 }
 0x8c5   :  { %21975 = vmatprep.subr.bf16.mxu0 %v23432_v0  ;;  %21995 = vmatprep.subr.bf16.mxu1 %v23433_v26  ;;  %v23453_v0 = vld [vmem:[%s30809_s4 + $0x1864] sm:$0xff]   ;;  %v12591_v26 = vrot.slane %v28107_v36, %v31038_v6  ;;  %v23457_v36 = vld [vmem:[%s30809_s4 + $0x18f8] sm:$0xff]  }
 0x8c7   :  { %21976 = vmatpush3.bf16.msra.mxu0 %v23434_v51  ;;  %v23454_v51 = vld [vmem:[%s30809_s4 + $0x17ac] sm:$0xff]  }
 0x8c8   :  { %21996 = vmatpush3.bf16.msra.mxu1 %v23435_v30  ;;  %21977 = vmatprep.subr.bf16.mxu0 %v23436_v12  ;;  %v12550_v30 = vrot.slane %v28103_v25, %v31038_v6  ;;  %v23455_v12 = vld [vmem:[%s30809_s4 + $0x1824] sm:$0xff]   ;;  %v23456_v25 = vld [vmem:[%s30809_s4 + $0x186c] sm:$0xff]  }
 0x8c9   :  { %21997 = vmatprep.subr.bf16.mxu1 %v23437_v46  ;;  %v13272_v46 = vrot.slane %v28141_v49, %v31035_v7 }
 0x8cb   :  { %21978 = vmatpush3.bf16.msra.mxu0 %v23438_v63  ;;  %v12622_v63 = vsel %vm366_vm12, %v12550_v30, %v12591_v26 }
 0x8cc   :  { %21998 = vmatpush3.bf16.msra.mxu1 %v23439_v60  ;;  %21979 = vmatprep.subr.bf16.mxu0 %v23440_v16  ;;  %v13347_v60 = vsel %vm366_vm12, %v13272_v46, %v13313_v22  ;;  %v23459_v16 = vld [vmem:[%s30809_s4 + $0x18b8] sm:$0xff]   ;;  %v23470_v22 = vld [vmem:[%s30809_s4 + $0x188c] sm:$0xff]  }
 0x8cd   :  { %21999 = vmatprep.subr.bf16.mxu1 %v23441_v40  ;;  %v12630_v40 = vpack.c.bf16 %v12622_v63, %v12622_v63  ;;  %v23475_v46 = vld [vmem:[%s30809_s4 + $0x1928] sm:$0xff]  }
 0x8cf   :  { %21980 = vmatpush3.bf16.msra.mxu0 %v23442_v42  ;;  %v23458_v42 = vld [vmem:[%s30809_s4 + $0x182c] sm:$0xff]  }
 0x8d0   :  { %22000 = vmatpush3.bf16.msra.mxu1 %v23443_v27  ;;  %21981 = vmatprep.subr.bf16.mxu0 %v23444_v59  ;;  %v23460_v27 = vld [vmem:[%s30809_s4 + $0x1900] sm:$0xff]   ;;  %v13355_v59 = vpack.c.bf16 %v13347_v60, %v13347_v60 }
 0x8d1   :  { %v21767_v43 = vpop.f32.mrb[104].mxu0  ;;  %22001 = vmatprep.subr.bf16.mxu1 %v23445_v62  ;;  %v23462_v62 = vld [vmem:[%s30809_s4 + $0x18c0] sm:$0xff]  }
 0x8d2   :  { %v21768_v1 = vpop.f32.mrb[105].mxu0 }
 0x8d3   :  { %v29373_v58 = vadd.f32 %v21768_v1, %v21767_v43  ;;  %v21770_v3 = vpop.f32.mrb[106].mxu0  ;;  %21982 = vmatpush3.bf16.msra.mxu0 %v23446_v55  ;;  %v23461_v55 = vld [vmem:[%s30809_s4 + $0x1874] sm:$0xff]   ;;  %v12635_v43 = vpack.c.bf16 %v28157_v57, %v28157_v57 }
 0x8d4   :  { %22002 = vmatpush3.bf16.msra.mxu1 %v23447_v19  ;;  %v21771_v20 = vpop.f32.mrb[107].mxu0  ;;  %21983 = vmatprep.subr.bf16.mxu0 %v23448_v45  ;;  %v12632_v19 = vpack.c.bf16 %v28154_v35, %v28154_v35  ;;  %v23463_v45 = vld [vmem:[%s30809_s4 + $0x1908] sm:$0xff]   ;;  %v23464_v35 = vld [vmem:[%s30809_s4 + $0x187c] sm:$0xff]   ;;  %v23466_v1 = vld [vmem:[%s30809_s4 + $0x1910] sm:$0xff]  }
 0x8d5   :  { %22003 = vmatprep.subr.bf16.mxu1 %v23449_v23  ;;  %v23465_v23 = vld [vmem:[%s30809_s4 + $0x18c8] sm:$0xff]   ;;  %v23468_v57 = vld [vmem:[%s30809_s4 + $0x18d0] sm:$0xff]  }
 0x8d6   :  { %v23467_v3 = vld [vmem:[%s30809_s4 + $0x1884] sm:$0xff]  }
 0x8d7   :  { %21984 = vmatpush3.bf16.msra.mxu0 %v23450_v54  ;;  %v23469_v54 = vld [vmem:[%s30809_s4 + $0x1918] sm:$0xff]  }
 0x8d8   :  { %22004 = vmatpush3.bf16.msra.mxu1 %v23451_v61  ;;  %21985 = vmatprep.subr.bf16.mxu0 %v23452_v24  ;;  %v23471_v24 = vld [vmem:[%s30809_s4 + $0x18d8] sm:$0xff]  }
 0x8d9   :  { %22005 = vmatprep.subr.bf16.mxu1 %v23453_v0 }
 0x8db   :  { %21986 = vmatpush3.bf16.msra.mxu0 %v23454_v51  ;;  %v23472_v51 = vld [vmem:[%s30809_s4 + $0x1920] sm:$0xff]  }
 0x8dc   :  { %22006 = vmatpush3.bf16.msra.mxu1 %v23455_v12  ;;  %22015 = vmatprep.subr.bf16.mxu0 %v23457_v36  ;;  %v23474_v12 = vld [vmem:[%s30809_s4 + $0x18e0] sm:$0xff]   ;;  %v23473_v36 = vld [vmem:[%s30809_s4 + $0x1894] sm:$0xff]  }
 0x8dd   :  { %22007 = vmatprep.subr.bf16.mxu1 %v23456_v25 }
 0x8de   :  { %13168 = vmatmul.mubr.bf16.vlgmr.msra.gmra.mrb[132].mxu0 %v12630_v40  ;;  %v23477_v40 = vld [vmem:[%s30809_s4 + $0x18e8] sm:$0xff]  }
 0x8df   :  { %22016 = vmatpush3.bf16.msra.mxu0 %v23459_v16  ;;  %13853 = vmatprep.mubr.bf16.mxu0 %v13355_v59  ;;  %v23478_v59 = vld [vmem:[%s30809_s4 + $0x1930] sm:$0xff]  }
 0x8e0   :  { %22008 = vmatpush3.bf16.msra.mxu1 %v23458_v42  ;;  %22017 = vmatprep.subr.bf16.mxu0 %v23460_v27  ;;  %v23476_v27 = vld [vmem:[%s30809_s4 + $0x189c] sm:$0xff]  }
 0x8e1   :  { %13215 = vmatprep.subr.bf16.mxu1 %v31034_v52 }
 0x8e3   :  { %13208 = vmatmul.mubr.bf16.vlgmr.msra.gmra.mrb[80].mxu1 %v12632_v19  ;;  %22018 = vmatpush3.bf16.msra.mxu0 %v23462_v62  ;;  %v13321_v19 = vrot.slane %v28133_v9, %v31036_v56 }
 0x8e4   :  { %13216 = vmatpush1.bf16.msra.mxu1 %v23461_v55  ;;  %20062 = vmatprep.mubr.msk.bf16.mxu1 %vm303_vm8, %v12635_v43  ;;  %v13309_v55 = vrot.slane %v28133_v9, %v31037_v13  ;;  %v23480_v43 = vld [vmem:[%s30809_s4 + $0x18f0] sm:$0xff]  }
 0x8e5   :  { %13217 = vmatprep.subr.bf16.mxu1 %v31034_v52  ;;  %22019 = vmatprep.subr.bf16.mxu0 %v23463_v45 }
 0x8e7   :  { %22020 = vmatpush3.bf16.msra.mxu0 %v23465_v23  ;;  %v13268_v23 = vrot.slane %v28141_v49, %v31037_v13 }
 0x8e8   :  { %13218 = vmatpush1.bf16.msra.mxu1 %v23464_v35  ;;  %22021 = vmatprep.subr.bf16.mxu0 %v23466_v1  ;;  %v23481_v35 = vld [vmem:[%s30809_s4 + $0x1978] sm:$0xff]   ;;  %v13280_v1 = vrot.slane %v28141_v49, %v31036_v56 }
 0x8e9   :  { %13219 = vmatprep.subr.bf16.mxu1 %v31034_v52 }
 0x8ea   :  { %v21811_v20 = vpop.f32.mrb[68].mxu1 }
 0x8eb   :  { %v21812_v61 = vpop.f32.mrb[69].mxu1  ;;  %22022 = vmatpush3.bf16.msra.mxu0 %v23468_v57 }
 0x8ec   :  { %v21813_v0 = vadd.f32 %v21812_v61, %v21811_v20  ;;  %v21814_v26 = vpop.f32.mrb[70].mxu1  ;;  %13220 = vmatpush1.bf16.msra.mxu1 %v23467_v3  ;;  %22023 = vmatprep.subr.bf16.mxu0 %v23469_v54  ;;  %v13346_v3 = vsel %vm366_vm12, %v13268_v23, %v13309_v55  ;;  %v13349_v54 = vsel %vm366_vm12, %v13280_v1, %v13321_v19  ;;  %v23483_v20 = vld [vmem:[%s30809_s4 + $0x1938] sm:$0xff]   ;;  %v23498_v55 = vld [vmem:[%s30809_s4 + $0x19c8] sm:$0xff]   ;;  %v23499_v19 = vld [vmem:[%s30809_s4 + $0x19a0] sm:$0xff]  }
 0x8ed   :  { %v21815_v30 = vpop.f32.mrb[71].mxu1  ;;  %13221 = vmatprep.subr.bf16.mxu1 %v31034_v52  ;;  %v13354_v61 = vpack.c.bf16 %v13346_v3, %v13346_v3  ;;  %v23485_v26 = vld [vmem:[%s30809_s4 + $0x18b4] ss:$0 sps:$4 sm:$0x33]   ;;  %v23504_v1 = vld [vmem:[%s30809_s4 + $0x1a18] sm:$0xff]  }
 0x8ee   :  { %v23487_v30 = vld [vmem:[%s30809_s4 + $0x1988] sm:$0xff]   ;;  %v23502_v23 = vld [vmem:[%s30809_s4 + $0x19d0] sm:$0xff]  }
 0x8ef   :  { %22024 = vmatpush3.bf16.msra.mxu0 %v23471_v24  ;;  %v23482_v24 = vld [vmem:[%s30809_s4 + $0x18ac] sm:$0xff]  }
 0x8f0   :  { %13222 = vmatpush1.bf16.msra.mxu1 %v23470_v22  ;;  %22025 = vmatprep.subr.bf16.mxu0 %v23472_v51  ;;  %v23486_v22 = vld [vmem:[%s30809_s4 + $0x1940] sm:$0xff]   ;;  %v13329_v51 = vrot.slane %v28133_v9, %v31039_v5  ;;  %v23489_v9 = vld [vmem:[%s30809_s4 + $0x1948] sm:$0xff]  }
 0x8f1   :  { %v21789_v63 = vpop.f32.mrb[108].mxu0  ;;  %13223 = vmatprep.subr.bf16.mxu1 %v31034_v52 }
 0x8f2   :  { %v21790_v25 = vpop.f32.mrb[109].mxu0 }
 0x8f3   :  { %v21791_v60 = vadd.f32 %v21790_v25, %v21789_v63  ;;  %v21792_v16 = vpop.f32.mrb[110].mxu0  ;;  %22026 = vmatpush3.bf16.msra.mxu0 %v23474_v12  ;;  %v13093_v12 = vsel %vm3653_vm1, %v23485_v26, 0  ;;  %v23490_v25 = vld [vmem:[%s30809_s4 + $0x19b8] sm:$0xff]   ;;  %v23508_v26 = vld [vmem:[%s30809_s4 + $0x1a20] sm:$0xff]  }
 0x8f4   :  { %13224 = vmatpush1.bf16.msra.mxu1 %v23473_v36  ;;  %v21793_v42 = vpop.f32.mrb[111].mxu0  ;;  %22027 = vmatprep.subr.bf16.mxu0 %v23475_v46  ;;  %v23488_v36 = vld [vmem:[%s30809_s4 + $0x19f8] sm:$0xff]   ;;  %v13288_v46 = vrot.slane %v28141_v49, %v31039_v5  ;;  %v23491_v49 = vld [vmem:[%s30809_s4 + $0x1990] sm:$0xff]   ;;  %v23492_v16 = vld [vmem:[%s30809_s4 + $0x1a00] sm:$0xff]  }
 0x8f5   :  { %v10992_v62 = vadd.f32 %v21791_v60, %v29373_v58  ;;  %13225 = vmatprep.subr.bf16.mxu1 %v31034_v52  ;;  %v23479_v58 = vld [vmem:[%s30809_s4 + $0x18a4] sm:$0xff]   ;;  %v12634_v60 = vpack.c.bf16 %v28183_v31, %v28183_v31  ;;  %v23493_v42 = vld [vmem:[%s30809_s4 + $0x1950] sm:$0xff]  }
 0x8f6   :  { %v13351_v63 = vsel %vm366_vm12, %v13288_v46, %v13329_v51  ;;  %v23494_v31 = vld [vmem:[%s30809_s4 + $0x19c0] sm:$0xff]   ;;  %v23509_v51 = vld [vmem:[%s30809_s4 + $0x1970] sm:$0xff]   ;;  %v23511_v46 = vld [vmem:[%s30809_s4 + $0x1a28] sm:$0xff]  }
 0x8f7   :  { %v11032_v45 = vadd.f32 %v21813_v0, %v10992_v62  ;;  %22028 = vmatpush3.bf16.msra.mxu0 %v23477_v40  ;;  %v13357_v0 = vpack.c.bf16 %v13349_v54, %v13349_v54  ;;  %v13359_v40 = vpack.c.bf16 %v13351_v63, %v13351_v63  ;;  %v23497_v62 = vld [vmem:[%s30809_s4 + $0x1958] sm:$0xff]  }
 0x8f8   :  { %13226 = vmatpush1.bf16.msra.mxu1 %v23476_v27  ;;  %22029 = vmatprep.subr.bf16.mxu0 %v23478_v59  ;;  %v23495_v27 = vld [vmem:[%s30809_s4 + $0x1998] sm:$0xff]   ;;  %v23496_v59 = vld [vmem:[%s30809_s4 + $0x1a08] sm:$0xff]  }
 0x8f9   :  { %v29502_v57 = vadd.f32 %v29287_v44, %v11032_v45  ;;  %13227 = vmatprep.subr.bf16.mxu1 %v31034_v52  ;;  %v23484_v44 = vld [vmem:[%s30809_s4 + $0x1980] sm:$0xff]   ;;  %v23500_v45 = vld [vmem:[%s30809_s4 + $0x1a10] sm:$0xff]  }
 0x8fa   :  { %v23514_v63 = vld [vmem:[%s30809_s4 + $0x1a7c] sm:$0xff]  }
 0x8fb   :  { %22030 = vmatpush3.bf16.msra.mxu0 %v23480_v43  ;;  %v23501_v43 = vld [vmem:[%s30809_s4 + $0x1960] sm:$0xff]  }
 0x8fc   :  { %13228 = vmatpush1.bf16.msra.mxu1 %v23479_v58  ;;  %22037 = vmatprep.subr.bf16.mxu0 %v23481_v35  ;;  %v23503_v58 = vld [vmem:[%s30809_s4 + $0x19a8] sm:$0xff]  }
 0x8fd   :  { %13229 = vmatprep.subr.bf16.mxu1 %v31034_v52 }
 0x8fe   :  { %13854 = vmatmul.mubr.bf16.vlgmr.msra.gmra.mrb[136].mxu0 %v13354_v61  ;;  %v23505_v61 = vld [vmem:[%s30809_s4 + $0x1968] sm:$0xff]  }
 0x8ff   :  { %22038 = vmatpush3.bf16.msra.mxu0 %v23483_v20  ;;  %13893 = vmatprep.mubr.bf16.mxu0 %v13357_v0  ;;  %v23507_v0 = vld [vmem:[%s30809_s4 + $0x19b0] sm:$0xff]  }
 0x900   :  { %13230 = vmatpush1.bf16.msra.mxu1 %v23482_v24  ;;  %22039 = vmatprep.subr.bf16.mxu0 %v23484_v44  ;;  %v23506_v44 = vld [vmem:[%s30809_s4 + $0x19d8] sm:$0xff]  }
 0x901   :  { %13231 = vmatprep.subr.bf16.mxu1 %v31034_v52 }
 0x903   :  { %22040 = vmatpush3.bf16.msra.mxu0 %v23486_v22  ;;  %v14039_v22 = vrot.slane %v28189_v2, %v31035_v7 }
 0x904   :  { %13232 = vmatpush1.bf16.msra.mxu1 %v13093_v12  ;;  %22041 = vmatprep.subr.bf16.mxu0 %v23487_v30  ;;  %v23510_v30 = vld [vmem:[%s30809_s4 + $0x19e0] sm:$0xff]  }
 0x905   :  { %22059 = vmatprep.subr.bf16.mxu1 %v23488_v36  ;;  %v23512_v12 = vld [vmem:[%s30809_s4 + $0x1abc] sm:$0xff]   ;;  %v13998_v36 = vrot.slane %v28187_v15, %v31035_v7 }
 0x907   :  { %13248 = vmatmul.mubr.bf16.vlgmr.msra.gmra.mrb[28].mxu1 %v12634_v60  ;;  %22042 = vmatpush3.bf16.msra.mxu0 %v23489_v9  ;;  %v14073_v9 = vsel %vm366_vm12, %v13998_v36, %v14039_v22  ;;  %v23513_v60 = vld [vmem:[%s30809_s4 + $0x19e8] sm:$0xff]  }
 0x908   :  { %22060 = vmatpush3.bf16.msra.mxu1 %v23490_v25  ;;  %13933 = vmatprep.mubr.bf16.mxu1 %v13359_v40  ;;  %v13356_v25 = vpack.c.bf16 %v28192_v39, %v28192_v39  ;;  %v23515_v40 = vld [vmem:[%s30809_s4 + $0x1a30] sm:$0xff]   ;;  %v23518_v39 = vld [vmem:[%s30809_s4 + $0x1a84] sm:$0xff]  }
 0x909   :  { %22043 = vmatprep.subr.bf16.mxu0 %v23491_v49  ;;  %22061 = vmatprep.subr.bf16.mxu1 %v23492_v16  ;;  %v23516_v49 = vld [vmem:[%s30809_s4 + $0x1ac4] sm:$0xff]   ;;  %v14081_v16 = vpack.c.bf16 %v14073_v9, %v14073_v9  ;;  %v23534_v9 = vld [vmem:[%s30809_s4 + $0x1af4] sm:$0xff]  }
 0x90b   :  { %22044 = vmatpush3.bf16.msra.mxu0 %v23493_v42  ;;  %v23517_v42 = vld [vmem:[%s30809_s4 + $0x19f0] sm:$0xff]  }
 0x90c   :  { %22062 = vmatpush3.bf16.msra.mxu1 %v23494_v31  ;;  %22045 = vmatprep.subr.bf16.mxu0 %v23495_v27  ;;  %v23519_v31 = vld [vmem:[%s30809_s4 + $0x1acc] sm:$0xff]  }
 0x90d   :  { %22063 = vmatprep.subr.bf16.mxu1 %v23496_v59  ;;  %v23521_v27 = vld [vmem:[%s30809_s4 + $0x1a8c] sm:$0xff]   ;;  %v23520_v59 = vld [vmem:[%s30809_s4 + $0x1a38] sm:$0xff]  }
 0x90f   :  { %22046 = vmatpush3.bf16.msra.mxu0 %v23497_v62  ;;  %v13358_v62 = vpack.c.bf16 %v28195_v38, %v28195_v38  ;;  %v23523_v38 = vld [vmem:[%s30809_s4 + $0x1a40] sm:$0xff]  }
 0x910   :  { %22064 = vmatpush3.bf16.msra.mxu1 %v23498_v55  ;;  %22047 = vmatprep.subr.bf16.mxu0 %v23499_v19  ;;  %v23522_v55 = vld [vmem:[%s30809_s4 + $0x1ad4] sm:$0xff]   ;;  %v13361_v19 = vpack.c.bf16 %v28212_v37, %v28212_v37  ;;  %v23527_v37 = vld [vmem:[%s30809_s4 + $0x1a9c] sm:$0xff]  }
 0x911   :  { %v21833_v35 = vpop.f32.mrb[112].mxu0  ;;  %22065 = vmatprep.subr.bf16.mxu1 %v23500_v45  ;;  %v23524_v45 = vld [vmem:[%s30809_s4 + $0x1a94] sm:$0xff]  }
 0x912   :  { %v21834_v3 = vpop.f32.mrb[113].mxu0 }
 0x913   :  { %v29586_v54 = vadd.f32 %v21834_v3, %v21833_v35  ;;  %v21836_v20 = vpop.f32.mrb[114].mxu0  ;;  %22048 = vmatpush3.bf16.msra.mxu0 %v23501_v43  ;;  %v23525_v43 = vld [vmem:[%s30809_s4 + $0x1adc] sm:$0xff]   ;;  %v23530_v3 = vld [vmem:[%s30809_s4 + $0x1aa4] sm:$0xff]  }
 0x914   :  { %22066 = vmatpush3.bf16.msra.mxu1 %v23502_v23  ;;  %v21837_v24 = vpop.f32.mrb[115].mxu0  ;;  %22049 = vmatprep.subr.bf16.mxu0 %v23503_v58  ;;  %v23526_v23 = vld [vmem:[%s30809_s4 + $0x1a48] sm:$0xff]  }
 0x915   :  { %22067 = vmatprep.subr.bf16.mxu1 %v23504_v1  ;;  %v23528_v58 = vld [vmem:[%s30809_s4 + $0x1ae4] sm:$0xff]   ;;  %v23529_v24 = vld [vmem:[%s30809_s4 + $0x1a50] sm:$0xff]  }
 0x917   :  { %22050 = vmatpush3.bf16.msra.mxu0 %v23505_v61 }
 0x918   :  { %22068 = vmatpush3.bf16.msra.mxu1 %v23506_v44  ;;  %22051 = vmatprep.subr.bf16.mxu0 %v23507_v0  ;;  %v23531_v44 = vld [vmem:[%s30809_s4 + $0x1aec] sm:$0xff]  }
 0x919   :  { %22069 = vmatprep.subr.bf16.mxu1 %v23508_v26 }
 0x91b   :  { %22052 = vmatpush3.bf16.msra.mxu0 %v23509_v51 }
 0x91c   :  { %22070 = vmatpush3.bf16.msra.mxu1 %v23510_v30  ;;  %22081 = vmatprep.subr.bf16.mxu0 %v23512_v12  ;;  %v23533_v12 = vld [vmem:[%s30809_s4 + $0x1aac] sm:$0xff]  }
 0x91d   :  { %22071 = vmatprep.subr.bf16.mxu1 %v23511_v46  ;;  %v23532_v46 = vld [vmem:[%s30809_s4 + $0x1a58] sm:$0xff]  }
 0x91e   :  { %13894 = vmatmul.mubr.bf16.vlgmr.msra.gmra.mrb[140].mxu0 %v13356_v25  ;;  %v14035_v25 = vrot.slane %v28189_v2, %v31037_v13 }
 0x91f   :  { %22082 = vmatpush3.bf16.msra.mxu0 %v23514_v63  ;;  %14579 = vmatprep.mubr.bf16.mxu0 %v14081_v16  ;;  %v23536_v16 = vld [vmem:[%s30809_s4 + $0x1ab4] sm:$0xff]  }
 0x920   :  { %22072 = vmatpush3.bf16.msra.mxu1 %v23513_v60  ;;  %22083 = vmatprep.subr.bf16.mxu0 %v23516_v49  ;;  %v14047_v60 = vrot.slane %v28189_v2, %v31036_v56 }
 0x921   :  { %22073 = vmatprep.subr.bf16.mxu1 %v23515_v40  ;;  %v13994_v40 = vrot.slane %v28187_v15, %v31037_v13 }
 0x923   :  { %22084 = vmatpush3.bf16.msra.mxu0 %v23518_v39  ;;  %v23537_v39 = vld [vmem:[%s30809_s4 + $0x1b3c] sm:$0xff]  }
 0x924   :  { %22074 = vmatpush3.bf16.msra.mxu1 %v23517_v42  ;;  %22085 = vmatprep.subr.bf16.mxu0 %v23519_v31  ;;  %v14006_v42 = vrot.slane %v28187_v15, %v31036_v56  ;;  %v14072_v31 = vsel %vm366_vm12, %v13994_v40, %v14035_v25  ;;  %v23558_v25 = vld [vmem:[%s30809_s4 + $0x1b6c] sm:$0xff]  }
 0x925   :  { %13941 = vmatprep.subr.bf16.mxu1 %v31034_v52 }
 0x927   :  { %13934 = vmatmul.mubr.bf16.vlgmr.msra.gmra.mrb[84].mxu1 %v13358_v62  ;;  %22086 = vmatpush3.bf16.msra.mxu0 %v23521_v27  ;;  %v23539_v62 = vld [vmem:[%s30809_s4 + $0x1afc] sm:$0xff]  }
 0x928   :  { %13942 = vmatpush1.bf16.msra.mxu1 %v23520_v59  ;;  %20233 = vmatprep.mubr.msk.bf16.mxu1 %vm303_vm8, %v13361_v19  ;;  %v14075_v59 = vsel %vm366_vm12, %v14006_v42, %v14047_v60  ;;  %v23538_v19 = vld [vmem:[%s30809_s4 + $0x1a68] sm:$0xff]  }
 0x929   :  { %13943 = vmatprep.subr.bf16.mxu1 %v31034_v52  ;;  %22087 = vmatprep.subr.bf16.mxu0 %v23522_v55  ;;  %v14080_v55 = vpack.c.bf16 %v14072_v31, %v14072_v31  ;;  %v23561_v31 = vld [vmem:[%s30809_s4 + $0x1b94] sm:$0xff]  }
 0x92b   :  { %22088 = vmatpush3.bf16.msra.mxu0 %v23524_v45  ;;  %v23540_v45 = vld [vmem:[%s30809_s4 + $0x1b44] sm:$0xff]  }
 0x92c   :  { %13944 = vmatpush1.bf16.msra.mxu1 %v23523_v38  ;;  %22089 = vmatprep.subr.bf16.mxu0 %v23525_v43  ;;  %v23542_v38 = vld [vmem:[%s30809_s4 + $0x1b04] sm:$0xff]   ;;  %v23541_v43 = vld [vmem:[%s30809_s4 + $0x1a70] sm:$0xff]  }
 0x92d   :  { %13945 = vmatprep.subr.bf16.mxu1 %v31034_v52 }
 0x92e   :  { %v21877_v35 = vpop.f32.mrb[72].mxu1 }
 0x92f   :  { %v21878_v1 = vpop.f32.mrb[73].mxu1  ;;  %22090 = vmatpush3.bf16.msra.mxu0 %v23527_v37  ;;  %v23543_v37 = vld [vmem:[%s30809_s4 + $0x1b4c] sm:$0xff]  }
 0x930   :  { %v21879_v20 = vadd.f32 %v21878_v1, %v21877_v35  ;;  %v21880_v61 = vpop.f32.mrb[74].mxu1  ;;  %13946 = vmatpush1.bf16.msra.mxu1 %v23526_v23  ;;  %22091 = vmatprep.subr.bf16.mxu0 %v23528_v58  ;;  %v23544_v23 = vld [vmem:[%s30809_s4 + $0x1a78] ss:$0 sps:$4 sm:$0x33]   ;;  %v23545_v58 = vld [vmem:[%s30809_s4 + $0x1b0c] sm:$0xff]   ;;  %v14055_v35 = vrot.slane %v28189_v2, %v31039_v5 }
 0x931   :  { %v21881_v0 = vpop.f32.mrb[75].mxu1  ;;  %v21855_v26 = vpop.f32.mrb[116].mxu0  ;;  %13947 = vmatprep.subr.bf16.mxu1 %v31034_v52  ;;  %v23546_v1 = vld [vmem:[%s30809_s4 + $0x1b54] sm:$0xff]   ;;  %v14014_v61 = vrot.slane %v28187_v15, %v31039_v5  ;;  %v23550_v15 = vld [vmem:[%s30809_s4 + $0x1b5c] sm:$0xff]  }
 0x932   :  { %v21856_v22 = vpop.f32.mrb[117].mxu0  ;;  %v23548_v2 = vld [vmem:[%s30809_s4 + $0x1b14] sm:$0xff]  }
 0x933   :  { %v21857_v51 = vadd.f32 %v21856_v22, %v21855_v26  ;;  %v21858_v30 = vpop.f32.mrb[118].mxu0  ;;  %22092 = vmatpush3.bf16.msra.mxu0 %v23530_v3  ;;  %v13819_v3 = vsel %vm3653_vm1, %v23544_v23, 0  ;;  %v31147_v0 = vld [vmem:[#allocation31_spill] sm:$0xff]  ;;  %v23551_v22 = vld [vmem:[%s30809_s4 + $0x1bc4] sm:$0xff]  }
 0x934   :  { %13948 = vmatpush1.bf16.msra.mxu1 %v23529_v24  ;;  %v21859_v36 = vpop.f32.mrb[119].mxu0  ;;  %22093 = vmatprep.subr.bf16.mxu0 %v23531_v44  ;;  %v14077_v24 = vsel %vm366_vm12, %v14014_v61, %v14055_v35  ;;  %v23549_v44 = vld [vmem:[%s30809_s4 + $0x1b7c] sm:$0xff]   ;;  %v13360_v26 = vpack.c.bf16 %v31147_v0, %v31147_v0  ;;  %v23570_v61 = vld [vmem:[%s30809_s4 + $0x1bec] sm:$0xff]   ;;  %v23574_v0 = vld [vmem:[%s30809_s4 + $0x1bf4] sm:$0xff]  }
 0x935   :  { %v11718_v63 = vadd.f32 %v21857_v51, %v29586_v54  ;;  %13949 = vmatprep.subr.bf16.mxu1 %v31034_v52  ;;  %v23535_v54 = vld [vmem:[%s30809_s4 + $0x1a60] sm:$0xff]   ;;  %v14085_v51 = vpack.c.bf16 %v14077_v24, %v14077_v24  ;;  %v23572_v24 = vld [vmem:[%s30809_s4 + $0x1bac] sm:$0xff]  }
 0x936   :  { %v23552_v30 = vld [vmem:[%s30809_s4 + $0x1b1c] sm:$0xff]   ;;  %v23554_v36 = vld [vmem:[%s30809_s4 + $0x1b64] sm:$0xff]  }
 0x937   :  { %v11758_v49 = vadd.f32 %v21879_v20, %v11718_v63  ;;  %22094 = vmatpush3.bf16.msra.mxu0 %v23533_v12  ;;  %v23547_v20 = vld [vmem:[%s30809_s4 + $0x1bbc] sm:$0xff]   ;;  %v23553_v12 = vld [vmem:[%s30809_s4 + $0x1b84] sm:$0xff]   ;;  %v23557_v63 = vld [vmem:[%s30809_s4 + $0x1b8c] sm:$0xff]  }
 0x938   :  { %13950 = vmatpush1.bf16.msra.mxu1 %v23532_v46  ;;  %22095 = vmatprep.subr.bf16.mxu0 %v23534_v9  ;;  %v23555_v46 = vld [vmem:[%s30809_s4 + $0x1bcc] sm:$0xff]   ;;  %v23556_v9 = vld [vmem:[%s30809_s4 + $0x1b24] sm:$0xff]  }
 0x939   :  { %13951 = vmatprep.subr.bf16.mxu1 %v31034_v52  ;;  %v29716_v27 = vadd.f32 %v29502_v57, %v11758_v49  ;;  %v14083_v57 = vpack.c.bf16 %v14075_v59, %v14075_v59  ;;  %v23559_v49 = vld [vmem:[%s30809_s4 + $0x1bd4] sm:$0xff]   ;;  %v23569_v23 = vld [vmem:[%s30809_s4 + $0x1c40] sm:$0xff]  }
 0x93a   :  { %v23562_v59 = vld [vmem:[%s30809_s4 + $0x1b74] sm:$0xff]  }
 0x93b   :  { %22096 = vmatpush3.bf16.msra.mxu0 %v23536_v16 }
 0x93c   :  { %13952 = vmatpush1.bf16.msra.mxu1 %v23535_v54  ;;  %22103 = vmatprep.subr.bf16.mxu0 %v23537_v39  ;;  %v23560_v39 = vld [vmem:[%s30809_s4 + $0x1b2c] sm:$0xff]  }
 0x93d   :  { %13953 = vmatprep.subr.bf16.mxu1 %v31034_v52 }
 0x93e   :  { %14580 = vmatmul.mubr.bf16.vlgmr.msra.gmra.mrb[144].mxu0 %v14080_v55  ;;  %v14724_v55 = vrot.slane %v28656_v8, %v31035_v7 }
 0x93f   :  { %22104 = vmatpush3.bf16.msra.mxu0 %v23539_v62  ;;  %14619 = vmatprep.mubr.bf16.mxu0 %v14083_v57  ;;  %v23563_v62 = vld [vmem:[%s30809_s4 + $0x1bdc] sm:$0xff]  }
 0x940   :  { %13954 = vmatpush1.bf16.msra.mxu1 %v23538_v19  ;;  %22105 = vmatprep.subr.bf16.mxu0 %v23540_v45  ;;  %v23564_v19 = vld [vmem:[%s30809_s4 + $0x1b34] sm:$0xff]   ;;  %v23565_v45 = vld [vmem:[%s30809_s4 + $0x1b9c] sm:$0xff]  }
 0x941   :  { %13955 = vmatprep.subr.bf16.mxu1 %v31034_v52  ;;  %v23567_v57 = vld [vmem:[%s30809_s4 + $0x1c80] sm:$0xff]  }
 0x943   :  { %22106 = vmatpush3.bf16.msra.mxu0 %v23542_v38  ;;  %v14765_v38 = vrot.slane %v28654_v18, %v31035_v7 }
 0x944   :  { %13956 = vmatpush1.bf16.msra.mxu1 %v23541_v43  ;;  %22107 = vmatprep.subr.bf16.mxu0 %v23543_v37  ;;  %v23566_v43 = vld [vmem:[%s30809_s4 + $0x1be4] sm:$0xff]  }
 0x945   :  { %13957 = vmatprep.subr.bf16.mxu1 %v31034_v52  ;;  %v14799_v37 = vsel %vm366_vm12, %v14724_v55, %v14765_v38 }
 0x947   :  { %22108 = vmatpush3.bf16.msra.mxu0 %v23545_v58  ;;  %v31148_v58 = vld [vmem:[#allocation32_spill] sm:$0xff] }
 0x948   :  { %13958 = vmatpush1.bf16.msra.mxu1 %v13819_v3  ;;  %22109 = vmatprep.subr.bf16.mxu0 %v23546_v1  ;;  %v14082_v35 = vpack.c.bf16 %v31148_v58, %v31148_v58  ;;  %v23568_v1 = vld [vmem:[%s30809_s4 + $0x1ba4] sm:$0xff]  }
 0x949   :  { %22125 = vmatprep.subr.bf16.mxu1 %v23547_v20  ;;  %v23571_v3 = vld [vmem:[%s30809_s4 + $0x1c88] sm:$0xff]   ;;  %v14807_v20 = vpack.c.bf16 %v14799_v37, %v14799_v37  ;;  %v23588_v37 = vld [vmem:[%s30809_s4 + $0x1c14] sm:$0xff]  }
 0x94b   :  { %13974 = vmatmul.mubr.bf16.vlgmr.msra.gmra.mrb[28].mxu1 %v13360_v26  ;;  %22110 = vmatpush3.bf16.msra.mxu0 %v23548_v2  ;;  %v23573_v2 = vld [vmem:[%s30809_s4 + $0x1c48] sm:$0xff]   ;;  %v23577_v26 = vld [vmem:[%s30809_s4 + $0x1c50] sm:$0xff]  }
 0x94c   :  { %22126 = vmatpush3.bf16.msra.mxu1 %v23549_v44  ;;  %14659 = vmatprep.mubr.bf16.mxu1 %v14085_v51  ;;  %v23575_v44 = vld [vmem:[%s30809_s4 + $0x1c90] sm:$0xff]   ;;  %v23580_v51 = vld [vmem:[%s30809_s4 + $0x1c58] sm:$0xff]  }
 0x94d   :  { %22111 = vmatprep.subr.bf16.mxu0 %v23550_v15  ;;  %22127 = vmatprep.subr.bf16.mxu1 %v23551_v22  ;;  %v23576_v15 = vld [vmem:[%s30809_s4 + $0x1bb4] sm:$0xff]  }
 0x94e   :  { %v23578_v22 = vld [vmem:[%s30809_s4 + $0x1c98] sm:$0xff]  }
 0x94f   :  { %22112 = vmatpush3.bf16.msra.mxu0 %v23552_v30  ;;  %v23579_v30 = vld [vmem:[%s30809_s4 + $0x1bfc] sm:$0xff]  }
 0x950   :  { %22128 = vmatpush3.bf16.msra.mxu1 %v23553_v12  ;;  %22113 = vmatprep.subr.bf16.mxu0 %v23554_v36  ;;  %v31149_v12 = vld [vmem:[#allocation33_spill] sm:$0xff] }
 0x951   :  { %v21899_v60 = vpop.f32.mrb[120].mxu0  ;;  %22129 = vmatprep.subr.bf16.mxu1 %v23555_v46  ;;  %v14084_v36 = vpack.c.bf16 %v31149_v12, %v31149_v12  ;;  %v23581_v46 = vld [vmem:[%s30809_s4 + $0x1ca0] sm:$0xff]  }
 0x952   :  { %v21900_v16 = vpop.f32.mrb[121].mxu0 }
 0x953   :  { %v29796_v40 = vadd.f32 %v21900_v16, %v21899_v60  ;;  %v21902_v54 = vpop.f32.mrb[122].mxu0  ;;  %22114 = vmatpush3.bf16.msra.mxu0 %v23556_v9  ;;  %v31150_v9 = vld [vmem:[#allocation34_spill] sm:$0xff]  ;;  %v23582_v60 = vld [vmem:[%s30809_s4 + $0x1c04] sm:$0xff]  }
 0x954   :  { %22130 = vmatpush3.bf16.msra.mxu1 %v23557_v63  ;;  %v21903_v42 = vpop.f32.mrb[123].mxu0  ;;  %22115 = vmatprep.subr.bf16.mxu0 %v23558_v25  ;;  %v14087_v63 = vpack.c.bf16 %v31150_v9, %v31150_v9  ;;  %v23583_v25 = vld [vmem:[%s30809_s4 + $0x1c60] sm:$0xff]   ;;  %v23586_v16 = vld [vmem:[%s30809_s4 + $0x1c68] sm:$0xff]   ;;  %v23599_v9 = vld [vmem:[%s30809_s4 + $0x1d10] sm:$0xff]  }
 0x955   :  { %22131 = vmatprep.subr.bf16.mxu1 %v23559_v49  ;;  %v23584_v49 = vld [vmem:[%s30809_s4 + $0x1ca8] sm:$0xff]  }
 0x956   :  { %v23585_v54 = vld [vmem:[%s30809_s4 + $0x1c0c] sm:$0xff]  }
 0x957   :  { %22116 = vmatpush3.bf16.msra.mxu0 %v23560_v39  ;;  %v23587_v39 = vld [vmem:[%s30809_s4 + $0x1cb0] sm:$0xff]  }
 0x958   :  { %22132 = vmatpush3.bf16.msra.mxu1 %v23561_v31  ;;  %22117 = vmatprep.subr.bf16.mxu0 %v23562_v59 }
 0x959   :  { %22133 = vmatprep.subr.bf16.mxu1 %v23563_v62 }
 0x95b   :  { %22118 = vmatpush3.bf16.msra.mxu0 %v23564_v19 }
 0x95c   :  { %22134 = vmatpush3.bf16.msra.mxu1 %v23565_v45  ;;  %22147 = vmatprep.subr.bf16.mxu0 %v23567_v57  ;;  %v23589_v45 = vld [vmem:[%s30809_s4 + $0x1c70] sm:$0xff]  }
 0x95d   :  { %22135 = vmatprep.subr.bf16.mxu1 %v23566_v43 }
 0x95e   :  { %14620 = vmatmul.mubr.bf16.vlgmr.msra.gmra.mrb[148].mxu0 %v14082_v35 }
 0x95f   :  { %22148 = vmatpush3.bf16.msra.mxu0 %v23569_v23  ;;  %15305 = vmatprep.mubr.bf16.mxu0 %v14807_v20  ;;  %v23590_v23 = vld [vmem:[%s30809_s4 + $0x1cb8] sm:$0xff]  }
 0x960   :  { %22136 = vmatpush3.bf16.msra.mxu1 %v23568_v1  ;;  %22149 = vmatprep.subr.bf16.mxu0 %v23571_v3  ;;  %v14720_v1 = vrot.slane %v28656_v8, %v31037_v13  ;;  %v14732_v3 = vrot.slane %v28656_v8, %v31036_v56 }
 0x961   :  { %22137 = vmatprep.subr.bf16.mxu1 %v23570_v61  ;;  %v23592_v61 = vld [vmem:[%s30809_s4 + $0x1c78] sm:$0xff]  }
 0x963   :  { %22150 = vmatpush3.bf16.msra.mxu0 %v23573_v2  ;;  %v14761_v2 = vrot.slane %v28654_v18, %v31037_v13 }
 0x964   :  { %22138 = vmatpush3.bf16.msra.mxu1 %v23572_v24  ;;  %22151 = vmatprep.subr.bf16.mxu0 %v23575_v44  ;;  %v23593_v24 = vld [vmem:[%s30809_s4 + $0x1d00] sm:$0xff]   ;;  %v14773_v44 = vrot.slane %v28654_v18, %v31036_v56 }
 0x965   :  { %22139 = vmatprep.subr.bf16.mxu1 %v23574_v0 }
 0x967   :  { %22152 = vmatpush3.bf16.msra.mxu0 %v23577_v26  ;;  %v14798_v26 = vsel %vm366_vm12, %v14720_v1, %v14761_v2  ;;  %v23612_v1 = vld [vmem:[%s30809_s4 + $0x1cf0] sm:$0xff]   ;;  %v23615_v2 = vld [vmem:[%s30809_s4 + $0x1cf8] sm:$0xff]  }
 0x968   :  { %22140 = vmatpush3.bf16.msra.mxu1 %v23576_v15  ;;  %22153 = vmatprep.subr.bf16.mxu0 %v23578_v22  ;;  %v14801_v15 = vsel %vm366_vm12, %v14732_v3, %v14773_v44  ;;  %v23595_v22 = vld [vmem:[%s30809_s4 + $0x1cc0] sm:$0xff]  }
 0x969   :  { %14667 = vmatprep.subr.bf16.mxu1 %v31034_v52  ;;  %v14809_v12 = vpack.c.bf16 %v14801_v15, %v14801_v15  ;;  %v23618_v44 = vld [vmem:[%s30809_s4 + $0x1d40] sm:$0xff]  }
 0x96a   :  { %v23619_v15 = vld [vmem:[%s30809_s4 + $0x1de0] sm:$0xff]  }
 0x96b   :  { %14660 = vmatmul.mubr.bf16.vlgmr.msra.gmra.mrb[88].mxu1 %v14084_v36  ;;  %22154 = vmatpush3.bf16.msra.mxu0 %v23580_v51  ;;  %v14806_v51 = vpack.c.bf16 %v14798_v26, %v14798_v26  ;;  %v23598_v36 = vld [vmem:[%s30809_s4 + $0x1cc8] sm:$0xff]   ;;  %v14808_v26 = vpack.c.bf16 %v28694_v41, %v28694_v41 }
 0x96c   :  { %14668 = vmatpush1.bf16.msra.mxu1 %v23579_v30  ;;  %20404 = vmatprep.mubr.msk.bf16.mxu1 %vm303_vm8, %v14087_v63  ;;  %v23594_v30 = vld [vmem:[%s30809_s4 + $0x1c24] sm:$0xff]   ;;  %v23601_v63 = vld [vmem:[%s30809_s4 + $0x1cd0] sm:$0xff]  }
 0x96d   :  { %14669 = vmatprep.subr.bf16.mxu1 %v31034_v52  ;;  %22155 = vmatprep.subr.bf16.mxu0 %v23581_v46  ;;  %v23597_v46 = vld [vmem:[%s30809_s4 + $0x1c2c] sm:$0xff]  }
 0x96e   :  { %v23621_v41 = vld [vmem:[%s30809_s4 + $0x1d48] sm:$0xff]  }
 0x96f   :  { %22156 = vmatpush3.bf16.msra.mxu0 %v23583_v25  ;;  %v23600_v25 = vld [vmem:[%s30809_s4 + $0x1c34] sm:$0xff]  }
 0x970   :  { %14670 = vmatpush1.bf16.msra.mxu1 %v23582_v60  ;;  %22157 = vmatprep.subr.bf16.mxu0 %v23584_v49  ;;  %v23602_v60 = vld [vmem:[%s30809_s4 + $0x1d18] sm:$0xff]  }
 0x971   :  { %v21921_v42 = vpop.f32.mrb[124].mxu0  ;;  %14671 = vmatprep.subr.bf16.mxu1 %v31034_v52  ;;  %v23603_v49 = vld [vmem:[%s30809_s4 + $0x1c3c] ss:$0 sps:$4 sm:$0x33]  }
 0x972   :  { %v21943_v31 = vpop.f32.mrb[76].mxu1  ;;  %v21922_v59 = vpop.f32.mrb[125].mxu0 }
 0x973   :  { %v21923_v62 = vadd.f32 %v21922_v59, %v21921_v42  ;;  %v21944_v55 = vpop.f32.mrb[77].mxu1  ;;  %v21924_v19 = vpop.f32.mrb[126].mxu0  ;;  %22158 = vmatpush3.bf16.msra.mxu0 %v23586_v16  ;;  %v23604_v16 = vld [vmem:[%s30809_s4 + $0x1cd8] sm:$0xff]   ;;  %v14545_v42 = vsel %vm3653_vm1, %v23603_v49, 0  ;;  %v23606_v59 = vld [vmem:[%s30809_s4 + $0x1ce0] sm:$0xff]   ;;  %v15458_v49 = vrot.slane %v28720_v21, %v31036_v56 }
 0x974   :  { %v21945_v57 = vadd.f32 %v21944_v55, %v21943_v31  ;;  %v21946_v38 = vpop.f32.mrb[78].mxu1  ;;  %14672 = vmatpush1.bf16.msra.mxu1 %v23585_v54  ;;  %v21925_v43 = vpop.f32.mrb[127].mxu0  ;;  %22159 = vmatprep.subr.bf16.mxu0 %v23587_v39  ;;  %v14748_v54 = vrot.slane %v28656_v8, %v31040_v33  ;;  %v23605_v39 = vld [vmem:[%s30809_s4 + $0x1d20] sm:$0xff]   ;;  %v14789_v31 = vrot.slane %v28654_v18, %v31040_v33  ;;  %v23608_v18 = vld [vmem:[%s30809_s4 + $0x1d28] sm:$0xff]  }
 0x975   :  { %v12444_v58 = vadd.f32 %v21923_v62, %v29796_v40  ;;  %v21947_v35 = vpop.f32.mrb[79].mxu1  ;;  %14673 = vmatprep.subr.bf16.mxu1 %v31034_v52  ;;  %v23591_v40 = vld [vmem:[%s30809_s4 + $0x1c1c] sm:$0xff]   ;;  %v23610_v38 = vld [vmem:[%s30809_s4 + $0x1dc8] sm:$0xff]   ;;  %v23611_v43 = vld [vmem:[%s30809_s4 + $0x1d30] sm:$0xff]  }
 0x976   :  { %v14805_v8 = vsel %vm366_vm12, %v14748_v54, %v14789_v31  ;;  %v23607_v62 = vld [vmem:[%s30809_s4 + $0x1dc0] sm:$0xff]   ;;  %v23634_v31 = vld [vmem:[%s30809_s4 + $0x1d68] sm:$0xff]  }
 0x977   :  { %v12484_v20 = vadd.f32 %v21945_v57, %v12444_v58  ;;  %22160 = vmatpush3.bf16.msra.mxu0 %v23589_v45  ;;  %v31151_v55 = vld [vmem:[#allocation20_spill] sm:$0xff]  ;;  %v14813_v45 = vpack.c.bf16 %v14805_v8, %v14805_v8 }
 0x978   :  { %14674 = vmatpush1.bf16.msra.mxu1 %v23588_v37  ;;  %22161 = vmatprep.subr.bf16.mxu0 %v23590_v23  ;;  %v14086_v19 = vpack.c.bf16 %v31151_v55, %v31151_v55  ;;  %v23609_v57 = vld [vmem:[%s30809_s4 + $0x1ce8] sm:$0xff]   ;;  %v14812_v55 = vpack.c.bf16 %v28700_v32, %v28700_v32 }
 0x979   :  { %v29926_v0 = vadd.f32 %v29716_v27, %v12484_v20  ;;  %14675 = vmatprep.subr.bf16.mxu1 %v31034_v52  ;;  %v23596_v27 = vld [vmem:[%s30809_s4 + $0x1d08] sm:$0xff]   ;;  %v23613_v20 = vld [vmem:[%s30809_s4 + $0x1dd0] sm:$0xff]  }
 0x97a   :  { %v23635_v8 = vld [vmem:[%s30809_s4 + $0x1e84] sm:$0xff]  }
 0x97b   :  { %22162 = vmatpush3.bf16.msra.mxu0 %v23592_v61  ;;  %v23614_v61 = vld [vmem:[%s30809_s4 + $0x1d38] sm:$0xff]  }
 0x97c   :  { %14676 = vmatpush1.bf16.msra.mxu1 %v23591_v40  ;;  %22169 = vmatprep.subr.bf16.mxu0 %v23593_v24  ;;  %v23616_v40 = vld [vmem:[%s30809_s4 + $0x1dd8] sm:$0xff]   ;;  %v23617_v24 = vld [vmem:[%s30809_s4 + $0x1d80] sm:$0xff]  }
 0x97d   :  { %14677 = vmatprep.subr.bf16.mxu1 %v31034_v52 }
 0x97e   :  { %15306 = vmatmul.mubr.bf16.vlgmr.msra.gmra.mrb[152].mxu0 %v14806_v51  ;;  %v14811_v51 = vpack.c.bf16 %v28697_v14, %v28697_v14  ;;  %v23624_v14 = vld [vmem:[%s30809_s4 + $0x1d50] sm:$0xff]  }
 0x97f   :  { %22170 = vmatpush3.bf16.msra.mxu0 %v23595_v22  ;;  %15345 = vmatprep.mubr.bf16.mxu0 %v14809_v12  ;;  %v23620_v22 = vld [vmem:[%s30809_s4 + $0x1d88] sm:$0xff]   ;;  %v23625_v12 = vld [vmem:[%s30809_s4 + $0x1df0] sm:$0xff]  }
 0x980   :  { %14678 = vmatpush1.bf16.msra.mxu1 %v23594_v30  ;;  %22171 = vmatprep.subr.bf16.mxu0 %v23596_v27  ;;  %v23622_v30 = vld [vmem:[%s30809_s4 + $0x1de8] sm:$0xff]   ;;  %v23623_v27 = vld [vmem:[%s30809_s4 + $0x1d90] sm:$0xff]  }
 0x981   :  { %14679 = vmatprep.subr.bf16.mxu1 %v31034_v52 }
 0x983   :  { %22172 = vmatpush3.bf16.msra.mxu0 %v23598_v36  ;;  %v23626_v36 = vld [vmem:[%s30809_s4 + $0x1d98] sm:$0xff]  }
 0x984   :  { %14680 = vmatpush1.bf16.msra.mxu1 %v23597_v46  ;;  %22173 = vmatprep.subr.bf16.mxu0 %v23599_v9  ;;  %v23627_v46 = vld [vmem:[%s30809_s4 + $0x1d58] sm:$0xff]  }
 0x985   :  { %14681 = vmatprep.subr.bf16.mxu1 %v31034_v52  ;;  %v23628_v9 = vld [vmem:[%s30809_s4 + $0x1df8] sm:$0xff]  }
 0x987   :  { %22174 = vmatpush3.bf16.msra.mxu0 %v23601_v63  ;;  %v23629_v63 = vld [vmem:[%s30809_s4 + $0x1da0] sm:$0xff]  }
 0x988   :  { %14682 = vmatpush1.bf16.msra.mxu1 %v23600_v25  ;;  %22175 = vmatprep.subr.bf16.mxu0 %v23602_v60  ;;  %v23631_v25 = vld [vmem:[%s30809_s4 + $0x1e00] ss:$0 sps:$4 sm:$0x33]  }
 0x989   :  { %14683 = vmatprep.subr.bf16.mxu1 %v31034_v52  ;;  %v23630_v60 = vld [vmem:[%s30809_s4 + $0x1d60] sm:$0xff]   ;;  %v15271_v54 = vsel %vm3653_vm1, %v23631_v25, 0  ;;  %v23652_v25 = vld [vmem:[%s30809_s4 + $0x1e54] sm:$0xff]  }
 0x98b   :  { %22176 = vmatpush3.bf16.msra.mxu0 %v23604_v16  ;;  %v23632_v16 = vld [vmem:[%s30809_s4 + $0x1da8] sm:$0xff]  }
 0x98c   :  { %14684 = vmatpush1.bf16.msra.mxu1 %v14545_v42  ;;  %22177 = vmatprep.subr.bf16.mxu0 %v23605_v39  ;;  %v23633_v39 = vld [vmem:[%s30809_s4 + $0x1ec4] sm:$0xff]   ;;  %v15499_v42 = vrot.slane %v28718_v53, %v31036_v56 }
 0x98d   :  { %15393 = vmatprep.subr.bf16.mxu1 %v31034_v52 }
 0x98f   :  { %14700 = vmatmul.mubr.bf16.vlgmr.msra.gmra.mrb[28].mxu1 %v14086_v19  ;;  %22178 = vmatpush3.bf16.msra.mxu0 %v23606_v59  ;;  %v15527_v59 = vsel %vm366_vm12, %v15458_v49, %v15499_v42  ;;  %v23636_v19 = vld [vmem:[%s30809_s4 + $0x1db0] sm:$0xff]   ;;  %v23658_v42 = vld [vmem:[%s30809_s4 + $0x1e1c] sm:$0xff]  }
 0x990   :  { %15394 = vmatpush1.bf16.msra.mxu1 %v23607_v62  ;;  %20575 = vmatprep.mubr.msk.bf16.mxu1 %vm303_vm8, %v14813_v45  ;;  %v23654_v49 = vld [vmem:[%s30809_s4 + $0x1e14] sm:$0xff]  }
 0x991   :  { %v21965_v37 = vpop.f32.mrb[128].mxu0  ;;  %22179 = vmatprep.subr.bf16.mxu0 %v23608_v18  ;;  %15395 = vmatprep.subr.bf16.mxu1 %v31034_v52  ;;  %v23637_v18 = vld [vmem:[%s30809_s4 + $0x1ecc] sm:$0xff]  }
 0x992   :  { %v21966_v23 = vpop.f32.mrb[129].mxu0 }
 0x993   :  { %v30000_v58 = vadd.f32 %v21966_v23, %v21965_v37  ;;  %v21968_v35 = vpop.f32.mrb[130].mxu0  ;;  %22180 = vmatpush3.bf16.msra.mxu0 %v23609_v57  ;;  %v15535_v57 = vpack.c.bf16 %v15527_v59, %v15527_v59  ;;  %v23638_v37 = vld [vmem:[%s30809_s4 + $0x1d70] sm:$0xff]   ;;  %v23660_v59 = vld [vmem:[%s30809_s4 + $0x1e64] sm:$0xff]  }
 0x994   :  { %15396 = vmatpush1.bf16.msra.mxu1 %v23610_v38  ;;  %v21969_v3 = vpop.f32.mrb[131].mxu0  ;;  %22181 = vmatprep.subr.bf16.mxu0 %v23611_v43  ;;  %v23639_v23 = vld [vmem:[%s30809_s4 + $0x1e8c] sm:$0xff]   ;;  %v23640_v35 = vld [vmem:[%s30809_s4 + $0x1db8] sm:$0xff]  }
 0x995   :  { %15397 = vmatprep.subr.bf16.mxu1 %v31034_v52  ;;  %v23641_v3 = vld [vmem:[%s30809_s4 + $0x1ed4] sm:$0xff]  }
 0x997   :  { %22182 = vmatpush3.bf16.msra.mxu0 %v23612_v1 }
 0x998   :  { %15398 = vmatpush1.bf16.msra.mxu1 %v23613_v20  ;;  %22183 = vmatprep.subr.bf16.mxu0 %v23614_v61  ;;  %v15450_v61 = vrot.slane %v28720_v21, %v31035_v7 }
 0x999   :  { %15399 = vmatprep.subr.bf16.mxu1 %v31034_v52 }
 0x99b   :  { %22184 = vmatpush3.bf16.msra.mxu0 %v23615_v2 }
 0x99c   :  { %15400 = vmatpush1.bf16.msra.mxu1 %v23616_v40  ;;  %22191 = vmatprep.subr.bf16.mxu0 %v23617_v24  ;;  %v23642_v40 = vld [vmem:[%s30809_s4 + $0x1d78] sm:$0xff]  }
 0x99d   :  { %15401 = vmatprep.subr.bf16.mxu1 %v31034_v52 }
 0x99e   :  { %15346 = vmatmul.mubr.bf16.vlgmr.msra.gmra.mrb[156].mxu0 %v14808_v26  ;;  %v23644_v26 = vld [vmem:[%s30809_s4 + $0x1e44] sm:$0xff]  }
 0x99f   :  { %22192 = vmatpush3.bf16.msra.mxu0 %v23618_v44  ;;  %15385 = vmatprep.mubr.bf16.mxu0 %v14811_v51  ;;  %v23645_v51 = vld [vmem:[%s30809_s4 + $0x1edc] sm:$0xff]  }
 0x9a0   :  { %15402 = vmatpush1.bf16.msra.mxu1 %v23619_v15  ;;  %22193 = vmatprep.subr.bf16.mxu0 %v23620_v22  ;;  %v15491_v15 = vrot.slane %v28718_v53, %v31035_v7 }
 0x9a1   :  { %15403 = vmatprep.subr.bf16.mxu1 %v31034_v52 }
 0x9a3   :  { %22194 = vmatpush3.bf16.msra.mxu0 %v23621_v41 }
 0x9a4   :  { %15404 = vmatpush1.bf16.msra.mxu1 %v23622_v30  ;;  %22195 = vmatprep.subr.bf16.mxu0 %v23623_v27  ;;  %v15525_v30 = vsel %vm366_vm12, %v15450_v61, %v15491_v15  ;;  %v23646_v27 = vld [vmem:[%s30809_s4 + $0x1e04] sm:$0xff]   ;;  %v15446_v15 = vrot.slane %v28720_v21, %v31037_v13 }
 0x9a5   :  { %15405 = vmatprep.subr.bf16.mxu1 %v31034_v52 }
 0x9a7   :  { %22196 = vmatpush3.bf16.msra.mxu0 %v23624_v14 }
 0x9a8   :  { %15406 = vmatpush1.bf16.msra.mxu1 %v23625_v12  ;;  %22197 = vmatprep.subr.bf16.mxu0 %v23626_v36  ;;  %v14810_v12 = vpack.c.bf16 %v28726_v28, %v28726_v28  ;;  %v23647_v36 = vld [vmem:[%s30809_s4 + $0x1e9c] sm:$0xff]   ;;  %v23650_v28 = vld [vmem:[%s30809_s4 + $0x1e0c] sm:$0xff]  }
 0x9a9   :  { %15407 = vmatprep.subr.bf16.mxu1 %v31034_v52 }
 0x9ab   :  { %22198 = vmatpush3.bf16.msra.mxu0 %v23627_v46  ;;  %v23648_v46 = vld [vmem:[%s30809_s4 + $0x1e4c] sm:$0xff]  }
 0x9ac   :  { %15408 = vmatpush1.bf16.msra.mxu1 %v23628_v9  ;;  %22199 = vmatprep.subr.bf16.mxu0 %v23629_v63  ;;  %v15533_v9 = vpack.c.bf16 %v15525_v30, %v15525_v30  ;;  %v23651_v63 = vld [vmem:[%s30809_s4 + $0x1ea4] sm:$0xff]   ;;  %v23672_v30 = vld [vmem:[%s30809_s4 + $0x1f94] sm:$0xff]  }
 0x9ad   :  { %15409 = vmatprep.subr.bf16.mxu1 %v31034_v52 }
 0x9af   :  { %22200 = vmatpush3.bf16.msra.mxu0 %v23630_v60  ;;  %v23653_v60 = vld [vmem:[%s30809_s4 + $0x1eec] sm:$0xff]  }
 0x9b0   :  { %15410 = vmatpush1.bf16.msra.mxu1 %v15271_v54  ;;  %22201 = vmatprep.subr.bf16.mxu0 %v23632_v16  ;;  %v23655_v16 = vld [vmem:[%s30809_s4 + $0x1eac] sm:$0xff]   ;;  %v23656_v54 = vld [vmem:[%s30809_s4 + $0x1e5c] sm:$0xff]  }
 0x9b1   :  { %v21987_v62 = vpop.f32.mrb[132].mxu0  ;;  %22235 = vmatprep.subr.bf16.mxu1 %v23633_v39  ;;  %v23657_v39 = vld [vmem:[%s30809_s4 + $0x1ef4] sm:$0xff]  }
 0x9b2   :  { %v21988_v45 = vpop.f32.mrb[133].mxu0 }
 0x9b3   :  { %v21989_v38 = vadd.f32 %v21988_v45, %v21987_v62  ;;  %15426 = vmatmul.mubr.bf16.vlgmr.msra.gmra.mrb[28].mxu1 %v14812_v55  ;;  %v21990_v43 = vpop.f32.mrb[134].mxu0  ;;  %22202 = vmatpush3.bf16.msra.mxu0 %v23634_v31  ;;  %v23659_v31 = vld [vmem:[%s30809_s4 + $0x1eb4] sm:$0xff]   ;;  %v15454_v62 = vrot.slane %v28720_v21, %v31038_v6  ;;  %v23662_v55 = vld [vmem:[%s30809_s4 + $0x1e24] sm:$0xff]   ;;  %v23664_v45 = vld [vmem:[%s30809_s4 + $0x1e6c] sm:$0xff]  }
 0x9b4   :  { %22236 = vmatpush3.bf16.msra.mxu1 %v23635_v8  ;;  %16071 = vmatprep.mubr.bf16.mxu1 %v15535_v57  ;;  %v21991_v32 = vpop.f32.mrb[135].mxu0  ;;  %v23661_v8 = vld [vmem:[%s30809_s4 + $0x1efc] sm:$0xff]   ;;  %v15495_v57 = vrot.slane %v28718_v53, %v31038_v6 }
 0x9b5   :  { %v13170_v1 = vadd.f32 %v21989_v38, %v30000_v58  ;;  %22203 = vmatprep.subr.bf16.mxu0 %v23636_v19  ;;  %22237 = vmatprep.subr.bf16.mxu1 %v23637_v18  ;;  %v23643_v58 = vld [vmem:[%s30809_s4 + $0x1e94] sm:$0xff]   ;;  %v15474_v19 = vrot.slane %v28720_v21, %v31040_v33  ;;  %v23663_v18 = vld [vmem:[%s30809_s4 + $0x1ebc] sm:$0xff]   ;;  %v15515_v38 = vrot.slane %v28718_v53, %v31040_v33 }
 0x9b6   :  { %v22009_v20 = vpop.f32.mrb[80].mxu1  ;;  %v15526_v43 = vsel %vm366_vm12, %v15454_v62, %v15495_v57  ;;  %v23688_v62 = vld [vmem:[%s30809_s4 + $0x1f6c] sm:$0xff]  }
 0x9b7   :  { %v22010_v2 = vpop.f32.mrb[81].mxu1  ;;  %22204 = vmatpush3.bf16.msra.mxu0 %v23638_v37  ;;  %v23665_v37 = vld [vmem:[%s30809_s4 + $0x1e2c] sm:$0xff]   ;;  %v15531_v32 = vsel %vm366_vm12, %v15474_v19, %v15515_v38 }
 0x9b8   :  { %v22011_v24 = vadd.f32 %v22010_v2, %v22009_v20  ;;  %v22012_v44 = vpop.f32.mrb[82].mxu1  ;;  %22238 = vmatpush3.bf16.msra.mxu1 %v23639_v23  ;;  %22205 = vmatprep.subr.bf16.mxu0 %v23640_v35  ;;  %v23666_v23 = vld [vmem:[%s30809_s4 + $0x1f84] sm:$0xff]   ;;  %v15539_v61 = vpack.c.bf16 %v15531_v32, %v15531_v32  ;;  %v23689_v19 = vld [vmem:[%s30809_s4 + $0x1f2c] sm:$0xff]  }
 0x9b9   :  { %v22013_v22 = vpop.f32.mrb[83].mxu1  ;;  %22239 = vmatprep.subr.bf16.mxu1 %v23641_v3  ;;  %v23667_v3 = vld [vmem:[%s30809_s4 + $0x1e74] sm:$0xff]  }
 0x9ba   :  { %v13210_v41 = vadd.f32 %v22011_v24, %v13170_v1  ;;  %v15534_v1 = vpack.c.bf16 %v15526_v43, %v15526_v43  ;;  %v23668_v24 = vld [vmem:[%s30809_s4 + $0x1e34] sm:$0xff]   ;;  %v15466_v22 = vrot.slane %v28720_v21, %v31039_v5  ;;  %v15507_v21 = vrot.slane %v28718_v53, %v31039_v5  ;;  %v23692_v43 = vld [vmem:[%s30809_s4 + $0x2088] sm:$0xff]  }
 0x9bb   :  { %22206 = vmatpush3.bf16.msra.mxu0 %v23642_v40 }
 0x9bc   :  { %v30133_v14 = vadd.f32 %v29926_v0, %v13210_v41  ;;  %22240 = vmatpush3.bf16.msra.mxu1 %v23643_v58  ;;  %22213 = vmatprep.subr.bf16.mxu0 %v23644_v26  ;;  %v23649_v0 = vld [vmem:[%s30809_s4 + $0x1ee4] sm:$0xff]   ;;  %v23669_v58 = vld [vmem:[%s30809_s4 + $0x1f8c] sm:$0xff]   ;;  %v23670_v26 = vld [vmem:[%s30809_s4 + $0x1e7c] sm:$0xff]   ;;  %v15487_v41 = vrot.slane %v28718_v53, %v31037_v13 }
 0x9bd   :  { %22241 = vmatprep.subr.bf16.mxu1 %v23645_v51  ;;  %v23671_v51 = vld [vmem:[%s30809_s4 + $0x1e3c] sm:$0xff]   ;;  %v23676_v53 = vld [vmem:[%s30809_s4 + $0x1f4c] sm:$0xff]  }
 0x9be   :  { %15386 = vmatmul.mubr.bf16.vlgmr.msra.gmra.mrb[160].mxu0 %v14810_v12  ;;  %v15524_v12 = vsel %vm366_vm12, %v15446_v15, %v15487_v41  ;;  %v16176_v15 = vrot.slane %v28751_v4, %v31035_v7  ;;  %v23700_v41 = vld [vmem:[%s30809_s4 + $0x2098] sm:$0xff]  }
 0x9bf   :  { %22214 = vmatpush3.bf16.msra.mxu0 %v23646_v27  ;;  %16031 = vmatprep.mubr.bf16.mxu0 %v15533_v9  ;;  %v23673_v27 = vld [vmem:[%s30809_s4 + $0x1f44] sm:$0xff]   ;;  %v15532_v9 = vpack.c.bf16 %v15524_v12, %v15524_v12 }
 0x9c0   :  { %22242 = vmatpush3.bf16.msra.mxu1 %v23647_v36  ;;  %22215 = vmatprep.subr.bf16.mxu0 %v23648_v46  ;;  %v15529_v36 = vsel %vm366_vm12, %v15466_v22, %v15507_v21  ;;  %v23674_v46 = vld [vmem:[%s30809_s4 + $0x1f04] sm:$0xff]  }
 0x9c1   :  { %22243 = vmatprep.subr.bf16.mxu1 %v23649_v0  ;;  %v23675_v0 = vld [vmem:[%s30809_s4 + $0x1f9c] sm:$0xff]   ;;  %v23699_v22 = vld [vmem:[%s30809_s4 + $0x2008] sm:$0xff]  }
 0x9c2   :  { %v23701_v12 = vld [vmem:[%s30809_s4 + $0x1fc8] sm:$0xff]  }
 0x9c3   :  { %22216 = vmatpush3.bf16.msra.mxu0 %v23650_v28  ;;  %v15537_v28 = vpack.c.bf16 %v15529_v36, %v15529_v36 }
 0x9c4   :  { %22244 = vmatpush3.bf16.msra.mxu1 %v23651_v63  ;;  %22217 = vmatprep.subr.bf16.mxu0 %v23652_v25  ;;  %v23677_v63 = vld [vmem:[%s30809_s4 + $0x1f0c] sm:$0xff]   ;;  %v23678_v25 = vld [vmem:[%s30809_s4 + $0x1fa4] sm:$0xff]  }
 0x9c5   :  { %22245 = vmatprep.subr.bf16.mxu1 %v23653_v60  ;;  %v23679_v60 = vld [vmem:[%s30809_s4 + $0x1f54] sm:$0xff]  }
 0x9c7   :  { %22218 = vmatpush3.bf16.msra.mxu0 %v23654_v49  ;;  %v23680_v49 = vld [vmem:[%s30809_s4 + $0x1f14] sm:$0xff]  }
 0x9c8   :  { %22246 = vmatpush3.bf16.msra.mxu1 %v23655_v16  ;;  %22219 = vmatprep.subr.bf16.mxu0 %v23656_v54  ;;  %v23681_v16 = vld [vmem:[%s30809_s4 + $0x1fac] sm:$0xff]   ;;  %v23682_v54 = vld [vmem:[%s30809_s4 + $0x1f5c] sm:$0xff]  }
 0x9c9   :  { %22247 = vmatprep.subr.bf16.mxu1 %v23657_v39  ;;  %v23683_v39 = vld [vmem:[%s30809_s4 + $0x1f1c] sm:$0xff]  }
 0x9cb   :  { %22220 = vmatpush3.bf16.msra.mxu0 %v23658_v42  ;;  %v23684_v42 = vld [vmem:[%s30809_s4 + $0x1fb4] sm:$0xff]  }
 0x9cc   :  { %22248 = vmatpush3.bf16.msra.mxu1 %v23659_v31  ;;  %22221 = vmatprep.subr.bf16.mxu0 %v23660_v59  ;;  %v23685_v31 = vld [vmem:[%s30809_s4 + $0x1f64] sm:$0xff]  }
 0x9cd   :  { %22249 = vmatprep.subr.bf16.mxu1 %v23661_v8  ;;  %v23686_v59 = vld [vmem:[%s30809_s4 + $0x1f24] sm:$0xff]   ;;  %v23687_v8 = vld [vmem:[%s30809_s4 + $0x1fbc] sm:$0xff]  }
 0x9cf   :  { %22222 = vmatpush3.bf16.msra.mxu0 %v23662_v55  ;;  %v23690_v55 = vld [vmem:[%s30809_s4 + $0x1fc4] ss:$0 sps:$4 sm:$0x33]  }
 0x9d0   :  { %22250 = vmatpush3.bf16.msra.mxu1 %v23663_v18  ;;  %22223 = vmatprep.subr.bf16.mxu0 %v23664_v45  ;;  %v16184_v18 = vrot.slane %v28751_v4, %v31036_v56  ;;  %v23691_v45 = vld [vmem:[%s30809_s4 + $0x1f74] sm:$0xff]   ;;  %v15997_v38 = vsel %vm3653_vm1, %v23690_v55, 0  ;;  %v23715_v55 = vld [vmem:[%s30809_s4 + $0x2028] sm:$0xff]  }
 0x9d1   :  { %v22031_v35 = vpop.f32.mrb[136].mxu0  ;;  %16119 = vmatprep.subr.bf16.mxu1 %v31034_v52 }
 0x9d2   :  { %v22032_v20 = vpop.f32.mrb[137].mxu0 }
 0x9d3   :  { %v30211_v2 = vadd.f32 %v22032_v20, %v22031_v35  ;;  %16072 = vmatmul.mubr.bf16.vlgmr.msra.gmra.mrb[92].mxu1 %v15534_v1  ;;  %v22034_v40 = vpop.f32.mrb[138].mxu0  ;;  %22224 = vmatpush3.bf16.msra.mxu0 %v23665_v37  ;;  %v16225_v37 = vrot.slane %v28749_v10, %v31036_v56  ;;  %v23693_v1 = vld [vmem:[%s30809_s4 + $0x1f34] sm:$0xff]  }
 0x9d4   :  { %16120 = vmatpush1.bf16.msra.mxu1 %v23666_v23  ;;  %20746 = vmatprep.mubr.msk.bf16.mxu1 %vm303_vm8, %v15539_v61  ;;  %v22035_v44 = vpop.f32.mrb[139].mxu0  ;;  %v23694_v61 = vld [vmem:[%s30809_s4 + $0x2048] sm:$0xff]  }
 0x9d5   :  { %22225 = vmatprep.subr.bf16.mxu0 %v23667_v3  ;;  %16121 = vmatprep.subr.bf16.mxu1 %v31034_v52  ;;  %v16253_v3 = vsel %vm366_vm12, %v16184_v18, %v16225_v37  ;;  %v23695_v44 = vld [vmem:[%s30809_s4 + $0x1f7c] sm:$0xff]   ;;  %v23717_v18 = vld [vmem:[%s30809_s4 + $0x1fe8] sm:$0xff]   ;;  %v23721_v37 = vld [vmem:[%s30809_s4 + $0x1ff0] sm:$0xff]  }
 0x9d7   :  { %22226 = vmatpush3.bf16.msra.mxu0 %v23668_v24  ;;  %v15538_v24 = vpack.c.bf16 %v28760_v48, %v28760_v48  ;;  %v23698_v48 = vld [vmem:[%s30809_s4 + $0x2050] sm:$0xff]  }
 0x9d8   :  { %16122 = vmatpush1.bf16.msra.mxu1 %v23669_v58  ;;  %22227 = vmatprep.subr.bf16.mxu0 %v23670_v26  ;;  %v23696_v58 = vld [vmem:[%s30809_s4 + $0x2090] sm:$0xff]   ;;  %v16261_v26 = vpack.c.bf16 %v16253_v3, %v16253_v3 }
 0x9d9   :  { %16123 = vmatprep.subr.bf16.mxu1 %v31034_v52 }
 0x9db   :  { %22228 = vmatpush3.bf16.msra.mxu0 %v23671_v51  ;;  %v16217_v51 = vrot.slane %v28749_v10, %v31035_v7 }
 0x9dc   :  { %16124 = vmatpush1.bf16.msra.mxu1 %v23672_v30  ;;  %22257 = vmatprep.subr.bf16.mxu0 %v23673_v27 }
 0x9dd   :  { %16125 = vmatprep.subr.bf16.mxu1 %v31034_v52  ;;  %v16251_v27 = vsel %vm366_vm12, %v16176_v15, %v16217_v51  ;;  %v16172_v51 = vrot.slane %v28751_v4, %v31037_v13 }
 0x9de   :  { %16032 = vmatmul.mubr.bf16.vlgmr.msra.gmra.mrb[164].mxu0 %v15532_v9  ;;  %v15536_v9 = vpack.c.bf16 %v28764_v29, %v28764_v29  ;;  %v23705_v29 = vld [vmem:[%s30809_s4 + $0x1fd0] sm:$0xff]  }
 0x9df   :  { %22258 = vmatpush3.bf16.msra.mxu0 %v23674_v46  ;;  %16111 = vmatprep.mubr.bf16.mxu0 %v15537_v28 }
 0x9e0   :  { %16126 = vmatpush1.bf16.msra.mxu1 %v23675_v0  ;;  %22259 = vmatprep.subr.bf16.mxu0 %v23676_v53  ;;  %v23702_v0 = vld [vmem:[%s30809_s4 + $0x2058] sm:$0xff]   ;;  %v23703_v53 = vld [vmem:[%s30809_s4 + $0x2010] sm:$0xff]  }
 0x9e1   :  { %16127 = vmatprep.subr.bf16.mxu1 %v31034_v52 }
 0x9e3   :  { %22260 = vmatpush3.bf16.msra.mxu0 %v23677_v63  ;;  %v16259_v63 = vpack.c.bf16 %v16251_v27, %v16251_v27  ;;  %v23727_v27 = vld [vmem:[%s30809_s4 + $0x2000] sm:$0xff]  }
 0x9e4   :  { %16128 = vmatpush1.bf16.msra.mxu1 %v23678_v25  ;;  %22261 = vmatprep.subr.bf16.mxu0 %v23679_v60  ;;  %v23704_v25 = vld [vmem:[%s30809_s4 + $0x20a0] sm:$0xff]  }
 0x9e5   :  { %16129 = vmatprep.subr.bf16.mxu1 %v31034_v52 }
 0x9e7   :  { %22262 = vmatpush3.bf16.msra.mxu0 %v23680_v49 }
 0x9e8   :  { %16130 = vmatpush1.bf16.msra.mxu1 %v23681_v16  ;;  %22263 = vmatprep.subr.bf16.mxu0 %v23682_v54  ;;  %v23706_v16 = vld [vmem:[%s30809_s4 + $0x2060] sm:$0xff]   ;;  %v23707_v54 = vld [vmem:[%s30809_s4 + $0x2018] sm:$0xff]  }
 0x9e9   :  { %16131 = vmatprep.subr.bf16.mxu1 %v31034_v52 }
 0x9eb   :  { %22264 = vmatpush3.bf16.msra.mxu0 %v23683_v39  ;;  %v23708_v39 = vld [vmem:[%s30809_s4 + $0x20a8] sm:$0xff]  }
 0x9ec   :  { %16132 = vmatpush1.bf16.msra.mxu1 %v23684_v42  ;;  %22265 = vmatprep.subr.bf16.mxu0 %v23685_v31  ;;  %v23710_v42 = vld [vmem:[%s30809_s4 + $0x2068] sm:$0xff]   ;;  %v23711_v31 = vld [vmem:[%s30809_s4 + $0x2020] sm:$0xff]  }
 0x9ed   :  { %16133 = vmatprep.subr.bf16.mxu1 %v31034_v52 }
 0x9ef   :  { %22266 = vmatpush3.bf16.msra.mxu0 %v23686_v59  ;;  %v23712_v59 = vld [vmem:[%s30809_s4 + $0x20b0] sm:$0xff]  }
 0x9f0   :  { %16134 = vmatpush1.bf16.msra.mxu1 %v23687_v8  ;;  %22267 = vmatprep.subr.bf16.mxu0 %v23688_v62  ;;  %v23713_v8 = vld [vmem:[%s30809_s4 + $0x1fe0] sm:$0xff]   ;;  %v23714_v62 = vld [vmem:[%s30809_s4 + $0x2070] sm:$0xff]  }
 0x9f1   :  { %v22053_v57 = vpop.f32.mrb[140].mxu0  ;;  %16135 = vmatprep.subr.bf16.mxu1 %v31034_v52 }
 0x9f2   :  { %v22054_v32 = vpop.f32.mrb[141].mxu0 }
 0x9f3   :  { %v22055_v23 = vadd.f32 %v22054_v32, %v22053_v57  ;;  %v22056_v35 = vpop.f32.mrb[142].mxu0  ;;  %22268 = vmatpush3.bf16.msra.mxu0 %v23689_v19  ;;  %v23716_v19 = vld [vmem:[%s30809_s4 + $0x20b8] sm:$0xff]   ;;  %v23719_v57 = vld [vmem:[%s30809_s4 + $0x2030] sm:$0xff]   ;;  %v16200_v32 = vrot.slane %v28751_v4, %v31040_v33 }
 0x9f4   :  { %16136 = vmatpush1.bf16.msra.mxu1 %v15997_v38  ;;  %v22057_v20 = vpop.f32.mrb[143].mxu0  ;;  %22269 = vmatprep.subr.bf16.mxu0 %v23691_v45  ;;  %v23718_v45 = vld [vmem:[%s30809_s4 + $0x2078] sm:$0xff]   ;;  %v23720_v38 = vld [vmem:[%s30809_s4 + $0x20c0] sm:$0xff]  }
 0x9f5   :  { %v13896_v40 = vadd.f32 %v22055_v23, %v30211_v2  ;;  %22301 = vmatprep.subr.bf16.mxu1 %v23692_v43  ;;  %v23697_v2 = vld [vmem:[%s30809_s4 + $0x1f3c] sm:$0xff]   ;;  %v16180_v43 = vrot.slane %v28751_v4, %v31038_v6  ;;  %v16241_v20 = vrot.slane %v28749_v10, %v31040_v33 }
 0x9f6   :  { %v23722_v23 = vld [vmem:[%s30809_s4 + $0x2080] sm:$0xff]   ;;  %v23723_v35 = vld [vmem:[%s30809_s4 + $0x2038] sm:$0xff]  }
 0x9f7   :  { %16152 = vmatmul.mubr.bf16.vlgmr.msra.gmra.mrb[28].mxu1 %v15538_v24  ;;  %22270 = vmatpush3.bf16.msra.mxu0 %v23693_v1  ;;  %v16221_v1 = vrot.slane %v28749_v10, %v31038_v6 }
 0x9f8   :  { %22302 = vmatpush3.bf16.msra.mxu1 %v23694_v61  ;;  %16797 = vmatprep.mubr.bf16.mxu1 %v16261_v26  ;;  %v16257_v26 = vsel %vm366_vm12, %v16200_v32, %v16241_v20  ;;  %v23748_v32 = vld [vmem:[%s30809_s4 + $0x20f8] sm:$0xff]  }
 0x9f9   :  { %22271 = vmatprep.subr.bf16.mxu0 %v23695_v44  ;;  %22303 = vmatprep.subr.bf16.mxu1 %v23696_v58  ;;  %v23724_v58 = vld [vmem:[%s30809_s4 + $0x1ff8] sm:$0xff]  }
 0x9fa   :  { %v22075_v30 = vpop.f32.mrb[84].mxu1 }
 0x9fb   :  { %v22076_v21 = vpop.f32.mrb[85].mxu1  ;;  %22272 = vmatpush3.bf16.msra.mxu0 %v23697_v2  ;;  %v23725_v2 = vld [vmem:[%s30809_s4 + $0x2148] sm:$0xff]  }
 0x9fc   :  { %v22077_v36 = vadd.f32 %v22076_v21, %v22075_v30  ;;  %v22078_v46 = vpop.f32.mrb[86].mxu1  ;;  %22304 = vmatpush3.bf16.msra.mxu1 %v23698_v48  ;;  %22279 = vmatprep.subr.bf16.mxu0 %v23699_v22  ;;  %v23726_v22 = vld [vmem:[%s30809_s4 + $0x2040] sm:$0xff]   ;;  %v16192_v30 = vrot.slane %v28751_v4, %v31039_v5  ;;  %v16213_v21 = vrot.slane %v28749_v10, %v31037_v13  ;;  %v23729_v4 = vld [vmem:[%s30809_s4 + $0x2108] sm:$0xff]  }
 0x9fd   :  { %v22079_v28 = vpop.f32.mrb[87].mxu1  ;;  %22305 = vmatprep.subr.bf16.mxu1 %v23700_v41  ;;  %v16265_v41 = vpack.c.bf16 %v16257_v26, %v16257_v26  ;;  %v23753_v26 = vld [vmem:[%s30809_s4 + $0x220c] sm:$0xff]  }
 0x9fe   :  { %v13936_v60 = vadd.f32 %v22077_v36, %v13896_v40  ;;  %16112 = vmatmul.mubr.bf16.vlgmr.msra.gmra.mrb[168].mxu0 %v15536_v9  ;;  %v16252_v40 = vsel %vm366_vm12, %v16180_v43, %v16221_v1  ;;  %v16233_v36 = vrot.slane %v28749_v10, %v31039_v5  ;;  %v16250_v46 = vsel %vm366_vm12, %v16172_v51, %v16213_v21  ;;  %v23731_v28 = vld [vmem:[%s30809_s4 + $0x2158] sm:$0xff]   ;;  %v23732_v10 = vld [vmem:[%s30809_s4 + $0x2110] sm:$0xff]   ;;  %v23750_v1 = vld [vmem:[%s30809_s4 + $0x2140] sm:$0xff]  }
 0x9ff   :  { %22280 = vmatpush3.bf16.msra.mxu0 %v23701_v12  ;;  %16757 = vmatprep.mubr.bf16.mxu0 %v16259_v63  ;;  %v16260_v48 = vpack.c.bf16 %v16252_v40, %v16252_v40  ;;  %v23728_v12 = vld [vmem:[%s30809_s4 + $0x2150] sm:$0xff]   ;;  %v16951_v40 = vrot.slane %v28789_v47, %v31036_v56 }
 0xa00   :  { %v30363_v49 = vadd.f32 %v30133_v14, %v13936_v60  ;;  %22306 = vmatpush3.bf16.msra.mxu1 %v23702_v0  ;;  %22281 = vmatprep.subr.bf16.mxu0 %v23703_v53  ;;  %v23709_v14 = vld [vmem:[%s30809_s4 + $0x1fd8] sm:$0xff]   ;;  %v16255_v9 = vsel %vm366_vm12, %v16192_v30, %v16233_v36  ;;  %v23730_v0 = vld [vmem:[%s30809_s4 + $0x20c8] sm:$0xff]   ;;  %v16258_v53 = vpack.c.bf16 %v16250_v46, %v16250_v46  ;;  %v23734_v60 = vld [vmem:[%s30809_s4 + $0x2160] sm:$0xff]  }
 0xa01   :  { %22307 = vmatprep.subr.bf16.mxu1 %v23704_v25  ;;  %v16263_v63 = vpack.c.bf16 %v16255_v9, %v16255_v9  ;;  %v23733_v25 = vld [vmem:[%s30809_s4 + $0x20d0] sm:$0xff]  }
 0xa02   :  { %v23757_v30 = vld [vmem:[%s30809_s4 + $0x2214] sm:$0xff]  }
 0xa03   :  { %22282 = vmatpush3.bf16.msra.mxu0 %v23705_v29  ;;  %v23735_v29 = vld [vmem:[%s30809_s4 + $0x2118] sm:$0xff]  }
 0xa04   :  { %22308 = vmatpush3.bf16.msra.mxu1 %v23706_v16  ;;  %22283 = vmatprep.subr.bf16.mxu0 %v23707_v54  ;;  %v23736_v16 = vld [vmem:[%s30809_s4 + $0x20d8] sm:$0xff]   ;;  %v23737_v54 = vld [vmem:[%s30809_s4 + $0x2168] sm:$0xff]  }
 0xa05   :  { %22309 = vmatprep.subr.bf16.mxu1 %v23708_v39  ;;  %v23738_v39 = vld [vmem:[%s30809_s4 + $0x2120] sm:$0xff]   ;;  %v23760_v46 = vld [vmem:[%s30809_s4 + $0x2194] sm:$0xff]  }
 0xa07   :  { %22284 = vmatpush3.bf16.msra.mxu0 %v23709_v14  ;;  %v23739_v14 = vld [vmem:[%s30809_s4 + $0x20e0] sm:$0xff]  }
 0xa08   :  { %22310 = vmatpush3.bf16.msra.mxu1 %v23710_v42  ;;  %22285 = vmatprep.subr.bf16.mxu0 %v23711_v31  ;;  %v23740_v42 = vld [vmem:[%s30809_s4 + $0x2170] sm:$0xff]   ;;  %v23741_v31 = vld [vmem:[%s30809_s4 + $0x2128] sm:$0xff]  }
 0xa09   :  { %22311 = vmatprep.subr.bf16.mxu1 %v23712_v59  ;;  %v23742_v59 = vld [vmem:[%s30809_s4 + $0x20e8] sm:$0xff]  }
 0xa0b   :  { %22286 = vmatpush3.bf16.msra.mxu0 %v23713_v8  ;;  %v23743_v8 = vld [vmem:[%s30809_s4 + $0x2178] sm:$0xff]  }
 0xa0c   :  { %22312 = vmatpush3.bf16.msra.mxu1 %v23714_v62  ;;  %22287 = vmatprep.subr.bf16.mxu0 %v23715_v55  ;;  %v23744_v62 = vld [vmem:[%s30809_s4 + $0x2130] sm:$0xff]  }
 0xa0d   :  { %22313 = vmatprep.subr.bf16.mxu1 %v23716_v19  ;;  %v23745_v55 = vld [vmem:[%s30809_s4 + $0x20f0] sm:$0xff]   ;;  %v23746_v19 = vld [vmem:[%s30809_s4 + $0x2180] sm:$0xff]  }
 0xa0f   :  { %22288 = vmatpush3.bf16.msra.mxu0 %v23717_v18  ;;  %v23747_v18 = vld [vmem:[%s30809_s4 + $0x2138] sm:$0xff]  }
 0xa10   :  { %22314 = vmatpush3.bf16.msra.mxu1 %v23718_v45  ;;  %22289 = vmatprep.subr.bf16.mxu0 %v23719_v57  ;;  %v23749_v57 = vld [vmem:[%s30809_s4 + $0x2188] ss:$0 sps:$4 sm:$0x33]  }
 0xa11   :  { %v22097_v3 = vpop.f32.mrb[144].mxu0  ;;  %22315 = vmatprep.subr.bf16.mxu1 %v23720_v38  ;;  %v16723_v20 = vsel %vm3653_vm1, %v23749_v57, 0 }
 0xa12   :  { %v22098_v61 = vpop.f32.mrb[145].mxu0 }
 0xa13   :  { %v30428_v24 = vadd.f32 %v22098_v61, %v22097_v3  ;;  %v22100_v44 = vpop.f32.mrb[146].mxu0  ;;  %22290 = vmatpush3.bf16.msra.mxu0 %v23721_v37  ;;  %v23751_v61 = vld [vmem:[%s30809_s4 + $0x224c] sm:$0xff]  }
 0xa14   :  { %22316 = vmatpush3.bf16.msra.mxu1 %v23722_v23  ;;  %v22101_v15 = vpop.f32.mrb[147].mxu0  ;;  %22291 = vmatprep.subr.bf16.mxu0 %v23723_v35  ;;  %v16910_v23 = vrot.slane %v28784_v11, %v31036_v56  ;;  %v16902_v44 = vrot.slane %v28784_v11, %v31035_v7  ;;  %v16264_v56 = vpack.c.bf16 %v28787_v17, %v28787_v17  ;;  %v31152_v17 = vld [vmem:[#allocation21_spill] sm:$0xff] }
 0xa15   :  { %16845 = vmatprep.subr.bf16.mxu1 %v31034_v52  ;;  %v16943_v15 = vrot.slane %v28789_v47, %v31035_v7  ;;  %v23756_v7 = vld [vmem:[%s30809_s4 + $0x218c] sm:$0xff]  }
 0xa17   :  { %16798 = vmatmul.mubr.bf16.vlgmr.msra.gmra.mrb[96].mxu1 %v16260_v48  ;;  %22292 = vmatpush3.bf16.msra.mxu0 %v23724_v58  ;;  %v23752_v58 = vld [vmem:[%s30809_s4 + $0x2100] sm:$0xff]   ;;  %v23755_v48 = vld [vmem:[%s30809_s4 + $0x2254] sm:$0xff]   ;;  %v16977_v51 = vsel %vm366_vm12, %v16902_v44, %v16943_v15  ;;  %v16967_v44 = vrot.slane %v28789_v47, %v31040_v33 }
 0xa18   :  { %16846 = vmatpush1.bf16.msra.mxu1 %v23725_v2  ;;  %20917 = vmatprep.mubr.msk.bf16.mxu1 %vm303_vm8, %v16265_v41  ;;  %v23754_v2 = vld [vmem:[%s30809_s4 + $0x21cc] sm:$0xff]   ;;  %v16262_v41 = vpack.c.bf16 %v31152_v17, %v31152_v17  ;;  %v16985_v21 = vpack.c.bf16 %v16977_v51, %v16977_v51  ;;  %v23783_v15 = vld [vmem:[%s30809_s4 + $0x21c4] sm:$0xff]   ;;  %v23788_v17 = vld [vmem:[%s30809_s4 + $0x22d4] sm:$0xff]  }
 0xa19   :  { %22293 = vmatprep.subr.bf16.mxu0 %v23726_v22  ;;  %16847 = vmatprep.subr.bf16.mxu1 %v31034_v52 }
 0xa1b   :  { %22294 = vmatpush3.bf16.msra.mxu0 %v23727_v27  ;;  %v23758_v27 = vld [vmem:[%s30809_s4 + $0x21d4] sm:$0xff]  }
 0xa1c   :  { %16848 = vmatpush1.bf16.msra.mxu1 %v23728_v12  ;;  %22323 = vmatprep.subr.bf16.mxu0 %v23729_v4  ;;  %v23759_v12 = vld [vmem:[%s30809_s4 + $0x225c] sm:$0xff]  }
 0xa1d   :  { %16849 = vmatprep.subr.bf16.mxu1 %v31034_v52 }
 0xa1e   :  { %16758 = vmatmul.mubr.bf16.vlgmr.msra.gmra.mrb[172].mxu0 %v16258_v53  ;;  %v23761_v53 = vld [vmem:[%s30809_s4 + $0x221c] sm:$0xff]  }
 0xa1f   :  { %22324 = vmatpush3.bf16.msra.mxu0 %v23730_v0  ;;  %16837 = vmatprep.mubr.bf16.mxu0 %v16263_v63  ;;  %v23763_v63 = vld [vmem:[%s30809_s4 + $0x2264] sm:$0xff]  }
 0xa20   :  { %16850 = vmatpush1.bf16.msra.mxu1 %v23731_v28  ;;  %22325 = vmatprep.subr.bf16.mxu0 %v23732_v10  ;;  %v23762_v28 = vld [vmem:[%s30809_s4 + $0x21dc] sm:$0xff]  }
 0xa21   :  { %16851 = vmatprep.subr.bf16.mxu1 %v31034_v52 }
 0xa23   :  { %22326 = vmatpush3.bf16.msra.mxu0 %v23733_v25 }
 0xa24   :  { %16852 = vmatpush1.bf16.msra.mxu1 %v23734_v60  ;;  %22327 = vmatprep.subr.bf16.mxu0 %v23735_v29  ;;  %v23764_v60 = vld [vmem:[%s30809_s4 + $0x219c] sm:$0xff]  }
 0xa25   :  { %16853 = vmatprep.subr.bf16.mxu1 %v31034_v52 }
 0xa27   :  { %22328 = vmatpush3.bf16.msra.mxu0 %v23736_v16  ;;  %v23765_v16 = vld [vmem:[%s30809_s4 + $0x2224] sm:$0xff]  }
 0xa28   :  { %16854 = vmatpush1.bf16.msra.mxu1 %v23737_v54  ;;  %22329 = vmatprep.subr.bf16.mxu0 %v23738_v39  ;;  %v23766_v54 = vld [vmem:[%s30809_s4 + $0x21e4] sm:$0xff]   ;;  %v23767_v39 = vld [vmem:[%s30809_s4 + $0x226c] sm:$0xff]  }
 0xa29   :  { %16855 = vmatprep.subr.bf16.mxu1 %v31034_v52 }
 0xa2b   :  { %22330 = vmatpush3.bf16.msra.mxu0 %v23739_v14  ;;  %v23769_v14 = vld [vmem:[%s30809_s4 + $0x222c] sm:$0xff]  }
 0xa2c   :  { %16856 = vmatpush1.bf16.msra.mxu1 %v23740_v42  ;;  %22331 = vmatprep.subr.bf16.mxu0 %v23741_v31  ;;  %v23770_v42 = vld [vmem:[%s30809_s4 + $0x21ec] sm:$0xff]   ;;  %v23771_v31 = vld [vmem:[%s30809_s4 + $0x2274] sm:$0xff]  }
 0xa2d   :  { %16857 = vmatprep.subr.bf16.mxu1 %v31034_v52 }
 0xa2f   :  { %22332 = vmatpush3.bf16.msra.mxu0 %v23742_v59  ;;  %v23772_v59 = vld [vmem:[%s30809_s4 + $0x21ac] sm:$0xff]  }
 0xa30   :  { %16858 = vmatpush1.bf16.msra.mxu1 %v23743_v8  ;;  %22333 = vmatprep.subr.bf16.mxu0 %v23744_v62  ;;  %v23773_v8 = vld [vmem:[%s30809_s4 + $0x2234] sm:$0xff]  }
 0xa31   :  { %v22119_v45 = vpop.f32.mrb[148].mxu0  ;;  %16859 = vmatprep.subr.bf16.mxu1 %v31034_v52  ;;  %v23774_v62 = vld [vmem:[%s30809_s4 + $0x21f4] sm:$0xff]  }
 0xa32   :  { %v22120_v38 = vpop.f32.mrb[149].mxu0 }
 0xa33   :  { %v22121_v43 = vadd.f32 %v22120_v38, %v22119_v45  ;;  %v22122_v37 = vpop.f32.mrb[150].mxu0  ;;  %22334 = vmatpush3.bf16.msra.mxu0 %v23745_v55  ;;  %v23775_v55 = vld [vmem:[%s30809_s4 + $0x227c] sm:$0xff]   ;;  %v23779_v38 = vld [vmem:[%s30809_s4 + $0x2284] sm:$0xff]  }
 0xa34   :  { %16860 = vmatpush1.bf16.msra.mxu1 %v23746_v19  ;;  %v22123_v35 = vpop.f32.mrb[151].mxu0  ;;  %22335 = vmatprep.subr.bf16.mxu0 %v23747_v18  ;;  %v23776_v19 = vld [vmem:[%s30809_s4 + $0x21b4] sm:$0xff]   ;;  %v23777_v18 = vld [vmem:[%s30809_s4 + $0x223c] sm:$0xff]   ;;  %v16906_v37 = vrot.slane %v28784_v11, %v31038_v6 }
 0xa35   :  { %v14622_v3 = vadd.f32 %v22121_v43, %v30428_v24  ;;  %16861 = vmatprep.subr.bf16.mxu1 %v31034_v52  ;;  %v16979_v24 = vsel %vm366_vm12, %v16910_v23, %v16951_v40  ;;  %v23778_v45 = vld [vmem:[%s30809_s4 + $0x21fc] sm:$0xff]   ;;  %v16947_v40 = vrot.slane %v28789_v47, %v31038_v6  ;;  %v16939_v6 = vrot.slane %v28789_v47, %v31037_v13 }
 0xa36   :  { %v16987_v22 = vpack.c.bf16 %v16979_v24, %v16979_v24  ;;  %v23780_v35 = vld [vmem:[%s30809_s4 + $0x21bc] sm:$0xff]  }
 0xa37   :  { %22336 = vmatpush3.bf16.msra.mxu0 %v23748_v32  ;;  %v16978_v24 = vsel %vm366_vm12, %v16906_v37, %v16947_v40 }
 0xa38   :  { %16862 = vmatpush1.bf16.msra.mxu1 %v16723_v20  ;;  %22337 = vmatprep.subr.bf16.mxu0 %v23750_v1  ;;  %v16926_v1 = vrot.slane %v28784_v11, %v31040_v33  ;;  %v23781_v20 = vld [vmem:[%s30809_s4 + $0x2244] sm:$0xff]   ;;  %v23784_v33 = vld [vmem:[%s30809_s4 + $0x230c] sm:$0xff]  }
 0xa39   :  { %22367 = vmatprep.subr.bf16.mxu1 %v23751_v61  ;;  %v23782_v61 = vld [vmem:[%s30809_s4 + $0x2204] sm:$0xff]  }
 0xa3b   :  { %16878 = vmatmul.mubr.bf16.vlgmr.msra.gmra.mrb[28].mxu1 %v16264_v56  ;;  %22338 = vmatpush3.bf16.msra.mxu0 %v23752_v58  ;;  %v16898_v58 = vrot.slane %v28784_v11, %v31037_v13  ;;  %v16983_v56 = vsel %vm366_vm12, %v16926_v1, %v16967_v44 }
 0xa3c   :  { %22368 = vmatpush3.bf16.msra.mxu1 %v23753_v26  ;;  %17523 = vmatprep.mubr.bf16.mxu1 %v16987_v22  ;;  %v16918_v26 = vrot.slane %v28784_v11, %v31039_v5  ;;  %v16986_v11 = vpack.c.bf16 %v16978_v24, %v16978_v24  ;;  %v23785_v22 = vld [vmem:[%s30809_s4 + $0x22cc] sm:$0xff]   ;;  %v16991_v51 = vpack.c.bf16 %v16983_v56, %v16983_v56  ;;  %v23873_v56 = vmov 0.0|0.0  }
 0xa3d   :  { %22345 = vmatprep.subr.bf16.mxu0 %v23754_v2  ;;  %22369 = vmatprep.subr.bf16.mxu1 %v23755_v48  ;;  %v16959_v2 = vrot.slane %v28789_v47, %v31039_v5  ;;  %v16976_v48 = vsel %vm366_vm12, %v16898_v58, %v16939_v6  ;;  %v23787_v47 = vld [vmem:[%s30809_s4 + $0x2314] sm:$0xff]  }
 0xa3e   :  { %v22141_v4 = vpop.f32.mrb[88].mxu1  ;;  %16838 = vmatmul.mubr.bf16.vlgmr.msra.gmra.mrb[176].mxu0 %v16262_v41  ;;  %v16984_v5 = vpack.c.bf16 %v16976_v48, %v16976_v48 }
 0xa3f   :  { %v22142_v36 = vpop.f32.mrb[89].mxu1  ;;  %22346 = vmatpush3.bf16.msra.mxu0 %v23756_v7  ;;  %17483 = vmatprep.mubr.bf16.mxu0 %v16985_v21  ;;  %v16981_v13 = vsel %vm366_vm12, %v16918_v26, %v16959_v2  ;;  %v23786_v7 = vld [vmem:[%s30809_s4 + $0x228c] sm:$0xff]   ;;  %v23791_v21 = vld [vmem:[%s30809_s4 + $0x22dc] sm:$0xff]  }
 0xa40   :  { %v22143_v9 = vadd.f32 %v22142_v36, %v22141_v4  ;;  %v22144_v0 = vpop.f32.mrb[90].mxu1  ;;  %22370 = vmatpush3.bf16.msra.mxu1 %v23757_v30  ;;  %22347 = vmatprep.subr.bf16.mxu0 %v23758_v27  ;;  %v16989_v41 = vpack.c.bf16 %v16981_v13, %v16981_v13  ;;  %v23789_v30 = vld [vmem:[%s30809_s4 + $0x2294] sm:$0xff]   ;;  %v23790_v27 = vld [vmem:[%s30809_s4 + $0x231c] sm:$0xff]   ;;  %v23793_v4 = vld [vmem:[%s30809_s4 + $0x2324] sm:$0xff]  }
 0xa41   :  { %v22145_v10 = vpop.f32.mrb[91].mxu1  ;;  %22371 = vmatprep.subr.bf16.mxu1 %v23759_v12  ;;  %v23792_v12 = vld [vmem:[%s30809_s4 + $0x229c] sm:$0xff]   ;;  %v23794_v36 = vld [vmem:[%s30809_s4 + $0x22e4] sm:$0xff]   ;;  %v23797_v0 = vld [vmem:[%s30809_s4 + $0x22ec] sm:$0xff]  }
 0xa42   :  { %v14662_v25 = vadd.f32 %v22143_v9, %v14622_v3  ;;  %v23796_v9 = vld [vmem:[%s30809_s4 + $0x232c] sm:$0xff]   ;;  %v23800_v10 = vld [vmem:[%s30809_s4 + $0x22f4] sm:$0xff]   ;;  %v17612_v26 = vld [vmem:[%s30811_s6] sm:$0xff] }
 0xa43   :  { %22348 = vmatpush3.bf16.msra.mxu0 %v23760_v46  ;;  %v23795_v46 = vld [vmem:[%s30809_s4 + $0x22a4] sm:$0xff]  }
 0xa44   :  { %v30591_v29 = vadd.f32 %v30363_v49, %v14662_v25  ;;  %22372 = vmatpush3.bf16.msra.mxu1 %v23761_v53  ;;  %22349 = vmatprep.subr.bf16.mxu0 %v23762_v28  ;;  %v23768_v49 = vld [vmem:[%s30809_s4 + $0x21a4] sm:$0xff]   ;;  %v23798_v53 = vld [vmem:[%s30809_s4 + $0x22ac] sm:$0xff]   ;;  %v23799_v28 = vld [vmem:[%s30809_s4 + $0x2334] sm:$0xff]  }
 0xa45   :  { %22373 = vmatprep.subr.bf16.mxu1 %v23763_v63  ;;  %v23801_v63 = vld [vmem:[%s30809_s4 + $0x22b4] sm:$0xff]   ;;  %v23802_v25 = vld [vmem:[%s30809_s4 + $0x233c] sm:$0xff]  }
 0xa47   :  { %22350 = vmatpush3.bf16.msra.mxu0 %v23764_v60  ;;  %v23803_v60 = vld [vmem:[%s30809_s4 + $0x22fc] sm:$0xff]  }
 0xa48   :  { %22374 = vmatpush3.bf16.msra.mxu1 %v23765_v16  ;;  %22351 = vmatprep.subr.bf16.mxu0 %v23766_v54 }
 0xa49   :  { %22375 = vmatprep.subr.bf16.mxu1 %v23767_v39 }
 0xa4b   :  { %22352 = vmatpush3.bf16.msra.mxu0 %v23768_v49 }
 0xa4c   :  { %22376 = vmatpush3.bf16.msra.mxu1 %v23769_v14  ;;  %22353 = vmatprep.subr.bf16.mxu0 %v23770_v42  ;;  %v23804_v14 = vld [vmem:[%s30809_s4 + $0x22bc] sm:$0xff]  }
 0xa4d   :  { %22377 = vmatprep.subr.bf16.mxu1 %v23771_v31  ;;  %v23805_v31 = vld [vmem:[%s30809_s4 + $0x2344] sm:$0xff]  }
 0xa4f   :  { %22354 = vmatpush3.bf16.msra.mxu0 %v23772_v59  ;;  %v23806_v59 = vld [vmem:[%s30809_s4 + $0x2304] sm:$0xff]  }
 0xa50   :  { %22378 = vmatpush3.bf16.msra.mxu1 %v23773_v8  ;;  %22355 = vmatprep.subr.bf16.mxu0 %v23774_v62  ;;  %v23808_v62 = vld [vmem:[%s30809_s4 + $0x234c] ss:$0 sps:$4 sm:$0x33]  }
 0xa51   :  { %v22163_v57 = vpop.f32.mrb[152].mxu0  ;;  %22379 = vmatprep.subr.bf16.mxu1 %v23775_v55  ;;  %v23807_v55 = vld [vmem:[%s30809_s4 + $0x22c4] sm:$0xff]  }
 0xa52   :  { %v22164_v43 = vpop.f32.mrb[153].mxu0 }
 0xa53   :  { %v30640_v32 = vadd.f32 %v22164_v43, %v22163_v57  ;;  %v22166_v23 = vpop.f32.mrb[154].mxu0  ;;  %22356 = vmatpush3.bf16.msra.mxu0 %v23776_v19  ;;  %v17449_v19 = vsel %vm3653_vm1, %v23808_v62, 0 }
 0xa54   :  { %22380 = vmatpush3.bf16.msra.mxu1 %v23777_v18  ;;  %v22167_v3 = vpop.f32.mrb[155].mxu0  ;;  %22357 = vmatprep.subr.bf16.mxu0 %v23778_v45  ;;  %v16988_v18 = vpack.c.bf16 %v28826_v34, %v28826_v34  ;;  %v16990_v45 = vpack.c.bf16 %v28829_v50, %v28829_v50 }
 0xa55   :  { %22381 = vmatprep.subr.bf16.mxu1 %v23779_v38 }
 0xa57   :  { %22358 = vmatpush3.bf16.msra.mxu0 %v23780_v35 }
 0xa58   :  { %22382 = vmatpush3.bf16.msra.mxu1 %v23781_v20  ;;  %22359 = vmatprep.subr.bf16.mxu0 %v23782_v61 }
 0xa59   :  { %17571 = vmatprep.subr.bf16.mxu1 %v31034_v52 }
 0xa5b   :  { %17524 = vmatmul.mubr.bf16.vlgmr.msra.gmra.mrb[100].mxu1 %v16986_v11  ;;  %22360 = vmatpush3.bf16.msra.mxu0 %v23783_v15  ;;  %v17613_v15 = vld [vmem:[%s30811_s6 + $0x8] sm:$0xff] }
 0xa5c   :  { %17572 = vmatpush1.bf16.msra.mxu1 %v23784_v33  ;;  %21088 = vmatprep.mubr.msk.bf16.mxu1 %vm303_vm8, %v16991_v51  ;;  %v22520_v6 = vpack.c.bf16 %v17613_v15, %v17612_v26  ;;  %v17615_v33 = vld [vmem:[%s30811_s6 + $0x18] sm:$0xff] }
 0xa5d   :  { %22389 = vmatprep.subr.bf16.mxu0 %v23785_v22  ;;  %17573 = vmatprep.subr.bf16.mxu1 %v31034_v52 }
 0xa5e   :  { %17484 = vmatmul.mubr.bf16.vlgmr.msra.gmra.mrb[180].mxu0 %v16984_v5 }
 0xa5f   :  { %22390 = vmatpush3.bf16.msra.mxu0 %v23786_v7  ;;  %17563 = vmatprep.mubr.bf16.mxu0 %v16989_v41  ;;  %v17618_v41 = vld [vmem:[%s30811_s6 + $0x30] sm:$0xff] }
 0xa60   :  { %17574 = vmatpush1.bf16.msra.mxu1 %v23787_v47  ;;  %22391 = vmatprep.subr.bf16.mxu0 %v23788_v17  ;;  %v17616_v47 = vld [vmem:[%s30811_s6 + $0x20] sm:$0xff]  ;;  %v17617_v17 = vld [vmem:[%s30811_s6 + $0x28] sm:$0xff] }
 0xa61   :  { %17575 = vmatprep.subr.bf16.mxu1 %v31034_v52 }
 0xa63   :  { %22392 = vmatpush3.bf16.msra.mxu0 %v23789_v30  ;;  %v22526_v30 = vpack.c.bf16 %v17617_v17, %v17616_v47 }
 0xa64   :  { %17576 = vmatpush1.bf16.msra.mxu1 %v23790_v27  ;;  %22393 = vmatprep.subr.bf16.mxu0 %v23791_v21  ;;  %v17619_v27 = vld [vmem:[%s30811_s6 + $0x38] sm:$0xff]  ;;  %v31153_v21 = vld [vmem:[#allocation8_spill] sm:$0xff] }
 0xa65   :  { %17577 = vmatprep.subr.bf16.mxu1 %v31034_v52 }
 0xa67   :  { %22394 = vmatpush3.bf16.msra.mxu0 %v23792_v12  ;;  %v22529_v12 = vpack.c.bf16 %v17619_v27, %v17618_v41 }
 0xa68   :  { %17578 = vmatpush1.bf16.msra.mxu1 %v23793_v4  ;;  %22395 = vmatprep.subr.bf16.mxu0 %v23794_v36 }
 0xa69   :  { %17579 = vmatprep.subr.bf16.mxu1 %v31034_v52 }
 0xa6b   :  { %22396 = vmatpush3.bf16.msra.mxu0 %v23795_v46 }
 0xa6c   :  { %17580 = vmatpush1.bf16.msra.mxu1 %v23796_v9  ;;  %22397 = vmatprep.subr.bf16.mxu0 %v23797_v0 }
 0xa6d   :  { %17581 = vmatprep.subr.bf16.mxu1 %v31034_v52 }
 0xa6f   :  { %22398 = vmatpush3.bf16.msra.mxu0 %v23798_v53 }
 0xa70   :  { %17582 = vmatpush1.bf16.msra.mxu1 %v23799_v28  ;;  %22399 = vmatprep.subr.bf16.mxu0 %v23800_v10 }
 0xa71   :  { %v22185_v16 = vpop.f32.mrb[156].mxu0  ;;  %17583 = vmatprep.subr.bf16.mxu1 %v31034_v52 }
 0xa72   :  { %v22186_v54 = vpop.f32.mrb[157].mxu0 }
 0xa73   :  { %v22187_v39 = vadd.f32 %v22186_v54, %v22185_v16  ;;  %v22188_v49 = vpop.f32.mrb[158].mxu0  ;;  %22400 = vmatpush3.bf16.msra.mxu0 %v23801_v63 }
 0xa74   :  { %17584 = vmatpush1.bf16.msra.mxu1 %v23802_v25  ;;  %v22189_v42 = vpop.f32.mrb[159].mxu0  ;;  %22401 = vmatprep.subr.bf16.mxu0 %v23803_v60 }
 0xa75   :  { %v15348_v8 = vadd.f32 %v22187_v39, %v30640_v32  ;;  %17585 = vmatprep.subr.bf16.mxu1 %v31034_v52 }
 0xa77   :  { %22402 = vmatpush3.bf16.msra.mxu0 %v23804_v14 }
 0xa78   :  { %17586 = vmatpush1.bf16.msra.mxu1 %v23805_v31  ;;  %22403 = vmatprep.subr.bf16.mxu0 %v23806_v59 }
 0xa79   :  { %17587 = vmatprep.subr.bf16.mxu1 %v31034_v52 }
 0xa7b   :  { %22404 = vmatpush3.bf16.msra.mxu0 %v23807_v55 }
 0xa7c   :  { %17588 = vmatpush1.bf16.msra.mxu1 %v17449_v19  ;;  %22519 = vmatprep.subr.bf16.mxu0 %v23873_v56 }
 0xa7e   :  { %17564 = vmatmul.mubr.bf16.vlgmr.msra.gmra.mrb[184].mxu0 %v16988_v18 }
 0xa7f   :  { %17604 = vmatmul.mubr.bf16.vlgmr.msra.gmra.mrb[28].mxu1 %v16990_v45  ;;  %22521 = vmatpush3.bf16.msra.mxu0 %v22520_v6 }
 0xa80   :  { %22522 = vmatprep.subr.bf16.mxu0 %v23873_v56  ;;  %22436 = vmatprep.mubr.msk.f32.mxu0 %vm23874_vm2, %v31153_v21 }
 0xa91   :  { %v22207_v57 = vpop.f32.mrb[160].mxu0 }
 0xa92   :  { %v22208_v38 = vpop.f32.mrb[161].mxu0 }
 0xa93   :  { %v22209_v43 = vadd.f32 %v22208_v38, %v22207_v57  ;;  %v22210_v37 = vpop.f32.mrb[162].mxu0 }
 0xa94   :  { %v22211_v32 = vpop.f32.mrb[163].mxu0 }
 0xa95   :  { %v15388_v23 = vadd.f32 %v22209_v43, %v15348_v8 }
 0xa97   :  { %v22547_v52 = vadd.f32 %v30591_v29, %v15388_v23  ;;  %v17614_v29 = vld [vmem:[%s30811_s6 + $0x10] sm:$0xff] }
 0xa98   :  { %v22523_v2 = vpack.c.bf16 %v17615_v33, %v17614_v29 }
 0xa9a   :  { %22524 = vmatpush3.bf16.msra.mxu0 %v22523_v2 }
 0xa9b   :  { %22525 = vmatprep.subr.bf16.mxu0 %v23873_v56 }
 0xa9e   :  { %22527 = vmatpush3.bf16.msra.mxu0 %v22526_v30 }
 0xa9f   :  { %22528 = vmatprep.subr.bf16.mxu0 %v23873_v56 }
 0xaa2   :  { %22530 = vmatpush3.bf16.msra.mxu0 %v22529_v12 }
 0xaa6   :  { %v22251_v35 = vpop.f32.mrb[92].mxu1 }
 0xaa7   :  { %v22252_v1 = vpop.f32.mrb[93].mxu1 }
 0xaa8   :  { %v22253_v3 = vadd.f32 %v22252_v1, %v22251_v35  ;;  %v22254_v20 = vpop.f32.mrb[94].mxu1 }
 0xaa9   :  { %v22255_v61 = vpop.f32.mrb[95].mxu1 }
 0xab1   :  { %v22229_v40 = vpop.f32.mrb[164].mxu0 }
 0xab2   :  { %v22230_v34 = vpop.f32.mrb[165].mxu0 }
 0xab3   :  { %v22231_v44 = vadd.f32 %v22230_v34, %v22229_v40  ;;  %v22232_v58 = vpop.f32.mrb[166].mxu0 }
 0xab4   :  { %v22233_v50 = vpop.f32.mrb[167].mxu0 }
 0xab5   :  { %v16074_v24 = vadd.f32 %v22253_v3, %v22231_v44  ;;  %v21089_v50 = vld [vmem:[%s30812_s7] ss:$0 sm:$0xff] }
 0xad1   :  { %v22273_v11 = vpop.f32.mrb[168].mxu0 }
 0xad2   :  { %v22274_v48 = vpop.f32.mrb[169].mxu0 }
 0xad3   :  { %v22275_v22 = vadd.f32 %v22274_v48, %v22273_v11  ;;  %v22276_v51 = vpop.f32.mrb[170].mxu0 }
 0xad4   :  { %v22277_v13 = vpop.f32.mrb[171].mxu0 }
 0xad5   :  { %v16114_v7 = vadd.f32 %v22275_v22, %v16074_v24 }
 0xad7   :  { %v22548_v5 = vadd.f32 %v22547_v52, %v16114_v7 }
 0xaea   :  { %v22317_v4 = vpop.f32.mrb[96].mxu1 }
 0xaeb   :  { %v22318_v36 = vpop.f32.mrb[97].mxu1 }
 0xaec   :  { %v22319_v46 = vadd.f32 %v22318_v36, %v22317_v4  ;;  %v22320_v9 = vpop.f32.mrb[98].mxu1 }
 0xaed   :  { %v22321_v0 = vpop.f32.mrb[99].mxu1 }
 0xaf1   :  { %v22295_v53 = vpop.f32.mrb[172].mxu0 }
 0xaf2   :  { %v22296_v28 = vpop.f32.mrb[173].mxu0 }
 0xaf3   :  { %v22297_v10 = vadd.f32 %v22296_v28, %v22295_v53  ;;  %v22298_v63 = vpop.f32.mrb[174].mxu0 }
 0xaf4   :  { %v22299_v25 = vpop.f32.mrb[175].mxu0 }
 0xaf5   :  { %v16800_v60 = vadd.f32 %v22319_v46, %v22297_v10 }
 0xb11   :  { %v22339_v16 = vpop.f32.mrb[176].mxu0 }
 0xb12   :  { %v22340_v54 = vpop.f32.mrb[177].mxu0 }
 0xb13   :  { %v22341_v39 = vadd.f32 %v22340_v54, %v22339_v16  ;;  %v22342_v49 = vpop.f32.mrb[178].mxu0 }
 0xb14   :  { %v22343_v14 = vpop.f32.mrb[179].mxu0 }
 0xb15   :  { %v16840_v42 = vadd.f32 %v22341_v39, %v16800_v60 }
 0xb17   :  { %v22549_v31 = vadd.f32 %v22548_v5, %v16840_v42 }
 0xb2e   :  { %v22383_v59 = vpop.f32.mrb[100].mxu1 }
 0xb2f   :  { %v22384_v8 = vpop.f32.mrb[101].mxu1 }
 0xb30   :  { %v22385_v62 = vadd.f32 %v22384_v8, %v22383_v59  ;;  %v22386_v55 = vpop.f32.mrb[102].mxu1 }
 0xb31   :  { %v22387_v19 = vpop.f32.mrb[103].mxu1  ;;  %v22361_v18 = vpop.f32.mrb[180].mxu0 }
 0xb32   :  { %v22362_v45 = vpop.f32.mrb[181].mxu0 }
 0xb33   :  { %v22363_v57 = vadd.f32 %v22362_v45, %v22361_v18  ;;  %v22364_v38 = vpop.f32.mrb[182].mxu0 }
 0xb34   :  { %v22365_v43 = vpop.f32.mrb[183].mxu0 }
 0xb35   :  { %v17526_v37 = vadd.f32 %v22385_v62, %v22363_v57 }
 0xb51   :  { %v22405_v32 = vpop.f32.mrb[184].mxu0 }
 0xb52   :  { %v17605_v23 = vpop.f32.mrb[28].mxu1  ;;  %v22406_v52 = vpop.f32.mrb[185].mxu0 }
 0xb53   :  { %v22407_v35 = vadd.f32 %v22406_v52, %v22405_v32  ;;  %v17607_v1 = vpop.f32.mrb[29].mxu1  ;;  %v22408_v3 = vpop.f32.mrb[186].mxu0 }
 0xb54   :  { %v17608_v20 = vpop.f32.mrb[30].mxu1  ;;  %v22409_v61 = vpop.f32.mrb[187].mxu0 }
 0xb55   :  { %v17566_v40 = vadd.f32 %v22407_v35, %v17526_v37  ;;  %v17609_v34 = vpop.f32.mrb[31].mxu1 }
 0xb57   :  { %v22550_v44 = vadd.f32 %v22549_v31, %v17566_v40 }
 0xb59   :  { %v22551_v58 = vadd.f32 %v22550_v44, %v17605_v23 }
 0xb5b   :  { %22437 = vmatmul.mubr.msk.f32.vlgmr.msra.gmra.mrb[188].mxu0 %vm193_vm13, %v22551_v58 }
 0xc2e   :  { %v17696_v24 = vpop.f32.mrb[188].mxu0 }
 0xc2f   :  { %v17697_v26 = vadd.f32 %v21089_v50, %v17696_v24  ;;  %v22438_v15 = vpop.f32.mrb[189].mxu0 }
 0xc31   :  { %17701 = vst.msk [vmem:[#allocation5] sm:$0x3] %vm17700_vm6, %v17697_v26 }
 0xc32   :  { %23830 = shalt.err (!%p23827_p4)
}
 0xc33   :  { %s23831_s29 = scalar_lea.hbm %s30813_s8, 32 }
 0xc34   :  { %p23832_p5 = scmp.ne.s32.totalorder %s30813_s8, %s23831_s29  ;;  %p23835_p6 = scmp.lt.u32.totalorder %s23831_s29, %s30813_s8 }
 0xc36   :  { %p23837_p7 = pnand %p23835_p6, %p23832_p5 }
 0xc38   :  { %23840 = shalt.err (!%p23837_p7)
}
 0xc39   :  { %17711 = dma.vmem_to_hbm [thread:$0]  %s17709_s26, 32, %s30813_s8, [#allocation6]  }
 0xc3a   :  { %23841 = dma.done.wait [#allocation6], 32  }
 0xc3b   :  { %23842 = vsyncadd [#allocation6], 4294967264 }
 0xc3c   :  { %17715 = vsyncpa [#allocation6], 1 }

</bundles_post_ra>
